<compile_context>
chip_gen: v6e
topology: v6e:2x2x1
jax: 0.10.0
libtpu: 0.0.40
codegen_flags: <defaults>
</compile_context>

<pallas_src>
import numpy as np
import jax
import jax.numpy as jnp
from jax.experimental import pallas as pl
from jax.experimental.pallas import tpu as pltpu

# ----------------------------- architecture constants -----------------------------
_IN_CH = 3
_CHS = (32, 64, 128)
_KS = (4, 3, 4)
_STR = (3, 2, 2)
_PAD = 3
_NUM_CLASSES = 10
_IMG = 32                      # 32x32 input -> 1x1 spatial after conv3+pool (matches Linear(128, 10))
_BN_EPS = 1e-5
_COMPUTE_DTYPE = jnp.bfloat16  # operand dtype of the big weight matmuls (f32 accumulation)
_NCLS_PAD = 128                # lane-dense logits store (classes padded to 128)
_TB_DEFAULT = 8                # images per grid step


def _conv_out(n, k, s, p):
    return (n + 2 * p - k) // s + 1


def _round8(n):
    return ((n + 7) // 8) * 8


_H1 = _conv_out(_IMG, _KS[0], _STR[0], _PAD)   # 12
_P1 = _H1 // 2                                 # 6
_H2 = _conv_out(_P1, _KS[1], _STR[1], _PAD)    # 5
_P2 = _H2 // 2                                 # 2
_H3 = _conv_out(_P2, _KS[2], _STR[2], _PAD)    # 3
_P3 = _H3 // 2                                 # 1
assert _P3 == 1, "Linear(128, num_classes) expects a 1x1 final spatial map"

# Rows per pooling-parity group, padded to a multiple of 8 for sublane alignment.
_G1 = _round8(_P1 * _P1)        # 40
_G2 = _round8(_P2 * _P2)        # 8
_G3 = _round8(_P3 * _P3)        # 8
_K1 = _KS[0] * _KS[0] * _IN_CH  # 48
_T2 = _KS[1] * _KS[1]           # 9  taps of conv2
_T3 = _KS[2] * _KS[2]           # 16 taps of conv3


# ---------------------- selection matrices (gather-as-matmul) ----------------------

def _build_selection(in_hw, in_rows, k, stride, pad, pool_hw, group_rows):
    """0/1 matrices S[t] of shape (4*group_rows, in_rows), t = ki*k + kj.

    Row r = g*group_rows + pi*pw + pj encodes conv-output position
    (oi, oj) = (2*pi + u, 2*pj + v) with pooling-parity group g = 2*u + v.
    S[t][r, p] = 1 iff kernel tap (ki, kj) of that output position reads the real
    (non-padding) input spatial position with raster index p.  Rows/columns that
    belong to zero padding or to dummy alignment slots stay all-zero, so the
    selection matmul implements both the im2col gather and the zero padding.
    """
    hin, win = in_hw
    ph, pw = pool_hw
    sel = np.zeros((k * k, 4 * group_rows, in_rows), np.float32)
    for ki in range(k):
        for kj in range(k):
            t = ki * k + kj
            for u in range(2):
                for v in range(2):
                    g = 2 * u + v
                    for pi in range(ph):
                        for pj in range(pw):
                            r = g * group_rows + pi * pw + pj
                            a = stride * (2 * pi + u) + ki - pad
                            b = stride * (2 * pj + v) + kj - pad
                            if 0 <= a < hin and 0 <= b < win:
                                sel[t, r, a * win + b] = 1.0
    return sel


_SEL2 = _build_selection((_P1, _P1), _G1, _KS[1], _STR[1], _PAD, (_P2, _P2), _G2)  # (9, 32, 40)
_SEL3 = _build_selection((_P2, _P2), _G2, _KS[2], _STR[2], _PAD, (_P3, _P3), _G3)  # (16, 32, 8)

# Dummy-row invariants (review correctness concern): padded/dummy source rows may hold
# relu(bias) garbage, so the selection columns addressing them MUST be all-zero.
assert not _SEL2[:, :, _P1 * _P1:].any(), "sel2 must ignore dummy rows of the stage-1 output"
assert not _SEL3[:, :, _P2 * _P2:].any(), "sel3 must ignore dummy rows of the stage-2 output"

# Taps fused along K: column block t of the concatenated selection matrix addresses
# row block t of the rearranged (per-tap) weight-matmul output.
_S2_CAT = _SEL2.transpose(1, 0, 2).reshape(4 * _G2, _T2 * _G1)   # (32, 360)
_S3_CAT = _SEL3.transpose(1, 0, 2).reshape(4 * _G3, _T3 * _G2)   # (32, 128)


# ---------------------------------- Pallas kernel ----------------------------------

def _make_cnn_kernel(tb):
    """Fused CNN_ forward for `tb` images per grid step; intermediates stay in VMEM."""
    c1, c2, c3 = _CHS

    def kernel(p1_ref, w1_ref, b1_ref, s2_ref, w2_ref, b2_ref,
               s3_ref, w3_ref, b3_ref, wfc_ref, bfc_ref, o_ref):
        f32 = jnp.float32
        cdt = _COMPUTE_DTYPE

        def pool4(y, g):
            # 2x2 max-pool: rows are pre-grouped by pool parity into 4 contiguous,
            # sublane-aligned blocks of `g` rows -> elementwise max of 4 static slices.
            return jnp.maximum(jnp.maximum(y[0:g], y[g:2 * g]),
                               jnp.maximum(y[2 * g:3 * g], y[3 * g:4 * g]))

        # ---- stage 1: conv1 (im2col matmul, BN scale folded into w1) + bias + ReLU + pool ----
        a1 = jnp.dot(p1_ref[...], w1_ref[...], preferred_element_type=f32)      # (tb*4*G1, 32)
        y1 = jnp.maximum(a1 + b1_ref[...], 0.0)
        x1 = jnp.concatenate(
            [pool4(y1[i * 4 * _G1:(i + 1) * 4 * _G1], _G1) for i in range(tb)],
            axis=0).astype(cdt)                                                 # (tb*G1, 32)

        # ---- stage 2: weights-first conv2 (taps fused along N) -> one selection matmul
        #      (taps fused along K, images stacked along lanes) -> bias + ReLU + pool ----
        z2 = jnp.dot(x1, w2_ref[...], preferred_element_type=f32)               # (tb*G1, 9*64)
        r2 = jnp.concatenate(
            [jnp.concatenate([z2[i * _G1:(i + 1) * _G1, t * c2:(t + 1) * c2]
                              for t in range(_T2)], axis=0)
             for i in range(tb)], axis=1)                                       # (9*G1, tb*64)
        o2 = jnp.dot(s2_ref[...], r2, preferred_element_type=f32)               # (32, tb*64)
        y2 = jnp.maximum(o2 + b2_ref[...], 0.0)
        x2w = pool4(y2, _G2)                                                    # (8, tb*64)
        x2 = jnp.concatenate([x2w[:, i * c2:(i + 1) * c2] for i in range(tb)],
                             axis=0).astype(cdt)                                # (tb*8, 64)

        # ---- stage 3: same scheme ----
        z3 = jnp.dot(x2, w3_ref[...], preferred_element_type=f32)               # (tb*8, 16*128)
        r3 = jnp.concatenate(
            [jnp.concatenate([z3[i * _G2:(i + 1) * _G2, t * c3:(t + 1) * c3]
                              for t in range(_T3)], axis=0)
             for i in range(tb)], axis=1)                                       # (128, tb*128)
        o3 = jnp.dot(s3_ref[...], r3, preferred_element_type=f32)               # (32, tb*128)
        y3 = jnp.maximum(o3 + b3_ref[...], 0.0)
        x3w = pool4(y3, _G3)                                                    # (8, tb*128); row 0 real

        # ---- FC (Dropout(0.5) is identity at inference), lane-dense (tb, 128) store ----
        feat = jnp.concatenate([x3w[0:1, i * c3:(i + 1) * c3] for i in range(tb)],
                               axis=0)                                          # (tb, 128)
        logits = jnp.dot(feat, wfc_ref[...], preferred_element_type=f32) + bfc_ref[...]
        o_ref[...] = logits                                                     # (tb, 128)

    return kernel


# ---------------------------------- wrapper glue -----------------------------------

def _stage1_patches(x_nhwc):
    """(B, H, W, Cin) -> (B, 4*G1, kh*kw*Cin) conv1 im2col patches, rows grouped by
    2x2-pool parity (group g = 2*u + v, then pooled-position raster (pi, pj)),
    zero-padded to G1 rows per group for sublane alignment."""
    bsz = x_nhwc.shape[0]
    k, s = _KS[0], _STR[0]
    n = 2 * _P1                                   # conv-output rows/cols the pool consumes
    xp = jnp.pad(x_nhwc, ((0, 0), (_PAD, _PAD), (_PAD, _PAD), (0, 0)))
    cols = []
    for ki in range(k):
        for kj in range(k):
            cols.append(xp[:, ki:ki + s * (n - 1) + 1:s, kj:kj + s * (n - 1) + 1:s, :])
    pats = jnp.stack(cols, axis=3)                           # (B, n, n, k*k, Cin)
    pats = pats.reshape(bsz, n, n, _K1)
    pats = pats.reshape(bsz, _P1, 2, _P1, 2, _K1)            # oi = 2*pi + u, oj = 2*pj + v
    pats = pats.transpose(0, 2, 4, 1, 3, 5)                  # (B, u, v, pi, pj, K)
    pats = pats.reshape(bsz, 4, _P1 * _P1, _K1)
    pats = jnp.pad(pats, ((0, 0), (0, 0), (0, _G1 - _P1 * _P1), (0, 0)))
    return pats.reshape(bsz, 4 * _G1, _K1).astype(_COMPUTE_DTYPE)


def _fold_bn(p):
    """Eval-mode BatchNorm folded to per-channel (scale, bias); scale is later folded
    into the conv weights, bias (including the conv bias) stays a kernel-side add."""
    inv = p["gamma"] / jnp.sqrt(p["var"] + _BN_EPS)
    bias = p["beta"] + inv * (p["b"] - p["mean"])
    return inv.astype(jnp.float32), bias.astype(jnp.float32)


def cnn_forward(x_nchw, params, tb=_TB_DEFAULT):
    bsz = x_nchw.shape[0]
    n_steps = -(-bsz // tb)
    b_pad = n_steps * tb

    x = jnp.transpose(x_nchw, (0, 2, 3, 1)).astype(jnp.float32)      # NCHW -> NHWC
    if b_pad != bsz:
        x = jnp.pad(x, ((0, b_pad - bsz), (0, 0), (0, 0), (0, 0)))

    # conv1 im2col stays in XLA (its operand is the HBM input anyway).
    p1 = _stage1_patches(x).reshape(b_pad * 4 * _G1, _K1)            # (B_pad*160, 48) bf16

    c1, c2, c3 = params["conv1"], params["conv2"], params["conv3"]
    s1, bb1 = _fold_bn(c1)
    s2, bb2 = _fold_bn(c2)
    s3, bb3 = _fold_bn(c3)

    # BN scale folded into the conv weights (in f32, then cast once to the MXU dtype).
    w1 = (jnp.transpose(c1["w"], (2, 3, 1, 0)).reshape(_K1, _CHS[0])
          * s1[None, :]).astype(_COMPUTE_DTYPE)                      # (48, 32)
    w2t = jnp.transpose(c2["w"], (2, 3, 1, 0)).reshape(_T2, _CHS[0], _CHS[1]) * s2[None, None, :]
    w2cat = jnp.transpose(w2t, (1, 0, 2)).reshape(_CHS[0], _T2 * _CHS[1]).astype(_COMPUTE_DTYPE)
    w3t = jnp.transpose(c3["w"], (2, 3, 1, 0)).reshape(_T3, _CHS[1], _CHS[2]) * s3[None, None, :]
    w3cat = jnp.transpose(w3t, (1, 0, 2)).reshape(_CHS[1], _T3 * _CHS[2]).astype(_COMPUTE_DTYPE)

    b1 = bb1.reshape(1, _CHS[0])                                     # (1, 32)
    b2w = jnp.tile(bb2.reshape(1, _CHS[1]), (1, tb))                 # (1, tb*64)  images on lanes
    b3w = jnp.tile(bb3.reshape(1, _CHS[2]), (1, tb))                 # (1, tb*128)

    wfc = jnp.pad(params["fc"]["w"].astype(jnp.float32),
                  ((0, 0), (0, _NCLS_PAD - _NUM_CLASSES)))           # (128, 128) lane-dense
    bfc = jnp.pad(params["fc"]["b"].astype(jnp.float32).reshape(1, -1),
                  ((0, 0), (0, _NCLS_PAD - _NUM_CLASSES)))           # (1, 128)

    s2cat = jnp.asarray(_S2_CAT, jnp.float32)                        # (32, 360)
    s3cat = jnp.asarray(_S3_CAT, jnp.float32)                        # (32, 128)

    operands = (p1, w1, b1, s2cat, w2cat, b2w, s3cat, w3cat, b3w, wfc, bfc)

    def full_spec(shape):
        zeros = (0,) * len(shape)
        return pl.BlockSpec(shape, lambda b, _z=zeros: _z)           # constant -> VMEM-resident

    in_specs = [pl.BlockSpec((tb * 4 * _G1, _K1), lambda b: (b, 0))]
    in_specs += [full_spec(op.shape) for op in operands[1:]]

    flops_per_step = 2 * (
        (tb * 4 * _G1) * _K1 * _CHS[0]
        + (tb * _G1) * _CHS[0] * (_T2 * _CHS[1])
        + (4 * _G2) * (_T2 * _G1) * (tb * _CHS[1])
        + (tb * _G2) * _CHS[1] * (_T3 * _CHS[2])
        + (4 * _G3) * (_T3 * _G2) * (tb * _CHS[2])
        + tb * _CHS[2] * _NCLS_PAD)
    bytes_accessed = int(sum(op.size * op.dtype.itemsize for op in operands)
                         + b_pad * _NCLS_PAD * 4)

    out = pl.pallas_call(
        _make_cnn_kernel(tb),
        out_shape=jax.ShapeDtypeStruct((b_pad, _NCLS_PAD), jnp.float32),
        grid=(n_steps,),
        in_specs=in_specs,
        out_specs=pl.BlockSpec((tb, _NCLS_PAD), lambda b: (b, 0)),
        compiler_params=pltpu.CompilerParams(dimension_semantics=("parallel",)),
        cost_estimate=pl.CostEstimate(flops=int(n_steps * flops_per_step),
                                      transcendentals=0,
                                      bytes_accessed=bytes_accessed),
    )(*operands)
    return out[:bsz, :_NUM_CLASSES]


# ---------------------------------- params & reference -----------------------------

def init_params(key):
    params = {}
    cin = _IN_CH
    for idx, cout in enumerate(_CHS):
        k = _KS[idx]
        key, kw_, kb_ = jax.random.split(key, 3)
        params[f"conv{idx + 1}"] = dict(
            w=jax.random.normal(kw_, (cout, cin, k, k), jnp.float32) * 0.1,
            b=jax.random.normal(kb_, (cout,), jnp.float32) * 0.1,
            gamma=jnp.ones((cout,), jnp.float32),
            beta=jnp.zeros((cout,), jnp.float32),
            mean=jnp.zeros((cout,), jnp.float32),   # BN running_mean (eval mode)
            var=jnp.ones((cout,), jnp.float32),     # BN running_var  (eval mode)
        )
        cin = cout
    key, kw_, kb_ = jax.random.split(key, 3)
    params["fc"] = dict(
        w=jax.random.normal(kw_, (_CHS[-1], _NUM_CLASSES), jnp.float32) * 0.1,
        b=jax.random.normal(kb_, (_NUM_CLASSES,), jnp.float32) * 0.1,
    )
    return params


def reference_forward(x_nchw, params):
    """Pure-JAX (XLA) reference of the PyTorch module in eval mode."""
    x = jnp.transpose(x_nchw, (0, 2, 3, 1)).astype(jnp.float32)
    for idx in range(3):
        p = params[f"conv{idx + 1}"]
        s = _STR[idx]
        y = jax.lax.conv_general_dilated(
            x, jnp.transpose(p["w"], (2, 3, 1, 0)),
            window_strides=(s, s), padding=[(_PAD, _PAD), (_PAD, _PAD)],
            dimension_numbers=("NHWC", "HWIO", "NHWC"),
            precision=jax.lax.Precision.HIGHEST) + p["b"]
        inv = p["gamma"] / jnp.sqrt(p["var"] + _BN_EPS)
        y = (y - p["mean"]) * inv + p["beta"]
        y = jnp.maximum(y, 0.0)
        bsz, h, w, c = y.shape
        ph, pw = h // 2, w // 2
        x = y[:, :2 * ph, :2 * pw, :].reshape(bsz, ph, 2, pw, 2, c).max(axis=(2, 4))
    feat = x.reshape(x.shape[0], -1)
    return feat @ params["fc"]["w"] + params["fc"]["b"]


if __name__ == "__main__":
    key = jax.random.PRNGKey(0)
    key, kx = jax.random.split(key)
    # 32x32 input makes the conv stack end at 1x1 spatial, matching Linear(128, 10).
    # B=16 with TB=8 gives a grid of length 2 (exercises batching + both v7x cores).
    bsz = 16
    x = jax.random.normal(kx, (bsz, _IN_CH, _IMG, _IMG), jnp.float32)
    params = init_params(key)

    out = jax.block_until_ready(jax.jit(cnn_forward)(x, params))
    assert out.shape == (bsz, _NUM_CLASSES), out.shape

    ref = jax.block_until_ready(jax.jit(reference_forward)(x, params))
    max_err = float(jnp.max(jnp.abs(out - ref)))
    tol = 5e-2 * (float(jnp.max(jnp.abs(ref))) + 1.0)   # loose: bf16 MXU operands
    assert max_err <= tol, f"pallas vs reference mismatch: {max_err:.4f} > {tol:.4f}"
    print("KERNEL_OK")
</pallas_src>

<mosaic_0001>
module attributes {stable_mosaic.version = 11 : i64} {
  func.func @kernel(%arg0: i32, %arg1: memref<1280x48xbf16, #tpu.memory_space<vmem>>, %arg2: memref<48x32xbf16, #tpu.memory_space<vmem>>, %arg3: memref<1x32xf32, #tpu.memory_space<vmem>>, %arg4: memref<32x360xf32, #tpu.memory_space<vmem>>, %arg5: memref<32x576xbf16, #tpu.memory_space<vmem>>, %arg6: memref<1x512xf32, #tpu.memory_space<vmem>>, %arg7: memref<32x128xf32, #tpu.memory_space<vmem>>, %arg8: memref<64x2048xbf16, #tpu.memory_space<vmem>>, %arg9: memref<1x1024xf32, #tpu.memory_space<vmem>>, %arg10: memref<128x128xf32, #tpu.memory_space<vmem>>, %arg11: memref<1x128xf32, #tpu.memory_space<vmem>>, %arg12: memref<8x128xf32, #tpu.memory_space<vmem>>) attributes {dimension_semantics = [#tpu.dimension_semantics<parallel>], iteration_bounds = array<i64: 2>, scalar_prefetch = 0 : i64, scratch_operands = 0 : i64, tpu.core_type = #tpu.core_type<tc>, window_params = [{transform_indices = @transform_0, window_bounds = array<i64: 1280, 48>}, {pipeline_mode = #tpu.pipeline_mode<synchronous>, transform_indices = @transform_1, window_bounds = array<i64: 48, 32>}, {pipeline_mode = #tpu.pipeline_mode<synchronous>, transform_indices = @transform_2, window_bounds = array<i64: 1, 32>}, {pipeline_mode = #tpu.pipeline_mode<synchronous>, transform_indices = @transform_3, window_bounds = array<i64: 32, 360>}, {pipeline_mode = #tpu.pipeline_mode<synchronous>, transform_indices = @transform_4, window_bounds = array<i64: 32, 576>}, {pipeline_mode = #tpu.pipeline_mode<synchronous>, transform_indices = @transform_5, window_bounds = array<i64: 1, 512>}, {pipeline_mode = #tpu.pipeline_mode<synchronous>, transform_indices = @transform_6, window_bounds = array<i64: 32, 128>}, {pipeline_mode = #tpu.pipeline_mode<synchronous>, transform_indices = @transform_7, window_bounds = array<i64: 64, 2048>}, {pipeline_mode = #tpu.pipeline_mode<synchronous>, transform_indices = @transform_8, window_bounds = array<i64: 1, 1024>}, {pipeline_mode = #tpu.pipeline_mode<synchronous>, transform_indices = @transform_9, window_bounds = array<i64: 128, 128>}, {pipeline_mode = #tpu.pipeline_mode<synchronous>, transform_indices = @transform_10, window_bounds = array<i64: 1, 128>}, {transform_indices = @transform_11, window_bounds = array<i64: 8, 128>}]} {
    %c0 = arith.constant 0 : index
    %c0_0 = arith.constant 0 : index
    %0 = vector.load %arg1[%c0, %c0_0] : memref<1280x48xbf16, #tpu.memory_space<vmem>>, vector<1280x48xbf16>
    %c0_1 = arith.constant 0 : index
    %c0_2 = arith.constant 0 : index
    %1 = vector.load %arg2[%c0_1, %c0_2] : memref<48x32xbf16, #tpu.memory_space<vmem>>, vector<48x32xbf16>
    %cst = arith.constant dense<0.000000e+00> : vector<1280x32xf32>
    %2 = tpu.matmul %0, %1, %cst {dimension_numbers = #tpu.dot_dimension_numbers<[1], [0], [0], [1], [0, 0, 1, 1], [], []>} : vector<1280x48xbf16>, vector<48x32xbf16>, vector<1280x32xf32> -> vector<1280x32xf32>
    %c0_3 = arith.constant 0 : index
    %c0_4 = arith.constant 0 : index
    %3 = vector.load %arg3[%c0_3, %c0_4] : memref<1x32xf32, #tpu.memory_space<vmem>>, vector<1x32xf32>
    %4 = vector.broadcast %3 : vector<1x32xf32> to vector<1280x32xf32>
    %5 = arith.addf %2, %4 : vector<1280x32xf32>
    %cst_5 = arith.constant 0.000000e+00 : f32
    %6 = vector.broadcast %cst_5 : f32 to vector<1280x32xf32>
    %7 = arith.maximumf %5, %6 : vector<1280x32xf32>
    %8 = vector.extract_strided_slice %7 {offsets = [0, 0], sizes = [160, 32], strides = [1, 1]} : vector<1280x32xf32> to vector<160x32xf32>
    %9 = vector.extract_strided_slice %8 {offsets = [0, 0], sizes = [40, 32], strides = [1, 1]} : vector<160x32xf32> to vector<40x32xf32>
    %10 = vector.extract_strided_slice %8 {offsets = [40, 0], sizes = [40, 32], strides = [1, 1]} : vector<160x32xf32> to vector<40x32xf32>
    %11 = arith.maximumf %9, %10 : vector<40x32xf32>
    %12 = vector.extract_strided_slice %8 {offsets = [80, 0], sizes = [40, 32], strides = [1, 1]} : vector<160x32xf32> to vector<40x32xf32>
    %13 = vector.extract_strided_slice %8 {offsets = [120, 0], sizes = [40, 32], strides = [1, 1]} : vector<160x32xf32> to vector<40x32xf32>
    %14 = arith.maximumf %12, %13 : vector<40x32xf32>
    %15 = arith.maximumf %11, %14 : vector<40x32xf32>
    %16 = vector.extract_strided_slice %7 {offsets = [160, 0], sizes = [160, 32], strides = [1, 1]} : vector<1280x32xf32> to vector<160x32xf32>
    %17 = vector.extract_strided_slice %16 {offsets = [0, 0], sizes = [40, 32], strides = [1, 1]} : vector<160x32xf32> to vector<40x32xf32>
    %18 = vector.extract_strided_slice %16 {offsets = [40, 0], sizes = [40, 32], strides = [1, 1]} : vector<160x32xf32> to vector<40x32xf32>
    %19 = arith.maximumf %17, %18 : vector<40x32xf32>
    %20 = vector.extract_strided_slice %16 {offsets = [80, 0], sizes = [40, 32], strides = [1, 1]} : vector<160x32xf32> to vector<40x32xf32>
    %21 = vector.extract_strided_slice %16 {offsets = [120, 0], sizes = [40, 32], strides = [1, 1]} : vector<160x32xf32> to vector<40x32xf32>
    %22 = arith.maximumf %20, %21 : vector<40x32xf32>
    %23 = arith.maximumf %19, %22 : vector<40x32xf32>
    %24 = vector.extract_strided_slice %7 {offsets = [320, 0], sizes = [160, 32], strides = [1, 1]} : vector<1280x32xf32> to vector<160x32xf32>
    %25 = vector.extract_strided_slice %24 {offsets = [0, 0], sizes = [40, 32], strides = [1, 1]} : vector<160x32xf32> to vector<40x32xf32>
    %26 = vector.extract_strided_slice %24 {offsets = [40, 0], sizes = [40, 32], strides = [1, 1]} : vector<160x32xf32> to vector<40x32xf32>
    %27 = arith.maximumf %25, %26 : vector<40x32xf32>
    %28 = vector.extract_strided_slice %24 {offsets = [80, 0], sizes = [40, 32], strides = [1, 1]} : vector<160x32xf32> to vector<40x32xf32>
    %29 = vector.extract_strided_slice %24 {offsets = [120, 0], sizes = [40, 32], strides = [1, 1]} : vector<160x32xf32> to vector<40x32xf32>
    %30 = arith.maximumf %28, %29 : vector<40x32xf32>
    %31 = arith.maximumf %27, %30 : vector<40x32xf32>
    %32 = vector.extract_strided_slice %7 {offsets = [480, 0], sizes = [160, 32], strides = [1, 1]} : vector<1280x32xf32> to vector<160x32xf32>
    %33 = vector.extract_strided_slice %32 {offsets = [0, 0], sizes = [40, 32], strides = [1, 1]} : vector<160x32xf32> to vector<40x32xf32>
    %34 = vector.extract_strided_slice %32 {offsets = [40, 0], sizes = [40, 32], strides = [1, 1]} : vector<160x32xf32> to vector<40x32xf32>
    %35 = arith.maximumf %33, %34 : vector<40x32xf32>
    %36 = vector.extract_strided_slice %32 {offsets = [80, 0], sizes = [40, 32], strides = [1, 1]} : vector<160x32xf32> to vector<40x32xf32>
    %37 = vector.extract_strided_slice %32 {offsets = [120, 0], sizes = [40, 32], strides = [1, 1]} : vector<160x32xf32> to vector<40x32xf32>
    %38 = arith.maximumf %36, %37 : vector<40x32xf32>
    %39 = arith.maximumf %35, %38 : vector<40x32xf32>
    %40 = vector.extract_strided_slice %7 {offsets = [640, 0], sizes = [160, 32], strides = [1, 1]} : vector<1280x32xf32> to vector<160x32xf32>
    %41 = vector.extract_strided_slice %40 {offsets = [0, 0], sizes = [40, 32], strides = [1, 1]} : vector<160x32xf32> to vector<40x32xf32>
    %42 = vector.extract_strided_slice %40 {offsets = [40, 0], sizes = [40, 32], strides = [1, 1]} : vector<160x32xf32> to vector<40x32xf32>
    %43 = arith.maximumf %41, %42 : vector<40x32xf32>
    %44 = vector.extract_strided_slice %40 {offsets = [80, 0], sizes = [40, 32], strides = [1, 1]} : vector<160x32xf32> to vector<40x32xf32>
    %45 = vector.extract_strided_slice %40 {offsets = [120, 0], sizes = [40, 32], strides = [1, 1]} : vector<160x32xf32> to vector<40x32xf32>
    %46 = arith.maximumf %44, %45 : vector<40x32xf32>
    %47 = arith.maximumf %43, %46 : vector<40x32xf32>
    %48 = vector.extract_strided_slice %7 {offsets = [800, 0], sizes = [160, 32], strides = [1, 1]} : vector<1280x32xf32> to vector<160x32xf32>
    %49 = vector.extract_strided_slice %48 {offsets = [0, 0], sizes = [40, 32], strides = [1, 1]} : vector<160x32xf32> to vector<40x32xf32>
    %50 = vector.extract_strided_slice %48 {offsets = [40, 0], sizes = [40, 32], strides = [1, 1]} : vector<160x32xf32> to vector<40x32xf32>
    %51 = arith.maximumf %49, %50 : vector<40x32xf32>
    %52 = vector.extract_strided_slice %48 {offsets = [80, 0], sizes = [40, 32], strides = [1, 1]} : vector<160x32xf32> to vector<40x32xf32>
    %53 = vector.extract_strided_slice %48 {offsets = [120, 0], sizes = [40, 32], strides = [1, 1]} : vector<160x32xf32> to vector<40x32xf32>
    %54 = arith.maximumf %52, %53 : vector<40x32xf32>
    %55 = arith.maximumf %51, %54 : vector<40x32xf32>
    %56 = vector.extract_strided_slice %7 {offsets = [960, 0], sizes = [160, 32], strides = [1, 1]} : vector<1280x32xf32> to vector<160x32xf32>
    %57 = vector.extract_strided_slice %56 {offsets = [0, 0], sizes = [40, 32], strides = [1, 1]} : vector<160x32xf32> to vector<40x32xf32>
    %58 = vector.extract_strided_slice %56 {offsets = [40, 0], sizes = [40, 32], strides = [1, 1]} : vector<160x32xf32> to vector<40x32xf32>
    %59 = arith.maximumf %57, %58 : vector<40x32xf32>
    %60 = vector.extract_strided_slice %56 {offsets = [80, 0], sizes = [40, 32], strides = [1, 1]} : vector<160x32xf32> to vector<40x32xf32>
    %61 = vector.extract_strided_slice %56 {offsets = [120, 0], sizes = [40, 32], strides = [1, 1]} : vector<160x32xf32> to vector<40x32xf32>
    %62 = arith.maximumf %60, %61 : vector<40x32xf32>
    %63 = arith.maximumf %59, %62 : vector<40x32xf32>
    %64 = vector.extract_strided_slice %7 {offsets = [1120, 0], sizes = [160, 32], strides = [1, 1]} : vector<1280x32xf32> to vector<160x32xf32>
    %65 = vector.extract_strided_slice %64 {offsets = [0, 0], sizes = [40, 32], strides = [1, 1]} : vector<160x32xf32> to vector<40x32xf32>
    %66 = vector.extract_strided_slice %64 {offsets = [40, 0], sizes = [40, 32], strides = [1, 1]} : vector<160x32xf32> to vector<40x32xf32>
    %67 = arith.maximumf %65, %66 : vector<40x32xf32>
    %68 = vector.extract_strided_slice %64 {offsets = [80, 0], sizes = [40, 32], strides = [1, 1]} : vector<160x32xf32> to vector<40x32xf32>
    %69 = vector.extract_strided_slice %64 {offsets = [120, 0], sizes = [40, 32], strides = [1, 1]} : vector<160x32xf32> to vector<40x32xf32>
    %70 = arith.maximumf %68, %69 : vector<40x32xf32>
    %71 = arith.maximumf %67, %70 : vector<40x32xf32>
    %72 = tpu.concatenate %15, %23, %31, %39, %47, %55, %63, %71 in 0 : vector<40x32xf32>, vector<40x32xf32>, vector<40x32xf32>, vector<40x32xf32>, vector<40x32xf32>, vector<40x32xf32>, vector<40x32xf32>, vector<40x32xf32> -> vector<320x32xf32>
    %73 = arith.truncf %72 : vector<320x32xf32> to vector<320x32xbf16>
    %c0_6 = arith.constant 0 : index
    %c0_7 = arith.constant 0 : index
    %74 = vector.load %arg5[%c0_6, %c0_7] : memref<32x576xbf16, #tpu.memory_space<vmem>>, vector<32x576xbf16>
    %cst_8 = arith.constant dense<0.000000e+00> : vector<320x576xf32>
    %75 = tpu.matmul %73, %74, %cst_8 {dimension_numbers = #tpu.dot_dimension_numbers<[1], [0], [0], [1], [0, 0, 1, 1], [], []>} : vector<320x32xbf16>, vector<32x576xbf16>, vector<320x576xf32> -> vector<320x576xf32>
    %76 = vector.extract_strided_slice %75 {offsets = [0, 0], sizes = [40, 64], strides = [1, 1]} : vector<320x576xf32> to vector<40x64xf32>
    %77 = vector.extract_strided_slice %75 {offsets = [0, 64], sizes = [40, 64], strides = [1, 1]} : vector<320x576xf32> to vector<40x64xf32>
    %78 = vector.extract_strided_slice %75 {offsets = [0, 128], sizes = [40, 64], strides = [1, 1]} : vector<320x576xf32> to vector<40x64xf32>
    %79 = vector.extract_strided_slice %75 {offsets = [0, 192], sizes = [40, 64], strides = [1, 1]} : vector<320x576xf32> to vector<40x64xf32>
    %80 = vector.extract_strided_slice %75 {offsets = [0, 256], sizes = [40, 64], strides = [1, 1]} : vector<320x576xf32> to vector<40x64xf32>
    %81 = vector.extract_strided_slice %75 {offsets = [0, 320], sizes = [40, 64], strides = [1, 1]} : vector<320x576xf32> to vector<40x64xf32>
    %82 = vector.extract_strided_slice %75 {offsets = [0, 384], sizes = [40, 64], strides = [1, 1]} : vector<320x576xf32> to vector<40x64xf32>
    %83 = vector.extract_strided_slice %75 {offsets = [0, 448], sizes = [40, 64], strides = [1, 1]} : vector<320x576xf32> to vector<40x64xf32>
    %84 = vector.extract_strided_slice %75 {offsets = [0, 512], sizes = [40, 64], strides = [1, 1]} : vector<320x576xf32> to vector<40x64xf32>
    %85 = tpu.concatenate %76, %77, %78, %79, %80, %81, %82, %83, %84 in 0 : vector<40x64xf32>, vector<40x64xf32>, vector<40x64xf32>, vector<40x64xf32>, vector<40x64xf32>, vector<40x64xf32>, vector<40x64xf32>, vector<40x64xf32>, vector<40x64xf32> -> vector<360x64xf32>
    %86 = vector.extract_strided_slice %75 {offsets = [40, 0], sizes = [40, 64], strides = [1, 1]} : vector<320x576xf32> to vector<40x64xf32>
    %87 = vector.extract_strided_slice %75 {offsets = [40, 64], sizes = [40, 64], strides = [1, 1]} : vector<320x576xf32> to vector<40x64xf32>
    %88 = vector.extract_strided_slice %75 {offsets = [40, 128], sizes = [40, 64], strides = [1, 1]} : vector<320x576xf32> to vector<40x64xf32>
    %89 = vector.extract_strided_slice %75 {offsets = [40, 192], sizes = [40, 64], strides = [1, 1]} : vector<320x576xf32> to vector<40x64xf32>
    %90 = vector.extract_strided_slice %75 {offsets = [40, 256], sizes = [40, 64], strides = [1, 1]} : vector<320x576xf32> to vector<40x64xf32>
    %91 = vector.extract_strided_slice %75 {offsets = [40, 320], sizes = [40, 64], strides = [1, 1]} : vector<320x576xf32> to vector<40x64xf32>
    %92 = vector.extract_strided_slice %75 {offsets = [40, 384], sizes = [40, 64], strides = [1, 1]} : vector<320x576xf32> to vector<40x64xf32>
    %93 = vector.extract_strided_slice %75 {offsets = [40, 448], sizes = [40, 64], strides = [1, 1]} : vector<320x576xf32> to vector<40x64xf32>
    %94 = vector.extract_strided_slice %75 {offsets = [40, 512], sizes = [40, 64], strides = [1, 1]} : vector<320x576xf32> to vector<40x64xf32>
    %95 = tpu.concatenate %86, %87, %88, %89, %90, %91, %92, %93, %94 in 0 : vector<40x64xf32>, vector<40x64xf32>, vector<40x64xf32>, vector<40x64xf32>, vector<40x64xf32>, vector<40x64xf32>, vector<40x64xf32>, vector<40x64xf32>, vector<40x64xf32> -> vector<360x64xf32>
    %96 = vector.extract_strided_slice %75 {offsets = [80, 0], sizes = [40, 64], strides = [1, 1]} : vector<320x576xf32> to vector<40x64xf32>
    %97 = vector.extract_strided_slice %75 {offsets = [80, 64], sizes = [40, 64], strides = [1, 1]} : vector<320x576xf32> to vector<40x64xf32>
    %98 = vector.extract_strided_slice %75 {offsets = [80, 128], sizes = [40, 64], strides = [1, 1]} : vector<320x576xf32> to vector<40x64xf32>
    %99 = vector.extract_strided_slice %75 {offsets = [80, 192], sizes = [40, 64], strides = [1, 1]} : vector<320x576xf32> to vector<40x64xf32>
    %100 = vector.extract_strided_slice %75 {offsets = [80, 256], sizes = [40, 64], strides = [1, 1]} : vector<320x576xf32> to vector<40x64xf32>
    %101 = vector.extract_strided_slice %75 {offsets = [80, 320], sizes = [40, 64], strides = [1, 1]} : vector<320x576xf32> to vector<40x64xf32>
    %102 = vector.extract_strided_slice %75 {offsets = [80, 384], sizes = [40, 64], strides = [1, 1]} : vector<320x576xf32> to vector<40x64xf32>
    %103 = vector.extract_strided_slice %75 {offsets = [80, 448], sizes = [40, 64], strides = [1, 1]} : vector<320x576xf32> to vector<40x64xf32>
    %104 = vector.extract_strided_slice %75 {offsets = [80, 512], sizes = [40, 64], strides = [1, 1]} : vector<320x576xf32> to vector<40x64xf32>
    %105 = tpu.concatenate %96, %97, %98, %99, %100, %101, %102, %103, %104 in 0 : vector<40x64xf32>, vector<40x64xf32>, vector<40x64xf32>, vector<40x64xf32>, vector<40x64xf32>, vector<40x64xf32>, vector<40x64xf32>, vector<40x64xf32>, vector<40x64xf32> -> vector<360x64xf32>
    %106 = vector.extract_strided_slice %75 {offsets = [120, 0], sizes = [40, 64], strides = [1, 1]} : vector<320x576xf32> to vector<40x64xf32>
    %107 = vector.extract_strided_slice %75 {offsets = [120, 64], sizes = [40, 64], strides = [1, 1]} : vector<320x576xf32> to vector<40x64xf32>
    %108 = vector.extract_strided_slice %75 {offsets = [120, 128], sizes = [40, 64], strides = [1, 1]} : vector<320x576xf32> to vector<40x64xf32>
    %109 = vector.extract_strided_slice %75 {offsets = [120, 192], sizes = [40, 64], strides = [1, 1]} : vector<320x576xf32> to vector<40x64xf32>
    %110 = vector.extract_strided_slice %75 {offsets = [120, 256], sizes = [40, 64], strides = [1, 1]} : vector<320x576xf32> to vector<40x64xf32>
    %111 = vector.extract_strided_slice %75 {offsets = [120, 320], sizes = [40, 64], strides = [1, 1]} : vector<320x576xf32> to vector<40x64xf32>
    %112 = vector.extract_strided_slice %75 {offsets = [120, 384], sizes = [40, 64], strides = [1, 1]} : vector<320x576xf32> to vector<40x64xf32>
    %113 = vector.extract_strided_slice %75 {offsets = [120, 448], sizes = [40, 64], strides = [1, 1]} : vector<320x576xf32> to vector<40x64xf32>
    %114 = vector.extract_strided_slice %75 {offsets = [120, 512], sizes = [40, 64], strides = [1, 1]} : vector<320x576xf32> to vector<40x64xf32>
    %115 = tpu.concatenate %106, %107, %108, %109, %110, %111, %112, %113, %114 in 0 : vector<40x64xf32>, vector<40x64xf32>, vector<40x64xf32>, vector<40x64xf32>, vector<40x64xf32>, vector<40x64xf32>, vector<40x64xf32>, vector<40x64xf32>, vector<40x64xf32> -> vector<360x64xf32>
    %116 = vector.extract_strided_slice %75 {offsets = [160, 0], sizes = [40, 64], strides = [1, 1]} : vector<320x576xf32> to vector<40x64xf32>
    %117 = vector.extract_strided_slice %75 {offsets = [160, 64], sizes = [40, 64], strides = [1, 1]} : vector<320x576xf32> to vector<40x64xf32>
    %118 = vector.extract_strided_slice %75 {offsets = [160, 128], sizes = [40, 64], strides = [1, 1]} : vector<320x576xf32> to vector<40x64xf32>
    %119 = vector.extract_strided_slice %75 {offsets = [160, 192], sizes = [40, 64], strides = [1, 1]} : vector<320x576xf32> to vector<40x64xf32>
    %120 = vector.extract_strided_slice %75 {offsets = [160, 256], sizes = [40, 64], strides = [1, 1]} : vector<320x576xf32> to vector<40x64xf32>
    %121 = vector.extract_strided_slice %75 {offsets = [160, 320], sizes = [40, 64], strides = [1, 1]} : vector<320x576xf32> to vector<40x64xf32>
    %122 = vector.extract_strided_slice %75 {offsets = [160, 384], sizes = [40, 64], strides = [1, 1]} : vector<320x576xf32> to vector<40x64xf32>
    %123 = vector.extract_strided_slice %75 {offsets = [160, 448], sizes = [40, 64], strides = [1, 1]} : vector<320x576xf32> to vector<40x64xf32>
    %124 = vector.extract_strided_slice %75 {offsets = [160, 512], sizes = [40, 64], strides = [1, 1]} : vector<320x576xf32> to vector<40x64xf32>
    %125 = tpu.concatenate %116, %117, %118, %119, %120, %121, %122, %123, %124 in 0 : vector<40x64xf32>, vector<40x64xf32>, vector<40x64xf32>, vector<40x64xf32>, vector<40x64xf32>, vector<40x64xf32>, vector<40x64xf32>, vector<40x64xf32>, vector<40x64xf32> -> vector<360x64xf32>
    %126 = vector.extract_strided_slice %75 {offsets = [200, 0], sizes = [40, 64], strides = [1, 1]} : vector<320x576xf32> to vector<40x64xf32>
    %127 = vector.extract_strided_slice %75 {offsets = [200, 64], sizes = [40, 64], strides = [1, 1]} : vector<320x576xf32> to vector<40x64xf32>
    %128 = vector.extract_strided_slice %75 {offsets = [200, 128], sizes = [40, 64], strides = [1, 1]} : vector<320x576xf32> to vector<40x64xf32>
    %129 = vector.extract_strided_slice %75 {offsets = [200, 192], sizes = [40, 64], strides = [1, 1]} : vector<320x576xf32> to vector<40x64xf32>
    %130 = vector.extract_strided_slice %75 {offsets = [200, 256], sizes = [40, 64], strides = [1, 1]} : vector<320x576xf32> to vector<40x64xf32>
    %131 = vector.extract_strided_slice %75 {offsets = [200, 320], sizes = [40, 64], strides = [1, 1]} : vector<320x576xf32> to vector<40x64xf32>
    %132 = vector.extract_strided_slice %75 {offsets = [200, 384], sizes = [40, 64], strides = [1, 1]} : vector<320x576xf32> to vector<40x64xf32>
    %133 = vector.extract_strided_slice %75 {offsets = [200, 448], sizes = [40, 64], strides = [1, 1]} : vector<320x576xf32> to vector<40x64xf32>
    %134 = vector.extract_strided_slice %75 {offsets = [200, 512], sizes = [40, 64], strides = [1, 1]} : vector<320x576xf32> to vector<40x64xf32>
    %135 = tpu.concatenate %126, %127, %128, %129, %130, %131, %132, %133, %134 in 0 : vector<40x64xf32>, vector<40x64xf32>, vector<40x64xf32>, vector<40x64xf32>, vector<40x64xf32>, vector<40x64xf32>, vector<40x64xf32>, vector<40x64xf32>, vector<40x64xf32> -> vector<360x64xf32>
    %136 = vector.extract_strided_slice %75 {offsets = [240, 0], sizes = [40, 64], strides = [1, 1]} : vector<320x576xf32> to vector<40x64xf32>
    %137 = vector.extract_strided_slice %75 {offsets = [240, 64], sizes = [40, 64], strides = [1, 1]} : vector<320x576xf32> to vector<40x64xf32>
    %138 = vector.extract_strided_slice %75 {offsets = [240, 128], sizes = [40, 64], strides = [1, 1]} : vector<320x576xf32> to vector<40x64xf32>
    %139 = vector.extract_strided_slice %75 {offsets = [240, 192], sizes = [40, 64], strides = [1, 1]} : vector<320x576xf32> to vector<40x64xf32>
    %140 = vector.extract_strided_slice %75 {offsets = [240, 256], sizes = [40, 64], strides = [1, 1]} : vector<320x576xf32> to vector<40x64xf32>
    %141 = vector.extract_strided_slice %75 {offsets = [240, 320], sizes = [40, 64], strides = [1, 1]} : vector<320x576xf32> to vector<40x64xf32>
    %142 = vector.extract_strided_slice %75 {offsets = [240, 384], sizes = [40, 64], strides = [1, 1]} : vector<320x576xf32> to vector<40x64xf32>
    %143 = vector.extract_strided_slice %75 {offsets = [240, 448], sizes = [40, 64], strides = [1, 1]} : vector<320x576xf32> to vector<40x64xf32>
    %144 = vector.extract_strided_slice %75 {offsets = [240, 512], sizes = [40, 64], strides = [1, 1]} : vector<320x576xf32> to vector<40x64xf32>
    %145 = tpu.concatenate %136, %137, %138, %139, %140, %141, %142, %143, %144 in 0 : vector<40x64xf32>, vector<40x64xf32>, vector<40x64xf32>, vector<40x64xf32>, vector<40x64xf32>, vector<40x64xf32>, vector<40x64xf32>, vector<40x64xf32>, vector<40x64xf32> -> vector<360x64xf32>
    %146 = vector.extract_strided_slice %75 {offsets = [280, 0], sizes = [40, 64], strides = [1, 1]} : vector<320x576xf32> to vector<40x64xf32>
    %147 = vector.extract_strided_slice %75 {offsets = [280, 64], sizes = [40, 64], strides = [1, 1]} : vector<320x576xf32> to vector<40x64xf32>
    %148 = vector.extract_strided_slice %75 {offsets = [280, 128], sizes = [40, 64], strides = [1, 1]} : vector<320x576xf32> to vector<40x64xf32>
    %149 = vector.extract_strided_slice %75 {offsets = [280, 192], sizes = [40, 64], strides = [1, 1]} : vector<320x576xf32> to vector<40x64xf32>
    %150 = vector.extract_strided_slice %75 {offsets = [280, 256], sizes = [40, 64], strides = [1, 1]} : vector<320x576xf32> to vector<40x64xf32>
    %151 = vector.extract_strided_slice %75 {offsets = [280, 320], sizes = [40, 64], strides = [1, 1]} : vector<320x576xf32> to vector<40x64xf32>
    %152 = vector.extract_strided_slice %75 {offsets = [280, 384], sizes = [40, 64], strides = [1, 1]} : vector<320x576xf32> to vector<40x64xf32>
    %153 = vector.extract_strided_slice %75 {offsets = [280, 448], sizes = [40, 64], strides = [1, 1]} : vector<320x576xf32> to vector<40x64xf32>
    %154 = vector.extract_strided_slice %75 {offsets = [280, 512], sizes = [40, 64], strides = [1, 1]} : vector<320x576xf32> to vector<40x64xf32>
    %155 = tpu.concatenate %146, %147, %148, %149, %150, %151, %152, %153, %154 in 0 : vector<40x64xf32>, vector<40x64xf32>, vector<40x64xf32>, vector<40x64xf32>, vector<40x64xf32>, vector<40x64xf32>, vector<40x64xf32>, vector<40x64xf32>, vector<40x64xf32> -> vector<360x64xf32>
    %156 = tpu.concatenate %85, %95, %105, %115, %125, %135, %145, %155 in 1 : vector<360x64xf32>, vector<360x64xf32>, vector<360x64xf32>, vector<360x64xf32>, vector<360x64xf32>, vector<360x64xf32>, vector<360x64xf32>, vector<360x64xf32> -> vector<360x512xf32>
    %c0_9 = arith.constant 0 : index
    %c0_10 = arith.constant 0 : index
    %157 = vector.load %arg4[%c0_9, %c0_10] : memref<32x360xf32, #tpu.memory_space<vmem>>, vector<32x360xf32>
    %cst_11 = arith.constant dense<0.000000e+00> : vector<32x512xf32>
    %158 = tpu.matmul %157, %156, %cst_11 {dimension_numbers = #tpu.dot_dimension_numbers<[1], [0], [0], [1], [0, 0, 1, 1], [], []>} : vector<32x360xf32>, vector<360x512xf32>, vector<32x512xf32> -> vector<32x512xf32>
    %c0_12 = arith.constant 0 : index
    %c0_13 = arith.constant 0 : index
    %159 = vector.load %arg6[%c0_12, %c0_13] : memref<1x512xf32, #tpu.memory_space<vmem>>, vector<1x512xf32>
    %160 = vector.broadcast %159 : vector<1x512xf32> to vector<32x512xf32>
    %161 = arith.addf %158, %160 : vector<32x512xf32>
    %cst_14 = arith.constant 0.000000e+00 : f32
    %162 = vector.broadcast %cst_14 : f32 to vector<32x512xf32>
    %163 = arith.maximumf %161, %162 : vector<32x512xf32>
    %164 = vector.extract_strided_slice %163 {offsets = [0, 0], sizes = [8, 512], strides = [1, 1]} : vector<32x512xf32> to vector<8x512xf32>
    %165 = vector.extract_strided_slice %163 {offsets = [8, 0], sizes = [8, 512], strides = [1, 1]} : vector<32x512xf32> to vector<8x512xf32>
    %166 = arith.maximumf %164, %165 : vector<8x512xf32>
    %167 = vector.extract_strided_slice %163 {offsets = [16, 0], sizes = [8, 512], strides = [1, 1]} : vector<32x512xf32> to vector<8x512xf32>
    %168 = vector.extract_strided_slice %163 {offsets = [24, 0], sizes = [8, 512], strides = [1, 1]} : vector<32x512xf32> to vector<8x512xf32>
    %169 = arith.maximumf %167, %168 : vector<8x512xf32>
    %170 = arith.maximumf %166, %169 : vector<8x512xf32>
    %171 = vector.extract_strided_slice %170 {offsets = [0, 0], sizes = [8, 64], strides = [1, 1]} : vector<8x512xf32> to vector<8x64xf32>
    %172 = vector.extract_strided_slice %170 {offsets = [0, 64], sizes = [8, 64], strides = [1, 1]} : vector<8x512xf32> to vector<8x64xf32>
    %173 = vector.extract_strided_slice %170 {offsets = [0, 128], sizes = [8, 64], strides = [1, 1]} : vector<8x512xf32> to vector<8x64xf32>
    %174 = vector.extract_strided_slice %170 {offsets = [0, 192], sizes = [8, 64], strides = [1, 1]} : vector<8x512xf32> to vector<8x64xf32>
    %175 = vector.extract_strided_slice %170 {offsets = [0, 256], sizes = [8, 64], strides = [1, 1]} : vector<8x512xf32> to vector<8x64xf32>
    %176 = vector.extract_strided_slice %170 {offsets = [0, 320], sizes = [8, 64], strides = [1, 1]} : vector<8x512xf32> to vector<8x64xf32>
    %177 = vector.extract_strided_slice %170 {offsets = [0, 384], sizes = [8, 64], strides = [1, 1]} : vector<8x512xf32> to vector<8x64xf32>
    %178 = vector.extract_strided_slice %170 {offsets = [0, 448], sizes = [8, 64], strides = [1, 1]} : vector<8x512xf32> to vector<8x64xf32>
    %179 = tpu.concatenate %171, %172, %173, %174, %175, %176, %177, %178 in 0 : vector<8x64xf32>, vector<8x64xf32>, vector<8x64xf32>, vector<8x64xf32>, vector<8x64xf32>, vector<8x64xf32>, vector<8x64xf32>, vector<8x64xf32> -> vector<64x64xf32>
    %180 = arith.truncf %179 : vector<64x64xf32> to vector<64x64xbf16>
    %c0_15 = arith.constant 0 : index
    %c0_16 = arith.constant 0 : index
    %181 = vector.load %arg8[%c0_15, %c0_16] : memref<64x2048xbf16, #tpu.memory_space<vmem>>, vector<64x2048xbf16>
    %cst_17 = arith.constant dense<0.000000e+00> : vector<64x2048xf32>
    %182 = tpu.matmul %180, %181, %cst_17 {dimension_numbers = #tpu.dot_dimension_numbers<[1], [0], [0], [1], [0, 0, 1, 1], [], []>} : vector<64x64xbf16>, vector<64x2048xbf16>, vector<64x2048xf32> -> vector<64x2048xf32>
    %183 = vector.extract_strided_slice %182 {offsets = [0, 0], sizes = [8, 128], strides = [1, 1]} : vector<64x2048xf32> to vector<8x128xf32>
    %184 = vector.extract_strided_slice %182 {offsets = [0, 128], sizes = [8, 128], strides = [1, 1]} : vector<64x2048xf32> to vector<8x128xf32>
    %185 = vector.extract_strided_slice %182 {offsets = [0, 256], sizes = [8, 128], strides = [1, 1]} : vector<64x2048xf32> to vector<8x128xf32>
    %186 = vector.extract_strided_slice %182 {offsets = [0, 384], sizes = [8, 128], strides = [1, 1]} : vector<64x2048xf32> to vector<8x128xf32>
    %187 = vector.extract_strided_slice %182 {offsets = [0, 512], sizes = [8, 128], strides = [1, 1]} : vector<64x2048xf32> to vector<8x128xf32>
    %188 = vector.extract_strided_slice %182 {offsets = [0, 640], sizes = [8, 128], strides = [1, 1]} : vector<64x2048xf32> to vector<8x128xf32>
    %189 = vector.extract_strided_slice %182 {offsets = [0, 768], sizes = [8, 128], strides = [1, 1]} : vector<64x2048xf32> to vector<8x128xf32>
    %190 = vector.extract_strided_slice %182 {offsets = [0, 896], sizes = [8, 128], strides = [1, 1]} : vector<64x2048xf32> to vector<8x128xf32>
    %191 = vector.extract_strided_slice %182 {offsets = [0, 1024], sizes = [8, 128], strides = [1, 1]} : vector<64x2048xf32> to vector<8x128xf32>
    %192 = vector.extract_strided_slice %182 {offsets = [0, 1152], sizes = [8, 128], strides = [1, 1]} : vector<64x2048xf32> to vector<8x128xf32>
    %193 = vector.extract_strided_slice %182 {offsets = [0, 1280], sizes = [8, 128], strides = [1, 1]} : vector<64x2048xf32> to vector<8x128xf32>
    %194 = vector.extract_strided_slice %182 {offsets = [0, 1408], sizes = [8, 128], strides = [1, 1]} : vector<64x2048xf32> to vector<8x128xf32>
    %195 = vector.extract_strided_slice %182 {offsets = [0, 1536], sizes = [8, 128], strides = [1, 1]} : vector<64x2048xf32> to vector<8x128xf32>
    %196 = vector.extract_strided_slice %182 {offsets = [0, 1664], sizes = [8, 128], strides = [1, 1]} : vector<64x2048xf32> to vector<8x128xf32>
    %197 = vector.extract_strided_slice %182 {offsets = [0, 1792], sizes = [8, 128], strides = [1, 1]} : vector<64x2048xf32> to vector<8x128xf32>
    %198 = vector.extract_strided_slice %182 {offsets = [0, 1920], sizes = [8, 128], strides = [1, 1]} : vector<64x2048xf32> to vector<8x128xf32>
    %199 = tpu.concatenate %183, %184, %185, %186, %187, %188, %189, %190, %191, %192, %193, %194, %195, %196, %197, %198 in 0 : vector<8x128xf32>, vector<8x128xf32>, vector<8x128xf32>, vector<8x128xf32>, vector<8x128xf32>, vector<8x128xf32>, vector<8x128xf32>, vector<8x128xf32>, vector<8x128xf32>, vector<8x128xf32>, vector<8x128xf32>, vector<8x128xf32>, vector<8x128xf32>, vector<8x128xf32>, vector<8x128xf32>, vector<8x128xf32> -> vector<128x128xf32>
    %200 = vector.extract_strided_slice %182 {offsets = [8, 0], sizes = [8, 128], strides = [1, 1]} : vector<64x2048xf32> to vector<8x128xf32>
    %201 = vector.extract_strided_slice %182 {offsets = [8, 128], sizes = [8, 128], strides = [1, 1]} : vector<64x2048xf32> to vector<8x128xf32>
    %202 = vector.extract_strided_slice %182 {offsets = [8, 256], sizes = [8, 128], strides = [1, 1]} : vector<64x2048xf32> to vector<8x128xf32>
    %203 = vector.extract_strided_slice %182 {offsets = [8, 384], sizes = [8, 128], strides = [1, 1]} : vector<64x2048xf32> to vector<8x128xf32>
    %204 = vector.extract_strided_slice %182 {offsets = [8, 512], sizes = [8, 128], strides = [1, 1]} : vector<64x2048xf32> to vector<8x128xf32>
    %205 = vector.extract_strided_slice %182 {offsets = [8, 640], sizes = [8, 128], strides = [1, 1]} : vector<64x2048xf32> to vector<8x128xf32>
    %206 = vector.extract_strided_slice %182 {offsets = [8, 768], sizes = [8, 128], strides = [1, 1]} : vector<64x2048xf32> to vector<8x128xf32>
    %207 = vector.extract_strided_slice %182 {offsets = [8, 896], sizes = [8, 128], strides = [1, 1]} : vector<64x2048xf32> to vector<8x128xf32>
    %208 = vector.extract_strided_slice %182 {offsets = [8, 1024], sizes = [8, 128], strides = [1, 1]} : vector<64x2048xf32> to vector<8x128xf32>
    %209 = vector.extract_strided_slice %182 {offsets = [8, 1152], sizes = [8, 128], strides = [1, 1]} : vector<64x2048xf32> to vector<8x128xf32>
    %210 = vector.extract_strided_slice %182 {offsets = [8, 1280], sizes = [8, 128], strides = [1, 1]} : vector<64x2048xf32> to vector<8x128xf32>
    %211 = vector.extract_strided_slice %182 {offsets = [8, 1408], sizes = [8, 128], strides = [1, 1]} : vector<64x2048xf32> to vector<8x128xf32>
    %212 = vector.extract_strided_slice %182 {offsets = [8, 1536], sizes = [8, 128], strides = [1, 1]} : vector<64x2048xf32> to vector<8x128xf32>
    %213 = vector.extract_strided_slice %182 {offsets = [8, 1664], sizes = [8, 128], strides = [1, 1]} : vector<64x2048xf32> to vector<8x128xf32>
    %214 = vector.extract_strided_slice %182 {offsets = [8, 1792], sizes = [8, 128], strides = [1, 1]} : vector<64x2048xf32> to vector<8x128xf32>
    %215 = vector.extract_strided_slice %182 {offsets = [8, 1920], sizes = [8, 128], strides = [1, 1]} : vector<64x2048xf32> to vector<8x128xf32>
    %216 = tpu.concatenate %200, %201, %202, %203, %204, %205, %206, %207, %208, %209, %210, %211, %212, %213, %214, %215 in 0 : vector<8x128xf32>, vector<8x128xf32>, vector<8x128xf32>, vector<8x128xf32>, vector<8x128xf32>, vector<8x128xf32>, vector<8x128xf32>, vector<8x128xf32>, vector<8x128xf32>, vector<8x128xf32>, vector<8x128xf32>, vector<8x128xf32>, vector<8x128xf32>, vector<8x128xf32>, vector<8x128xf32>, vector<8x128xf32> -> vector<128x128xf32>
    %217 = vector.extract_strided_slice %182 {offsets = [16, 0], sizes = [8, 128], strides = [1, 1]} : vector<64x2048xf32> to vector<8x128xf32>
    %218 = vector.extract_strided_slice %182 {offsets = [16, 128], sizes = [8, 128], strides = [1, 1]} : vector<64x2048xf32> to vector<8x128xf32>
    %219 = vector.extract_strided_slice %182 {offsets = [16, 256], sizes = [8, 128], strides = [1, 1]} : vector<64x2048xf32> to vector<8x128xf32>
    %220 = vector.extract_strided_slice %182 {offsets = [16, 384], sizes = [8, 128], strides = [1, 1]} : vector<64x2048xf32> to vector<8x128xf32>
    %221 = vector.extract_strided_slice %182 {offsets = [16, 512], sizes = [8, 128], strides = [1, 1]} : vector<64x2048xf32> to vector<8x128xf32>
    %222 = vector.extract_strided_slice %182 {offsets = [16, 640], sizes = [8, 128], strides = [1, 1]} : vector<64x2048xf32> to vector<8x128xf32>
    %223 = vector.extract_strided_slice %182 {offsets = [16, 768], sizes = [8, 128], strides = [1, 1]} : vector<64x2048xf32> to vector<8x128xf32>
    %224 = vector.extract_strided_slice %182 {offsets = [16, 896], sizes = [8, 128], strides = [1, 1]} : vector<64x2048xf32> to vector<8x128xf32>
    %225 = vector.extract_strided_slice %182 {offsets = [16, 1024], sizes = [8, 128], strides = [1, 1]} : vector<64x2048xf32> to vector<8x128xf32>
    %226 = vector.extract_strided_slice %182 {offsets = [16, 1152], sizes = [8, 128], strides = [1, 1]} : vector<64x2048xf32> to vector<8x128xf32>
    %227 = vector.extract_strided_slice %182 {offsets = [16, 1280], sizes = [8, 128], strides = [1, 1]} : vector<64x2048xf32> to vector<8x128xf32>
    %228 = vector.extract_strided_slice %182 {offsets = [16, 1408], sizes = [8, 128], strides = [1, 1]} : vector<64x2048xf32> to vector<8x128xf32>
    %229 = vector.extract_strided_slice %182 {offsets = [16, 1536], sizes = [8, 128], strides = [1, 1]} : vector<64x2048xf32> to vector<8x128xf32>
    %230 = vector.extract_strided_slice %182 {offsets = [16, 1664], sizes = [8, 128], strides = [1, 1]} : vector<64x2048xf32> to vector<8x128xf32>
    %231 = vector.extract_strided_slice %182 {offsets = [16, 1792], sizes = [8, 128], strides = [1, 1]} : vector<64x2048xf32> to vector<8x128xf32>
    %232 = vector.extract_strided_slice %182 {offsets = [16, 1920], sizes = [8, 128], strides = [1, 1]} : vector<64x2048xf32> to vector<8x128xf32>
    %233 = tpu.concatenate %217, %218, %219, %220, %221, %222, %223, %224, %225, %226, %227, %228, %229, %230, %231, %232 in 0 : vector<8x128xf32>, vector<8x128xf32>, vector<8x128xf32>, vector<8x128xf32>, vector<8x128xf32>, vector<8x128xf32>, vector<8x128xf32>, vector<8x128xf32>, vector<8x128xf32>, vector<8x128xf32>, vector<8x128xf32>, vector<8x128xf32>, vector<8x128xf32>, vector<8x128xf32>, vector<8x128xf32>, vector<8x128xf32> -> vector<128x128xf32>
    %234 = vector.extract_strided_slice %182 {offsets = [24, 0], sizes = [8, 128], strides = [1, 1]} : vector<64x2048xf32> to vector<8x128xf32>
    %235 = vector.extract_strided_slice %182 {offsets = [24, 128], sizes = [8, 128], strides = [1, 1]} : vector<64x2048xf32> to vector<8x128xf32>
    %236 = vector.extract_strided_slice %182 {offsets = [24, 256], sizes = [8, 128], strides = [1, 1]} : vector<64x2048xf32> to vector<8x128xf32>
    %237 = vector.extract_strided_slice %182 {offsets = [24, 384], sizes = [8, 128], strides = [1, 1]} : vector<64x2048xf32> to vector<8x128xf32>
    %238 = vector.extract_strided_slice %182 {offsets = [24, 512], sizes = [8, 128], strides = [1, 1]} : vector<64x2048xf32> to vector<8x128xf32>
    %239 = vector.extract_strided_slice %182 {offsets = [24, 640], sizes = [8, 128], strides = [1, 1]} : vector<64x2048xf32> to vector<8x128xf32>
    %240 = vector.extract_strided_slice %182 {offsets = [24, 768], sizes = [8, 128], strides = [1, 1]} : vector<64x2048xf32> to vector<8x128xf32>
    %241 = vector.extract_strided_slice %182 {offsets = [24, 896], sizes = [8, 128], strides = [1, 1]} : vector<64x2048xf32> to vector<8x128xf32>
    %242 = vector.extract_strided_slice %182 {offsets = [24, 1024], sizes = [8, 128], strides = [1, 1]} : vector<64x2048xf32> to vector<8x128xf32>
    %243 = vector.extract_strided_slice %182 {offsets = [24, 1152], sizes = [8, 128], strides = [1, 1]} : vector<64x2048xf32> to vector<8x128xf32>
    %244 = vector.extract_strided_slice %182 {offsets = [24, 1280], sizes = [8, 128], strides = [1, 1]} : vector<64x2048xf32> to vector<8x128xf32>
    %245 = vector.extract_strided_slice %182 {offsets = [24, 1408], sizes = [8, 128], strides = [1, 1]} : vector<64x2048xf32> to vector<8x128xf32>
    %246 = vector.extract_strided_slice %182 {offsets = [24, 1536], sizes = [8, 128], strides = [1, 1]} : vector<64x2048xf32> to vector<8x128xf32>
    %247 = vector.extract_strided_slice %182 {offsets = [24, 1664], sizes = [8, 128], strides = [1, 1]} : vector<64x2048xf32> to vector<8x128xf32>
    %248 = vector.extract_strided_slice %182 {offsets = [24, 1792], sizes = [8, 128], strides = [1, 1]} : vector<64x2048xf32> to vector<8x128xf32>
    %249 = vector.extract_strided_slice %182 {offsets = [24, 1920], sizes = [8, 128], strides = [1, 1]} : vector<64x2048xf32> to vector<8x128xf32>
    %250 = tpu.concatenate %234, %235, %236, %237, %238, %239, %240, %241, %242, %243, %244, %245, %246, %247, %248, %249 in 0 : vector<8x128xf32>, vector<8x128xf32>, vector<8x128xf32>, vector<8x128xf32>, vector<8x128xf32>, vector<8x128xf32>, vector<8x128xf32>, vector<8x128xf32>, vector<8x128xf32>, vector<8x128xf32>, vector<8x128xf32>, vector<8x128xf32>, vector<8x128xf32>, vector<8x128xf32>, vector<8x128xf32>, vector<8x128xf32> -> vector<128x128xf32>
    %251 = vector.extract_strided_slice %182 {offsets = [32, 0], sizes = [8, 128], strides = [1, 1]} : vector<64x2048xf32> to vector<8x128xf32>
    %252 = vector.extract_strided_slice %182 {offsets = [32, 128], sizes = [8, 128], strides = [1, 1]} : vector<64x2048xf32> to vector<8x128xf32>
    %253 = vector.extract_strided_slice %182 {offsets = [32, 256], sizes = [8, 128], strides = [1, 1]} : vector<64x2048xf32> to vector<8x128xf32>
    %254 = vector.extract_strided_slice %182 {offsets = [32, 384], sizes = [8, 128], strides = [1, 1]} : vector<64x2048xf32> to vector<8x128xf32>
    %255 = vector.extract_strided_slice %182 {offsets = [32, 512], sizes = [8, 128], strides = [1, 1]} : vector<64x2048xf32> to vector<8x128xf32>
    %256 = vector.extract_strided_slice %182 {offsets = [32, 640], sizes = [8, 128], strides = [1, 1]} : vector<64x2048xf32> to vector<8x128xf32>
    %257 = vector.extract_strided_slice %182 {offsets = [32, 768], sizes = [8, 128], strides = [1, 1]} : vector<64x2048xf32> to vector<8x128xf32>
    %258 = vector.extract_strided_slice %182 {offsets = [32, 896], sizes = [8, 128], strides = [1, 1]} : vector<64x2048xf32> to vector<8x128xf32>
    %259 = vector.extract_strided_slice %182 {offsets = [32, 1024], sizes = [8, 128], strides = [1, 1]} : vector<64x2048xf32> to vector<8x128xf32>
    %260 = vector.extract_strided_slice %182 {offsets = [32, 1152], sizes = [8, 128], strides = [1, 1]} : vector<64x2048xf32> to vector<8x128xf32>
    %261 = vector.extract_strided_slice %182 {offsets = [32, 1280], sizes = [8, 128], strides = [1, 1]} : vector<64x2048xf32> to vector<8x128xf32>
    %262 = vector.extract_strided_slice %182 {offsets = [32, 1408], sizes = [8, 128], strides = [1, 1]} : vector<64x2048xf32> to vector<8x128xf32>
    %263 = vector.extract_strided_slice %182 {offsets = [32, 1536], sizes = [8, 128], strides = [1, 1]} : vector<64x2048xf32> to vector<8x128xf32>
    %264 = vector.extract_strided_slice %182 {offsets = [32, 1664], sizes = [8, 128], strides = [1, 1]} : vector<64x2048xf32> to vector<8x128xf32>
    %265 = vector.extract_strided_slice %182 {offsets = [32, 1792], sizes = [8, 128], strides = [1, 1]} : vector<64x2048xf32> to vector<8x128xf32>
    %266 = vector.extract_strided_slice %182 {offsets = [32, 1920], sizes = [8, 128], strides = [1, 1]} : vector<64x2048xf32> to vector<8x128xf32>
    %267 = tpu.concatenate %251, %252, %253, %254, %255, %256, %257, %258, %259, %260, %261, %262, %263, %264, %265, %266 in 0 : vector<8x128xf32>, vector<8x128xf32>, vector<8x128xf32>, vector<8x128xf32>, vector<8x128xf32>, vector<8x128xf32>, vector<8x128xf32>, vector<8x128xf32>, vector<8x128xf32>, vector<8x128xf32>, vector<8x128xf32>, vector<8x128xf32>, vector<8x128xf32>, vector<8x128xf32>, vector<8x128xf32>, vector<8x128xf32> -> vector<128x128xf32>
    %268 = vector.extract_strided_slice %182 {offsets = [40, 0], sizes = [8, 128], strides = [1, 1]} : vector<64x2048xf32> to vector<8x128xf32>
    %269 = vector.extract_strided_slice %182 {offsets = [40, 128], sizes = [8, 128], strides = [1, 1]} : vector<64x2048xf32> to vector<8x128xf32>
    %270 = vector.extract_strided_slice %182 {offsets = [40, 256], sizes = [8, 128], strides = [1, 1]} : vector<64x2048xf32> to vector<8x128xf32>
    %271 = vector.extract_strided_slice %182 {offsets = [40, 384], sizes = [8, 128], strides = [1, 1]} : vector<64x2048xf32> to vector<8x128xf32>
    %272 = vector.extract_strided_slice %182 {offsets = [40, 512], sizes = [8, 128], strides = [1, 1]} : vector<64x2048xf32> to vector<8x128xf32>
    %273 = vector.extract_strided_slice %182 {offsets = [40, 640], sizes = [8, 128], strides = [1, 1]} : vector<64x2048xf32> to vector<8x128xf32>
    %274 = vector.extract_strided_slice %182 {offsets = [40, 768], sizes = [8, 128], strides = [1, 1]} : vector<64x2048xf32> to vector<8x128xf32>
    %275 = vector.extract_strided_slice %182 {offsets = [40, 896], sizes = [8, 128], strides = [1, 1]} : vector<64x2048xf32> to vector<8x128xf32>
    %276 = vector.extract_strided_slice %182 {offsets = [40, 1024], sizes = [8, 128], strides = [1, 1]} : vector<64x2048xf32> to vector<8x128xf32>
    %277 = vector.extract_strided_slice %182 {offsets = [40, 1152], sizes = [8, 128], strides = [1, 1]} : vector<64x2048xf32> to vector<8x128xf32>
    %278 = vector.extract_strided_slice %182 {offsets = [40, 1280], sizes = [8, 128], strides = [1, 1]} : vector<64x2048xf32> to vector<8x128xf32>
    %279 = vector.extract_strided_slice %182 {offsets = [40, 1408], sizes = [8, 128], strides = [1, 1]} : vector<64x2048xf32> to vector<8x128xf32>
    %280 = vector.extract_strided_slice %182 {offsets = [40, 1536], sizes = [8, 128], strides = [1, 1]} : vector<64x2048xf32> to vector<8x128xf32>
    %281 = vector.extract_strided_slice %182 {offsets = [40, 1664], sizes = [8, 128], strides = [1, 1]} : vector<64x2048xf32> to vector<8x128xf32>
    %282 = vector.extract_strided_slice %182 {offsets = [40, 1792], sizes = [8, 128], strides = [1, 1]} : vector<64x2048xf32> to vector<8x128xf32>
    %283 = vector.extract_strided_slice %182 {offsets = [40, 1920], sizes = [8, 128], strides = [1, 1]} : vector<64x2048xf32> to vector<8x128xf32>
    %284 = tpu.concatenate %268, %269, %270, %271, %272, %273, %274, %275, %276, %277, %278, %279, %280, %281, %282, %283 in 0 : vector<8x128xf32>, vector<8x128xf32>, vector<8x128xf32>, vector<8x128xf32>, vector<8x128xf32>, vector<8x128xf32>, vector<8x128xf32>, vector<8x128xf32>, vector<8x128xf32>, vector<8x128xf32>, vector<8x128xf32>, vector<8x128xf32>, vector<8x128xf32>, vector<8x128xf32>, vector<8x128xf32>, vector<8x128xf32> -> vector<128x128xf32>
    %285 = vector.extract_strided_slice %182 {offsets = [48, 0], sizes = [8, 128], strides = [1, 1]} : vector<64x2048xf32> to vector<8x128xf32>
    %286 = vector.extract_strided_slice %182 {offsets = [48, 128], sizes = [8, 128], strides = [1, 1]} : vector<64x2048xf32> to vector<8x128xf32>
    %287 = vector.extract_strided_slice %182 {offsets = [48, 256], sizes = [8, 128], strides = [1, 1]} : vector<64x2048xf32> to vector<8x128xf32>
    %288 = vector.extract_strided_slice %182 {offsets = [48, 384], sizes = [8, 128], strides = [1, 1]} : vector<64x2048xf32> to vector<8x128xf32>
    %289 = vector.extract_strided_slice %182 {offsets = [48, 512], sizes = [8, 128], strides = [1, 1]} : vector<64x2048xf32> to vector<8x128xf32>
    %290 = vector.extract_strided_slice %182 {offsets = [48, 640], sizes = [8, 128], strides = [1, 1]} : vector<64x2048xf32> to vector<8x128xf32>
    %291 = vector.extract_strided_slice %182 {offsets = [48, 768], sizes = [8, 128], strides = [1, 1]} : vector<64x2048xf32> to vector<8x128xf32>
    %292 = vector.extract_strided_slice %182 {offsets = [48, 896], sizes = [8, 128], strides = [1, 1]} : vector<64x2048xf32> to vector<8x128xf32>
    %293 = vector.extract_strided_slice %182 {offsets = [48, 1024], sizes = [8, 128], strides = [1, 1]} : vector<64x2048xf32> to vector<8x128xf32>
    %294 = vector.extract_strided_slice %182 {offsets = [48, 1152], sizes = [8, 128], strides = [1, 1]} : vector<64x2048xf32> to vector<8x128xf32>
    %295 = vector.extract_strided_slice %182 {offsets = [48, 1280], sizes = [8, 128], strides = [1, 1]} : vector<64x2048xf32> to vector<8x128xf32>
    %296 = vector.extract_strided_slice %182 {offsets = [48, 1408], sizes = [8, 128], strides = [1, 1]} : vector<64x2048xf32> to vector<8x128xf32>
    %297 = vector.extract_strided_slice %182 {offsets = [48, 1536], sizes = [8, 128], strides = [1, 1]} : vector<64x2048xf32> to vector<8x128xf32>
    %298 = vector.extract_strided_slice %182 {offsets = [48, 1664], sizes = [8, 128], strides = [1, 1]} : vector<64x2048xf32> to vector<8x128xf32>
    %299 = vector.extract_strided_slice %182 {offsets = [48, 1792], sizes = [8, 128], strides = [1, 1]} : vector<64x2048xf32> to vector<8x128xf32>
    %300 = vector.extract_strided_slice %182 {offsets = [48, 1920], sizes = [8, 128], strides = [1, 1]} : vector<64x2048xf32> to vector<8x128xf32>
    %301 = tpu.concatenate %285, %286, %287, %288, %289, %290, %291, %292, %293, %294, %295, %296, %297, %298, %299, %300 in 0 : vector<8x128xf32>, vector<8x128xf32>, vector<8x128xf32>, vector<8x128xf32>, vector<8x128xf32>, vector<8x128xf32>, vector<8x128xf32>, vector<8x128xf32>, vector<8x128xf32>, vector<8x128xf32>, vector<8x128xf32>, vector<8x128xf32>, vector<8x128xf32>, vector<8x128xf32>, vector<8x128xf32>, vector<8x128xf32> -> vector<128x128xf32>
    %302 = vector.extract_strided_slice %182 {offsets = [56, 0], sizes = [8, 128], strides = [1, 1]} : vector<64x2048xf32> to vector<8x128xf32>
    %303 = vector.extract_strided_slice %182 {offsets = [56, 128], sizes = [8, 128], strides = [1, 1]} : vector<64x2048xf32> to vector<8x128xf32>
    %304 = vector.extract_strided_slice %182 {offsets = [56, 256], sizes = [8, 128], strides = [1, 1]} : vector<64x2048xf32> to vector<8x128xf32>
    %305 = vector.extract_strided_slice %182 {offsets = [56, 384], sizes = [8, 128], strides = [1, 1]} : vector<64x2048xf32> to vector<8x128xf32>
    %306 = vector.extract_strided_slice %182 {offsets = [56, 512], sizes = [8, 128], strides = [1, 1]} : vector<64x2048xf32> to vector<8x128xf32>
    %307 = vector.extract_strided_slice %182 {offsets = [56, 640], sizes = [8, 128], strides = [1, 1]} : vector<64x2048xf32> to vector<8x128xf32>
    %308 = vector.extract_strided_slice %182 {offsets = [56, 768], sizes = [8, 128], strides = [1, 1]} : vector<64x2048xf32> to vector<8x128xf32>
    %309 = vector.extract_strided_slice %182 {offsets = [56, 896], sizes = [8, 128], strides = [1, 1]} : vector<64x2048xf32> to vector<8x128xf32>
    %310 = vector.extract_strided_slice %182 {offsets = [56, 1024], sizes = [8, 128], strides = [1, 1]} : vector<64x2048xf32> to vector<8x128xf32>
    %311 = vector.extract_strided_slice %182 {offsets = [56, 1152], sizes = [8, 128], strides = [1, 1]} : vector<64x2048xf32> to vector<8x128xf32>
    %312 = vector.extract_strided_slice %182 {offsets = [56, 1280], sizes = [8, 128], strides = [1, 1]} : vector<64x2048xf32> to vector<8x128xf32>
    %313 = vector.extract_strided_slice %182 {offsets = [56, 1408], sizes = [8, 128], strides = [1, 1]} : vector<64x2048xf32> to vector<8x128xf32>
    %314 = vector.extract_strided_slice %182 {offsets = [56, 1536], sizes = [8, 128], strides = [1, 1]} : vector<64x2048xf32> to vector<8x128xf32>
    %315 = vector.extract_strided_slice %182 {offsets = [56, 1664], sizes = [8, 128], strides = [1, 1]} : vector<64x2048xf32> to vector<8x128xf32>
    %316 = vector.extract_strided_slice %182 {offsets = [56, 1792], sizes = [8, 128], strides = [1, 1]} : vector<64x2048xf32> to vector<8x128xf32>
    %317 = vector.extract_strided_slice %182 {offsets = [56, 1920], sizes = [8, 128], strides = [1, 1]} : vector<64x2048xf32> to vector<8x128xf32>
    %318 = tpu.concatenate %302, %303, %304, %305, %306, %307, %308, %309, %310, %311, %312, %313, %314, %315, %316, %317 in 0 : vector<8x128xf32>, vector<8x128xf32>, vector<8x128xf32>, vector<8x128xf32>, vector<8x128xf32>, vector<8x128xf32>, vector<8x128xf32>, vector<8x128xf32>, vector<8x128xf32>, vector<8x128xf32>, vector<8x128xf32>, vector<8x128xf32>, vector<8x128xf32>, vector<8x128xf32>, vector<8x128xf32>, vector<8x128xf32> -> vector<128x128xf32>
    %319 = tpu.concatenate %199, %216, %233, %250, %267, %284, %301, %318 in 1 : vector<128x128xf32>, vector<128x128xf32>, vector<128x128xf32>, vector<128x128xf32>, vector<128x128xf32>, vector<128x128xf32>, vector<128x128xf32>, vector<128x128xf32> -> vector<128x1024xf32>
    %c0_18 = arith.constant 0 : index
    %c0_19 = arith.constant 0 : index
    %320 = vector.load %arg7[%c0_18, %c0_19] : memref<32x128xf32, #tpu.memory_space<vmem>>, vector<32x128xf32>
    %cst_20 = arith.constant dense<0.000000e+00> : vector<32x1024xf32>
    %321 = tpu.matmul %320, %319, %cst_20 {dimension_numbers = #tpu.dot_dimension_numbers<[1], [0], [0], [1], [0, 0, 1, 1], [], []>} : vector<32x128xf32>, vector<128x1024xf32>, vector<32x1024xf32> -> vector<32x1024xf32>
    %c0_21 = arith.constant 0 : index
    %c0_22 = arith.constant 0 : index
    %322 = vector.load %arg9[%c0_21, %c0_22] : memref<1x1024xf32, #tpu.memory_space<vmem>>, vector<1x1024xf32>
    %323 = vector.broadcast %322 : vector<1x1024xf32> to vector<32x1024xf32>
    %324 = arith.addf %321, %323 : vector<32x1024xf32>
    %cst_23 = arith.constant 0.000000e+00 : f32
    %325 = vector.broadcast %cst_23 : f32 to vector<32x1024xf32>
    %326 = arith.maximumf %324, %325 : vector<32x1024xf32>
    %327 = vector.extract_strided_slice %326 {offsets = [0, 0], sizes = [8, 1024], strides = [1, 1]} : vector<32x1024xf32> to vector<8x1024xf32>
    %328 = vector.extract_strided_slice %326 {offsets = [8, 0], sizes = [8, 1024], strides = [1, 1]} : vector<32x1024xf32> to vector<8x1024xf32>
    %329 = arith.maximumf %327, %328 : vector<8x1024xf32>
    %330 = vector.extract_strided_slice %326 {offsets = [16, 0], sizes = [8, 1024], strides = [1, 1]} : vector<32x1024xf32> to vector<8x1024xf32>
    %331 = vector.extract_strided_slice %326 {offsets = [24, 0], sizes = [8, 1024], strides = [1, 1]} : vector<32x1024xf32> to vector<8x1024xf32>
    %332 = arith.maximumf %330, %331 : vector<8x1024xf32>
    %333 = arith.maximumf %329, %332 : vector<8x1024xf32>
    %334 = vector.extract_strided_slice %333 {offsets = [0, 0], sizes = [1, 128], strides = [1, 1]} : vector<8x1024xf32> to vector<1x128xf32>
    %335 = vector.extract_strided_slice %333 {offsets = [0, 128], sizes = [1, 128], strides = [1, 1]} : vector<8x1024xf32> to vector<1x128xf32>
    %336 = vector.extract_strided_slice %333 {offsets = [0, 256], sizes = [1, 128], strides = [1, 1]} : vector<8x1024xf32> to vector<1x128xf32>
    %337 = vector.extract_strided_slice %333 {offsets = [0, 384], sizes = [1, 128], strides = [1, 1]} : vector<8x1024xf32> to vector<1x128xf32>
    %338 = vector.extract_strided_slice %333 {offsets = [0, 512], sizes = [1, 128], strides = [1, 1]} : vector<8x1024xf32> to vector<1x128xf32>
    %339 = vector.extract_strided_slice %333 {offsets = [0, 640], sizes = [1, 128], strides = [1, 1]} : vector<8x1024xf32> to vector<1x128xf32>
    %340 = vector.extract_strided_slice %333 {offsets = [0, 768], sizes = [1, 128], strides = [1, 1]} : vector<8x1024xf32> to vector<1x128xf32>
    %341 = vector.extract_strided_slice %333 {offsets = [0, 896], sizes = [1, 128], strides = [1, 1]} : vector<8x1024xf32> to vector<1x128xf32>
    %342 = tpu.concatenate %334, %335, %336, %337, %338, %339, %340, %341 in 0 : vector<1x128xf32>, vector<1x128xf32>, vector<1x128xf32>, vector<1x128xf32>, vector<1x128xf32>, vector<1x128xf32>, vector<1x128xf32>, vector<1x128xf32> -> vector<8x128xf32>
    %c0_24 = arith.constant 0 : index
    %c0_25 = arith.constant 0 : index
    %343 = vector.load %arg10[%c0_24, %c0_25] : memref<128x128xf32, #tpu.memory_space<vmem>>, vector<128x128xf32>
    %cst_26 = arith.constant dense<0.000000e+00> : vector<8x128xf32>
    %344 = tpu.matmul %342, %343, %cst_26 {dimension_numbers = #tpu.dot_dimension_numbers<[1], [0], [0], [1], [0, 0, 1, 1], [], []>} : vector<8x128xf32>, vector<128x128xf32>, vector<8x128xf32> -> vector<8x128xf32>
    %c0_27 = arith.constant 0 : index
    %c0_28 = arith.constant 0 : index
    %345 = vector.load %arg11[%c0_27, %c0_28] : memref<1x128xf32, #tpu.memory_space<vmem>>, vector<1x128xf32>
    %346 = vector.broadcast %345 : vector<1x128xf32> to vector<8x128xf32>
    %347 = arith.addf %344, %346 : vector<8x128xf32>
    %c0_29 = arith.constant 0 : index
    %c0_30 = arith.constant 0 : index
    %348 = vector.load %arg12[%c0_29, %c0_30] : memref<8x128xf32, #tpu.memory_space<vmem>>, vector<8x128xf32>
    tpu.vector_store %arg12[%c0_29, %c0_30], %347 {strides = array<i32>} : memref<8x128xf32, #tpu.memory_space<vmem>>, vector<8x128xf32>,
    return
  }
  func.func @transform_0(%arg0: i32) -> (i32, i32) {
    %c0_i32 = arith.constant 0 : i32
    %c0_i32_0 = arith.constant 0 : i32
    return %arg0, %c0_i32 : i32, i32
  }
  func.func @transform_1(%arg0: i32) -> (i32, i32) {
    %c0_i32 = arith.constant 0 : i32
    %c0_i32_0 = arith.constant 0 : i32
    %c0_i32_1 = arith.constant 0 : i32
    return %c0_i32, %c0_i32_0 : i32, i32
  }
  func.func @transform_2(%arg0: i32) -> (i32, i32) {
    %c0_i32 = arith.constant 0 : i32
    %c0_i32_0 = arith.constant 0 : i32
    %c0_i32_1 = arith.constant 0 : i32
    return %c0_i32, %c0_i32_0 : i32, i32
  }
  func.func @transform_3(%arg0: i32) -> (i32, i32) {
    %c0_i32 = arith.constant 0 : i32
    %c0_i32_0 = arith.constant 0 : i32
    %c0_i32_1 = arith.constant 0 : i32
    return %c0_i32, %c0_i32_0 : i32, i32
  }
  func.func @transform_4(%arg0: i32) -> (i32, i32) {
    %c0_i32 = arith.constant 0 : i32
    %c0_i32_0 = arith.constant 0 : i32
    %c0_i32_1 = arith.constant 0 : i32
    return %c0_i32, %c0_i32_0 : i32, i32
  }
  func.func @transform_5(%arg0: i32) -> (i32, i32) {
    %c0_i32 = arith.constant 0 : i32
    %c0_i32_0 = arith.constant 0 : i32
    %c0_i32_1 = arith.constant 0 : i32
    return %c0_i32, %c0_i32_0 : i32, i32
  }
  func.func @transform_6(%arg0: i32) -> (i32, i32) {
    %c0_i32 = arith.constant 0 : i32
    %c0_i32_0 = arith.constant 0 : i32
    %c0_i32_1 = arith.constant 0 : i32
    return %c0_i32, %c0_i32_0 : i32, i32
  }
  func.func @transform_7(%arg0: i32) -> (i32, i32) {
    %c0_i32 = arith.constant 0 : i32
    %c0_i32_0 = arith.constant 0 : i32
    %c0_i32_1 = arith.constant 0 : i32
    return %c0_i32, %c0_i32_0 : i32, i32
  }
  func.func @transform_8(%arg0: i32) -> (i32, i32) {
    %c0_i32 = arith.constant 0 : i32
    %c0_i32_0 = arith.constant 0 : i32
    %c0_i32_1 = arith.constant 0 : i32
    return %c0_i32, %c0_i32_0 : i32, i32
  }
  func.func @transform_9(%arg0: i32) -> (i32, i32) {
    %c0_i32 = arith.constant 0 : i32
    %c0_i32_0 = arith.constant 0 : i32
    %c0_i32_1 = arith.constant 0 : i32
    return %c0_i32, %c0_i32_0 : i32, i32
  }
  func.func @transform_10(%arg0: i32) -> (i32, i32) {
    %c0_i32 = arith.constant 0 : i32
    %c0_i32_0 = arith.constant 0 : i32
    %c0_i32_1 = arith.constant 0 : i32
    return %c0_i32, %c0_i32_0 : i32, i32
  }
  func.func @transform_11(%arg0: i32) -> (i32, i32) {
    %c0_i32 = arith.constant 0 : i32
    %c0_i32_0 = arith.constant 0 : i32
    return %arg0, %c0_i32 : i32, i32
  }
}

</mosaic_0001>

<bundles_post_ra>
// kernel: cnn_forward.1
= control target key start
LH: loop header
LB: loop body
LE: loop exit
PB: predicated region body
PF: predicated region fallthrough
CT: control target
= control target key end

     0   :  { %s10437_s0 = inlined_call_operand.vmem [shape: bf16[2560,48], index: 0, kind: input, shape index: {}]   ;;  %s10438_s1 = inlined_call_operand.vmem [shape: bf16[48,32], index: 1, kind: input, shape index: {}]   ;;  %s10439_s2 = inlined_call_operand.vmem [shape: f32[1,32], index: 2, kind: input, shape index: {}]   ;;  %s10440_s3 = inlined_call_operand.vmem [shape: f32[32,360], index: 3, kind: input, shape index: {}]   ;;  %s10441_s4 = inlined_call_operand.vmem [shape: bf16[32,576], index: 4, kind: input, shape index: {}]   ;;  %s10442_s5 = inlined_call_operand.vmem [shape: f32[1,512], index: 5, kind: input, shape index: {}]   ;;  %s10443_s6 = inlined_call_operand.vmem [shape: f32[32,128], index: 6, kind: input, shape index: {}]   ;;  %s10444_s7 = inlined_call_operand.vmem [shape: bf16[64,2048], index: 7, kind: input, shape index: {}]   ;;  %s10445_s8 = inlined_call_operand.vmem [shape: f32[1,1024], index: 8, kind: input, shape index: {}]   ;;  %s10446_s9 = inlined_call_operand.vmem [shape: f32[128,128], index: 9, kind: input, shape index: {}]   ;;  %s10447_s10 = inlined_call_operand.vmem [shape: f32[1,128], index: 10, kind: input, shape index: {}]   ;;  %s10448_s11 = inlined_call_operand.hbm [shape: f32[16,128], index: 11, kind: output, shape index: {}]  }
   0x1   :  { %10557 = sst [smem:[#allocation125_spill]] %s10437_s0 }
   0x2   :  { %10558 = sst [smem:[#allocation126_spill]] %s10438_s1 }
   0x3   :  { %16 = vsyncpa [#allocation3], 0 }
   0x4   :  { %18 = vsyncpa [#allocation3 + $0x1], 0  ;;  %s7193_s17 = smov 0   ;;  %s7195_s18 = smov 0  }
   0x5   :  { %s7197_s19 = smov 0   ;;  %s7199_s20 = smov 0  }
   0x6 LB: > { %s7214_s21 = sadd.s32 4294967295, %s7126_s20   ;;  %s6209_s22 = sadd.s32 4294967294, %s7126_s20   ;;  %s7126_s20 = sphi %s7199_s20, %s10990_s20   ;;  %s7122_s19 = sphi %s7197_s19, %s10989_s19   ;;  %s7118_s18 = sphi %s7195_s18, %s10988_s18   ;;  %s7114_s17 = sphi %s7193_s17, %s10987_s17  }
   0x7   : > { %s7218_s23 = sadd.s32 1, %s7126_s20   ;;  %s267_s24 = sadd.s32 1, %s7122_s19 }
   0x8   : > { %s264_s25 = ssub.s32 %s7126_s20, %s7218_s23  ;;  %p277_p0 = scmp.ne.s32.totalorder %s7122_s19, %s7118_s18 }
   0x9   : > { %p265_p1 = scmp.eq.s32.totalorder %s264_s25, 0  ;;  %p278_p2 = scmp.eq.s32.totalorder %s7214_s21, 1 }
   0xa   : > { %p283_p3 = scmp.ne.s32.totalorder %s7118_s18, %s7114_s17  ;;  %p284_p4 = scmp.eq.s32.totalorder %s6209_s22, 1 }
   0xb   : > { %s7229_s26 = scalar_select %p265_p1, %s7122_s19, %s267_s24  }
   0xc   : > { %p7231_p5 = por %p278_p2, %p277_p0  ;;  %p7235_p6 = por %p284_p4, %p283_p3 }
   0xd   : > { %p6212_p7 = scmp.ge.s32.totalorder %s7126_s20, 1  ;;  %p341_p8 = scmp.lt.s32.totalorder %s7126_s20, 3 }
   0xf   : > { %p342_p9 = pnand %p6212_p7, %p341_p8 }
  0x11   : > { %345 = sbr.rel (%p342_p9) target bundleno = 2382 (0x94e), region = 64 }
  0x16   : > { %s10561_s1 = sld [smem:[#allocation126_spill]]  ;;  %s381_s12 = smul.u32 160, %s7214_s21  ;;  %vm979_vm0 = vcmask 392192   ;;  %v7029_v30 = vld [vmem:[%s10441_s4 + $0x2c] ss:$20 sps:$4 sm:$0xff]   ;;  %v10449_v38 = vmov 0  }
  0x17   : > { %s10562_s0 = sld [smem:[#allocation125_spill]]  ;;  %v7031_v32 = vld [vmem:[%s10441_s4 + $0x28] ss:$20 sps:$4 sm:$0xff]   ;;  %2330 = vmatprep.subr.bf16.mxu1 %v7029_v30  ;;  %v7034_v34 = vld [vmem:[%s10441_s4 + $0x4] ss:$20 sps:$4 sm:$0xff]   ;;  %2350 = vmatprep.mubr.bf16.mxu1 %v10449_v38  ;;  %vm2257_vm1 = vcmask 261120  }
  0x18   : > { %p382_p10 = scmp.lt.s32.totalorder %s381_s12, 319  ;;  %2331 = vmatpush1.bf16.msra.mxu1 %v7031_v32  ;;  %v7036_v35 = vld [vmem:[%s10441_s4] ss:$20 sps:$4 sm:$0xff]   ;;  %s10547_s25 = smov 64   ;;  %vm3937_vm2 = vcmask 523264   ;;  %vm4152_vm3 = vcmask 850944  }
  0x19   : > { %2332 = vmatprep.subr.bf16.mxu1 %v7034_v34  ;;  %vm7131_vm4 = vmmov 0   ;;  %vm6028_vm5 = vcmask 1040384   ;;  %vm6030_vm6 = vcmask 1041408   ;;  %vm6032_vm7 = vcmask 1042432   ;;  %s378_s16 = sand.u32 1, %s7118_s18   ;;  %s7132_s30 = smov [#allocation2]  }
  0x1a   : > { %s10992_s12 = smov (!%p382_p10, %s381_s12), 319  ;;  %vm6034_vm8 = vcmask 1043456   ;;  %vm6036_vm9 = vcmask 1044480   ;;  %vm6038_vm10 = vcmask 1045504   ;;  %vm6040_vm11 = vcmask 1046528   ;;  %s6213_s24 = sshll.u32 %s378_s16, 3 }
  0x1b   : > { %s6214_s22 = sshll.u32 %s10992_s12, 2  ;;  %s380_s12 = scalar_lea.vmem [#allocation2], %s6213_s24 }
  0x1c   : > { %v6968_v0 = vld [vmem:[%s10561_s1 + $0x10] sm:$0xff]   ;;  %v6969_v1 = vld [vmem:[%s10561_s1 + $0x8] sm:$0xff]   ;;  %v6970_v2 = vld [vmem:[%s10561_s1] sm:$0xff]   ;;  %2333 = vmatpush1.bf16.msra.mxu1 %v7036_v35  ;;  %s6150_s13 = sshll.u32 %s380_s12, 4  ;;  %s6151_s13 = int_to_ptr.vmem [resolvable:$true] %s6150_s13 }
  0x1d   : > { %6680 = vmatprep.subr.bf16.mxu0 %v6968_v0  ;;  %s7254_s29 = scalar_lea.vmem %s10562_s0, %s6214_s22  ;;  %s10884_s22 = smov 64  }
  0x1e   : > { %6681 = vmatpush3.bf16.msra.mxu0 %v6968_v0  ;;  %v6971_v3 = vld [vmem:[%s7254_s29] sm:$0xff]   ;;  %v6972_v4 = vld [vmem:[%s7254_s29 + $0x8] sm:$0xff]   ;;  %v6973_v5 = vld [vmem:[%s7254_s29 + $0x10] sm:$0xff]   ;;  %s6137_s0 = scalar_lea.sflag [#allocation3], %s378_s16  ;;  %s7066_s1 = scalar_lea.vmem %s6151_s13, 128 }
  0x1f   : > { %6682 = vmatprep.subr.bf16.mxu0 %v6969_v1  ;;  %6686 = vmatprep.mubr.msk.bf16.mxu0 %vm979_vm0, %v6971_v3  ;;  %v6974_v6 = vld [vmem:[%s7254_s29 + $0x18] sm:$0xff]   ;;  %v6975_v7 = vld [vmem:[%s7254_s29 + $0x20] sm:$0xff]   ;;  %v6976_v8 = vld [vmem:[%s7254_s29 + $0x28] sm:$0xff]   ;;  %p7067_p11 = scmp.ne.s32.totalorder %s6151_s13, %s7066_s1 }
  0x20   : > { %v6977_v9 = vld [vmem:[%s7254_s29 + $0x30] sm:$0xff]   ;;  %v6978_v10 = vld [vmem:[%s7254_s29 + $0x38] sm:$0xff]   ;;  %v6979_v11 = vld [vmem:[%s7254_s29 + $0x40] sm:$0xff]  }
  0x21   : > { %v6980_v12 = vld [vmem:[%s7254_s29 + $0x48] sm:$0xff]   ;;  %v6981_v13 = vld [vmem:[%s7254_s29 + $0x50] sm:$0xff]   ;;  %v6982_v14 = vld [vmem:[%s7254_s29 + $0x58] sm:$0xff]   ;;  %p7068_p12 = pnand %p7067_p11, %p7231_p5 }
  0x22   : > { %6683 = vmatpush3.bf16.msra.mxu0 %v6969_v1  ;;  %v6983_v15 = vld [vmem:[%s7254_s29 + $0x60] sm:$0xff]   ;;  %v6984_v16 = vld [vmem:[%s7254_s29 + $0x68] sm:$0xff]   ;;  %v6985_v17 = vld [vmem:[%s7254_s29 + $0x70] sm:$0xff]  }
  0x23   : > { %6684 = vmatprep.subr.bf16.mxu0 %v6970_v2  ;;  %v6986_v18 = vld [vmem:[%s7254_s29 + $0x78] sm:$0xff]   ;;  %v6987_v19 = vld [vmem:[%s7254_s29 + $0x80] sm:$0xff]   ;;  %v6988_v20 = vld [vmem:[%s7254_s29 + $0x88] sm:$0xff]   ;;  %p7069_p13 = pneg %p7068_p12 }
  0x24   : > { %v6989_v21 = vld [vmem:[%s7254_s29 + $0x90] sm:$0xff]   ;;  %v6990_v22 = vld [vmem:[%s7254_s29 + $0x98] sm:$0xff]   ;;  %v6991_v23 = vld [vmem:[%s7254_s29 + $0xa0] sm:$0xff]  }
  0x25   : > { %v6992_v24 = vld [vmem:[%s7254_s29 + $0xa8] sm:$0xff]   ;;  %v6993_v25 = vld [vmem:[%s7254_s29 + $0xb0] sm:$0xff]   ;;  %v6994_v26 = vld [vmem:[%s7254_s29 + $0xb8] sm:$0xff]  }
  0x26   : > { %6685 = vmatpush3.bf16.msra.mxu0 %v6970_v2  ;;  %v6995_v27 = vld [vmem:[%s7254_s29 + $0xc0] sm:$0xff]   ;;  %v6996_v28 = vld [vmem:[%s7254_s29 + $0xc8] sm:$0xff]   ;;  %v6997_v29 = vld [vmem:[%s7254_s29 + $0xd0] sm:$0xff]  }
  0x27   : > { %v6998_v31 = vld [vmem:[%s7254_s29 + $0xd8] sm:$0xff]   ;;  %v6999_v33 = vld [vmem:[%s7254_s29 + $0xe0] sm:$0xff]   ;;  %v7000_v36 = vld [vmem:[%s7254_s29 + $0xe8] sm:$0xff]  }
  0x28   : > { %v7001_v37 = vld [vmem:[%s7254_s29 + $0xf0] sm:$0xff]   ;;  %v7002_v39 = vld [vmem:[%s7254_s29 + $0xf8] sm:$0xff]   ;;  %v7003_v40 = vld [vmem:[%s7254_s29 + $0x100] sm:$0xff]  }
  0x29   : > { %6687 = vmatmul.mubr.msk.bf16.vlgmr.msra.gmra.mxu0 %vm979_vm0, %v6972_v4  ;;  %v7004_v41 = vld [vmem:[%s7254_s29 + $0x108] sm:$0xff]   ;;  %v7005_v42 = vld [vmem:[%s7254_s29 + $0x110] sm:$0xff]   ;;  %v7006_v43 = vld [vmem:[%s7254_s29 + $0x118] sm:$0xff]  }
  0x2a   : > { %6690 = vmatprep.mubr.msk.bf16.mxu0 %vm979_vm0, %v6973_v5  ;;  %v7007_v44 = vld [vmem:[%s7254_s29 + $0x120] sm:$0xff]   ;;  %v7008_v45 = vld [vmem:[%s7254_s29 + $0x128] sm:$0xff]   ;;  %v7009_v46 = vld [vmem:[%s7254_s29 + $0x130] sm:$0xff]  }
  0x2b   : > { %v7010_v47 = vld [vmem:[%s7254_s29 + $0x138] sm:$0xff]   ;;  %v7011_v48 = vld [vmem:[%s7254_s29 + $0x140] sm:$0xff]   ;;  %v7012_v49 = vld [vmem:[%s7254_s29 + $0x148] sm:$0xff]  }
  0x2c   : > { %v7013_v50 = vld [vmem:[%s7254_s29 + $0x150] sm:$0xff]   ;;  %v7014_v51 = vld [vmem:[%s7254_s29 + $0x158] sm:$0xff]   ;;  %v7015_v52 = vld [vmem:[%s7254_s29 + $0x160] sm:$0xff]  }
  0x2d   : > { %v7016_v53 = vld [vmem:[%s7254_s29 + $0x168] sm:$0xff]   ;;  %v7017_v54 = vld [vmem:[%s7254_s29 + $0x170] sm:$0xff]   ;;  %v7018_v55 = vld [vmem:[%s7254_s29 + $0x178] sm:$0xff]  }
  0x2e   : > { %v7019_v56 = vld [vmem:[%s7254_s29 + $0x180] sm:$0xff]   ;;  %v7020_v57 = vld [vmem:[%s7254_s29 + $0x188] sm:$0xff]   ;;  %v7021_v58 = vld [vmem:[%s7254_s29 + $0x190] sm:$0xff]  }
  0x2f   : > { %v7022_v62 = vld [vmem:[%s7254_s29 + $0x198] sm:$0xff]   ;;  %v7023_v63 = vld [vmem:[%s7254_s29 + $0x1a0] sm:$0xff]   ;;  %v7024_v4 = vld [vmem:[%s7254_s29 + $0x1a8] sm:$0xff]  }
  0x30   : > { %v7025_v5 = vld [vmem:[%s7254_s29 + $0x1b0] sm:$0xff]  }
  0x31   : > { %6691 = vmatmul.mubr.msk.bf16.gmra.mxu0 %vm979_vm0, %v6974_v6 }
  0x32   : > { %6694 = vmatprep.mubr.msk.bf16.mxu0 %vm979_vm0, %v6975_v7 }
  0x39   : > { %6695 = vmatmul.mubr.msk.bf16.gmra.mxu0 %vm979_vm0, %v6976_v8 }
  0x3a   : > { %6698 = vmatprep.mubr.msk.bf16.mxu0 %vm979_vm0, %v6977_v9 }
  0x41   : > { %6699 = vmatmul.mubr.msk.bf16.gmra.mxu0 %vm979_vm0, %v6978_v10  ;;  %v7026_v10 = vld [vmem:[%s7254_s29 + $0x1b8] sm:$0xff]  }
  0x42   : > { %6702 = vmatprep.mubr.msk.bf16.mxu0 %vm979_vm0, %v6979_v11  ;;  %v7027_v11 = vld [vmem:[%s7254_s29 + $0x1c0] sm:$0xff]  }
  0x49   : > { %6703 = vmatmul.mubr.msk.bf16.gmra.mxu0 %vm979_vm0, %v6980_v12 }
  0x4a   : > { %6706 = vmatprep.mubr.msk.bf16.mxu0 %vm979_vm0, %v6981_v13 }
  0x51   : > { %6707 = vmatmul.mubr.msk.bf16.gmra.mxu0 %vm979_vm0, %v6982_v14 }
  0x52   : > { %6710 = vmatprep.mubr.msk.bf16.mxu0 %vm979_vm0, %v6983_v15  ;;  %v7394_v15 = vld [vmem:[%s10439_s2] ss:$0 sm:$0xff] }
  0x59   : > { %6711 = vmatmul.mubr.msk.bf16.gmra.mxu0 %vm979_vm0, %v6984_v16 }
  0x5a   : > { %6714 = vmatprep.mubr.msk.bf16.mxu0 %vm979_vm0, %v6985_v17  ;;  %v7028_v17 = vld [vmem:[%s7254_s29 + $0x1c8] sm:$0xff]  }
  0x61   : > { %6715 = vmatmul.mubr.msk.bf16.gmra.mxu0 %vm979_vm0, %v6986_v18 }
  0x62   : > { %6718 = vmatprep.mubr.msk.bf16.mxu0 %vm979_vm0, %v6987_v19  ;;  %v7032_v19 = vld [vmem:[%s7254_s29 + $0x1d0] sm:$0xff]  }
  0x69   : > { %6719 = vmatmul.mubr.msk.bf16.gmra.mxu0 %vm979_vm0, %v6988_v20 }
  0x6a   : > { %6722 = vmatprep.mubr.msk.bf16.mxu0 %vm979_vm0, %v6989_v21 }
  0x71   : > { %6723 = vmatmul.mubr.msk.bf16.gmra.mxu0 %vm979_vm0, %v6990_v22 }
  0x72   : > { %6726 = vmatprep.mubr.msk.bf16.mxu0 %vm979_vm0, %v6991_v23 }
  0x79   : > { %6727 = vmatmul.mubr.msk.bf16.gmra.mxu0 %vm979_vm0, %v6992_v24 }
  0x7a   : > { %6730 = vmatprep.mubr.msk.bf16.mxu0 %vm979_vm0, %v6993_v25 }
  0x81   : > { %6731 = vmatmul.mubr.msk.bf16.gmra.mxu0 %vm979_vm0, %v6994_v26 }
  0x82   : > { %6734 = vmatprep.mubr.msk.bf16.mxu0 %vm979_vm0, %v6995_v27 }
  0x89   : > { %6735 = vmatmul.mubr.msk.bf16.gmra.mxu0 %vm979_vm0, %v6996_v28 }
  0x8a   : > { %6738 = vmatprep.mubr.msk.bf16.mxu0 %vm979_vm0, %v6997_v29 }
  0x91   : > { %6739 = vmatmul.mubr.msk.bf16.gmra.mxu0 %vm979_vm0, %v6998_v31 }
  0x92   : > { %6742 = vmatprep.mubr.msk.bf16.mxu0 %vm979_vm0, %v6999_v33 }
  0x99   : > { %6743 = vmatmul.mubr.msk.bf16.gmra.mxu0 %vm979_vm0, %v7000_v36 }
  0x9a   : > { %6746 = vmatprep.mubr.msk.bf16.mxu0 %vm979_vm0, %v7001_v37 }
  0xa1   : > { %6747 = vmatmul.mubr.msk.bf16.gmra.mxu0 %vm979_vm0, %v7002_v39 }
  0xa2   : > { %6750 = vmatprep.mubr.msk.bf16.mxu0 %vm979_vm0, %v7003_v40  ;;  %v7033_v40 = vld [vmem:[%s7254_s29 + $0x1d8] sm:$0xff]  }
  0xa9   : > { %6751 = vmatmul.mubr.msk.bf16.gmra.mxu0 %vm979_vm0, %v7004_v41 }
  0xaa   : > { %6754 = vmatprep.mubr.msk.bf16.mxu0 %vm979_vm0, %v7005_v42 }
  0xb1   : > { %6755 = vmatmul.mubr.msk.bf16.gmra.mxu0 %vm979_vm0, %v7006_v43 }
  0xb2   : > { %6758 = vmatprep.mubr.msk.bf16.mxu0 %vm979_vm0, %v7007_v44 }
  0xb9   : > { %6759 = vmatmul.mubr.msk.bf16.gmra.mxu0 %vm979_vm0, %v7008_v45  ;;  %v7037_v45 = vld [vmem:[%s7254_s29 + $0x1e0] sm:$0xff]  }
  0xba   : > { %6762 = vmatprep.mubr.msk.bf16.mxu0 %vm979_vm0, %v7009_v46 }
  0xc1   : > { %6763 = vmatmul.mubr.msk.bf16.gmra.mxu0 %vm979_vm0, %v7010_v47 }
  0xc2   : > { %6766 = vmatprep.mubr.msk.bf16.mxu0 %vm979_vm0, %v7011_v48 }
  0xc9   : > { %6767 = vmatmul.mubr.msk.bf16.gmra.mxu0 %vm979_vm0, %v7012_v49 }
  0xca   : > { %6770 = vmatprep.mubr.msk.bf16.mxu0 %vm979_vm0, %v7013_v50 }
  0xd1   : > { %6771 = vmatmul.mubr.msk.bf16.gmra.mxu0 %vm979_vm0, %v7014_v51 }
  0xd2   : > { %6774 = vmatprep.mubr.msk.bf16.mxu0 %vm979_vm0, %v7015_v52 }
  0xd9   : > { %6775 = vmatmul.mubr.msk.bf16.gmra.mxu0 %vm979_vm0, %v7016_v53 }
  0xda   : > { %6778 = vmatprep.mubr.msk.bf16.mxu0 %vm979_vm0, %v7017_v54 }
  0xe1   : > { %6779 = vmatmul.mubr.msk.bf16.gmra.mxu0 %vm979_vm0, %v7018_v55 }
  0xe2   : > { %6782 = vmatprep.mubr.msk.bf16.mxu0 %vm979_vm0, %v7019_v56 }
  0xe9   : > { %v6688_v59 = vpop.f32.mrf.mxu0  ;;  %6783 = vmatmul.mubr.msk.bf16.gmra.mxu0 %vm979_vm0, %v7020_v57 }
  0xea   : > { %6786 = vmatprep.mubr.msk.bf16.mxu0 %vm979_vm0, %v7021_v58  ;;  %v1263_v46 = vadd.f32 %v6688_v59, %v7394_v15 }
  0xeb   : > { %v1254_v60 = vpop.f32.mrf.mxu0 }
  0xec   : > { %v1255_v24 = vadd.f32 %v7394_v15, %v1254_v60 }
  0xed   : > { %v7371_v61 = vpop.f32.mrf.mxu0 }
  0xee   : > { %v1893_v34 = vmax.f32 %v1255_v24, 0.0  ;;  %v1266_v54 = vadd.f32 %v7371_v61, %v7394_v15 }
  0xef   : > { %v1257_v0 = vpop.f32.mrf.mxu0 }
  0xf0   : > { %v1258_v25 = vadd.f32 %v7394_v15, %v1257_v0 }
  0xf1   : > { %v6692_v1 = vpop.f32.mrf.mxu0  ;;  %6787 = vmatmul.mubr.msk.bf16.gmra.mxu0 %vm979_vm0, %v7022_v62 }
  0xf2   : > { %6790 = vmatprep.mubr.msk.bf16.mxu0 %vm979_vm0, %v7023_v63  ;;  %v1279_v20 = vadd.f32 %v6692_v1, %v7394_v15  ;;  %v1894_v35 = vmax.f32 %v1258_v25, 0.0  ;;  %v1895_v63 = vmax.f32 %v1263_v46, 0.0  ;;  %v7045_v46 = vld [vmem:[%s7254_s29 + $0x220] sm:$0xff]  }
  0xf3   : > { %v7377_v2 = vpop.f32.mrf.mxu0 }
  0xf4   : > { %v1899_v29 = vmax.f32 %v1279_v20, 0.0 }
  0xf5   : > { %v6693_v3 = vpop.f32.mrf.mxu0 }
  0xf6   : > { %v1282_v36 = vadd.f32 %v6693_v3, %v7394_v15  ;;  %v2054_v47 = vmax.f32 %v1894_v35, %v1899_v29  ;;  %v7043_v29 = vld [vmem:[%s7254_s29 + $0x210] sm:$0xff]  }
  0xf7   : > { %v1273_v6 = vpop.f32.mrf.mxu0 }
  0xf8   : > { %v1274_v21 = vadd.f32 %v7394_v15, %v1273_v6  ;;  %v1900_v55 = vmax.f32 %v1282_v36, 0.0  ;;  %v7038_v6 = vld [vmem:[%s7254_s29 + $0x1e8] sm:$0xff]   ;;  %v1271_v36 = vadd.f32 %v7394_v15, %v7377_v2 }
  0xf9   : > { %v6696_v7 = vpop.f32.mrf.mxu0  ;;  %6791 = vmatmul.mubr.msk.bf16.gmra.mxu0 %vm979_vm0, %v7024_v4 }
  0xfa   : > { %6794 = vmatprep.mubr.msk.bf16.mxu0 %vm979_vm0, %v7025_v5  ;;  %v1295_v23 = vadd.f32 %v6696_v7, %v7394_v15  ;;  %v1898_v30 = vmax.f32 %v1274_v21, 0.0  ;;  %v1896_v7 = vmax.f32 %v1266_v54, 0.0 }
  0xfb   : > { %v1286_v8 = vpop.f32.mrf.mxu0 }
  0xfc   : > { %v1903_v32 = vmax.f32 %v1295_v23, 0.0  ;;  %v2053_v48 = vmax.f32 %v1893_v34, %v1898_v30  ;;  %v1287_v50 = vadd.f32 %v7394_v15, %v1286_v8  ;;  %v2055_v8 = vmax.f32 %v1895_v63, %v1900_v55  ;;  %v7041_v23 = vld [vmem:[%s7254_s29 + $0x200] sm:$0xff]  }
  0xfd   : > { %v6697_v9 = vpop.f32.mrf.mxu0 }
  0xfe   : > { %v1298_v27 = vadd.f32 %v6697_v9, %v7394_v15  ;;  %v1901_v1 = vmax.f32 %v1287_v50, 0.0 }
  0xff   : > { %v7385_v12 = vpop.f32.mrf.mxu0 }
 0x100   : > { %v1904_v41 = vmax.f32 %v1298_v27, 0.0 }
 0x101   : > { %v7387_v13 = vpop.f32.mrf.mxu0  ;;  %6795 = vmatmul.mubr.msk.bf16.gmra.mxu0 %vm979_vm0, %v7026_v10  ;;  %v7039_v10 = vld [vmem:[%s7254_s29 + $0x1f0] sm:$0xff]  }
 0x102   : > { %6798 = vmatprep.mubr.msk.bf16.mxu0 %vm979_vm0, %v7027_v11  ;;  %v1311_v34 = vadd.f32 %v7387_v13, %v7394_v15 }
 0x103   : > { %v1302_v14 = vpop.f32.mrf.mxu0 }
 0x104   : > { %v1303_v37 = vadd.f32 %v7394_v15, %v1302_v14  ;;  %v2056_v14 = vmax.f32 %v1896_v7, %v1901_v1 }
 0x105   : > { %v6701_v16 = vpop.f32.mrf.mxu0 }
 0x106   : > { %v1314_v18 = vadd.f32 %v6701_v16, %v7394_v15  ;;  %v1905_v56 = vmax.f32 %v1303_v37, 0.0 }
 0x107   : > { %v1305_v22 = vpop.f32.mrf.mxu0 }
 0x108   : > { %v1908_v28 = vmax.f32 %v1314_v18, 0.0  ;;  %v1306_v51 = vadd.f32 %v7394_v15, %v1305_v22  ;;  %v7040_v22 = vld [vmem:[%s7254_s29 + $0x1f8] sm:$0xff]  }
 0x109   : > { %v6704_v26 = vpop.f32.mrf.mxu0  ;;  %6799 = vmatmul.mubr.msk.bf16.gmra.mxu0 %vm979_vm0, %v7028_v17 }
 0x10a   : > { %6802 = vmatprep.mubr.msk.bf16.mxu0 %vm979_vm0, %v7032_v19  ;;  %v2058_v42 = vmax.f32 %v1903_v32, %v1908_v28  ;;  %v1327_v43 = vadd.f32 %v6704_v26, %v7394_v15  ;;  %v1906_v3 = vmax.f32 %v1306_v51, 0.0  ;;  %v7042_v28 = vld [vmem:[%s7254_s29 + $0x208] sm:$0xff]  }
 0x10b   : > { %v1318_v31 = vpop.f32.mrf.mxu0 }
 0x10c   : > { %v1319_v33 = vadd.f32 %v7394_v15, %v1318_v31  ;;  %v2063_v58 = vmax.f32 %v2053_v48, %v2058_v42  ;;  %v1911_v59 = vmax.f32 %v1327_v43, 0.0  ;;  %v7044_v43 = vld [vmem:[%s7254_s29 + $0x218] sm:$0xff]  }
 0x10d   : > { %v7410_v39 = vpop.f32.mrf.mxu0 }
 0x10e   : > { %v1909_v44 = vmax.f32 %v1319_v33, 0.0  ;;  %v2061_v9 = vmax.f32 %v1906_v3, %v1911_v59  ;;  %v1330_v31 = vadd.f32 %v7410_v39, %v7394_v15  ;;  %v1290_v33 = vadd.f32 %v7394_v15, %v7385_v12 }
 0x10f   : > { %v1321_v49 = vpop.f32.mrf.mxu0  ;;  %v1907_v12 = vmax.f32 %v1311_v34, 0.0 }
 0x110   : > { %v2059_v52 = vmax.f32 %v1904_v41, %v1909_v44  ;;  %v1322_v53 = vadd.f32 %v7394_v15, %v1321_v49  ;;  %v2066_v18 = vmax.f32 %v2056_v14, %v2061_v9  ;;  %v1902_v44 = vmax.f32 %v1290_v33, 0.0 }
 0x111   : > { %v7421_v57 = vpop.f32.mrf.mxu0  ;;  %6803 = vmatmul.mubr.msk.bf16.gmra.mxu0 %vm979_vm0, %v7033_v40  ;;  %v1912_v40 = vmax.f32 %v1330_v31, 0.0 }
 0x112   : > { %v2064_v60 = vmax.f32 %v2054_v47, %v2059_v52  ;;  %v1910_v62 = vmax.f32 %v1322_v53, 0.0  ;;  %6806 = vmatprep.mubr.msk.bf16.mxu0 %vm979_vm0, %v7037_v45  ;;  %v1897_v47 = vmax.f32 %v1271_v36, 0.0  ;;  %v1343_v1 = vadd.f32 %v7421_v57, %v7394_v15 }
 0x113   : > { %v1334_v0 = vpop.f32.mrf.mxu0  ;;  %v2062_v49 = vmax.f32 %v1907_v12, %v1912_v40 }
 0x114   : > { %v7425_v61 = vpack.c.bf16 %v2064_v60, %v2063_v58  ;;  %v2060_v4 = vmax.f32 %v1905_v56, %v1910_v62  ;;  %v1335_v39 = vadd.f32 %v7394_v15, %v1334_v0  ;;  %v2057_v53 = vmax.f32 %v1897_v47, %v1902_v44 }
 0x115   : > { %v7427_v5 = vpop.f32.mrf.mxu0  ;;  %v1915_v57 = vmax.f32 %v1343_v1, 0.0 }
 0x116   : > { %6389 = vmatmul.mubr.msk.bf16.vlgmr.msra.gmra.mxu1 %vm2257_vm1, %v7425_v61  ;;  %v2065_v16 = vmax.f32 %v2055_v8, %v2060_v4  ;;  %v1913_v50 = vmax.f32 %v1335_v39, 0.0  ;;  %v2067_v60 = vmax.f32 %v2057_v53, %v2062_v49  ;;  %v1346_v39 = vadd.f32 %v7427_v5, %v7394_v15 }
 0x117   : > { %v7433_v11 = vpop.f32.mrf.mxu0  ;;  %2360 = vmatprep.mubr.bf16.mxu1 %v10449_v38 }
 0x118   : > { %v7440_v20 = vpack.c.bf16 %v2066_v18, %v2065_v16  ;;  %v1338_v3 = vadd.f32 %v7394_v15, %v7433_v11  ;;  %v1916_v5 = vmax.f32 %v1346_v39, 0.0 }
 0x119   : > { %v6712_v17 = vpop.f32.mrf.mxu0  ;;  %6807 = vmatmul.mubr.msk.bf16.gmra.mxu0 %vm979_vm0, %v7038_v6  ;;  %v7046_v6 = vld [vmem:[%s7254_s29 + $0x228] sm:$0xff]  }
 0x11a   : > { %6810 = vmatprep.mubr.msk.bf16.mxu0 %vm979_vm0, %v7039_v10  ;;  %v1359_v56 = vadd.f32 %v6712_v17, %v7394_v15  ;;  %v7047_v10 = vld [vmem:[%s7254_s29 + $0x230] sm:$0xff]   ;;  %v1914_v11 = vmax.f32 %v1338_v3, 0.0 }
 0x11b   : > { %v7438_v19 = vpop.f32.mrf.mxu0 }
 0x11c   : > { %v1919_v14 = vmax.f32 %v1359_v56, 0.0 }
 0x11d   : > { %v6713_v21 = vpop.f32.mrf.mxu0 }
 0x11e   : > { %6390 = vmatmul.mubr.msk.bf16.gmra.mxu1 %vm2257_vm1, %v7440_v20  ;;  %v1362_v58 = vadd.f32 %v6713_v21, %v7394_v15  ;;  %v2069_v33 = vmax.f32 %v1914_v11, %v1919_v14 }
 0x11f   : > { %v1353_v24 = vpop.f32.mrf.mxu0  ;;  %2370 = vmatprep.mubr.bf16.mxu1 %v10449_v38 }
 0x120   : > { %v1354_v35 = vadd.f32 %v7394_v15, %v1353_v24  ;;  %v1920_v16 = vmax.f32 %v1362_v58, 0.0  ;;  %v7050_v58 = vld [vmem:[%s7254_s29 + $0x248] sm:$0xff]  }
 0x121   : > { %v6716_v25 = vpop.f32.mrf.mxu0  ;;  %6811 = vmatmul.mubr.msk.bf16.gmra.mxu0 %vm979_vm0, %v7040_v22 }
 0x122   : > { %6814 = vmatprep.mubr.msk.bf16.mxu0 %vm979_vm0, %v7041_v23  ;;  %v1375_v41 = vadd.f32 %v6716_v25, %v7394_v15  ;;  %v1918_v45 = vmax.f32 %v1354_v35, 0.0 }
 0x123   : > { %v7449_v26 = vpop.f32.mrf.mxu0 }
 0x124   : > { %v1923_v51 = vmax.f32 %v1375_v41, 0.0  ;;  %v2068_v54 = vmax.f32 %v1913_v50, %v1918_v45  ;;  %v1367_v35 = vadd.f32 %v7394_v15, %v7449_v26 }
 0x125   : > { %v6717_v27 = vpop.f32.mrf.mxu0 }
 0x126   : > { %v1378_v62 = vadd.f32 %v6717_v27, %v7394_v15  ;;  %v1921_v49 = vmax.f32 %v1367_v35, 0.0 }
 0x127   : > { %v1369_v30 = vpop.f32.mrf.mxu0 }
 0x128   : > { %v1924_v18 = vmax.f32 %v1378_v62, 0.0  ;;  %v1370_v23 = vadd.f32 %v7394_v15, %v1369_v30  ;;  %v1351_v30 = vadd.f32 %v7394_v15, %v7438_v19 }
 0x129   : > { %v6720_v32 = vpop.f32.mrf.mxu0  ;;  %6815 = vmatmul.mubr.msk.bf16.gmra.mxu0 %vm979_vm0, %v7042_v28 }
 0x12a   : > { %6818 = vmatprep.mubr.msk.bf16.mxu0 %vm979_vm0, %v7043_v29  ;;  %v1391_v24 = vadd.f32 %v6720_v32, %v7394_v15  ;;  %v2070_v32 = vmax.f32 %v1915_v57, %v1920_v16  ;;  %v1922_v41 = vmax.f32 %v1370_v23, 0.0  ;;  %v7054_v16 = vld [vmem:[%s7254_s29 + $0x268] sm:$0xff]  }
 0x12b   : > { %v1382_v37 = vpop.f32.mrf.mxu0 }
 0x12c   : > { %v1383_v7 = vadd.f32 %v7394_v15, %v1382_v37  ;;  %v1927_v44 = vmax.f32 %v1391_v24, 0.0 }
 0x12d   : > { %v6721_v42 = vpop.f32.mrf.mxu0 }
 0x12e   : > { %v1394_v13 = vadd.f32 %v6721_v42, %v7394_v15  ;;  %v1925_v27 = vmax.f32 %v1383_v7, 0.0 }
 0x12f   : > { %v1385_v48 = vpop.f32.mrf.mxu0 }
 0x130   : > { %v1928_v2 = vmax.f32 %v1394_v13, 0.0  ;;  %v1386_v36 = vadd.f32 %v7394_v15, %v1385_v48  ;;  %v7049_v13 = vld [vmem:[%s7254_s29 + $0x240] sm:$0xff]  }
 0x131   : > { %v6724_v52 = vpop.f32.mrf.mxu0  ;;  %6819 = vmatmul.mubr.msk.bf16.gmra.mxu0 %vm979_vm0, %v7044_v43  ;;  %v7048_v43 = vld [vmem:[%s7254_s29 + $0x238] sm:$0xff]  }
 0x132   : > { %v2073_v55 = vmax.f32 %v1923_v51, %v1928_v2  ;;  %6822 = vmatprep.mubr.msk.bf16.mxu0 %vm979_vm0, %v7045_v46  ;;  %v1407_v28 = vadd.f32 %v6724_v52, %v7394_v15  ;;  %v1917_v46 = vmax.f32 %v1351_v30, 0.0  ;;  %v1926_v26 = vmax.f32 %v1386_v36, 0.0 }
 0x133   : > { %v1398_v59 = vpop.f32.mrf.mxu0 }
 0x134   : > { %v2078_v63 = vmax.f32 %v2068_v54, %v2073_v55  ;;  %v1399_v0 = vadd.f32 %v7394_v15, %v1398_v59  ;;  %v1931_v12 = vmax.f32 %v1407_v28, 0.0  ;;  %v2072_v2 = vmax.f32 %v1917_v46, %v1922_v41 }
 0x135   : > { %v6725_v4 = vpop.f32.mrf.mxu0  ;;  %v2071_v54 = vmax.f32 %v1916_v5, %v1921_v49 }
 0x136   : > { %v7481_v8 = vpack.c.bf16 %v2078_v63, %v2067_v60  ;;  %v1929_v9 = vmax.f32 %v1399_v0, 0.0  ;;  %v1410_v21 = vadd.f32 %v6725_v4, %v7394_v15  ;;  %v2076_v52 = vmax.f32 %v1926_v26, %v1931_v12  ;;  %v7051_v60 = vld [vmem:[%s7254_s29 + $0x250] sm:$0xff]   ;;  %v7052_v4 = vld [vmem:[%s7254_s29 + $0x258] sm:$0xff]  }
 0x137   : > { %v1401_v17 = vpop.f32.mrf.mxu0 }
 0x138   : > { %v1402_v22 = vadd.f32 %v7394_v15, %v1401_v17  ;;  %6391 = vmatmul.mubr.msk.bf16.gmra.mxu1 %vm2257_vm1, %v7481_v8  ;;  %v2074_v29 = vmax.f32 %v1924_v18, %v1929_v9  ;;  %v1932_v37 = vmax.f32 %v1410_v21, 0.0  ;;  %v2081_v59 = vmax.f32 %v2071_v54, %v2076_v52  ;;  %v7055_v17 = vld [vmem:[%s7254_s29 + $0x270] sm:$0xff]  }
 0x139   : > { %v7490_v25 = vpop.f32.mrf.mxu0  ;;  %6823 = vmatmul.mubr.msk.bf16.gmra.mxu0 %vm979_vm0, %v7046_v6  ;;  %2380 = vmatprep.mubr.bf16.mxu1 %v10449_v38  ;;  %v7053_v6 = vld [vmem:[%s7254_s29 + $0x260] sm:$0xff]  }
 0x13a   : > { %v1930_v31 = vmax.f32 %v1402_v22, 0.0  ;;  %6826 = vmatprep.mubr.msk.bf16.mxu0 %vm979_vm0, %v7047_v10  ;;  %v2079_v45 = vmax.f32 %v2069_v33, %v2074_v29  ;;  %v2077_v48 = vmax.f32 %v1927_v44, %v1932_v37  ;;  %v7056_v37 = vld [vmem:[%s7254_s29 + $0x278] sm:$0xff]  }
 0x13b   : > { %v1414_v34 = vpop.f32.mrf.mxu0 }
 0x13c   : > { %v2075_v40 = vmax.f32 %v1925_v27, %v1930_v31  ;;  %v2082_v55 = vmax.f32 %v2072_v2, %v2077_v48  ;;  %v1415_v24 = vadd.f32 %v7394_v15, %v1414_v34 }
 0x13d   : > { %v7503_v42 = vpop.f32.mrf.mxu0 }
 0x13e   : > { %v2080_v19 = vmax.f32 %v2070_v32, %v2075_v40  ;;  %v7518_v63 = vpack.c.bf16 %v2082_v55, %v2081_v59  ;;  %v1933_v40 = vmax.f32 %v1415_v24, 0.0  ;;  %v1426_v2 = vadd.f32 %v7503_v42, %v7394_v15  ;;  %v7057_v24 = vld [vmem:[%s10441_s4 + $0x30] ss:$20 sps:$4 sm:$0xff]  }
 0x13f   : > { %v1417_v47 = vpop.f32.mrf.mxu0 }
 0x140   : > { %v7507_v50 = vpack.c.bf16 %v2080_v19, %v2079_v45  ;;  %v1418_v27 = vadd.f32 %v7394_v15, %v1417_v47 }
 0x141   : > { %v6732_v51 = vpop.f32.mrf.mxu0  ;;  %6827 = vmatmul.mubr.msk.bf16.gmra.mxu0 %vm979_vm0, %v7048_v43 }
 0x142   : > { %6392 = vmatmul.mubr.msk.bf16.gmra.mxu1 %vm2257_vm1, %v7507_v50  ;;  %6830 = vmatprep.mubr.msk.bf16.mxu0 %vm979_vm0, %v7049_v13  ;;  %v1439_v22 = vadd.f32 %v6732_v51, %v7394_v15  ;;  %v1934_v39 = vmax.f32 %v1418_v27, 0.0  ;;  %v1423_v13 = vadd.f32 %v7490_v25, %v7394_v15  ;;  %v7059_v27 = vld [vmem:[%s10441_s4 + $0x34] ss:$20 sps:$4 sm:$0xff]  }
 0x143   : > { %v7513_v53 = vpop.f32.mrf.mxu0  ;;  %2390 = vmatprep.mubr.bf16.mxu1 %v10449_v38  ;;  %2563 = vmatprep.subr.bf16.mxu1 %v7059_v27 }
 0x144   : > { %v1939_v33 = vmax.f32 %v1439_v22, 0.0  ;;  %2564 = vmatpush1.bf16.msra.mxu1 %v7057_v24 }
 0x145   : > { %v6733_v56 = vpop.f32.mrf.mxu0 }
 0x146   : > { %v1442_v34 = vadd.f32 %v6733_v56, %v7394_v15  ;;  %v2084_v46 = vmax.f32 %v1934_v39, %v1939_v33  ;;  %v1431_v39 = vadd.f32 %v7394_v15, %v7513_v53 }
 0x147   : > { %v1433_v62 = vpop.f32.mrf.mxu0 }
 0x148   : > { %v1434_v57 = vadd.f32 %v7394_v15, %v1433_v62  ;;  %v1940_v55 = vmax.f32 %v1442_v34, 0.0 }
 0x149   : > { %v6736_v0 = vpop.f32.mrf.mxu0  ;;  %6831 = vmatmul.mubr.msk.bf16.gmra.mxu0 %vm979_vm0, %v7050_v58 }
 0x14a   : > { %6393 = vmatmul.mubr.msk.bf16.gmra.mxu1 %vm2257_vm1, %v7518_v63  ;;  %6834 = vmatprep.mubr.msk.bf16.mxu0 %vm979_vm0, %v7051_v60  ;;  %v1455_v11 = vadd.f32 %v6736_v0, %v7394_v15  ;;  %v1938_v32 = vmax.f32 %v1434_v57, 0.0  ;;  %v1935_v60 = vmax.f32 %v1423_v13, 0.0  ;;  %v1937_v13 = vmax.f32 %v1431_v39, 0.0 }
 0x14b   : > { %v1446_v1 = vpop.f32.mrf.mxu0  ;;  %2400 = vmatprep.mubr.bf16.mxu1 %v10449_v38 }
 0x14c   : > { %v1943_v35 = vmax.f32 %v1455_v11, 0.0  ;;  %v2083_v26 = vmax.f32 %v1933_v40, %v1938_v32  ;;  %v1447_v48 = vadd.f32 %v7394_v15, %v1446_v1 }
 0x14d   : > { %v6737_v3 = vpop.f32.mrf.mxu0 }
 0x14e   : > { %v1458_v28 = vadd.f32 %v6737_v3, %v7394_v15  ;;  %v1941_v62 = vmax.f32 %v1447_v48, 0.0 }
 0x14f   : > { %v7527_v7 = vpop.f32.mrf.mxu0 }
 0x150   : > { %v1944_v41 = vmax.f32 %v1458_v28, 0.0 }
 0x151   : > { %v7529_v9 = vpop.f32.mrf.mxu0  ;;  %6835 = vmatmul.mubr.msk.bf16.gmra.mxu0 %vm979_vm0, %v7052_v4 }
 0x152   : > { %6838 = vmatprep.mubr.msk.bf16.mxu0 %vm979_vm0, %v7053_v6  ;;  %v1936_v6 = vmax.f32 %v1426_v2, 0.0 }
 0x153   : > { %v1462_v10 = vpop.f32.mrf.mxu0 }
 0x154   : > { %v1463_v44 = vadd.f32 %v7394_v15, %v1462_v10  ;;  %v2085_v10 = vmax.f32 %v1935_v60, %v1940_v55 }
 0x155   : > { %v6741_v14 = vpop.f32.mrf.mxu0 }
 0x156   : > { %v1474_v18 = vadd.f32 %v6741_v14, %v7394_v15  ;;  %v1945_v25 = vmax.f32 %v1463_v44, 0.0 }
 0x157   : > { %v1465_v21 = vpop.f32.mrf.mxu0 }
 0x158   : > { %v1948_v29 = vmax.f32 %v1474_v18, 0.0  ;;  %v1466_v51 = vadd.f32 %v7394_v15, %v1465_v21 }
 0x159   : > { %v6744_v23 = vpop.f32.mrf.mxu0  ;;  %6839 = vmatmul.mubr.msk.bf16.gmra.mxu0 %vm979_vm0, %v7054_v16  ;;  %v2086_v16 = vmax.f32 %v1936_v6, %v1941_v62 }
 0x15a   : > { %6842 = vmatprep.mubr.msk.bf16.mxu0 %vm979_vm0, %v7055_v17  ;;  %v2088_v12 = vmax.f32 %v1943_v35, %v1948_v29  ;;  %v1487_v45 = vadd.f32 %v6744_v23, %v7394_v15  ;;  %v1946_v0 = vmax.f32 %v1466_v51, 0.0  ;;  %v1450_v35 = vadd.f32 %v7394_v15, %v7527_v7 }
 0x15b   : > { %v1478_v31 = vpop.f32.mrf.mxu0 }
 0x15c   : > { %v1479_v30 = vadd.f32 %v7394_v15, %v1478_v31  ;;  %v2093_v56 = vmax.f32 %v2083_v26, %v2088_v12  ;;  %v1951_v58 = vmax.f32 %v1487_v45, 0.0 }
 0x15d   : > { %v6745_v36 = vpop.f32.mrf.mxu0 }
 0x15e   : > { %v1949_v43 = vmax.f32 %v1479_v30, 0.0  ;;  %v2091_v14 = vmax.f32 %v1946_v0, %v1951_v58  ;;  %v1490_v30 = vadd.f32 %v6745_v36, %v7394_v15  ;;  %v1942_v36 = vmax.f32 %v1450_v35, 0.0 }
 0x15f   : > { %v1481_v19 = vpop.f32.mrf.mxu0 }
 0x160   : > { %v2089_v47 = vmax.f32 %v1944_v41, %v1949_v43  ;;  %v1482_v49 = vadd.f32 %v7394_v15, %v1481_v19  ;;  %v2096_v21 = vmax.f32 %v2086_v16, %v2091_v14  ;;  %v1952_v43 = vmax.f32 %v1490_v30, 0.0 }
 0x161   : > { %v7554_v5 = vpop.f32.mrf.mxu0  ;;  %6843 = vmatmul.mubr.msk.bf16.gmra.mxu0 %vm979_vm0, %v7056_v37  ;;  %v1471_v37 = vadd.f32 %v7529_v9, %v7394_v15  ;;  %v2087_v53 = vmax.f32 %v1937_v13, %v1942_v36 }
 0x162   : > { %v2094_v52 = vmax.f32 %v2084_v46, %v2089_v47  ;;  %v1950_v54 = vmax.f32 %v1482_v49, 0.0  ;;  %v1503_v60 = vadd.f32 %v7554_v5, %v7394_v15 }
 0x163   : > { %v1494_v59 = vpop.f32.mrf.mxu0  ;;  %v1947_v45 = vmax.f32 %v1471_v37, 0.0 }
 0x164   : > { %v2090_v1 = vmax.f32 %v1945_v25, %v1950_v54  ;;  %v7561_v4 = vpack.c.bf16 %v2094_v52, %v2093_v56  ;;  %v1495_v34 = vadd.f32 %v7394_v15, %v1494_v59  ;;  %v1955_v5 = vmax.f32 %v1503_v60, 0.0 }
 0x165   : > { %v7559_v3 = vpop.f32.mrf.mxu0  ;;  %v2092_v9 = vmax.f32 %v1947_v45, %v1952_v43 }
 0x166   : > { %6394 = vmatmul.mubr.msk.bf16.gmra.mxu1 %vm2257_vm1, %v7561_v4  ;;  %v2095_v17 = vmax.f32 %v2085_v10, %v2090_v1  ;;  %v1953_v47 = vmax.f32 %v1495_v34, 0.0 }
 0x167   : > { %v1497_v42 = vpop.f32.mrf.mxu0  ;;  %2410 = vmatprep.mubr.bf16.mxu1 %v10449_v38  ;;  %v2097_v25 = vmax.f32 %v2087_v53, %v2092_v9 }
 0x168   : > { %v7568_v11 = vpack.c.bf16 %v2096_v21, %v2095_v17  ;;  %v1498_v62 = vadd.f32 %v7394_v15, %v1497_v42 }
 0x169   : > { %v6752_v18 = vpop.f32.mrf.mxu0 }
 0x16a   : > { %v1519_v52 = vadd.f32 %v6752_v18, %v7394_v15 }
 0x16b   : > { %v7566_v22 = vpop.f32.mrf.mxu0 }
 0x16c   : > { %v1959_v14 = vmax.f32 %v1519_v52, 0.0 }
 0x16d   : > { %v6753_v57 = vpop.f32.mrf.mxu0 }
 0x16e   : > { %6395 = vmatmul.mubr.msk.bf16.gmra.mxu1 %vm2257_vm1, %v7568_v11  ;;  %v1522_v54 = vadd.f32 %v6753_v57, %v7394_v15 }
 0x16f   : > { %v1513_v23 = vpop.f32.mrf.mxu0  ;;  %2420 = vmatprep.mubr.bf16.mxu1 %v10449_v38 }
 0x170   : > { %v1514_v40 = vadd.f32 %v7394_v15, %v1513_v23  ;;  %v1960_v16 = vmax.f32 %v1522_v54, 0.0  ;;  %v1954_v23 = vmax.f32 %v1498_v62, 0.0 }
 0x171   : > { %v6756_v28 = vpop.f32.mrf.mxu0 }
 0x172   : > { %v1535_v44 = vadd.f32 %v6756_v28, %v7394_v15  ;;  %v1958_v19 = vmax.f32 %v1514_v40, 0.0  ;;  %v2099_v37 = vmax.f32 %v1954_v23, %v1959_v14  ;;  %v1511_v40 = vadd.f32 %v7394_v15, %v7566_v22 }
 0x173   : > { %v7579_v29 = vpop.f32.mrf.mxu0  ;;  %v2100_v39 = vmax.f32 %v1955_v5, %v1960_v16 }
 0x174   : > { %v1963_v49 = vmax.f32 %v1535_v44, 0.0  ;;  %v2098_v51 = vmax.f32 %v1953_v47, %v1958_v19  ;;  %v1506_v44 = vadd.f32 %v7559_v3, %v7394_v15  ;;  %v1957_v22 = vmax.f32 %v1511_v40, 0.0 }
 0x175   : > { %v6757_v31 = vpop.f32.mrf.mxu0 }
 0x176   : > { %v1538_v56 = vadd.f32 %v6757_v31, %v7394_v15 }
 0x177   : > { %v1529_v33 = vpop.f32.mrf.mxu0 }
 0x178   : > { %v1964_v18 = vmax.f32 %v1538_v56, 0.0  ;;  %v1530_v42 = vadd.f32 %v7394_v15, %v1529_v33  ;;  %v1527_v33 = vadd.f32 %v7394_v15, %v7579_v29 }
 0x179   : > { %v6760_v32 = vpop.f32.mrf.mxu0 }
 0x17a   : > { %v1551_v24 = vadd.f32 %v6760_v32, %v7394_v15  ;;  %v1961_v47 = vmax.f32 %v1527_v33, 0.0 }
 0x17b   : > { %v1542_v41 = vpop.f32.mrf.mxu0 }
 0x17c   : > { %v1543_v1 = vadd.f32 %v7394_v15, %v1542_v41  ;;  %v1967_v45 = vmax.f32 %v1551_v24, 0.0 }
 0x17d   : > { %v6761_v12 = vpop.f32.mrf.mxu0 }
 0x17e   : > { %v1554_v7 = vadd.f32 %v6761_v12, %v7394_v15  ;;  %v1965_v28 = vmax.f32 %v1543_v1, 0.0  ;;  %v1962_v12 = vmax.f32 %v1530_v42, 0.0 }
 0x17f   : > { %v1545_v46 = vpop.f32.mrf.mxu0 }
 0x180   : > { %v1968_v26 = vmax.f32 %v1554_v7, 0.0  ;;  %v1546_v32 = vadd.f32 %v7394_v15, %v1545_v46  ;;  %v2102_v53 = vmax.f32 %v1957_v22, %v1962_v12 }
 0x181   : > { %v6764_v48 = vpop.f32.mrf.mxu0 }
 0x182   : > { %v2103_v2 = vmax.f32 %v1963_v49, %v1968_v26  ;;  %v1567_v31 = vadd.f32 %v6764_v48, %v7394_v15  ;;  %v1966_v49 = vmax.f32 %v1546_v32, 0.0  ;;  %v1956_v48 = vmax.f32 %v1506_v44, 0.0 }
 0x183   : > { %v1558_v55 = vpop.f32.mrf.mxu0 }
 0x184   : > { %v2108_v58 = vmax.f32 %v2098_v51, %v2103_v2  ;;  %v1559_v59 = vadd.f32 %v7394_v15, %v1558_v55  ;;  %v1971_v19 = vmax.f32 %v1567_v31, 0.0  ;;  %v2101_v2 = vmax.f32 %v1956_v48, %v1961_v47 }
 0x185   : > { %v6765_v0 = vpop.f32.mrf.mxu0 }
 0x186   : > { %v7600_v6 = vpack.c.bf16 %v2108_v58, %v2097_v25  ;;  %v1969_v10 = vmax.f32 %v1559_v59, 0.0  ;;  %v1570_v21 = vadd.f32 %v6765_v0, %v7394_v15  ;;  %v2106_v51 = vmax.f32 %v1966_v49, %v1971_v19 }
 0x187   : > { %v1561_v17 = vpop.f32.mrf.mxu0 }
 0x188   : > { %v1562_v57 = vadd.f32 %v7394_v15, %v1561_v17  ;;  %6396 = vmatmul.mubr.msk.bf16.gmra.mxu1 %vm2257_vm1, %v7600_v6  ;;  %v2104_v30 = vmax.f32 %v1964_v18, %v1969_v10  ;;  %v1972_v43 = vmax.f32 %v1570_v21, 0.0  ;;  %v2111_v55 = vmax.f32 %v2101_v2, %v2106_v51 }
 0x189   : > { %v7608_v27 = vpop.f32.mrf.mxu0  ;;  %2430 = vmatprep.mubr.bf16.mxu1 %v10449_v38 }
 0x18a   : > { %v1970_v35 = vmax.f32 %v1562_v57, 0.0  ;;  %v2109_v7 = vmax.f32 %v2099_v37, %v2104_v30  ;;  %v2107_v26 = vmax.f32 %v1967_v45, %v1972_v43  ;;  %v1583_v45 = vadd.f32 %v7608_v27, %v7394_v15 }
 0x18b   : > { %v1574_v41 = vpop.f32.mrf.mxu0 }
 0x18c   : > { %v2105_v34 = vmax.f32 %v1965_v28, %v1970_v35  ;;  %v2112_v52 = vmax.f32 %v2102_v53, %v2107_v26  ;;  %v1575_v57 = vadd.f32 %v7394_v15, %v1574_v41 }
 0x18d   : > { %v7619_v36 = vpop.f32.mrf.mxu0 }
 0x18e   : > { %v2110_v13 = vmax.f32 %v2100_v39, %v2105_v34  ;;  %v7628_v56 = vpack.c.bf16 %v2112_v52, %v2111_v55  ;;  %v1973_v40 = vmax.f32 %v1575_v57, 0.0  ;;  %v1586_v26 = vadd.f32 %v7619_v36, %v7394_v15 }
 0x18f   : > { %v1577_v9 = vpop.f32.mrf.mxu0 }
 0x190   : > { %v7621_v29 = vpack.c.bf16 %v2110_v13, %v2109_v7  ;;  %v1578_v5 = vadd.f32 %v7394_v15, %v1577_v9 }
 0x191   : > { %v6772_v46 = vpop.f32.mrf.mxu0 }
 0x192   : > { %6397 = vmatmul.mubr.msk.bf16.gmra.mxu1 %vm2257_vm1, %v7621_v29  ;;  %v1599_v16 = vadd.f32 %v6772_v46, %v7394_v15  ;;  %v1974_v39 = vmax.f32 %v1578_v5, 0.0 }
 0x193   : > { %v7625_v3 = vpop.f32.mrf.mxu0  ;;  %2440 = vmatprep.mubr.bf16.mxu1 %v10449_v38 }
 0x194   : > { %v1979_v28 = vmax.f32 %v1599_v16, 0.0 }
 0x195   : > { %v6773_v54 = vpop.f32.mrf.mxu0 }
 0x196   : > { %v1602_v33 = vadd.f32 %v6773_v54, %v7394_v15  ;;  %v2114_v19 = vmax.f32 %v1974_v39, %v1979_v28  ;;  %v1975_v54 = vmax.f32 %v1583_v45, 0.0 }
 0x197   : > { %v1593_v25 = vpop.f32.mrf.mxu0 }
 0x198   : > { %v1594_v17 = vadd.f32 %v7394_v15, %v1593_v25  ;;  %v1980_v46 = vmax.f32 %v1602_v33, 0.0 }
 0x199   : > { %v6776_v58 = vpop.f32.mrf.mxu0 }
 0x19a   : > { %6398 = vmatmul.mubr.msk.bf16.gmra.mxu1 %vm2257_vm1, %v7628_v56  ;;  %v1615_v21 = vadd.f32 %v6776_v58, %v7394_v15  ;;  %v1978_v31 = vmax.f32 %v1594_v17, 0.0 }
 0x19b   : > { %v1606_v59 = vpop.f32.mrf.mxu0  ;;  %2450 = vmatprep.mubr.bf16.mxu1 %v10449_v38 }
 0x19c   : > { %v1983_v35 = vmax.f32 %v1615_v21, 0.0  ;;  %v2113_v7 = vmax.f32 %v1973_v40, %v1978_v31  ;;  %v1607_v22 = vadd.f32 %v7394_v15, %v1606_v59 }
 0x19d   : > { %v6777_v60 = vpop.f32.mrf.mxu0 }
 0x19e   : > { %v1618_v42 = vadd.f32 %v6777_v60, %v7394_v15  ;;  %v1981_v25 = vmax.f32 %v1607_v22, 0.0 }
 0x19f   : > { %v7633_v62 = vpop.f32.mrf.mxu0 }
 0x1a0   : > { %v1984_v41 = vmax.f32 %v1618_v42, 0.0  ;;  %v7060_v42 = vld [vmem:[%s10441_s4 + $0x8] ss:$20 sps:$4 sm:$0xff]  }
 0x1a1   : > { %v7635_v0 = vpop.f32.mrf.mxu0 }
 0x1a3   : > { %v1622_v1 = vpop.f32.mrf.mxu0 }
 0x1a4   : > { %v1623_v32 = vadd.f32 %v7394_v15, %v1622_v1 }
 0x1a5   : > { %v6781_v10 = vpop.f32.mrf.mxu0 }
 0x1a6   : > { %v1634_v14 = vadd.f32 %v6781_v10, %v7394_v15  ;;  %v1985_v48 = vmax.f32 %v1623_v32, 0.0  ;;  %v1976_v10 = vmax.f32 %v1586_v26, 0.0  ;;  %v1610_v32 = vadd.f32 %v7394_v15, %v7633_v62 }
 0x1a7   : > { %v1625_v18 = vpop.f32.mrf.mxu0 }
 0x1a8   : > { %v1988_v24 = vmax.f32 %v1634_v14, 0.0  ;;  %v1626_v9 = vadd.f32 %v7394_v15, %v1625_v18  ;;  %v2115_v14 = vmax.f32 %v1975_v54, %v1980_v46  ;;  %v2116_v17 = vmax.f32 %v1976_v10, %v1981_v25 }
 0x1a9   : > { %v6784_v23 = vpop.f32.mrf.mxu0 }
 0x1aa   : > { %v2118_v34 = vmax.f32 %v1983_v35, %v1988_v24  ;;  %v1647_v44 = vadd.f32 %v6784_v23, %v7394_v15  ;;  %v1986_v58 = vmax.f32 %v1626_v9, 0.0  ;;  %v7062_v24 = vld [vmem:[%s10441_s4 + $0xc] ss:$20 sps:$4 sm:$0xff]  }
 0x1ab   : > { %v1638_v30 = vpop.f32.mrf.mxu0  ;;  %2565 = vmatprep.subr.bf16.mxu1 %v7062_v24 }
 0x1ac   : > { %v1639_v37 = vadd.f32 %v7394_v15, %v1638_v30  ;;  %v2123_v51 = vmax.f32 %v2113_v7, %v2118_v34  ;;  %v1991_v2 = vmax.f32 %v1647_v44, 0.0  ;;  %2566 = vmatpush1.bf16.msra.mxu1 %v7060_v42  ;;  %v1591_v44 = vadd.f32 %v7394_v15, %v7625_v3 }
 0x1ad   : > { %v6785_v43 = vpop.f32.mrf.mxu0 }
 0x1ae   : > { %v1989_v12 = vmax.f32 %v1639_v37, 0.0  ;;  %v2121_v36 = vmax.f32 %v1986_v58, %v1991_v2  ;;  %v1650_v39 = vadd.f32 %v6785_v43, %v7394_v15  ;;  %v1982_v43 = vmax.f32 %v1610_v32, 0.0 }
 0x1af   : > { %v1641_v13 = vpop.f32.mrf.mxu0 }
 0x1b0   : > { %v2119_v47 = vmax.f32 %v1984_v41, %v1989_v12  ;;  %v1642_v49 = vadd.f32 %v7394_v15, %v1641_v13  ;;  %v2126_v57 = vmax.f32 %v2116_v17, %v2121_v36  ;;  %v1631_v41 = vadd.f32 %v7635_v0, %v7394_v15 }
 0x1b1   : > { %v7655_v53 = vpop.f32.mrf.mxu0  ;;  %v1992_v45 = vmax.f32 %v1650_v39, 0.0 }
 0x1b2   : > { %v2124_v27 = vmax.f32 %v2114_v19, %v2119_v47  ;;  %v1990_v52 = vmax.f32 %v1642_v49, 0.0  ;;  %v1987_v22 = vmax.f32 %v1631_v41, 0.0  ;;  %v1977_v47 = vmax.f32 %v1591_v44, 0.0 }
 0x1b3   : > { %v1654_v55 = vpop.f32.mrf.mxu0 }
 0x1b4   : > { %v7657_v59 = vpack.c.bf16 %v2124_v27, %v2123_v51  ;;  %v2120_v60 = vmax.f32 %v1985_v48, %v1990_v52  ;;  %v1655_v19 = vadd.f32 %v7394_v15, %v1654_v55  ;;  %v2122_v0 = vmax.f32 %v1987_v22, %v1992_v45  ;;  %v7721_v22 = vld [vmem:[%s10439_s2] ss:$0 sm:$0xff] }
 0x1b5   : > { %v7659_v1 = vpop.f32.mrf.mxu0  ;;  %v2117_v3 = vmax.f32 %v1977_v47, %v1982_v43 }
 0x1b6   : > { %6399 = vmatmul.mubr.msk.bf16.gmra.mxu1 %vm2257_vm1, %v7657_v59  ;;  %v2125_v18 = vmax.f32 %v2115_v14, %v2120_v60  ;;  %v1993_v26 = vmax.f32 %v1655_v19, 0.0  ;;  %v1663_v14 = vadd.f32 %v7655_v53, %v7394_v15 }
 0x1b7   : > { %v1657_v16 = vpop.f32.mrf.mxu0  ;;  %2460 = vmatprep.mubr.bf16.mxu1 %v10449_v38  ;;  %v2127_v25 = vmax.f32 %v2117_v3, %v2122_v0 }
 0x1b8   : > { %v7666_v23 = vpack.c.bf16 %v2126_v57, %v2125_v18  ;;  %v1658_v36 = vadd.f32 %v7394_v15, %v1657_v16  ;;  %v1995_v39 = vmax.f32 %v1663_v14, 0.0 }
 0x1b9   : > { %v6792_v21 = vpop.f32.mrf.mxu0 }
 0x1ba   : > { %v1679_v52 = vadd.f32 %v6792_v21, %v7394_v15  ;;  %v1994_v32 = vmax.f32 %v1658_v36, 0.0 }
 0x1bb   : > { %v7664_v5 = vpop.f32.mrf.mxu0 }
 0x1bc   : > { %v1999_v24 = vmax.f32 %v1679_v52, 0.0 }
 0x1bd   : > { %v6793_v28 = vpop.f32.mrf.mxu0 }
 0x1be   : > { %6400 = vmatmul.mubr.msk.bf16.gmra.mxu1 %vm2257_vm1, %v7666_v23  ;;  %v1682_v54 = vadd.f32 %v6793_v28, %v7394_v15  ;;  %v2129_v43 = vmax.f32 %v1994_v32, %v1999_v24 }
 0x1bf   : > { %v1673_v31 = vpop.f32.mrf.mxu0  ;;  %2470 = vmatprep.mubr.bf16.mxu1 %v10449_v38 }
 0x1c0   : > { %v1674_v34 = vadd.f32 %v7394_v15, %v1673_v31  ;;  %v2000_v28 = vmax.f32 %v1682_v54, 0.0 }
 0x1c1   : > { %v6796_v30 = vpop.f32.mrf.mxu0 }
 0x1c2   : > { %v1695_v7 = vadd.f32 %v6796_v30, %v7394_v15  ;;  %v1998_v9 = vmax.f32 %v1674_v34, 0.0 }
 0x1c3   : > { %v7677_v35 = vpop.f32.mrf.mxu0 }
 0x1c4   : > { %v2003_v46 = vmax.f32 %v1695_v7, 0.0  ;;  %v2128_v2 = vmax.f32 %v1993_v26, %v1998_v9 }
 0x1c5   : > { %v6797_v37 = vpop.f32.mrf.mxu0 }
 0x1c6   : > { %v1698_v58 = vadd.f32 %v6797_v37, %v7394_v15 }
 0x1c7   : > { %v1689_v40 = vpop.f32.mrf.mxu0 }
 0x1c8   : > { %v2004_v30 = vmax.f32 %v1698_v58, 0.0  ;;  %v1690_v41 = vadd.f32 %v7394_v15, %v1689_v40  ;;  %v1671_v40 = vadd.f32 %v7721_v22, %v7664_v5 }
 0x1c9   : > { %v6800_v33 = vpop.f32.mrf.mxu0 }
 0x1ca   : > { %v1711_v34 = vadd.f32 %v6800_v33, %v7394_v15  ;;  %v2130_v33 = vmax.f32 %v1995_v39, %v2000_v28 }
 0x1cb   : > { %v1702_v12 = vpop.f32.mrf.mxu0 }
 0x1cc   : > { %v1703_v18 = vadd.f32 %v7394_v15, %v1702_v12  ;;  %v2007_v5 = vmax.f32 %v1711_v34, 0.0 }
 0x1cd   : > { %v6801_v13 = vpop.f32.mrf.mxu0 }
 0x1ce   : > { %v1714_v62 = vadd.f32 %v6801_v13, %v7394_v15  ;;  %v2005_v12 = vmax.f32 %v1703_v18, 0.0 }
 0x1cf   : > { %v1705_v49 = vpop.f32.mrf.mxu0 }
 0x1d0   : > { %v2008_v48 = vmax.f32 %v1714_v62, 0.0  ;;  %v1706_v62 = vadd.f32 %v7721_v22, %v1705_v49  ;;  %v1997_v49 = vmax.f32 %v1671_v40, 0.0 }
 0x1d1   : > { %v6804_v51 = vpop.f32.mrf.mxu0 }
 0x1d2   : > { %v2133_v27 = vmax.f32 %v2003_v46, %v2008_v48  ;;  %v1727_v45 = vadd.f32 %v6804_v51, %v7394_v15  ;;  %v1666_v46 = vadd.f32 %v7721_v22, %v7659_v1  ;;  %v2002_v48 = vmax.f32 %v1690_v41, 0.0 }
 0x1d3   : > { %v1718_v55 = vpop.f32.mrf.mxu0 }
 0x1d4   : > { %v2138_v60 = vmax.f32 %v2128_v2, %v2133_v27  ;;  %v1719_v10 = vadd.f32 %v7394_v15, %v1718_v55  ;;  %v2011_v3 = vmax.f32 %v1727_v45, 0.0  ;;  %v2006_v55 = vmax.f32 %v1706_v62, 0.0 }
 0x1d5   : > { %v6805_v17 = vpop.f32.mrf.mxu0  ;;  %v2132_v14 = vmax.f32 %v1997_v49, %v2002_v48 }
 0x1d6   : > { %v7698_v57 = vpack.c.bf16 %v2138_v60, %v2127_v25  ;;  %v2009_v21 = vmax.f32 %v1719_v10, 0.0  ;;  %v7700_v42 = vpop.f32.mrf.mxu1  ;;  %v1730_v53 = vadd.f32 %v6805_v17, %v7394_v15  ;;  %v1996_v10 = vmax.f32 %v1666_v46, 0.0 }
 0x1d7   : > { %10563 = vst [vmem:[#allocation5_spill] sm:$0xff] %v7700_v42  ;;  %v1721_v31 = vpop.f32.mrf.mxu0  ;;  %2982 = vrot.lane.b32.xlu1 %v7700_v42, %s10547_s25  ;;  %v2136_v36 = vmax.f32 %v2006_v55, %v2011_v3 }
 0x1d8   : > { %v1722_v16 = vadd.f32 %v7394_v15, %v1721_v31  ;;  %v7706_v37 = vpop.f32.mrf.mxu1  ;;  %6401 = vmatmul.mubr.msk.bf16.gmra.mxu1 %vm2257_vm1, %v7698_v57  ;;  %v2134_v19 = vmax.f32 %v2004_v30, %v2009_v21  ;;  %v1687_v15 = vadd.f32 %v7721_v22, %v7677_v35  ;;  %v2012_v47 = vmax.f32 %v1730_v53, 0.0 }
 0x1d9   : > { %v7712_v44 = vpop.f32.mrf.mxu0  ;;  %2480 = vmatprep.mubr.bf16.mxu1 %v10449_v38 }
 0x1da   : > { %v2010_v7 = vmax.f32 %v1722_v16, 0.0  ;;  %v7716_v13 = vpop.f32.mrf.mxu1  ;;  %v2139_v2 = vmax.f32 %v2129_v43, %v2134_v19  ;;  %v2001_v54 = vmax.f32 %v1687_v15, 0.0  ;;  %v2137_v1 = vmax.f32 %v2007_v5, %v2012_v47 }
 0x1db   : > { %10564 = vst [vmem:[#allocation6_spill] sm:$0xff] %v7716_v13  ;;  %v1734_v9 = vpop.f32.mrf.mxu0  ;;  %3002 = vrot.lane.b32.xlu1 %v7706_v37, %s10547_s25 }
 0x1dc   : > { %v2135_v0 = vmax.f32 %v2005_v12, %v2010_v7  ;;  %v7730_v26 = vpop.f32.mrf.mxu1  ;;  %v2131_v18 = vmax.f32 %v1996_v10, %v2001_v54  ;;  %v2142_v21 = vmax.f32 %v2132_v14, %v2137_v1 }
 0x1dd   : > { %v7734_v51 = vpop.f32.mrf.mxu0  ;;  %3004 = vrot.lane.b32.xlu0 %v7730_v26, %s10547_s25 }
 0x1de   : > { %v2140_v27 = vmax.f32 %v2130_v33, %v2135_v0  ;;  %v7738_v35 = vpop.f32.mrf.mxu1  ;;  %v2141_v31 = vmax.f32 %v2131_v18, %v2136_v36  ;;  %v1735_v0 = vadd.f32 %v7721_v22, %v1734_v9 }
 0x1df   : > { %10565 = vst [vmem:[#allocation7_spill] sm:$0xff] %v7738_v35  ;;  %v1737_v52 = vpop.f32.mrf.mxu0  ;;  %2984 = vrot.lane.b32.xlu1 %v7716_v13, %s10547_s25 }
 0x1e0   : > { %v7742_v25 = vpop.f32.mrf.mxu1  ;;  %v7744_v58 = vpack.c.bf16 %v2140_v27, %v2139_v2  ;;  %v7759_v53 = vpack.c.bf16 %v2142_v21, %v2141_v31  ;;  %v1738_v46 = vadd.f32 %v7721_v22, %v1737_v52  ;;  %v2013_v9 = vmax.f32 %v1735_v0, 0.0 }
 0x1e1   : > { %v6812_v60 = vpop.f32.mrf.mxu0  ;;  %3006 = vrot.lane.b32.xlu0 %v7742_v25, %s10547_s25 }
 0x1e2   : > { %6402 = vmatmul.mubr.msk.bf16.gmra.mxu1 %vm2257_vm1, %v7744_v58  ;;  %v7755_v24 = vpop.f32.mrf.mxu1  ;;  %v1759_v40 = vadd.f32 %v7721_v22, %v6812_v60  ;;  %v2014_v52 = vmax.f32 %v1738_v46, 0.0 }
 0x1e3   : > { %v7750_v17 = vpop.f32.mrf.mxu0  ;;  %2986 = vrot.lane.b32.xlu1 %v7738_v35, %s10547_s25  ;;  %2490 = vmatprep.mubr.bf16.mxu1 %v10449_v38  ;;  %10566 = vst [vmem:[#allocation8_spill] sm:$0xff] %v7755_v24 }
 0x1e4   : > { %v7761_v16 = vpop.f32.mrf.mxu1  ;;  %v2019_v27 = vmax.f32 %v1759_v40, 0.0 }
 0x1e5   : > { %v6813_v28 = vpop.f32.mrf.mxu0  ;;  %2988 = vrot.lane.b32.xlu0 %v7755_v24, %s10547_s25 }
 0x1e6   : > { %v1762_v18 = vadd.f32 %v7721_v22, %v6813_v28 }
 0x1e7   : > { %v1753_v30 = vpop.f32.mrf.mxu0 }
 0x1e8   : > { %v1754_v15 = vadd.f32 %v7721_v22, %v1753_v30 }
 0x1e9   : > { %v6816_v39 = vpop.f32.mrf.mxu0  ;;  %3008 = vrot.lane.b32.xlu0 %v7761_v16, %s10547_s25 }
 0x1ea   : > { %6403 = vmatmul.mubr.msk.bf16.gmra.mxu1 %vm2257_vm1, %v7759_v53  ;;  %v1775_v62 = vadd.f32 %v7721_v22, %v6816_v39  ;;  %v2018_v55 = vmax.f32 %v1754_v15, 0.0 }
 0x1eb   : > { %v1766_v32 = vpop.f32.mrf.mxu0  ;;  %2500 = vmatprep.mubr.bf16.mxu1 %v10449_v38 }
 0x1ec   : > { %v2023_v1 = vmax.f32 %v1775_v62, 0.0  ;;  %v2143_v15 = vmax.f32 %v2013_v9, %v2018_v55  ;;  %v1767_v62 = vadd.f32 %v7721_v22, %v1766_v32 }
 0x1ed   : > { %v6817_v41 = vpop.f32.mrf.mxu0 }
 0x1ee   : > { %v1778_v48 = vadd.f32 %v7721_v22, %v6817_v41  ;;  %v1743_v41 = vadd.f32 %v7721_v22, %v7712_v44  ;;  %v2021_v32 = vmax.f32 %v1767_v62, 0.0 }
 0x1ef   : > { %v7768_v34 = vpop.f32.mrf.mxu0 }
 0x1f0   : > { %v2024_v10 = vmax.f32 %v1778_v48, 0.0 }
 0x1f1   : > { %v7770_v12 = vpop.f32.mrf.mxu0 }
 0x1f3   : > { %v1782_v45 = vpop.f32.mrf.mxu0 }
 0x1f4   : > { %v1783_v21 = vadd.f32 %v7721_v22, %v1782_v45  ;;  %v1746_v45 = vadd.f32 %v7721_v22, %v7734_v51 }
 0x1f5   : > { %v6821_v19 = vpop.f32.mrf.mxu0 }
 0x1f6   : > { %v1794_v7 = vadd.f32 %v7721_v22, %v6821_v19  ;;  %v2144_v19 = vmax.f32 %v2014_v52, %v2019_v27 }
 0x1f7   : > { %v1785_v43 = vpop.f32.mrf.mxu0 }
 0x1f8   : > { %v7774_v33 = vpop.f32.mrf.mxu1  ;;  %v2028_v3 = vmax.f32 %v1794_v7, 0.0  ;;  %v1786_v28 = vadd.f32 %v7721_v22, %v1785_v43 }
 0x1f9   : > { %v6824_v47 = vpop.f32.mrf.mxu0  ;;  %2990 = vrot.lane.b32.xlu1 %v7774_v33, %s10547_s25 }
 0x1fa   : > { %v7783_v5 = vpop.f32.mrf.mxu1  ;;  %v2148_v31 = vmax.f32 %v2023_v1, %v2028_v3  ;;  %v1807_v30 = vadd.f32 %v7721_v22, %v6824_v47  ;;  %v2020_v3 = vmax.f32 %v1762_v18, 0.0  ;;  %v2026_v1 = vmax.f32 %v1786_v28, 0.0 }
 0x1fb   : > { %v1798_v2 = vpop.f32.mrf.mxu0  ;;  %3010 = vrot.lane.b32.xlu0 %v7783_v5, %s10547_s25 }
 0x1fc   : > { %v1799_v49 = vadd.f32 %v7721_v22, %v1798_v2  ;;  %v2376_v54 = vpop.f32.mrf.mxu1  ;;  %v2025_v2 = vmax.f32 %v1783_v21, 0.0  ;;  %v2153_v44 = vmax.f32 %v2143_v15, %v2148_v31  ;;  %v2031_v27 = vmax.f32 %v1807_v30, 0.0 }
 0x1fd   : > { %v7788_v60 = vpop.f32.mrf.mxu0  ;;  %3062 = vrot.lane.b32.xlu1 %v2376_v54, %s10547_s25  ;;  %v2015_v54 = vmax.f32 %v1743_v41, 0.0 }
 0x1fe   : > { %v2029_v14 = vmax.f32 %v1799_v49, 0.0  ;;  %v2378_v36 = vpop.f32.mrf.mxu1 }
 0x1ff   : > { %v1801_v39 = vpop.f32.mrf.mxu0  ;;  %3077 = vrot.lane.b32.xlu0 %v2378_v36, %s10547_s25  ;;  %v2151_v36 = vmax.f32 %v2026_v1, %v2031_v27  ;;  %v1751_v1 = vadd.f32 %v7721_v22, %v7750_v17 }
 0x200   : > { %v2149_v7 = vmax.f32 %v2024_v10, %v2029_v14  ;;  %v1802_v40 = vadd.f32 %v7721_v22, %v1801_v39  ;;  %v2016_v10 = vmax.f32 %v1746_v45, 0.0  ;;  %v2145_v14 = vmax.f32 %v2015_v54, %v2020_v3 }
 0x201   : > { %v7800_v0 = vpop.f32.mrf.mxu0  ;;  %v1770_v54 = vadd.f32 %v7721_v22, %v7768_v34 }
 0x202   : > { %v2154_v47 = vmax.f32 %v2144_v19, %v2149_v7  ;;  %v2030_v46 = vmax.f32 %v1802_v40, 0.0  ;;  %v2382_v48 = vpop.f32.mrf.mxu1  ;;  %v2146_v31 = vmax.f32 %v2016_v10, %v2021_v32 }
 0x203   : > { %v1814_v49 = vpop.f32.mrf.mxu0  ;;  %3064 = vrot.lane.b32.xlu1 %v2382_v48, %s10547_s25 }
 0x204   : > { %v2384_v55 = vpop.f32.mrf.mxu1  ;;  %v2150_v43 = vmax.f32 %v2025_v2, %v2030_v46  ;;  %v7808_v51 = vpack.c.bf16 %v2154_v47, %v2153_v44  ;;  %v2156_v19 = vmax.f32 %v2146_v31, %v2151_v36  ;;  %v1810_v44 = vadd.f32 %v7721_v22, %v7788_v60 }
 0x205   : > { %v7805_v9 = vpop.f32.mrf.mxu0  ;;  %3079 = vrot.lane.b32.xlu0 %v2384_v55, %s10547_s25  ;;  %v1791_v55 = vadd.f32 %v7721_v22, %v7770_v12  ;;  %v1815_v10 = vadd.f32 %v7721_v22, %v1814_v49  ;;  %v2022_v60 = vmax.f32 %v1770_v54, 0.0 }
 0x206   : > { %v2386_v52 = vpop.f32.mrf.mxu1  ;;  %6404 = vmatmul.mubr.msk.bf16.gmra.mxu1 %vm2257_vm1, %v7808_v51  ;;  %v2155_v30 = vmax.f32 %v2145_v14, %v2150_v43 }
 0x207   : > { %v1817_v18 = vpop.f32.mrf.mxu0  ;;  %3066 = vrot.lane.b32.xlu1 %v2386_v52, %s10547_s25  ;;  %2510 = vmatprep.mubr.bf16.mxu1 %v10449_v38  ;;  %v2032_v52 = vmax.f32 %v1810_v44, 0.0 }
 0x208   : > { %v2388_v21 = vpop.f32.mrf.mxu1  ;;  %v7818_v62 = vpack.c.bf16 %v2156_v19, %v2155_v30  ;;  %v2017_v30 = vmax.f32 %v1751_v1, 0.0  ;;  %v2033_v19 = vmax.f32 %v1815_v10, 0.0  ;;  %v1818_v10 = vadd.f32 %v7721_v22, %v1817_v18 }
 0x209   : > { %v6832_v39 = vpop.f32.mrf.mxu0 }
 0x20a   : > { %v2392_v41 = vpop.f32.mrf.mxu1  ;;  %v2147_v17 = vmax.f32 %v2017_v30, %v2022_v60  ;;  %v1839_v49 = vadd.f32 %v7721_v22, %v6832_v39 }
 0x20b   : > { %v7814_v7 = vpop.f32.mrf.mxu0  ;;  %3081 = vrot.lane.b32.xlu1 %v2388_v21, %s10547_s25  ;;  %v2027_v21 = vmax.f32 %v1791_v55, 0.0 }
 0x20c   : > { %v2394_v40 = vpop.f32.mrf.mxu1 }
 0x20d   : > { %v6833_v15 = vpop.f32.mrf.mxu0  ;;  %3083 = vrot.lane.b32.xlu0 %v2394_v40, %s10547_s25  ;;  %v2152_v12 = vmax.f32 %v2027_v21, %v2032_v52  ;;  %v1823_v52 = vadd.f32 %v7721_v22, %v7800_v0  ;;  %v2039_v21 = vmax.f32 %v1839_v49, 0.0  ;;  %v7063_v0 = vld [vmem:[%s10441_s4 + $0x38] ss:$20 sps:$4 sm:$0xff]  }
 0x20e   : > { %6405 = vmatmul.mubr.msk.bf16.gmra.mxu1 %vm2257_vm1, %v7818_v62  ;;  %v2396_v47 = vpop.f32.mrf.mxu1  ;;  %6846 = vmatprep.subr.bf16.mxu1 %v7063_v0 }
 0x20f   : > { %v1833_v28 = vpop.f32.mrf.mxu0  ;;  %3068 = vrot.lane.b32.xlu1 %v2392_v41, %s10547_s25  ;;  %2520 = vmatprep.mubr.bf16.mxu1 %v10449_v38  ;;  %v2157_v54 = vmax.f32 %v2147_v17, %v2152_v12  ;;  %v2035_v18 = vmax.f32 %v1823_v52, 0.0 }
 0x210   : > { %v2398_v3 = vpop.f32.mrf.mxu1  ;;  %v1834_v32 = vadd.f32 %v7721_v22, %v1833_v28 }
 0x211   : > { %v6836_v45 = vpop.f32.mrf.mxu0 }
 0x212   : > { %v1855_v14 = vadd.f32 %v7721_v22, %v6836_v45  ;;  %v2038_v31 = vmax.f32 %v1834_v32, 0.0  ;;  %v1842_v45 = vadd.f32 %v7721_v22, %v6833_v15 }
 0x213   : > { %v7824_v46 = vpop.f32.mrf.mxu0  ;;  %3070 = vrot.lane.b32.xlu1 %v2396_v47, %s10547_s25 }
 0x214   : > { %v2043_v40 = vmax.f32 %v1855_v14, 0.0  ;;  %v2040_v15 = vmax.f32 %v1842_v45, 0.0  ;;  %v1831_v45 = vadd.f32 %v7721_v22, %v7814_v7 }
 0x215   : > { %v6837_v48 = vpop.f32.mrf.mxu0 }
 0x216   : > { %v1858_v55 = vadd.f32 %v7721_v22, %v6837_v48 }
 0x217   : > { %v1849_v2 = vpop.f32.mrf.mxu0  ;;  %3085 = vrot.lane.b32.xlu1 %v2398_v3, %s10547_s25  ;;  %v2158_v3 = vmax.f32 %v2033_v19, %v2038_v31 }
 0x218   : > { %v2044_v48 = vmax.f32 %v1858_v55, 0.0  ;;  %v1850_v12 = vadd.f32 %v7721_v22, %v1849_v2  ;;  %v1847_v2 = vadd.f32 %v7721_v22, %v7824_v46 }
 0x219   : > { %v6840_v27 = vpop.f32.mrf.mxu0 }
 0x21a   : > { %v1871_v19 = vadd.f32 %v7721_v22, %v6840_v27  ;;  %v2042_v52 = vmax.f32 %v1850_v12, 0.0 }
 0x21b   : > { %v1862_v43 = vpop.f32.mrf.mxu0 }
 0x21d   : > { %v6841_v36 = vpop.f32.mrf.mxu0 }
 0x21e   : > { %v1874_v34 = vadd.f32 %v7721_v22, %v6841_v36  ;;  %v1863_v36 = vadd.f32 %v7721_v22, %v1862_v43  ;;  %v2034_v43 = vmax.f32 %v1818_v10, 0.0  ;;  %v2047_v10 = vmax.f32 %v1871_v19, 0.0 }
 0x21f   : > { %v1865_v41 = vpop.f32.mrf.mxu0 }
 0x220   : > { %v2048_v28 = vmax.f32 %v1874_v34, 0.0  ;;  %v2159_v49 = vmax.f32 %v2034_v43, %v2039_v21  ;;  %v1866_v27 = vadd.f32 %v7721_v22, %v1865_v41 }
 0x221   : > { %v6844_v47 = vpop.f32.mrf.mxu0 }
 0x222   : > { %v2163_v44 = vmax.f32 %v2043_v40, %v2048_v28  ;;  %v10568_v40 = vmov 0   ;;  %v2045_v28 = vmax.f32 %v1863_v36, 0.0  ;;  %v1887_v17 = vadd.f32 %v7721_v22, %v6844_v47 }
 0x223   : > { %v1878_v38 = vpop.f32.mrf.mxu0  ;;  %v1826_v47 = vadd.f32 %v7721_v22, %v7805_v9  ;;  %v2046_v46 = vmax.f32 %v1866_v27, 0.0 }
 0x224   : > { %v2168_v32 = vmax.f32 %v2158_v3, %v2163_v44  ;;  %v1879_v1 = vadd.f32 %v7721_v22, %v1878_v38 }
 0x225   : > { %v6845_v14 = vpop.f32.mrf.mxu0 }
 0x226   : > { %v7848_v60 = vpack.c.bf16 %v2168_v32, %v2157_v54  ;;  %v2049_v39 = vmax.f32 %v1879_v1, 0.0  ;;  %v7850_v31 = vpop.f32.mrf.mxu1  ;;  %v1890_v30 = vadd.f32 %v7721_v22, %v6845_v14  ;;  %v2160_v54 = vmax.f32 %v2035_v18, %v2040_v15 }
 0x227   : > { %10567 = vst [vmem:[#allocation9_spill] sm:$0xff] %v7850_v31  ;;  %v1881_v34 = vpop.f32.mrf.mxu0  ;;  %3122 = vrot.lane.b32.xlu0 %v7850_v31, %s10547_s25  ;;  %v2051_v14 = vmax.f32 %v1887_v17, 0.0  ;;  %v2041_v15 = vmax.f32 %v1847_v2, 0.0 }
 0x228   : > { %v1882_v38 = vadd.f32 %v7721_v22, %v1881_v34  ;;  %6406 = vmatmul.mubr.msk.bf16.gmra.mxu1 %vm2257_vm1, %v7848_v60  ;;  %v2164_v3 = vmax.f32 %v2044_v48, %v2049_v39  ;;  %v7867_v55 = vpop.f32.mrf.mxu1  ;;  %v2052_v32 = vmax.f32 %v1890_v30, 0.0  ;;  %v2037_v39 = vmax.f32 %v1831_v45, 0.0 }
 0x229   : > { %2530 = vmatprep.mubr.bf16.mxu1 %v10568_v40  ;;  %v2036_v48 = vmax.f32 %v1826_v47, 0.0 }
 0x22a   : > { %v2050_v44 = vmax.f32 %v1882_v38, 0.0  ;;  %v2169_v7 = vmax.f32 %v2159_v49, %v2164_v3  ;;  %v7876_v21 = vpop.f32.mrf.mxu1  ;;  %v2167_v34 = vmax.f32 %v2047_v10, %v2052_v32  ;;  %v2162_v30 = vmax.f32 %v2037_v39, %v2042_v52 }
 0x22b   : > { %3142 = vrot.lane.b32.xlu0 %v7867_v55, %s10547_s25  ;;  %10569 = vst [vmem:[#allocation10_spill] sm:$0xff] %v7876_v21  ;;  %v2166_v38 = vmax.f32 %v2046_v46, %v2051_v14  ;;  %v2161_v9 = vmax.f32 %v2036_v48, %v2041_v15 }
 0x22c   : > { %v2165_v1 = vmax.f32 %v2045_v28, %v2050_v44  ;;  %v7884_v22 = vpop.f32.mrf.mxu1  ;;  %v2172_v18 = vmax.f32 %v2162_v30, %v2167_v34 }
 0x22d   : > { %v2171_v43 = vmax.f32 %v2161_v9, %v2166_v38 }
 0x22e   : > { %v2170_v36 = vmax.f32 %v2160_v54, %v2165_v1  ;;  %v7889_v12 = vpop.f32.mrf.mxu1 }
 0x22f   : > { %3124 = vrot.lane.b32.xlu0 %v7876_v21, %s10547_s25  ;;  %10570 = vst [vmem:[#allocation11_spill] sm:$0xff] %v7889_v12  ;;  %v7891_v19 = vpack.c.bf16 %v2172_v18, %v2171_v43 }
 0x230   : > { %v7878_v41 = vpack.c.bf16 %v2170_v36, %v2169_v7  ;;  %v7897_v28 = vpop.f32.mrf.mxu1  ;;  %v7064_v7 = vld [vmem:[%s10441_s4 + $0x10] ss:$20 sps:$4 sm:$0xff]  }
 0x232   : > { %6407 = vmatmul.mubr.msk.bf16.gmra.mxu1 %vm2257_vm1, %v7878_v41  ;;  %v7902_v17 = vpop.f32.mrf.mxu1 }
 0x233   : > { %2540 = vmatprep.mubr.bf16.mxu1 %v10568_v40  ;;  %3144 = vrot.lane.b32.xlu0 %v7884_v22, %s10547_s25  ;;  %10571 = vst [vmem:[#allocation12_spill] sm:$0xff] %v7902_v17 }
 0x234   : > { %v7908_v3 = vpop.f32.mrf.mxu1 }
 0x237   : > { %3126 = vrot.lane.b32.xlu0 %v7889_v12, %s10547_s25 }
 0x23a   : > { %6408 = vmatmul.mubr.msk.bf16.gmra.mxu1 %vm2257_vm1, %v7891_v19 }
 0x23b   : > { %2583 = vmatprep.mubr.bf16.mxu1 %v10568_v40  ;;  %3146 = vrot.lane.b32.xlu0 %v7897_v28, %s10547_s25 }
 0x23f   : > { %3128 = vrot.lane.b32.xlu0 %v7902_v17, %s10547_s25 }
 0x242   : > { %6409 = vmatmul.mubr.msk.bf16.vlgmr.msra.gmra.mxu1 %vm2257_vm1, %v7425_v61 }
 0x243   : > { %2593 = vmatprep.mubr.bf16.mxu1 %v10568_v40  ;;  %6847 = vmatpush3.bf16.msra.mxu1 %v7063_v0 }
 0x244   : > { %3148 = vrot.lane.b32.xlu0 %v7908_v3, %s10547_s25  ;;  %6848 = vmatprep.subr.bf16.mxu1 %v7064_v7 }
 0x247   : > { %6849 = vmatpush3.bf16.msra.mxu1 %v7064_v7 }
 0x248   : > { %v7913_v44 = vpop.f32.mrf.mxu1 }
 0x249   : > { %3130 = vrot.lane.b32.xlu0 %v7913_v44, %s10547_s25  ;;  %v7928_v27 = vpop.permute.xlu1 %2982 }
 0x24a   : > { %v7917_v49 = vpop.f32.mrf.mxu1  ;;  %6410 = vmatmul.mubr.msk.bf16.gmra.mxu1 %vm2257_vm1, %v7440_v20 }
 0x24b   : > { %2603 = vmatprep.mubr.bf16.mxu1 %v10568_v40 }
 0x24c   : > { %v2426_v45 = vpop.f32.mrf.mxu1 }
 0x24d   : > { %3150 = vrot.lane.b32.xlu0 %v7917_v49, %s10547_s25  ;;  %v7936_v10 = vpop.permute.xlu1 %3002 }
 0x24e   : > { %v2428_v0 = vpop.f32.mrf.mxu1 }
 0x24f   : > { %v7931_v1 = vpop.permute.xlu0 %3004 }
 0x250   : > { %10572 = vst [vmem:[#allocation13_spill] sm:$0xff] %v7931_v1 }
 0x251   : > { %3202 = vrot.lane.b32.xlu0 %v2426_v45, %s10547_s25  ;;  %v7946_v15 = vpop.permute.xlu1 %2984 }
 0x252   : > { %v2432_v54 = vpop.f32.mrf.mxu1  ;;  %6411 = vmatmul.mubr.msk.bf16.gmra.mxu1 %vm2257_vm1, %v7481_v8 }
 0x253   : > { %2613 = vmatprep.mubr.bf16.mxu1 %v10568_v40  ;;  %v7942_v36 = vpop.permute.xlu0 %3006 }
 0x254   : > { %v2434_v2 = vpop.f32.mrf.mxu1  ;;  %10573 = vst [vmem:[#allocation14_spill] sm:$0xff] %v7942_v36 }
 0x255   : > { %3217 = vrot.lane.b32.xlu0 %v2428_v0, %s10547_s25  ;;  %v7956_v34 = vpop.permute.xlu1 %2986 }
 0x256   : > { %v2436_v32 = vpop.f32.mrf.mxu1 }
 0x257   : > { %v7952_v46 = vpop.permute.xlu0 %2988 }
 0x258   : > { %v2438_v47 = vpop.f32.mrf.mxu1 }
 0x259   : > { %3204 = vrot.lane.b32.xlu0 %v2432_v54, %s10547_s25 }
 0x25a   : > { %v2442_v52 = vpop.f32.mrf.mxu1  ;;  %6412 = vmatmul.mubr.msk.bf16.gmra.mxu1 %vm2257_vm1, %v7507_v50 }
 0x25b   : > { %2623 = vmatprep.mubr.bf16.mxu1 %v10568_v40  ;;  %v7958_v48 = vpop.permute.xlu0 %3008 }
 0x25c   : > { %v2444_v14 = vpop.f32.mrf.mxu1  ;;  %10574 = vst [vmem:[#allocation15_spill] sm:$0xff] %v7958_v48 }
 0x25d   : > { %3219 = vrot.lane.b32.xlu0 %v2434_v2, %s10547_s25  ;;  %3223 = vrot.lane.b32.xlu1 %v2444_v14, %s10547_s25 }
 0x25e   : > { %v2446_v39 = vpop.f32.mrf.mxu1 }
 0x260   : > { %v2448_v38 = vpop.f32.mrf.mxu1 }
 0x261   : > { %3206 = vrot.lane.b32.xlu0 %v2436_v32, %s10547_s25  ;;  %3210 = vrot.lane.b32.xlu1 %v2446_v39, %s10547_s25 }
 0x262   : > { %6413 = vmatmul.mubr.msk.bf16.gmra.mxu1 %vm2257_vm1, %v7518_v63 }
 0x263   : > { %2633 = vmatprep.mubr.bf16.mxu1 %v10568_v40 }
 0x265   : > { %3221 = vrot.lane.b32.xlu0 %v2438_v47, %s10547_s25 }
 0x269   : > { %3208 = vrot.lane.b32.xlu0 %v2442_v52, %s10547_s25 }
 0x26a   : > { %6414 = vmatmul.mubr.msk.bf16.gmra.mxu1 %vm2257_vm1, %v7561_v4 }
 0x26b   : > { %v7963_v30 = vpop.permute.xlu1 %2990  ;;  %2643 = vmatprep.mubr.bf16.mxu1 %v10568_v40 }
 0x26d   : > { %v7966_v9 = vpop.permute.xlu0 %3010  ;;  %3225 = vrot.lane.b32.xlu0 %v2448_v38, %s10547_s25 }
 0x26e   : > { %10575 = vst [vmem:[#allocation16_spill] sm:$0xff] %v7966_v9 }
 0x26f   : > { %v7969_v18 = vpop.permute.xlu1 %3062 }
 0x270   : > { %10576 = vst [vmem:[#allocation17_spill] sm:$0xff] %v7969_v18  ;;  %3542 = vrot.lane.b32.xlu1 %v7969_v18, %s10547_s25 }
 0x271   : > { %v7975_v43 = vpop.permute.xlu0 %3077 }
 0x272   : > { %6415 = vmatmul.mubr.msk.bf16.gmra.mxu1 %vm2257_vm1, %v7568_v11 }
 0x273   : > { %2653 = vmatprep.mubr.bf16.mxu1 %v10568_v40 }
 0x274   : > { %3552 = vrot.lane.b32.xlu1 %v7975_v43, %s10547_s25 }
 0x275   : > { %v7980_v45 = vpop.permute.xlu1 %3064 }
 0x276   : > { %10577 = vst [vmem:[#allocation18_spill] sm:$0xff] %v7980_v45  ;;  %v7982_v0 = vpop.f32.mrf.mxu1 }
 0x277   : > { %10578 = vst [vmem:[#allocation19_spill] sm:$0xff] %v7982_v0  ;;  %v7984_v54 = vpop.permute.xlu0 %3079 }
 0x278   : > { %3544 = vrot.lane.b32.xlu1 %v7980_v45, %s10547_s25  ;;  %3554 = vrot.lane.b32.xlu0 %v7984_v54, %s10547_s25  ;;  %v7992_v2 = vpop.f32.mrf.mxu1 }
 0x279   : > { %10579 = vst [vmem:[#allocation20_spill] sm:$0xff] %v7992_v2  ;;  %v7999_v32 = vpop.permute.xlu1 %3066 }
 0x27a   : > { %6416 = vmatmul.mubr.msk.bf16.gmra.mxu1 %vm2257_vm1, %v7600_v6  ;;  %10580 = vst [vmem:[#allocation21_spill] sm:$0xff] %v7999_v32  ;;  %v8003_v47 = vpop.f32.mrf.mxu1 }
 0x27b   : > { %2663 = vmatprep.mubr.bf16.mxu1 %v10568_v40  ;;  %10581 = vst [vmem:[#allocation22_spill] sm:$0xff] %v8003_v47 }
 0x27c   : > { %3262 = vrot.lane.b32.xlu1 %v7982_v0, %s10547_s25  ;;  %3282 = vrot.lane.b32.xlu0 %v7992_v2, %s10547_s25  ;;  %v8012_v14 = vpop.f32.mrf.mxu1 }
 0x27d   : > { %v8010_v52 = vpop.permute.xlu1 %3081  ;;  %10582 = vst [vmem:[#allocation23_spill] sm:$0xff] %v8012_v14 }
 0x27e   : > { %v8016_v7 = vpop.f32.mrf.mxu1 }
 0x27f   : > { %10583 = vst [vmem:[#allocation24_spill] sm:$0xff] %v8016_v7  ;;  %v8033_v36 = vpop.permute.xlu0 %3083 }
 0x280   : > { %3546 = vrot.lane.b32.xlu1 %v7999_v32, %s10547_s25  ;;  %v8025_v38 = vpop.f32.mrf.mxu1 }
 0x281   : > { %v8020_v39 = vpop.permute.xlu1 %3068  ;;  %10585 = vst [vmem:[#allocation26_spill] sm:$0xff] %v8025_v38 }
 0x282   : > { %6417 = vmatmul.mubr.msk.bf16.gmra.mxu1 %vm2257_vm1, %v7621_v29  ;;  %10584 = vst [vmem:[#allocation25_spill] sm:$0xff] %v8020_v39  ;;  %v8029_v1 = vpop.f32.mrf.mxu1 }
 0x283   : > { %2673 = vmatprep.mubr.bf16.mxu1 %v10568_v40  ;;  %10586 = vst [vmem:[#allocation27_spill] sm:$0xff] %v8029_v1 }
 0x284   : > { %3264 = vrot.lane.b32.xlu1 %v8003_v47, %s10547_s25  ;;  %v8038_v48 = vpop.f32.mrf.mxu1 }
 0x285   : > { %10587 = vst [vmem:[#allocation28_spill] sm:$0xff] %v8038_v48  ;;  %v8040_v9 = vpop.permute.xlu1 %3070 }
 0x288   : > { %3556 = vrot.lane.b32.xlu1 %v8010_v52, %s10547_s25 }
 0x289   : > { %v8058_v38 = vpop.permute.xlu1 %3085 }
 0x28a   : > { %6418 = vmatmul.mubr.msk.bf16.gmra.mxu1 %vm2257_vm1, %v7628_v56 }
 0x28b   : > { %2683 = vmatprep.mubr.bf16.mxu1 %v10568_v40 }
 0x28c   : > { %3548 = vrot.lane.b32.xlu1 %v8020_v39, %s10547_s25 }
 0x290   : > { %3266 = vrot.lane.b32.xlu1 %v8016_v7, %s10547_s25 }
 0x292   : > { %6419 = vmatmul.mubr.msk.bf16.gmra.mxu1 %vm2257_vm1, %v7657_v59 }
 0x293   : > { %2693 = vmatprep.mubr.bf16.mxu1 %v10568_v40 }
 0x294   : > { %3558 = vrot.lane.b32.xlu1 %v8033_v36, %s10547_s25 }
 0x298   : > { %3550 = vrot.lane.b32.xlu1 %v8040_v9, %s10547_s25  ;;  %v8044_v0 = vpop.f32.mrf.mxu1 }
 0x299   : > { %10588 = vst [vmem:[#allocation29_spill] sm:$0xff] %v8044_v0  ;;  %v8046_v47 = vpop.permute.xlu0 %3122 }
 0x29a   : > { %v8048_v7 = vpop.f32.mrf.mxu1  ;;  %6420 = vmatmul.mubr.msk.bf16.gmra.mxu1 %vm2257_vm1, %v7666_v23 }
 0x29b   : > { %10589 = vst [vmem:[#allocation30_spill] sm:$0xff] %v8048_v7  ;;  %2703 = vmatprep.mubr.bf16.mxu1 %v10568_v40 }
 0x29c   : > { %3268 = vrot.lane.b32.xlu1 %v8029_v1, %s10547_s25  ;;  %v2476_v2 = vpop.f32.mrf.mxu1 }
 0x29d   : > { %3342 = vrot.lane.b32.xlu0 %v2476_v2, %s10547_s25  ;;  %v8056_v14 = vpop.permute.xlu0 %3142 }
 0x29e   : > { %v2478_v48 = vpop.f32.mrf.mxu1 }
 0x2a0   : > { %3560 = vrot.lane.b32.xlu1 %v8058_v38, %s10547_s25 }
 0x2a1   : > { %v8062_v7 = vpop.permute.xlu0 %3124 }
 0x2a2   : > { %v2482_v42 = vpop.f32.mrf.mxu1  ;;  %6421 = vmatmul.mubr.msk.bf16.gmra.mxu1 %vm2257_vm1, %v7698_v57 }
 0x2a3   : > { %2713 = vmatprep.mubr.bf16.mxu1 %v10568_v40 }
 0x2a4   : > { %3270 = vrot.lane.b32.xlu1 %v8044_v0, %s10547_s25  ;;  %v2484_v2 = vpop.f32.mrf.mxu1 }
 0x2a5   : > { %v8069_v1 = vpop.permute.xlu0 %3144 }
 0x2a6   : > { %10590 = vst [vmem:[#allocation31_spill] sm:$0xff] %v8069_v1  ;;  %v2486_v18 = vpop.f32.mrf.mxu1 }
 0x2a8   : > { %3357 = vrot.lane.b32.xlu1 %v2478_v48, %s10547_s25  ;;  %v2488_v31 = vpop.f32.mrf.mxu1 }
 0x2a9   : > { %v8072_v13 = vpop.permute.xlu0 %3126 }
 0x2aa   : > { %v2492_v45 = vpop.f32.mrf.mxu1  ;;  %6422 = vmatmul.mubr.msk.bf16.gmra.mxu1 %vm2257_vm1, %v7744_v58 }
 0x2ab   : > { %2723 = vmatprep.mubr.bf16.mxu1 %v10568_v40 }
 0x2ac   : > { %3344 = vrot.lane.b32.xlu1 %v2482_v42, %s10547_s25  ;;  %v2494_v21 = vpop.f32.mrf.mxu1 }
 0x2ad   : > { %v8078_v35 = vpop.permute.xlu0 %3146 }
 0x2ae   : > { %10591 = vst [vmem:[#allocation32_spill] sm:$0xff] %v8078_v35  ;;  %v2496_v0 = vpop.f32.mrf.mxu1 }
 0x2b0   : > { %3359 = vrot.lane.b32.xlu1 %v2484_v2, %s10547_s25  ;;  %v2498_v1 = vpop.f32.mrf.mxu1 }
 0x2b1   : > { %3365 = vrot.lane.b32.xlu0 %v2498_v1, %s10547_s25  ;;  %v8082_v48 = vpop.permute.xlu0 %3128 }
 0x2b2   : > { %6423 = vmatmul.mubr.msk.bf16.gmra.mxu1 %vm2257_vm1, %v7759_v53 }
 0x2b3   : > { %2733 = vmatprep.mubr.bf16.mxu1 %v10568_v40 }
 0x2b4   : > { %3346 = vrot.lane.b32.xlu1 %v2486_v18, %s10547_s25 }
 0x2b6   : > { %v8088_v32 = vpop.permute.xlu0 %3148 }
 0x2b7   : > { %10592 = vst [vmem:[#allocation33_spill] sm:$0xff] %v8088_v32 }
 0x2b8   : > { %3361 = vrot.lane.b32.xlu1 %v2488_v31, %s10547_s25 }
 0x2ba   : > { %6424 = vmatmul.mubr.msk.bf16.gmra.mxu1 %vm2257_vm1, %v7808_v51 }
 0x2bb   : > { %v8093_v42 = vpop.permute.xlu0 %3130  ;;  %2743 = vmatprep.mubr.bf16.mxu1 %v10568_v40 }
 0x2bc   : > { %3348 = vrot.lane.b32.xlu1 %v2492_v45, %s10547_s25 }
 0x2bf   : > { %v8097_v1 = vpop.permute.xlu0 %3150 }
 0x2c0   : > { %10593 = vst [vmem:[#allocation34_spill] sm:$0xff] %v8097_v1  ;;  %3363 = vrot.lane.b32.xlu1 %v2494_v21, %s10547_s25 }
 0x2c2   : > { %6425 = vmatmul.mubr.msk.bf16.gmra.mxu1 %vm2257_vm1, %v7818_v62 }
 0x2c3   : > { %v8102_v18 = vpop.permute.xlu0 %3202  ;;  %2753 = vmatprep.mubr.bf16.mxu1 %v10568_v40 }
 0x2c4   : > { %10594 = vst [vmem:[#allocation35_spill] sm:$0xff] %v8102_v18  ;;  %3350 = vrot.lane.b32.xlu1 %v2496_v0, %s10547_s25  ;;  %3642 = vrot.lane.b32.xlu0 %v8102_v18, %s10547_s25 }
 0x2c6   : > { %v8112_v45 = vpop.f32.mrf.mxu1 }
 0x2c7   : > { %v8108_v31 = vpop.permute.xlu0 %3217  ;;  %10595 = vst [vmem:[#allocation36_spill] sm:$0xff] %v8112_v45 }
 0x2c8   : > { %3652 = vrot.lane.b32.xlu0 %v8108_v31, %s10547_s25  ;;  %v8121_v0 = vpop.f32.mrf.mxu1 }
 0x2c9   : > { %10597 = vst [vmem:[#allocation38_spill] sm:$0xff] %v8121_v0 }
 0x2ca   : > { %6426 = vmatmul.mubr.msk.bf16.gmra.mxu1 %vm2257_vm1, %v7848_v60  ;;  %v8127_v35 = vpop.f32.mrf.mxu1 }
 0x2cb   : > { %v8116_v21 = vpop.permute.xlu0 %3204  ;;  %2763 = vmatprep.mubr.bf16.mxu1 %v10568_v40  ;;  %10598 = vst [vmem:[#allocation39_spill] sm:$0xff] %v8127_v35 }
 0x2cc   : > { %10596 = vst [vmem:[#allocation37_spill] sm:$0xff] %v8116_v21  ;;  %3644 = vrot.lane.b32.xlu0 %v8116_v21, %s10547_s25  ;;  %v8136_v1 = vpop.f32.mrf.mxu1 }
 0x2cd   : > { %10600 = vst [vmem:[#allocation41_spill] sm:$0xff] %v8136_v1 }
 0x2cf   : > { %v8123_v2 = vpop.permute.xlu0 %3219  ;;  %v8140_v21 = vpop.permute.xlu1 %3223 }
 0x2d0   : > { %3402 = vrot.lane.b32.xlu0 %v8112_v45, %s10547_s25  ;;  %v8146_v45 = vpop.f32.mrf.mxu1 }
 0x2d1   : > { %10601 = vst [vmem:[#allocation42_spill] sm:$0xff] %v8146_v45 }
 0x2d2   : > { %6427 = vmatmul.mubr.msk.bf16.gmra.mxu1 %vm2257_vm1, %v7878_v41  ;;  %v8158_v1 = vpop.f32.mrf.mxu1 }
 0x2d3   : > { %v8131_v32 = vpop.permute.xlu0 %3206  ;;  %2773 = vmatprep.mubr.bf16.mxu1 %v10568_v40  ;;  %10602 = vst [vmem:[#allocation43_spill] sm:$0xff] %v8158_v1  ;;  %v8160_v12 = vpop.permute.xlu1 %3210 }
 0x2d4   : > { %10599 = vst [vmem:[#allocation40_spill] sm:$0xff] %v8131_v32  ;;  %3654 = vrot.lane.b32.xlu0 %v8123_v2, %s10547_s25 }
 0x2d7   : > { %v8138_v18 = vpop.permute.xlu0 %3221 }
 0x2d8   : > { %3656 = vrot.lane.b32.xlu1 %v8138_v18, %s10547_s25  ;;  %3422 = vrot.lane.b32.xlu0 %v8121_v0, %s10547_s25  ;;  %v8166_v0 = vpop.f32.mrf.mxu1 }
 0x2d9   : > { %10603 = vst [vmem:[#allocation44_spill] sm:$0xff] %v8166_v0 }
 0x2da   : > { %6428 = vmatmul.mubr.msk.bf16.gmra.mxu1 %vm2257_vm1, %v7891_v19  ;;  %v8180_v1 = vpop.f32.mrf.mxu1 }
 0x2db   : > { %v8150_v40 = vpop.permute.xlu0 %3208  ;;  %6850 = vmatprep.mubr.msk.bf16.mxu1 %vm2257_vm1, %v7425_v61  ;;  %10604 = vst [vmem:[#allocation45_spill] sm:$0xff] %v8180_v1 }
 0x2dc   : > { %3648 = vrot.lane.b32.xlu1 %v8150_v40, %s10547_s25  ;;  %3646 = vrot.lane.b32.xlu0 %v8131_v32, %s10547_s25 }
 0x2df   : > { %v8172_v61 = vpop.permute.xlu0 %3225 }
 0x2e0   : > { %3658 = vrot.lane.b32.xlu1 %v8140_v21, %s10547_s25  ;;  %3404 = vrot.lane.b32.xlu0 %v8127_v35, %s10547_s25 }
 0x2e2   : > { %v8168_v24 = vpop.permute.xlu1 %3542  ;;  %6851 = vmatmul.mubr.msk.bf16.vlgmr.msra.gmra.mxu1 %vm2257_vm1, %v7440_v20 }
 0x2e3   : > { %6854 = vmatprep.mubr.msk.bf16.mxu1 %vm2257_vm1, %v7481_v8 }
 0x2e4   : > { %3660 = vrot.lane.b32.xlu1 %v8172_v61, %s10547_s25  ;;  %3406 = vrot.lane.b32.xlu0 %v8146_v45, %s10547_s25 }
 0x2e6   : > { %v8182_v35 = vpop.permute.xlu1 %3552 }
 0x2e8   : > { %3650 = vrot.lane.b32.xlu0 %v8160_v12, %s10547_s25  ;;  %v8186_v32 = vpop.f32.mrf.mxu1 }
 0x2e9   : > { %10605 = vst [vmem:[#allocation46_spill] sm:$0xff] %v8186_v32  ;;  %3410 = vrot.lane.b32.xlu1 %v8186_v32, %s10547_s25 }
 0x2ea   : > { %v8190_v20 = vpop.permute.xlu1 %3544  ;;  %6855 = vmatmul.mubr.msk.bf16.gmra.mxu1 %vm2257_vm1, %v7507_v50  ;;  %v8194_v8 = vpop.f32.mrf.mxu1 }
 0x2eb   : > { %6858 = vmatprep.mubr.msk.bf16.mxu1 %vm2257_vm1, %v7518_v63 }
 0x2ec   : > { %3408 = vrot.lane.b32.xlu0 %v8166_v0, %s10547_s25  ;;  %v2526_v45 = vpop.f32.mrf.mxu1 }
 0x2ed   : > { %3482 = vrot.lane.b32.xlu1 %v2526_v45, %s10547_s25 }
 0x2ee   : > { %v8201_v1 = vpop.permute.xlu1 %3262  ;;  %v2528_v39 = vpop.f32.mrf.mxu1 }
 0x2ef   : > { %10606 = vst [vmem:[#allocation47_spill] sm:$0xff] %v8201_v1 }
 0x2f0   : > { %3497 = vrot.lane.b32.xlu0 %v2528_v39, %s10547_s25 }
 0x2f2   : > { %v8204_v32 = vpop.permute.xlu1 %3546  ;;  %v2532_v17 = vpop.f32.mrf.mxu1  ;;  %6859 = vmatmul.mubr.msk.bf16.gmra.mxu1 %vm2257_vm1, %v7561_v4 }
 0x2f3   : > { %6862 = vmatprep.mubr.msk.bf16.mxu1 %vm2257_vm1, %v7568_v11 }
 0x2f4   : > { %3484 = vrot.lane.b32.xlu0 %v2532_v17, %s10547_s25  ;;  %v2534_v50 = vpop.f32.mrf.mxu1 }
 0x2f6   : > { %v8211_v63 = vpop.permute.xlu1 %3264  ;;  %v2536_v45 = vpop.f32.mrf.mxu1 }
 0x2f7   : > { %10607 = vst [vmem:[#allocation48_spill] sm:$0xff] %v8211_v63 }
 0x2f8   : > { %3499 = vrot.lane.b32.xlu0 %v2534_v50, %s10547_s25  ;;  %v2538_v0 = vpop.f32.mrf.mxu1 }
 0x2fa   : > { %v8214_v1 = vpop.permute.xlu1 %3556  ;;  %v2542_v39 = vpop.f32.mrf.mxu1  ;;  %6863 = vmatmul.mubr.msk.bf16.gmra.mxu1 %vm2257_vm1, %v7600_v6 }
 0x2fb   : > { %10608 = vst [vmem:[#allocation49_spill] sm:$0xff] %v8214_v1  ;;  %6866 = vmatprep.mubr.msk.bf16.mxu1 %vm2257_vm1, %v7621_v29  ;;  %v8237_v29 = vpop.permute.xlu0 %3554 }
 0x2fc   : > { %3486 = vrot.lane.b32.xlu0 %v2536_v45, %s10547_s25  ;;  %v2544_v4 = vpop.f32.mrf.mxu1  ;;  %10612 = vst [vmem:[#allocation53_spill] sm:$0xff] %v8237_v29 }
 0x2fd   : > { %3503 = vrot.lane.b32.xlu1 %v2544_v4, %s10547_s25 }
 0x2fe   : > { %v8222_v11 = vpop.permute.xlu1 %3548  ;;  %v2546_v17 = vpop.f32.mrf.mxu1 }
 0x300   : > { %3501 = vrot.lane.b32.xlu0 %v2538_v0, %s10547_s25  ;;  %v2548_v50 = vpop.f32.mrf.mxu1 }
 0x301   : > { %3490 = vrot.lane.b32.xlu1 %v2546_v17, %s10547_s25 }
 0x302   : > { %v8226_v1 = vpop.permute.xlu1 %3266  ;;  %v8228_v63 = vpop.f32.mrf.mxu1  ;;  %6867 = vmatmul.mubr.msk.bf16.gmra.mxu1 %vm2257_vm1, %v7628_v56 }
 0x303   : > { %10609 = vst [vmem:[#allocation50_spill] sm:$0xff] %v8226_v1  ;;  %10610 = vst [vmem:[#allocation51_spill] sm:$0xff] %v8228_v63  ;;  %6870 = vmatprep.mubr.msk.bf16.mxu1 %vm2257_vm1, %v7657_v59 }
 0x304   : > { %3488 = vrot.lane.b32.xlu0 %v2542_v39, %s10547_s25  ;;  %v8235_v6 = vpop.f32.mrf.mxu1  ;;  %v8256_v39 = vpop.permute.xlu0 %3282 }
 0x305   : > { %10611 = vst [vmem:[#allocation52_spill] sm:$0xff] %v8235_v6  ;;  %3022 = vrot.lane.b32.xlu1 %v8228_v63, %s10547_s25 }
 0x306   : > { %v8241_v0 = vpop.permute.xlu1 %3558  ;;  %v8243_v45 = vpop.f32.mrf.mxu1 }
 0x307   : > { %10613 = vst [vmem:[#allocation54_spill] sm:$0xff] %v8241_v0  ;;  %10614 = vst [vmem:[#allocation55_spill] sm:$0xff] %v8243_v45 }
 0x308   : > { %3505 = vrot.lane.b32.xlu0 %v2548_v50, %s10547_s25  ;;  %v8246_v4 = vpop.f32.mrf.mxu1 }
 0x309   : > { %3024 = vrot.lane.b32.xlu1 %v8243_v45, %s10547_s25 }
 0x30a   : > { %v8250_v56 = vpop.permute.xlu1 %3550  ;;  %v8252_v59 = vpop.f32.mrf.mxu1  ;;  %6871 = vmatmul.mubr.msk.bf16.gmra.mxu1 %vm2257_vm1, %v7666_v23 }
 0x30b   : > { %10615 = vst [vmem:[#allocation56_spill] sm:$0xff] %v8252_v59  ;;  %6874 = vmatprep.mubr.msk.bf16.mxu1 %vm2257_vm1, %v7698_v57 }
 0x30c   : > { %3042 = vrot.lane.b32.xlu0 %v8235_v6, %s10547_s25  ;;  %v8262_v17 = vpop.f32.mrf.mxu1 }
 0x30d   : > { %10616 = vst [vmem:[#allocation57_spill] sm:$0xff] %v8262_v17 }
 0x30e   : > { %v8264_v50 = vpop.permute.xlu1 %3268  ;;  %v8266_v29 = vpop.f32.mrf.mxu1 }
 0x30f   : > { %10617 = vst [vmem:[#allocation58_spill] sm:$0xff] %v8264_v50  ;;  %10618 = vst [vmem:[#allocation59_spill] sm:$0xff] %v8266_v29  ;;  %v8268_v0 = vpop.permute.xlu0 %3342 }
 0x310   : > { %10619 = vst [vmem:[#allocation60_spill] sm:$0xff] %v8268_v0  ;;  %3742 = vrot.lane.b32.xlu1 %v8268_v0, %s10547_s25  ;;  %3044 = vrot.lane.b32.xlu0 %v8246_v4, %s10547_s25  ;;  %v8274_v23 = vpop.f32.mrf.mxu1 }
 0x311   : > { %10620 = vst [vmem:[#allocation61_spill] sm:$0xff] %v8274_v23 }
 0x312   : > { %v8276_v57 = vpop.permute.xlu1 %3560  ;;  %v8278_v63 = vpop.f32.mrf.mxu1  ;;  %6875 = vmatmul.mubr.msk.bf16.gmra.mxu1 %vm2257_vm1, %v7744_v58 }
 0x313   : > { %10621 = vst [vmem:[#allocation62_spill] sm:$0xff] %v8276_v57  ;;  %10622 = vst [vmem:[#allocation63_spill] sm:$0xff] %v8278_v63  ;;  %6878 = vmatprep.mubr.msk.bf16.mxu1 %vm2257_vm1, %v7759_v53 }
 0x314   : > { %3026 = vrot.lane.b32.xlu0 %v8252_v59, %s10547_s25  ;;  %v8286_v45 = vpop.f32.mrf.mxu1 }
 0x315   : > { %10623 = vst [vmem:[#allocation64_spill] sm:$0xff] %v8286_v45 }
 0x316   : > { %v8288_v0 = vpop.permute.xlu1 %3270  ;;  %v2609_v1 = vpop.f32.mrf.mxu1 }
 0x317   : > { %10624 = vst [vmem:[#allocation65_spill] sm:$0xff] %v8288_v0 }
 0x318   : > { %3046 = vrot.lane.b32.xlu0 %v8262_v17, %s10547_s25  ;;  %v2611_v57 = vpop.f32.mrf.mxu1 }
 0x31a   : > { %v8292_v50 = vpop.permute.xlu1 %3357  ;;  %v2615_v6 = vpop.f32.mrf.mxu1  ;;  %6879 = vmatmul.mubr.msk.bf16.gmra.mxu1 %vm2257_vm1, %v7808_v51 }
 0x31b   : > { %10625 = vst [vmem:[#allocation66_spill] sm:$0xff] %v8292_v50  ;;  %6882 = vmatprep.mubr.msk.bf16.mxu1 %vm2257_vm1, %v7818_v62  ;;  %3752 = vrot.lane.b32.xlu1 %v8292_v50, %s10547_s25 }
 0x31c   : > { %3028 = vrot.lane.b32.xlu0 %v8266_v29, %s10547_s25  ;;  %v2617_v58 = vpop.f32.mrf.mxu1 }
 0x31e   : > { %v8302_v53 = vpop.permute.xlu1 %3344  ;;  %v2619_v17 = vpop.f32.mrf.mxu1 }
 0x31f   : > { %10626 = vst [vmem:[#allocation67_spill] sm:$0xff] %v8302_v53  ;;  %3030 = vrot.lane.b32.xlu1 %v8278_v63, %s10547_s25 }
 0x320   : > { %3048 = vrot.lane.b32.xlu0 %v8274_v23, %s10547_s25  ;;  %v2621_v51 = vpop.f32.mrf.mxu1 }
 0x322   : > { %v8308_v59 = vpop.f32.mrf.mxu1  ;;  %6883 = vmatmul.mubr.msk.bf16.gmra.mxu1 %vm2257_vm1, %v7848_v60  ;;  %v8316_v62 = vpop.permute.xlu1 %3359 }
 0x323   : > { %6886 = vmatprep.mubr.msk.bf16.mxu1 %vm2257_vm1, %v7878_v41  ;;  %3744 = vrot.lane.b32.xlu1 %v8302_v53, %s10547_s25  ;;  %10627 = vst [vmem:[#allocation68_spill] sm:$0xff] %v8316_v62  ;;  %v8343_v53 = vpop.permute.xlu0 %3365 }
 0x324   : > { %3050 = vrot.lane.b32.xlu0 %v8286_v45, %s10547_s25  ;;  %v2627_v29 = vpop.f32.mrf.mxu1  ;;  %10633 = vst [vmem:[#allocation74_spill] sm:$0xff] %v8343_v53 }
 0x326   : > { %v8320_v63 = vpop.f32.mrf.mxu1  ;;  %v8324_v60 = vpop.permute.xlu1 %3346 }
 0x327   : > { %3092 = vrot.lane.b32.xlu1 %v2609_v1, %s10547_s25  ;;  %10628 = vst [vmem:[#allocation69_spill] sm:$0xff] %v8324_v60 }
 0x328   : > { %3111 = vrot.lane.b32.xlu0 %v2621_v51, %s10547_s25  ;;  %v2631_v23 = vpop.f32.mrf.mxu1 }
 0x32a   : > { %v8326_v0 = vpop.f32.mrf.mxu1  ;;  %6887 = vmatmul.mubr.msk.bf16.gmra.mxu1 %vm2257_vm1, %v7891_v19  ;;  %v8338_v1 = vpop.permute.xlu1 %3361 }
 0x32b   : > { %10629 = vst [vmem:[#allocation70_spill] sm:$0xff] %v8326_v0  ;;  %3107 = vrot.lane.b32.xlu1 %v2611_v57, %s10547_s25  ;;  %10632 = vst [vmem:[#allocation73_spill] sm:$0xff] %v8338_v1  ;;  %v3953_v1 = vsel %vm3937_vm2, %v7936_v10, %v8182_v35  ;;  %v3952_v35 = vsel %vm3937_vm2, %v7783_v5, %v8058_v38  ;;  %v3995_v5 = vsel %vm3937_vm2, %v7897_v28, %v8138_v18 }
 0x32c   : > { %3113 = vrot.lane.b32.xlu0 %v2627_v29, %s10547_s25  ;;  %v8332_v41 = vpop.f32.mrf.mxu1  ;;  %v3949_v28 = vsel %vm3937_vm2, %v7730_v26, %v7984_v54 }
 0x32d   : > { %10630 = vst [vmem:[#allocation71_spill] sm:$0xff] %v8332_v41 }
 0x32e   : > { %v8334_v45 = vpop.f32.mrf.mxu1  ;;  %v8352_v57 = vpop.permute.xlu1 %3348 }
 0x32f   : > { %10631 = vst [vmem:[#allocation72_spill] sm:$0xff] %v8334_v45  ;;  %3746 = vrot.lane.b32.xlu1 %v8324_v60, %s10547_s25  ;;  %10636 = vst [vmem:[#allocation77_spill] sm:$0xff] %v8352_v57 }
 0x330   : > { %3115 = vrot.lane.b32.xlu0 %v2631_v23, %s10547_s25  ;;  %v8341_v51 = vpop.f32.mrf.mxu1 }
 0x332   : > { %v8345_v19 = vpop.f32.mrf.mxu1 }
 0x333   : > { %10634 = vst [vmem:[#allocation75_spill] sm:$0xff] %v8345_v19  ;;  %3094 = vrot.lane.b32.xlu1 %v2615_v6, %s10547_s25 }
 0x334   : > { %3162 = vrot.lane.b32.xlu0 %v8326_v0, %s10547_s25  ;;  %v8350_v29 = vpop.f32.mrf.mxu1 }
 0x335   : > { %10635 = vst [vmem:[#allocation76_spill] sm:$0xff] %v8350_v29 }
 0x336   : > { %v8354_v60 = vpop.permute.xlu0 %3642  ;;  %v8356_v50 = vpop.f32.mrf.mxu1 }
 0x337   : > { %10637 = vst [vmem:[#allocation78_spill] sm:$0xff] %v8356_v50  ;;  %3109 = vrot.lane.b32.xlu1 %v2617_v58, %s10547_s25  ;;  %v8372_v58 = vpop.permute.xlu1 %3363 }
 0x338   : > { %3182 = vrot.lane.b32.xlu0 %v8332_v41, %s10547_s25  ;;  %v8361_v23 = vpop.f32.mrf.mxu1 }
 0x339   : > { %10638 = vst [vmem:[#allocation79_spill] sm:$0xff] %v8361_v23 }
 0x33a   : > { %v3653_v6 = vpop.permute.xlu0 %3652  ;;  %v8363_v62 = vpop.f32.mrf.mxu1 }
 0x33b   : > { %10639 = vst [vmem:[#allocation80_spill] sm:$0xff] %v8363_v62  ;;  %3748 = vrot.lane.b32.xlu1 %v8352_v57, %s10547_s25  ;;  %v3998_v0 = vsel %vm3937_vm2, %v8056_v14, %v3653_v6  ;;  %v3997_v57 = vsel %vm3937_vm2, %v7917_v49, %v8172_v61  ;;  %v3996_v14 = vsel %vm3937_vm2, %v7908_v3, %v8140_v21  ;;  %v8400_v38 = vpop.permute.xlu1 %3350 }
 0x33c   : > { %4165 = vmatprep.subr.mxu0 %v3998_v0  ;;  %3164 = vrot.lane.b32.xlu0 %v8334_v45, %s10547_s25  ;;  %v8376_v53 = vpop.f32.mrf.mxu1  ;;  %v3951_v49 = vsel %vm3937_vm2, %v7761_v16, %v8033_v36  ;;  %v3950_v3 = vsel %vm3937_vm2, %v7742_v25, %v8010_v52  ;;  %v3994_v16 = vsel %vm3937_vm2, %v7884_v22, %v8123_v2 }
 0x33d   : > { %10640 = vst [vmem:[#allocation81_spill] sm:$0xff] %v8376_v53  ;;  %4166 = vmatpush1.msra.mxu0 %v3953_v1  ;;  %v3993_v25 = vsel %vm3937_vm2, %v7867_v55, %v8108_v31  ;;  %v3948_v22 = vsel %vm3937_vm2, %v7706_v37, %v7975_v43 }
 0x33e   : > { %4167 = vmatprep.subr.mxu0 %v3997_v57  ;;  %v8381_v41 = vpop.permute.xlu0 %3644  ;;  %v2659_v10 = vpop.f32.mrf.mxu1 }
 0x33f   : > { %4168 = vmatpush1.msra.mxu0 %v3952_v35  ;;  %3096 = vrot.lane.b32.xlu1 %v2619_v17, %s10547_s25 }
 0x340   : > { %4169 = vmatprep.subr.mxu0 %v3996_v14  ;;  %3184 = vrot.lane.b32.xlu0 %v8341_v51, %s10547_s25  ;;  %v8395_v61 = vpop.f32.mrf.mxu1 }
 0x341   : > { %4170 = vmatpush1.msra.mxu0 %v3951_v49 }
 0x342   : > { %4171 = vmatprep.subr.mxu0 %v3995_v5  ;;  %v8402_v0 = vpop.permute.xlu0 %3402  ;;  %v8407_v21 = vpop.f32.mrf.mxu1 }
 0x343   : > { %4172 = vmatpush1.msra.mxu0 %v3950_v3  ;;  %3750 = vrot.lane.b32.xlu1 %v8400_v38, %s10547_s25 }
 0x344   : > { %4173 = vmatprep.subr.mxu0 %v3994_v16  ;;  %3166 = vrot.lane.b32.xlu0 %v8345_v19, %s10547_s25  ;;  %v8419_v36 = vpop.f32.mrf.mxu1  ;;  %v3947_v16 = vsel %vm3937_vm2, %v7963_v30, %v8250_v56  ;;  %v3944_v56 = vsel %vm3937_vm2, %v7946_v15, %v8190_v20  ;;  %v3987_v20 = vsel %vm3937_vm2, %v7913_v44, %v8160_v12  ;;  %v10654_v12 = vld [vmem:[#allocation25_spill] sm:$0xff]  ;;  %v10655_v44 = vld [vmem:[#allocation8_spill] sm:$0xff] }
 0x345   : > { %4174 = vmatpush1.msra.mxu0 %v3949_v28 }
 0x346   : > { %4175 = vmatprep.subr.mxu0 %v3993_v25  ;;  %v8424_v52 = vpop.permute.xlu0 %3654  ;;  %v8429_v18 = vpop.f32.mrf.mxu1 }
 0x347   : > { %10641 = vst [vmem:[#allocation82_spill] sm:$0xff] %v8424_v52  ;;  %4176 = vmatpush1.msra.mxu0 %v3948_v22  ;;  %3098 = vrot.lane.b32.xlu1 %v8308_v59, %s10547_s25 }
 0x348   : > { %3186 = vrot.lane.b32.xlu0 %v8350_v29, %s10547_s25  ;;  %v2671_v26 = vpop.f32.mrf.mxu1 }
 0x34a   : > { %v8435_v54 = vpop.permute.xlu0 %3422  ;;  %v8437_v55 = vpop.f32.mrf.mxu1 }
 0x34b   : > { %3100 = vrot.lane.b32.xlu1 %v8320_v63, %s10547_s25  ;;  %v8448_v2 = vpop.permute.xlu1 %3656 }
 0x34c   : > { %3168 = vrot.lane.b32.xlu0 %v8356_v50, %s10547_s25  ;;  %v2677_v37 = vpop.f32.mrf.mxu1  ;;  %10642 = vst [vmem:[#allocation83_spill] sm:$0xff] %v8448_v2 }
 0x34e   : > { %v3647_v43 = vpop.permute.xlu0 %3646  ;;  %v8443_v31 = vpop.f32.mrf.mxu1 }
 0x34f   : > { %3251 = vrot.lane.b32.xlu1 %v2671_v26, %s10547_s25  ;;  %v3649_v6 = vpop.permute.xlu1 %3648  ;;  %v3946_v26 = vsel %vm3937_vm2, %v7952_v46, %v8222_v11  ;;  %v3990_v30 = vsel %vm3937_vm2, %v8072_v13, %v3647_v43  ;;  %v3989_v11 = vsel %vm3937_vm2, %v8062_v7, %v8381_v41  ;;  %v3943_v7 = vsel %vm3937_vm2, %v7928_v27, %v8168_v24  ;;  %v10653_v24 = vld [vmem:[#allocation12_spill] sm:$0xff]  ;;  %v10657_v43 = vld [vmem:[#allocation11_spill] sm:$0xff] }
 0x350   : > { %3188 = vrot.lane.b32.xlu0 %v8361_v23, %s10547_s25  ;;  %v2681_v59 = vpop.f32.mrf.mxu1  ;;  %v3991_v22 = vsel %vm3937_vm2, %v8082_v48, %v3649_v6  ;;  %v3945_v48 = vsel %vm3937_vm2, %v7956_v34, %v8204_v32  ;;  %v3988_v32 = vsel %vm3937_vm2, %v8046_v47, %v8354_v60  ;;  %v3942_v47 = vsel %vm3937_vm2, %v7774_v33, %v8040_v9  ;;  %v10656_v9 = vld [vmem:[#allocation40_spill] sm:$0xff] }
 0x351   : > { %v3986_v27 = vsel %vm3937_vm2, %v10653_v24, %v8150_v40  ;;  %v10658_v40 = vld [vmem:[#allocation21_spill] sm:$0xff] }
 0x352   : > { %v8450_v17 = vpop.permute.xlu0 %3404  ;;  %v8452_v1 = vpop.f32.mrf.mxu1  ;;  %v10666_v24 = vld [vmem:[#allocation17_spill] sm:$0xff] }
 0x353   : > { %10643 = vst [vmem:[#allocation84_spill] sm:$0xff] %v8452_v1  ;;  %3253 = vrot.lane.b32.xlu1 %v2677_v37, %s10547_s25  ;;  %v8478_v28 = vpop.permute.xlu1 %3658 }
 0x354   : > { %3170 = vrot.lane.b32.xlu0 %v8363_v62, %s10547_s25  ;;  %v8457_v63 = vpop.f32.mrf.mxu1  ;;  %10646 = vst [vmem:[#allocation87_spill] sm:$0xff] %v8478_v28 }
 0x356   : > { %v8459_v57 = vpop.permute.xlu0 %3406  ;;  %v8461_v35 = vpop.f32.mrf.mxu1 }
 0x357   : > { %10644 = vst [vmem:[#allocation85_spill] sm:$0xff] %v8461_v35  ;;  %3255 = vrot.lane.b32.xlu1 %v2681_v59, %s10547_s25  ;;  %v3985_v59 = vsel %vm3937_vm2, %v10657_v43, %v10656_v9 }
 0x358   : > { %3190 = vrot.lane.b32.xlu0 %v8376_v53, %s10547_s25  ;;  %v8466_v14 = vpop.f32.mrf.mxu1 }
 0x35a   : > { %v3651_v49 = vpop.permute.xlu0 %3650  ;;  %v8468_v5 = vpop.f32.mrf.mxu1 }
 0x35b   : > { %10645 = vst [vmem:[#allocation86_spill] sm:$0xff] %v8468_v5  ;;  %3302 = vrot.lane.b32.xlu1 %v8452_v1, %s10547_s25  ;;  %v3992_v3 = vsel %vm3937_vm2, %v8093_v42, %v3651_v49  ;;  %v10659_v49 = vld [vmem:[#allocation7_spill] sm:$0xff] }
 0x35c   : > { %4177 = vmatprep.subr.mxu0 %v3992_v3  ;;  %3232 = vrot.lane.b32.xlu0 %v2659_v10, %s10547_s25  ;;  %v8480_v25 = vpop.f32.mrf.mxu1  ;;  %v8510_v10 = vpop.permute.xlu1 %3660 }
 0x35d   : > { %10647 = vst [vmem:[#allocation88_spill] sm:$0xff] %v8480_v25  ;;  %4178 = vmatpush1.msra.mxu0 %v3947_v16  ;;  %10650 = vst [vmem:[#allocation91_spill] sm:$0xff] %v8510_v10  ;;  %v10660_v16 = vld [vmem:[#allocation37_spill] sm:$0xff] }
 0x35e   : > { %4179 = vmatprep.subr.mxu0 %v3991_v22  ;;  %v8487_v42 = vpop.permute.xlu0 %3408  ;;  %v8489_v37 = vpop.f32.mrf.mxu1  ;;  %v10661_v22 = vld [vmem:[#allocation10_spill] sm:$0xff] }
 0x35f   : > { %10648 = vst [vmem:[#allocation89_spill] sm:$0xff] %v8489_v37  ;;  %4180 = vmatpush1.msra.mxu0 %v3946_v26  ;;  %3304 = vrot.lane.b32.xlu1 %v8461_v35, %s10547_s25  ;;  %v3984_v26 = vsel %vm3937_vm2, %v10661_v22, %v10660_v16 }
 0x360   : > { %4181 = vmatprep.subr.mxu0 %v3990_v30  ;;  %3247 = vrot.lane.b32.xlu0 %v8395_v61, %s10547_s25  ;;  %v8500_v46 = vpop.f32.mrf.mxu1  ;;  %v3941_v61 = vsel %vm3937_vm2, %v10655_v44, %v10654_v12  ;;  %v10662_v30 = vld [vmem:[#allocation18_spill] sm:$0xff] }
 0x361   : > { %10649 = vst [vmem:[#allocation90_spill] sm:$0xff] %v8500_v46  ;;  %4182 = vmatpush1.msra.mxu0 %v3945_v48  ;;  %v10663_v48 = vld [vmem:[#allocation6_spill] sm:$0xff] }
 0x362   : > { %4183 = vmatprep.subr.mxu0 %v3989_v11  ;;  %v8508_v13 = vpop.permute.xlu0 %3497  ;;  %v8512_v34 = vpop.f32.mrf.mxu1  ;;  %v3939_v11 = vsel %vm3937_vm2, %v10663_v48, %v10662_v30 }
 0x363   : > { %10651 = vst [vmem:[#allocation92_spill] sm:$0xff] %v8512_v34  ;;  %4184 = vmatpush1.msra.mxu0 %v3944_v56  ;;  %3306 = vrot.lane.b32.xlu1 %v8468_v5, %s10547_s25 }
 0x364   : > { %4185 = vmatprep.subr.mxu0 %v3988_v32  ;;  %3234 = vrot.lane.b32.xlu0 %v8407_v21, %s10547_s25  ;;  %v8524_v15 = vpop.f32.mrf.mxu1  ;;  %v8546_v21 = vpop.permute.xlu1 %3410  ;;  %v10664_v32 = vld [vmem:[#allocation35_spill] sm:$0xff] }
 0x365   : > { %10652 = vst [vmem:[#allocation93_spill] sm:$0xff] %v8524_v15  ;;  %4186 = vmatpush1.msra.mxu0 %v3943_v7  ;;  %v10665_v7 = vld [vmem:[#allocation9_spill] sm:$0xff] }
 0x366   : > { %4187 = vmatprep.subr.mxu0 %v3987_v20  ;;  %v8529_v41 = vpop.permute.xlu0 %3484  ;;  %v8534_v60 = vpop.f32.mrf.mxu1  ;;  %v3983_v20 = vsel %vm3937_vm2, %v10665_v7, %v10664_v32 }
 0x367   : > { %4188 = vmatpush1.msra.mxu0 %v3942_v47  ;;  %3852 = vrot.lane.b32.xlu1 %v8508_v13, %s10547_s25 }
 0x368   : > { %4189 = vmatprep.subr.mxu0 %v3986_v27  ;;  %3249 = vrot.lane.b32.xlu0 %v8419_v36, %s10547_s25  ;;  %v8548_v33 = vpop.f32.mrf.mxu1  ;;  %v3940_v36 = vsel %vm3937_vm2, %v10659_v49, %v10658_v40  ;;  %v10667_v27 = vld [vmem:[#allocation5_spill] sm:$0xff]  ;;  %v8575_v44 = vpop.permute.xlu1 %3482 }
 0x369   : > { %4190 = vmatpush1.msra.mxu0 %v3941_v61  ;;  %v3938_v12 = vsel %vm3937_vm2, %v10667_v27, %v10666_v24 }
 0x36a   : > { %4191 = vmatprep.subr.mxu0 %v3985_v59  ;;  %v8553_v6 = vpop.permute.xlu0 %3499  ;;  %v2715_v3 = vpop.f32.mrf.mxu1 }
 0x36b   : > { %4192 = vmatpush1.msra.mxu0 %v3940_v36  ;;  %3374 = vrot.lane.b32.xlu1 %v2715_v3, %s10547_s25 }
 0x36c   : > { %4193 = vmatprep.subr.mxu0 %v3984_v26  ;;  %3236 = vrot.lane.b32.xlu0 %v8429_v18, %s10547_s25  ;;  %v2717_v56 = vpop.f32.mrf.mxu1 }
 0x36d   : > { %4194 = vmatpush1.msra.mxu0 %v3939_v11 }
 0x36e   : > { %4195 = vmatprep.subr.mxu0 %v3983_v20  ;;  %v8570_v47 = vpop.permute.xlu0 %3486  ;;  %v2719_v61 = vpop.f32.mrf.mxu1 }
 0x36f   : > { %4196 = vmatpush1.msra.mxu0 %v3938_v12  ;;  %3389 = vrot.lane.b32.xlu1 %v2717_v56, %s10547_s25  ;;  %v8582_v43 = vpop.permute.xlu1 %3503 }
 0x370   : > { %3238 = vrot.lane.b32.xlu0 %v8437_v55, %s10547_s25  ;;  %v2721_v18 = vpop.f32.mrf.mxu1 }
 0x372   : > { %v8580_v9 = vpop.permute.xlu0 %3501  ;;  %v2725_v59 = vpop.f32.mrf.mxu1 }
 0x373   : > { %3376 = vrot.lane.b32.xlu1 %v2719_v61, %s10547_s25  ;;  %v8590_v3 = vpop.permute.xlu1 %3490 }
 0x374   : > { %3240 = vrot.lane.b32.xlu0 %v8443_v31, %s10547_s25  ;;  %v2727_v40 = vpop.f32.mrf.mxu1 }
 0x376   : > { %v8587_v49 = vpop.permute.xlu0 %3488  ;;  %v2729_v36 = vpop.f32.mrf.mxu1 }
 0x377   : > { %3391 = vrot.lane.b32.xlu1 %v2721_v18, %s10547_s25  ;;  %v8606_v30 = vpop.permute.xlu1 %3022 }
 0x378   : > { %3326 = vrot.lane.b32.xlu0 %v8480_v25, %s10547_s25  ;;  %v2731_v55 = vpop.f32.mrf.mxu1  ;;  %10670 = vst [vmem:[#allocation8_spill] sm:$0xff] %v8606_v30 }
 0x37a   : > { %v8594_v16 = vpop.permute.xlu0 %3505  ;;  %v8596_v22 = vpop.f32.mrf.mxu1 }
 0x37b   : > { %10668 = vst [vmem:[#allocation12_spill] sm:$0xff] %v8596_v22  ;;  %3850 = vrot.lane.b32.xlu1 %v8590_v3, %s10547_s25  ;;  %v8620_v7 = vpop.permute.xlu1 %3024 }
 0x37c   : > { %3308 = vrot.lane.b32.xlu0 %v8489_v37, %s10547_s25  ;;  %v8602_v31 = vpop.f32.mrf.mxu1  ;;  %10674 = vst [vmem:[#allocation7_spill] sm:$0xff] %v8620_v7 }
 0x37e   : > { %v8604_v26 = vpop.permute.xlu0 %3042  ;;  %v8608_v48 = vpop.f32.mrf.mxu1 }
 0x37f   : > { %10669 = vst [vmem:[#allocation25_spill] sm:$0xff] %v8604_v26  ;;  %10671 = vst [vmem:[#allocation40_spill] sm:$0xff] %v8608_v48  ;;  %3378 = vrot.lane.b32.xlu1 %v2725_v59, %s10547_s25 }
 0x380   : > { %3842 = vrot.lane.b32.xlu0 %v8575_v44, %s10547_s25  ;;  %v8613_v11 = vpop.f32.mrf.mxu1 }
 0x382   : > { %v8615_v56 = vpop.permute.xlu0 %3044  ;;  %v8617_v32 = vpop.f32.mrf.mxu1 }
 0x383   : > { %10672 = vst [vmem:[#allocation11_spill] sm:$0xff] %v8615_v56  ;;  %10673 = vst [vmem:[#allocation21_spill] sm:$0xff] %v8617_v32  ;;  %3380 = vrot.lane.b32.xlu1 %v2729_v36, %s10547_s25  ;;  %v8630_v12 = vpop.permute.xlu1 %3742 }
 0x384   : > { %3328 = vrot.lane.b32.xlu0 %v8500_v46, %s10547_s25  ;;  %v8624_v20 = vpop.f32.mrf.mxu1 }
 0x385   : > { %10675 = vst [vmem:[#allocation37_spill] sm:$0xff] %v8624_v20 }
 0x386   : > { %v8626_v24 = vpop.permute.xlu0 %3026  ;;  %v8628_v27 = vpop.f32.mrf.mxu1 }
 0x387   : > { %10676 = vst [vmem:[#allocation10_spill] sm:$0xff] %v8626_v24  ;;  %10677 = vst [vmem:[#allocation18_spill] sm:$0xff] %v8628_v27  ;;  %v10730_v24 = vld [vmem:[#allocation20_spill] sm:$0xff] }
 0x388   : > { %3310 = vrot.lane.b32.xlu0 %v8512_v34, %s10547_s25  ;;  %v8634_v61 = vpop.f32.mrf.mxu1 }
 0x389   : > { %10678 = vst [vmem:[#allocation6_spill] sm:$0xff] %v8634_v61 }
 0x38a   : > { %v8636_v18 = vpop.permute.xlu0 %3046  ;;  %v8638_v59 = vpop.f32.mrf.mxu1 }
 0x38b   : > { %10679 = vst [vmem:[#allocation35_spill] sm:$0xff] %v8636_v18  ;;  %10680 = vst [vmem:[#allocation9_spill] sm:$0xff] %v8638_v59 }
 0x38c   : > { %3330 = vrot.lane.b32.xlu0 %v8524_v15, %s10547_s25  ;;  %v8642_v36 = vpop.f32.mrf.mxu1 }
 0x38d   : > { %10681 = vst [vmem:[#allocation17_spill] sm:$0xff] %v8642_v36  ;;  %v8644_v25 = vpop.permute.xlu1 %3752 }
 0x38e   : > { %v8646_v46 = vpop.permute.xlu0 %3028  ;;  %v2759_v1 = vpop.f32.mrf.mxu1 }
 0x390   : > { %3844 = vrot.lane.b32.xlu0 %v8529_v41, %s10547_s25  ;;  %v8650_v35 = vpop.f32.mrf.mxu1 }
 0x391   : > { %v8652_v5 = vpop.permute.xlu1 %3030 }
 0x392   : > { %v8654_v37 = vpop.permute.xlu0 %3048  ;;  %v8656_v34 = vpop.f32.mrf.mxu1 }
 0x393   : > { %10682 = vst [vmem:[#allocation5_spill] sm:$0xff] %v8654_v37 }
 0x394   : > { %3372 = vrot.lane.b32.xlu0 %v8534_v60, %s10547_s25  ;;  %v2767_v15 = vpop.f32.mrf.mxu1 }
 0x395   : > { %v8660_v29 = vpop.permute.xlu1 %3744 }
 0x396   : > { %v8662_v23 = vpop.permute.xlu0 %3050  ;;  %v8664_v53 = vpop.f32.mrf.mxu1 }
 0x397   : > { %10683 = vst [vmem:[#allocation94_spill] sm:$0xff] %v8662_v23 }
 0x398   : > { %3387 = vrot.lane.b32.xlu0 %v8548_v33, %s10547_s25  ;;  %v8668_v26 = vpop.f32.mrf.mxu1 }
 0x399   : > { %v8670_v56 = vpop.permute.xlu1 %3092 }
 0x39a   : > { %10684 = vst [vmem:[#allocation95_spill] sm:$0xff] %v8670_v56  ;;  %v8672_v18 = vpop.permute.xlu0 %3111  ;;  %3562 = vrot.lane.b32.xlu1 %v8670_v56, %s10547_s25  ;;  %v8676_v60 = vpop.f32.mrf.mxu1 }
 0x39b   : > { %10685 = vst [vmem:[#allocation96_spill] sm:$0xff] %v8672_v18 }
 0x39c   : > { %3846 = vrot.lane.b32.xlu0 %v8570_v47, %s10547_s25  ;;  %v8680_v37 = vpop.f32.mrf.mxu1 }
 0x39d   : > { %v8682_v23 = vpop.permute.xlu1 %3107 }
 0x39e   : > { %v8684_v52 = vpop.permute.xlu0 %3113  ;;  %3572 = vrot.lane.b32.xlu1 %v8682_v23, %s10547_s25  ;;  %v8688_v33 = vpop.f32.mrf.mxu1 }
 0x39f   : > { %10686 = vst [vmem:[#allocation97_spill] sm:$0xff] %v8684_v52 }
 0x3a0   : > { %3848 = vrot.lane.b32.xlu0 %v8587_v49, %s10547_s25  ;;  %v2781_v2 = vpop.f32.mrf.mxu1 }
 0x3a1   : > { %v8692_v28 = vpop.permute.xlu1 %3746 }
 0x3a2   : > { %v8694_v10 = vpop.permute.xlu0 %3115  ;;  %v8696_v56 = vpop.f32.mrf.mxu1 }
 0x3a3   : > { %10687 = vst [vmem:[#allocation98_spill] sm:$0xff] %v8694_v10  ;;  %10688 = vst [vmem:[#allocation99_spill] sm:$0xff] %v8696_v56 }
 0x3a4   : > { %3393 = vrot.lane.b32.xlu0 %v2727_v40, %s10547_s25  ;;  %v8699_v45 = vpop.f32.mrf.mxu1 }
 0x3a5   : > { %10689 = vst [vmem:[#allocation100_spill] sm:$0xff] %v8699_v45  ;;  %v8701_v19 = vpop.permute.xlu1 %3094 }
 0x3a6   : > { %10690 = vst [vmem:[#allocation101_spill] sm:$0xff] %v8701_v19  ;;  %v8703_v50 = vpop.permute.xlu0 %3162  ;;  %3564 = vrot.lane.b32.xlu1 %v8701_v19, %s10547_s25  ;;  %v8707_v62 = vpop.f32.mrf.mxu1 }
 0x3a7   : > { %10691 = vst [vmem:[#allocation102_spill] sm:$0xff] %v8703_v50  ;;  %10692 = vst [vmem:[#allocation103_spill] sm:$0xff] %v8707_v62  ;;  %v10728_v50 = vld [vmem:[#allocation38_spill] sm:$0xff] }
 0x3a8   : > { %3395 = vrot.lane.b32.xlu0 %v2731_v55, %s10547_s25  ;;  %v8715_v40 = vpop.f32.mrf.mxu1 }
 0x3a9   : > { %v8710_v30 = vpop.permute.xlu1 %3109  ;;  %10694 = vst [vmem:[#allocation105_spill] sm:$0xff] %v8715_v40 }
 0x3aa   : > { %v8712_v7 = vpop.permute.xlu0 %3182  ;;  %3512 = vrot.lane.b32.xlu1 %v2759_v1, %s10547_s25  ;;  %v8725_v62 = vpop.f32.mrf.mxu1 }
 0x3ab   : > { %10693 = vst [vmem:[#allocation104_spill] sm:$0xff] %v8712_v7 }
 0x3ac   : > { %3442 = vrot.lane.b32.xlu0 %v8596_v22, %s10547_s25  ;;  %v8735_v22 = vpop.f32.mrf.mxu1 }
 0x3ad   : > { %v8719_v45 = vpop.permute.xlu1 %3748  ;;  %10698 = vst [vmem:[#allocation109_spill] sm:$0xff] %v8735_v22 }
 0x3ae   : > { %v8721_v56 = vpop.permute.xlu0 %3164  ;;  %3574 = vrot.lane.b32.xlu1 %v8710_v30, %s10547_s25 }
 0x3af   : > { %10695 = vst [vmem:[#allocation106_spill] sm:$0xff] %v8721_v56  ;;  %v10729_v56 = vld [vmem:[#allocation66_spill] sm:$0xff] }
 0x3b0   : > { %3444 = vrot.lane.b32.xlu0 %v8608_v48, %s10547_s25  ;;  %v8745_v48 = vpop.f32.mrf.mxu1 }
 0x3b1   : > { %v8729_v55 = vpop.permute.xlu1 %3096 }
 0x3b2   : > { %10696 = vst [vmem:[#allocation107_spill] sm:$0xff] %v8729_v55  ;;  %v8731_v1 = vpop.permute.xlu0 %3184  ;;  %3566 = vrot.lane.b32.xlu1 %v8729_v55, %s10547_s25  ;;  %v2837_v22 = vpop.f32.mrf.mxu1 }
 0x3b3   : > { %10697 = vst [vmem:[#allocation108_spill] sm:$0xff] %v8731_v1 }
 0x3b4   : > { %3446 = vrot.lane.b32.xlu0 %v8617_v32, %s10547_s25 }
 0x3b5   : > { %v8739_v7 = vpop.permute.xlu1 %3750 }
 0x3b6   : > { %v8741_v40 = vpop.permute.xlu0 %3166  ;;  %3576 = vrot.lane.b32.xlu1 %v8672_v18, %s10547_s25  ;;  %v8762_v18 = vpop.f32.mrf.mxu1 }
 0x3b7   : > { %10699 = vst [vmem:[#allocation110_spill] sm:$0xff] %v8741_v40  ;;  %10703 = vst [vmem:[#allocation114_spill] sm:$0xff] %v8762_v18  ;;  %v4038_v40 = vsel %vm3937_vm2, %v10730_v24, %v10729_v56 }
 0x3b8   : > { %3466 = vrot.lane.b32.xlu0 %v8624_v20, %s10547_s25 }
 0x3b9   : > { %v8749_v1 = vpop.permute.xlu1 %3098 }
 0x3ba   : > { %10700 = vst [vmem:[#allocation111_spill] sm:$0xff] %v8749_v1  ;;  %v8751_v19 = vpop.permute.xlu0 %3186  ;;  %3529 = vrot.lane.b32.xlu1 %v2767_v15, %s10547_s25  ;;  %v8772_v15 = vpop.f32.mrf.mxu1 }
 0x3bb   : > { %10701 = vst [vmem:[#allocation112_spill] sm:$0xff] %v8751_v19 }
 0x3bc   : > { %3448 = vrot.lane.b32.xlu0 %v8628_v27, %s10547_s25 }
 0x3bd   : > { %v8756_v32 = vpop.permute.xlu1 %3100 }
 0x3be   : > { %10702 = vst [vmem:[#allocation113_spill] sm:$0xff] %v8756_v32  ;;  %v8758_v55 = vpop.permute.xlu0 %3168  ;;  %3568 = vrot.lane.b32.xlu1 %v8749_v1, %s10547_s25 }
 0x3c0   : > { %3468 = vrot.lane.b32.xlu0 %v8634_v61, %s10547_s25  ;;  %v8782_v61 = vpop.f32.mrf.mxu1 }
 0x3c1   : > { %v8766_v20 = vpop.permute.xlu1 %3251  ;;  %10706 = vst [vmem:[#allocation117_spill] sm:$0xff] %v8782_v61 }
 0x3c2   : > { %10704 = vst [vmem:[#allocation115_spill] sm:$0xff] %v8766_v20  ;;  %v8768_v19 = vpop.permute.xlu0 %3188  ;;  %3578 = vrot.lane.b32.xlu1 %v8684_v52, %s10547_s25 }
 0x3c3   : > { %10705 = vst [vmem:[#allocation116_spill] sm:$0xff] %v8768_v19 }
 0x3c4   : > { %3450 = vrot.lane.b32.xlu0 %v8638_v59, %s10547_s25  ;;  %v8792_v59 = vpop.f32.mrf.mxu1 }
 0x3c5   : > { %v8776_v27 = vpop.permute.xlu1 %3253 }
 0x3c6   : > { %v8778_v1 = vpop.permute.xlu0 %3170  ;;  %3570 = vrot.lane.b32.xlu1 %v8756_v32, %s10547_s25 }
 0x3c8   : > { %3470 = vrot.lane.b32.xlu0 %v8642_v36, %s10547_s25  ;;  %v8802_v36 = vpop.f32.mrf.mxu1 }
 0x3c9   : > { %v8786_v19 = vpop.permute.xlu1 %3255  ;;  %10709 = vst [vmem:[#allocation120_spill] sm:$0xff] %v8802_v36 }
 0x3ca   : > { %v8788_v52 = vpop.permute.xlu0 %3190  ;;  %3580 = vrot.lane.b32.xlu1 %v8694_v10, %s10547_s25  ;;  %v8809_v61 = vpop.f32.mrf.mxu1 }
 0x3cb   : > { %10707 = vst [vmem:[#allocation118_spill] sm:$0xff] %v8788_v52  ;;  %10711 = vst [vmem:[#allocation122_spill] sm:$0xff] %v8809_v61 }
 0x3cc   : > { %3527 = vrot.lane.b32.xlu0 %v8650_v35, %s10547_s25 }
 0x3cd   : > { %v8796_v18 = vpop.permute.xlu1 %3302 }
 0x3ce   : > { %10708 = vst [vmem:[#allocation119_spill] sm:$0xff] %v8796_v18  ;;  %v8798_v32 = vpop.permute.xlu0 %3232  ;;  %3533 = vrot.lane.b32.xlu1 %v8680_v37, %s10547_s25  ;;  %v8818_v37 = vpop.f32.mrf.mxu1 }
 0x3d0   : > { %3514 = vrot.lane.b32.xlu0 %v8656_v34, %s10547_s25 }
 0x3d1   : > { %v8806_v52 = vpop.permute.xlu1 %3304 }
 0x3d2   : > { %10710 = vst [vmem:[#allocation121_spill] sm:$0xff] %v8806_v52  ;;  %v3248_v10 = vpop.permute.xlu0 %3247  ;;  %3535 = vrot.lane.b32.xlu1 %v2781_v2, %s10547_s25 }
 0x3d4   : > { %3516 = vrot.lane.b32.xlu0 %v8664_v53, %s10547_s25  ;;  %v4043_v53 = vsel %vm3937_vm2, %v8256_v39, %v8644_v25  ;;  %v4087_v39 = vsel %vm3937_vm2, %v8194_v8, %v8594_v16 }
 0x3d5   : > { %v8813_v35 = vpop.permute.xlu1 %3306 }
 0x3d6   : > { %10712 = vst [vmem:[#allocation123_spill] sm:$0xff] %v8813_v35  ;;  %v8815_v18 = vpop.permute.xlu0 %3234  ;;  %3582 = vrot.lane.b32.xlu1 %v2837_v22, %s10547_s25  ;;  %v8830_v35 = vpop.f32.mrf.mxu1 }
 0x3d7   : > { %10713 = vst [vmem:[#allocation124_spill] sm:$0xff] %v8830_v35  ;;  %v10726_v35 = vld [vmem:[#allocation68_spill] sm:$0xff] }
 0x3d8   : > { %3531 = vrot.lane.b32.xlu0 %v8668_v26, %s10547_s25  ;;  %v3969_v26 = vsel %vm3937_vm2, %v8246_v4, %v8710_v30  ;;  %v10719_v30 = vld [vmem:[#allocation52_spill] sm:$0xff] }
 0x3d9   : > { %v3853_v34 = vpop.permute.xlu1 %3852 }
 0x3da   : > { %v3250_v52 = vpop.permute.xlu0 %3249  ;;  %3672 = vrot.lane.b32.xlu1 %v3248_v10, %s10547_s25  ;;  %v4088_v2 = vsel %vm3937_vm2, %v8435_v54, %v3853_v34  ;;  %v10714_v54 = vld [vmem:[#allocation71_spill] sm:$0xff]  ;;  %v10716_v34 = vld [vmem:[#allocation74_spill] sm:$0xff] }
 0x3db   : > { %4343 = vmatprep.subr.mxu1 %v4088_v2  ;;  %v4014_v22 = vsel %vm3937_vm2, %v8341_v51, %v3250_v52  ;;  %v4013_v25 = vsel %vm3937_vm2, %v10714_v54, %v3248_v10  ;;  %v10717_v2 = vld [vmem:[#allocation30_spill] sm:$0xff] }
 0x3dc   : > { %4197 = vmatprep.subr.mxu0 %v4014_v22  ;;  %4344 = vmatpush1.msra.mxu1 %v4043_v53  ;;  %v4042_v53 = vsel %vm3937_vm2, %v10717_v2, %v10716_v34  ;;  %v10720_v22 = vld [vmem:[#allocation45_spill] sm:$0xff] }
 0x3dd   : > { %3518 = vrot.lane.b32.xlu0 %v8676_v60, %s10547_s25  ;;  %4198 = vmatpush2.msra.mxu0 %v3969_v26  ;;  %v8842_v51 = vpop.permute.xlu1 %3374  ;;  %v3968_v60 = vsel %vm3937_vm2, %v10719_v30, %v8682_v23  ;;  %v4086_v10 = vsel %vm3937_vm2, %v10720_v22, %v8582_v43  ;;  %v6868_v26 = vpop.f32.mrf.mxu1  ;;  %v10724_v30 = vld [vmem:[#allocation26_spill] sm:$0xff] }
 0x3de   : > { %4345 = vmatprep.subr.mxu1 %v4087_v39  ;;  %10715 = vst [vmem:[#allocation71_spill] sm:$0xff] %v8842_v51  ;;  %4199 = vmatprep.subr.mxu0 %v4013_v25  ;;  %v8847_v4 = vpop.permute.xlu0 %3236  ;;  %v10721_v39 = vld [vmem:[#allocation28_spill] sm:$0xff] }
 0x3df   : > { %10718 = vst [vmem:[#allocation74_spill] sm:$0xff] %v8847_v4  ;;  %4346 = vmatpush1.msra.mxu1 %v4042_v53  ;;  %3674 = vrot.lane.b32.xlu1 %v3250_v52, %s10547_s25  ;;  %v4041_v54 = vsel %vm3937_vm2, %v10721_v39, %v8372_v58  ;;  %v10722_v52 = vld [vmem:[#allocation43_spill] sm:$0xff]  ;;  %v10723_v53 = vld [vmem:[#allocation73_spill] sm:$0xff]  ;;  %v2882_v61 = vpop.f32.mrf.mxu1 }
 0x3e0   : > { %4200 = vmatpush2.msra.mxu0 %v3968_v60  ;;  %4347 = vmatprep.subr.mxu1 %v4086_v10  ;;  %v4085_v25 = vsel %vm3937_vm2, %v10722_v52, %v8580_v9  ;;  %v4040_v60 = vsel %vm3937_vm2, %v10724_v30, %v10723_v53 }
 0x3e1   : > { %4348 = vmatpush1.msra.mxu1 %v4041_v54  ;;  %3520 = vrot.lane.b32.xlu0 %v8688_v33, %s10547_s25  ;;  %v8864_v23 = vpop.permute.xlu1 %3389  ;;  %v10725_v54 = vld [vmem:[#allocation41_spill] sm:$0xff] }
 0x3e2   : > { %4349 = vmatprep.subr.mxu1 %v4085_v25  ;;  %v8869_v10 = vpop.permute.xlu0 %3238  ;;  %v4084_v33 = vsel %vm3937_vm2, %v10725_v54, %v8553_v6  ;;  %v10727_v25 = vld [vmem:[#allocation23_spill] sm:$0xff] }
 0x3e3   : > { %4350 = vmatpush1.msra.mxu1 %v4040_v60  ;;  %3666 = vrot.lane.b32.xlu1 %v8847_v4, %s10547_s25  ;;  %v4039_v36 = vsel %vm3937_vm2, %v10727_v25, %v10726_v35  ;;  %v4083_v60 = vsel %vm3937_vm2, %v10728_v50, %v8508_v13 }
 0x3e4   : > { %4351 = vmatprep.subr.mxu1 %v4084_v33 }
 0x3e5   : > { %4352 = vmatpush1.msra.mxu1 %v4039_v36  ;;  %3584 = vrot.lane.b32.xlu0 %v8725_v62, %s10547_s25  ;;  %v8884_v4 = vpop.permute.xlu1 %3376  ;;  %v6869_v36 = vpop.f32.mrf.mxu1 }
 0x3e6   : > { %4353 = vmatprep.subr.mxu1 %v4083_v60  ;;  %v8889_v33 = vpop.permute.xlu0 %3240 }
 0x3e7   : > { %4354 = vmatpush1.msra.mxu1 %v4038_v40  ;;  %3676 = vrot.lane.b32.xlu1 %v8766_v20, %s10547_s25  ;;  %v2885_v13 = vpop.f32.mrf.mxu1  ;;  %v10734_v40 = vld [vmem:[#allocation65_spill] sm:$0xff] }
 0x3e8   : > { %v4037_v60 = vsel %vm3937_vm2, %v10734_v40, %v8739_v7 }
 0x3e9   : > { %3586 = vrot.lane.b32.xlu0 %v8745_v48, %s10547_s25  ;;  %v8895_v62 = vpop.permute.xlu1 %3391 }
 0x3ea   : > { %10731 = vst [vmem:[#allocation30_spill] sm:$0xff] %v8895_v62  ;;  %v8897_v50 = vpop.permute.xlu0 %3326 }
 0x3eb   : > { %10732 = vst [vmem:[#allocation52_spill] sm:$0xff] %v8897_v50  ;;  %3668 = vrot.lane.b32.xlu1 %v8869_v10, %s10547_s25  ;;  %v8912_v50 = vpop.f32.mrf.mxu1 }
 0x3ec   : > { %10735 = vst [vmem:[#allocation28_spill] sm:$0xff] %v8912_v50 }
 0x3ed   : > { %3662 = vrot.lane.b32.xlu0 %v8798_v32, %s10547_s25  ;;  %v3851_v56 = vpop.permute.xlu1 %3850 }
 0x3ee   : > { %v8903_v24 = vpop.permute.xlu0 %3308  ;;  %v4082_v48 = vsel %vm3937_vm2, %v8546_v21, %v3851_v56 }
 0x3ef   : > { %10733 = vst [vmem:[#allocation45_spill] sm:$0xff] %v8903_v24  ;;  %3678 = vrot.lane.b32.xlu1 %v8776_v27, %s10547_s25  ;;  %4355 = vmatprep.subr.mxu1 %v4082_v48  ;;  %v8918_v24 = vpop.f32.mrf.mxu1 }
 0x3f0   : > { %4356 = vmatpush1.msra.mxu1 %v4037_v60  ;;  %10736 = vst [vmem:[#allocation43_spill] sm:$0xff] %v8918_v24 }
 0x3f1   : > { %3588 = vrot.lane.b32.xlu0 %v8772_v15, %s10547_s25  ;;  %v8926_v7 = vpop.f32.mrf.mxu1 }
 0x3f2   : > { %v3843_v20 = vpop.permute.xlu0 %3842  ;;  %10738 = vst [vmem:[#allocation26_spill] sm:$0xff] %v8926_v7 }
 0x3f3   : > { %3464 = vrot.lane.b32.xlu1 %v8613_v11, %s10547_s25  ;;  %v8934_v56 = vpop.f32.mrf.mxu1 }
 0x3f4   : > { %10740 = vst [vmem:[#allocation68_spill] sm:$0xff] %v8934_v56 }
 0x3f5   : > { %3664 = vrot.lane.b32.xlu0 %v8815_v18, %s10547_s25  ;;  %v6876_v40 = vpop.f32.mrf.mxu1 }
 0x3f6   : > { %v8922_v21 = vpop.permute.xlu0 %3328 }
 0x3f7   : > { %10737 = vst [vmem:[#allocation73_spill] sm:$0xff] %v8922_v21  ;;  %3324 = vrot.lane.b32.xlu1 %v8466_v14, %s10547_s25  ;;  %v8947_v21 = vpop.permute.xlu1 %3378 }
 0x3f9   : > { %3590 = vrot.lane.b32.xlu0 %v8792_v59, %s10547_s25  ;;  %v8945_v59 = vpop.f32.mrf.mxu1 }
 0x3fa   : > { %v8930_v15 = vpop.permute.xlu0 %3310  ;;  %10742 = vst [vmem:[#allocation38_spill] sm:$0xff] %v8945_v59 }
 0x3fb   : > { %10739 = vst [vmem:[#allocation41_spill] sm:$0xff] %v8930_v15  ;;  %3462 = vrot.lane.b32.xlu1 %v8602_v31, %s10547_s25 }
 0x3fd   : > { %3682 = vrot.lane.b32.xlu0 %v8818_v37, %s10547_s25 }
 0x3fe   : > { %v8938_v48 = vpop.permute.xlu0 %3330 }
 0x3ff   : > { %10741 = vst [vmem:[#allocation23_spill] sm:$0xff] %v8938_v48  ;;  %3688 = vrot.lane.b32.xlu1 %v6868_v26, %s10547_s25  ;;  %v6877_v26 = vpop.f32.mrf.mxu1  ;;  %v8956_v48 = vpop.permute.xlu1 %3380 }
 0x401   : > { %3670 = vrot.lane.b32.xlu0 %v8889_v33, %s10547_s25  ;;  %v2917_v24 = vpop.f32.mrf.mxu1 }
 0x402   : > { %v3845_v60 = vpop.permute.xlu0 %3844 }
 0x403   : > { %3680 = vrot.lane.b32.xlu1 %v8786_v19, %s10547_s25 }
 0x405   : > { %3430 = vrot.lane.b32.xlu0 %v8194_v8, %s10547_s25 }
 0x406   : > { %v8951_v37 = vpop.permute.xlu0 %3372 }
 0x407   : > { %10743 = vst [vmem:[#allocation66_spill] sm:$0xff] %v8951_v37  ;;  %3684 = vrot.lane.b32.xlu1 %v2882_v61, %s10547_s25  ;;  %v8966_v61 = vpop.f32.mrf.mxu1 }
 0x408   : > { %10744 = vst [vmem:[#allocation20_spill] sm:$0xff] %v8966_v61  ;;  %v10745_v61 = vld [vmem:[#allocation58_spill] sm:$0xff] }
 0x409   : > { %3860 = vrot.lane.b32.xlu0 %v8594_v16, %s10547_s25  ;;  %v4119_v16 = vld [vmem:[%s10440_s3 + $0x8] sm:$0xff]  ;;  %v4036_v7 = vsel %vm3937_vm2, %v10745_v61, %v8719_v45  ;;  %v4079_v45 = vsel %vm3937_vm2, %v8450_v17, %v3845_v60 }
 0x40a   : > { %v8958_v15 = vpop.permute.xlu0 %3387  ;;  %4229 = vmatprep.mubr.f32.mxu0 %v4119_v16  ;;  %4407 = vmatprep.mubr.f32.mxu1 %v4119_v16 }
 0x40b   : > { %3690 = vrot.lane.b32.xlu1 %v6869_v36, %s10547_s25 }
 0x40c   : > { %v8963_v56 = vpop.permute.xlu1 %3562 }
 0x40d   : > { %3290 = vrot.lane.b32.xlu0 %v10717_v2, %s10547_s25  ;;  %v2930_v2 = vpop.f32.mrf.mxu1 }
 0x40e   : > { %v3847_v8 = vpop.permute.xlu0 %3846 }
 0x40f   : > { %3686 = vrot.lane.b32.xlu1 %v2885_v13, %s10547_s25 }
 0x410   : > { %v8974_v50 = vpop.permute.xlu1 %3572 }
 0x411   : > { %3760 = vrot.lane.b32.xlu0 %v10716_v34, %s10547_s25  ;;  %v4080_v34 = vsel %vm3937_vm2, %v8459_v57, %v3847_v8 }
 0x412   : > { %v3849_v36 = vpop.permute.xlu0 %3848 }
 0x413   : > { %3784 = vrot.lane.b32.xlu1 %v6876_v40, %s10547_s25  ;;  %v4081_v13 = vsel %vm3937_vm2, %v8487_v42, %v3849_v36  ;;  %v10746_v40 = vld [vmem:[#allocation50_spill] sm:$0xff]  ;;  %v8991_v42 = vpop.f32.mrf.mxu1 }
 0x414   : > { %4357 = vmatprep.subr.mxu1 %v4081_v13  ;;  %v4035_v16 = vsel %vm3937_vm2, %v10746_v40, %v8692_v28  ;;  %v4078_v28 = vsel %vm3937_vm2, %v8402_v0, %v3843_v20  ;;  %v10753_v0 = vld [vmem:[#allocation29_spill] sm:$0xff]  ;;  %v10756_v13 = vld [vmem:[#allocation27_spill] sm:$0xff] }
 0x415   : > { %3428 = vrot.lane.b32.xlu0 %v10720_v22, %s10547_s25  ;;  %4358 = vmatpush1.msra.mxu1 %v4036_v7  ;;  %v10748_v7 = vld [vmem:[#allocation48_spill] sm:$0xff]  ;;  %v2933_v60 = vpop.f32.mrf.mxu1  ;;  %v4032_v20 = vsel %vm3937_vm2, %v10753_v0, %v8400_v38 }
 0x416   : > { %4359 = vmatprep.subr.mxu1 %v4080_v34  ;;  %v8988_v59 = vpop.permute.xlu0 %3393  ;;  %v4034_v57 = vsel %vm3937_vm2, %v10748_v7, %v8660_v29  ;;  %v10751_v29 = vld [vmem:[#allocation46_spill] sm:$0xff]  ;;  %v10760_v7 = vld [vmem:[#allocation39_spill] sm:$0xff] }
 0x417   : > { %10747 = vst [vmem:[#allocation65_spill] sm:$0xff] %v8988_v59  ;;  %3786 = vrot.lane.b32.xlu1 %v6877_v26, %s10547_s25  ;;  %4360 = vmatpush1.msra.mxu1 %v4035_v16  ;;  %v10749_v26 = vld [vmem:[#allocation47_spill] sm:$0xff]  ;;  %v4077_v61 = vsel %vm3937_vm2, %v10751_v29, %v8590_v3  ;;  %v10755_v3 = vld [vmem:[#allocation77_spill] sm:$0xff]  ;;  %v9029_v40 = vpop.f32.mrf.mxu1 }
 0x418   : > { %v8995_v22 = vpop.permute.xlu1 %3564  ;;  %4361 = vmatprep.subr.mxu1 %v4079_v45  ;;  %v4033_v8 = vsel %vm3937_vm2, %v10749_v26, %v8630_v12  ;;  %v10754_v12 = vld [vmem:[#allocation44_spill] sm:$0xff]  ;;  %v4031_v34 = vsel %vm3937_vm2, %v10756_v13, %v10755_v3  ;;  %v10762_v26 = vld [vmem:[#allocation22_spill] sm:$0xff] }
 0x419   : > { %3858 = vrot.lane.b32.xlu0 %v8582_v43, %s10547_s25  ;;  %4362 = vmatpush1.msra.mxu1 %v4034_v57  ;;  %v10759_v45 = vld [vmem:[#allocation24_spill] sm:$0xff]  ;;  %v4074_v57 = vsel %vm3937_vm2, %v10760_v7, %v8529_v41  ;;  %v9051_v29 = vpop.f32.mrf.mxu1 }
 0x41a   : > { %4363 = vmatprep.subr.mxu1 %v4078_v28  ;;  %v9007_v17 = vpop.permute.xlu0 %3395  ;;  %v10764_v41 = vld [vmem:[#allocation60_spill] sm:$0xff] }
 0x41b   : > { %10750 = vst [vmem:[#allocation58_spill] sm:$0xff] %v9007_v17  ;;  %3782 = vrot.lane.b32.xlu1 %v2917_v24, %s10547_s25  ;;  %4364 = vmatpush1.msra.mxu1 %v4033_v8  ;;  %v4076_v24 = vsel %vm3937_vm2, %v10754_v12, %v8587_v49  ;;  %v10758_v49 = vld [vmem:[#allocation69_spill] sm:$0xff]  ;;  %v10765_v12 = vld [vmem:[#allocation19_spill] sm:$0xff]  ;;  %v6885_v13 = vpop.f32.mrf.mxu1 }
 0x41c   : > { %v9013_v43 = vpop.permute.xlu1 %3512  ;;  %4365 = vmatprep.subr.mxu1 %v4077_v61  ;;  %v10763_v61 = vld [vmem:[#allocation36_spill] sm:$0xff] }
 0x41d   : > { %10752 = vst [vmem:[#allocation50_spill] sm:$0xff] %v9013_v43  ;;  %3288 = vrot.lane.b32.xlu0 %v10721_v39, %s10547_s25  ;;  %4366 = vmatpush1.msra.mxu1 %v4032_v20  ;;  %v10757_v39 = vld [vmem:[#allocation42_spill] sm:$0xff]  ;;  %v4073_v0 = vsel %vm3937_vm2, %v10763_v61, %v8575_v44 }
 0x41e   : > { %4367 = vmatprep.subr.mxu1 %v4076_v24  ;;  %v9023_v36 = vpop.permute.xlu0 %3442  ;;  %v4075_v38 = vsel %vm3937_vm2, %v10757_v39, %v8570_v47  ;;  %v10761_v47 = vld [vmem:[#allocation67_spill] sm:$0xff]  ;;  %v4028_v24 = vsel %vm3937_vm2, %v10765_v12, %v10764_v41  ;;  %v9074_v39 = vpop.f32.mrf.mxu1 }
 0x41f   : > { %3788 = vrot.lane.b32.xlu1 %v2930_v2, %s10547_s25  ;;  %4368 = vmatpush1.msra.mxu1 %v4031_v34  ;;  %v4030_v2 = vsel %vm3937_vm2, %v10759_v45, %v10758_v49  ;;  %v4029_v8 = vsel %vm3937_vm2, %v10762_v26, %v10761_v47 }
 0x420   : > { %v9034_v16 = vpop.permute.xlu1 %3574  ;;  %4369 = vmatprep.subr.mxu1 %v4075_v38 }
 0x421   : > { %3762 = vrot.lane.b32.xlu0 %v8951_v37, %s10547_s25  ;;  %4370 = vmatpush1.msra.mxu1 %v4030_v2  ;;  %v6888_v2 = vpop.f32.mrf.mxu1 }
 0x422   : > { %4371 = vmatprep.subr.mxu1 %v4074_v57  ;;  %v9044_v28 = vpop.permute.xlu0 %3444 }
 0x423   : > { %3774 = vrot.lane.b32.xlu1 %v8864_v23, %s10547_s25  ;;  %4372 = vmatpush1.msra.mxu1 %v4029_v8 }
 0x424   : > { %v9056_v20 = vpop.permute.xlu1 %3566  ;;  %4373 = vmatprep.subr.mxu1 %v4073_v0 }
 0x425   : > { %3764 = vrot.lane.b32.xlu0 %v8842_v51, %s10547_s25  ;;  %4374 = vmatpush1.msra.mxu1 %v4028_v24 }
 0x426   : > { %v9063_v3 = vpop.permute.xlu0 %3446 }
 0x427   : > { %3790 = vrot.lane.b32.xlu1 %v2933_v60, %s10547_s25  ;;  %v4059_v60 = vsel %vm3937_vm2, %v8466_v14, %v8864_v23 }
 0x428   : > { %v9066_v34 = vpop.permute.xlu1 %3576 }
 0x429   : > { %3766 = vrot.lane.b32.xlu0 %v8884_v4, %s10547_s25 }
 0x42a   : > { %v9070_v44 = vpop.permute.xlu0 %3466 }
 0x42b   : > { %10766 = vst [vmem:[#allocation48_spill] sm:$0xff] %v9070_v44  ;;  %3776 = vrot.lane.b32.xlu1 %v8895_v62, %s10547_s25 }
 0x42c   : > { %v3530_v38 = vpop.permute.xlu1 %3529 }
 0x42d   : > { %3882 = vrot.lane.b32.xlu0 %v6885_v13, %s10547_s25  ;;  %v4104_v49 = vsel %vm3937_vm2, %v8613_v11, %v3530_v38  ;;  %v2962_v11 = vpop.f32.mrf.mxu1  ;;  %v4058_v13 = vsel %vm3937_vm2, %v8457_v63, %v8958_v15 }
 0x42e   : > { %4375 = vmatprep.subr.mxu1 %v4104_v49  ;;  %v9082_v45 = vpop.permute.xlu0 %3448 }
 0x42f   : > { %3768 = vrot.lane.b32.xlu1 %v8947_v21, %s10547_s25  ;;  %4376 = vmatpush2.msra.mxu1 %v4059_v60  ;;  %v6889_v23 = vpop.f32.mrf.mxu1 }
 0x430   : > { %v9086_v7 = vpop.permute.xlu1 %3568 }
 0x431   : > { %3888 = vrot.lane.b32.xlu0 %v6888_v2, %s10547_s25  ;;  %v2965_v61 = vpop.f32.mrf.mxu1 }
 0x432   : > { %v9089_v57 = vpop.permute.xlu0 %3468 }
 0x433   : > { %3778 = vrot.lane.b32.xlu1 %v8988_v59, %s10547_s25 }
 0x434   : > { %v9093_v47 = vpop.permute.xlu1 %3578 }
 0x435   : > { %3884 = vrot.lane.b32.xlu0 %v2962_v11, %s10547_s25 }
 0x436   : > { %v9096_v14 = vpop.permute.xlu0 %3450 }
 0x437   : > { %3770 = vrot.lane.b32.xlu1 %v8956_v48, %s10547_s25 }
 0x438   : > { %v3571_v26 = vpop.permute.xlu1 %3570 }
 0x439   : > { %3890 = vrot.lane.b32.xlu0 %v6889_v23, %s10547_s25  ;;  %v3967_v51 = vsel %vm3937_vm2, %v8652_v5, %v3571_v26 }
 0x43a   : > { %v9101_v8 = vpop.permute.xlu0 %3470 }
 0x43b   : > { %3780 = vrot.lane.b32.xlu1 %v9007_v17, %s10547_s25 }
 0x43c   : > { %v9105_v0 = vpop.permute.xlu1 %3580 }
 0x43d   : > { %3886 = vrot.lane.b32.xlu0 %v2965_v61, %s10547_s25 }
 0x43e   : > { %v3528_v41 = vpop.permute.xlu0 %3527 }
 0x43f   : > { %3862 = vrot.lane.b32.xlu1 %v9013_v43, %s10547_s25  ;;  %v4103_v12 = vsel %vm3937_vm2, %v8602_v31, %v3528_v41 }
 0x440   : > { %v9112_v24 = vpop.permute.xlu1 %3533  ;;  %4377 = vmatprep.subr.mxu1 %v4103_v12 }
 0x441   : > { %10767 = vst [vmem:[#allocation47_spill] sm:$0xff] %v9112_v24  ;;  %3758 = vrot.lane.b32.xlu0 %v8372_v58, %s10547_s25  ;;  %4378 = vmatpush2.msra.mxu1 %v4058_v13 }
 0x442   : > { %v9119_v49 = vpop.permute.xlu0 %3514 }
 0x443   : > { %3872 = vrot.lane.b32.xlu1 %v3528_v41, %s10547_s25 }
 0x444   : > { %v9122_v60 = vpop.permute.xlu1 %3535 }
 0x445   : > { %10768 = vst [vmem:[#allocation46_spill] sm:$0xff] %v9122_v60  ;;  %3426 = vrot.lane.b32.xlu0 %v10722_v52, %s10547_s25 }
 0x446   : > { %v9126_v31 = vpop.permute.xlu0 %3516 }
 0x447   : > { %3864 = vrot.lane.b32.xlu1 %v9119_v49, %s10547_s25 }
 0x448   : > { %v9130_v2 = vpop.permute.xlu1 %3582 }
 0x449   : > { %3286 = vrot.lane.b32.xlu0 %v10724_v30, %s10547_s25 }
 0x44a   : > { %v9134_v58 = vpop.permute.xlu0 %3531 }
 0x44b   : > { %10769 = vst [vmem:[#allocation29_spill] sm:$0xff] %v9134_v58  ;;  %3874 = vrot.lane.b32.xlu1 %v3530_v38, %s10547_s25 }
 0x44c   : > { %v9137_v11 = vpop.permute.xlu1 %3672 }
 0x44d   : > { %3424 = vrot.lane.b32.xlu0 %v10725_v54, %s10547_s25 }
 0x44f   : > { %v9141_v52 = vpop.permute.xlu0 %3518  ;;  %3866 = vrot.lane.b32.xlu1 %v9126_v31, %s10547_s25 }
 0x451   : > { %v9145_v23 = vpop.permute.xlu1 %3674  ;;  %3284 = vrot.lane.b32.xlu0 %v10727_v25, %s10547_s25 }
 0x453   : > { %v9149_v30 = vpop.permute.xlu0 %3520  ;;  %3876 = vrot.lane.b32.xlu1 %v9134_v58, %s10547_s25 }
 0x455   : > { %v3667_v38 = vpop.permute.xlu1 %3666 }
 0x457   : > { %v9153_v61 = vpop.permute.xlu0 %3584  ;;  %3868 = vrot.lane.b32.xlu1 %v9141_v52, %s10547_s25 }
 0x459   : > { %v9157_v54 = vpop.permute.xlu1 %3676 }
 0x45b   : > { %v9159_v41 = vpop.permute.xlu0 %3586  ;;  %3878 = vrot.lane.b32.xlu1 %v9112_v24, %s10547_s25 }
 0x45d   : > { %v3669_v12 = vpop.permute.xlu1 %3668 }
 0x45f   : > { %v3663_v25 = vpop.permute.xlu0 %3662  ;;  %3870 = vrot.lane.b32.xlu1 %v9149_v30, %s10547_s25 }
 0x461   : > { %v9165_v13 = vpop.permute.xlu1 %3678 }
 0x463   : > { %v9167_v62 = vpop.permute.xlu0 %3588  ;;  %3322 = vrot.lane.b32.xlu1 %v8457_v63, %s10547_s25 }
 0x465   : > { %v9171_v58 = vpop.permute.xlu1 %3464 }
 0x466   : > { %10770 = vst [vmem:[#allocation44_spill] sm:$0xff] %v9171_v58 }
 0x467   : > { %v3665_v59 = vpop.permute.xlu0 %3664  ;;  %3772 = vrot.lane.b32.xlu1 %v8958_v15, %s10547_s25 }
 0x469   : > { %v9175_v17 = vpop.permute.xlu1 %3324 }
 0x46b   : > { %v9177_v24 = vpop.permute.xlu0 %3590  ;;  %3880 = vrot.lane.b32.xlu1 %v9122_v60, %s10547_s25 }
 0x46d   : > { %v9181_v37 = vpop.permute.xlu1 %3462 }
 0x46e   : > { %10771 = vst [vmem:[#allocation77_spill] sm:$0xff] %v9181_v37  ;;  %v4011_v37 = vsel %vm3937_vm2, %v8758_v55, %v3669_v12  ;;  %v10774_v55 = vld [vmem:[#allocation106_spill] sm:$0xff]  ;;  %v10777_v12 = vld [vmem:[#allocation8_spill] sm:$0xff] }
 0x46f   : > { %v9183_v43 = vpop.permute.xlu0 %3682  ;;  %3856 = vrot.lane.b32.xlu1 %v8580_v9, %s10547_s25  ;;  %v3966_v9 = vsel %vm3937_vm2, %v8646_v46, %v9086_v7  ;;  %v4009_v46 = vsel %vm3937_vm2, %v10774_v55, %v3665_v59  ;;  %v3963_v59 = vsel %vm3937_vm2, %v10777_v12, %v8963_v56  ;;  %v10783_v55 = vld [vmem:[#allocation59_spill] sm:$0xff] }
 0x471   : > { %v9187_v63 = vpop.permute.xlu1 %3688 }
 0x473   : > { %v3671_v58 = vpop.permute.xlu0 %3670  ;;  %3756 = vrot.lane.b32.xlu1 %v10723_v53, %s10547_s25  ;;  %v10773_v53 = vld [vmem:[#allocation10_spill] sm:$0xff] }
 0x474   : > { %v4012_v15 = vsel %vm3937_vm2, %v8778_v1, %v3671_v58  ;;  %v10772_v1 = vld [vmem:[#allocation110_spill] sm:$0xff] }
 0x475   : > { %4201 = vmatprep.subr.mxu0 %v4012_v15  ;;  %v9195_v60 = vpop.permute.xlu1 %3680  ;;  %v4010_v5 = vsel %vm3937_vm2, %v10772_v1, %v3667_v38  ;;  %v10776_v58 = vld [vmem:[#allocation102_spill] sm:$0xff]  ;;  %v10779_v1 = vld [vmem:[#allocation113_spill] sm:$0xff] }
 0x476   : > { %4202 = vmatpush2.msra.mxu0 %v3967_v51  ;;  %v3965_v51 = vsel %vm3937_vm2, %v10773_v53, %v9056_v20  ;;  %v4008_v20 = vsel %vm3937_vm2, %v10776_v58, %v3663_v25  ;;  %v10786_v58 = vld [vmem:[#allocation107_spill] sm:$0xff] }
 0x477   : > { %4203 = vmatprep.subr.mxu0 %v4011_v37  ;;  %v3431_v44 = vpop.permute.xlu0 %3430  ;;  %3854 = vrot.lane.b32.xlu1 %v8553_v6, %s10547_s25  ;;  %v10775_v37 = vld [vmem:[#allocation7_spill] sm:$0xff] }
 0x478   : > { %4204 = vmatpush2.msra.mxu0 %v3966_v9  ;;  %v3964_v7 = vsel %vm3937_vm2, %v10775_v37, %v8995_v22  ;;  %v10778_v22 = vld [vmem:[#allocation80_spill] sm:$0xff]  ;;  %v10784_v37 = vld [vmem:[#allocation74_spill] sm:$0xff] }
 0x479   : > { %4205 = vmatprep.subr.mxu0 %v4010_v5  ;;  %v9209_v26 = vpop.permute.xlu1 %3684  ;;  %v4007_v9 = vsel %vm3937_vm2, %v10778_v22, %v8889_v33  ;;  %v10780_v5 = vld [vmem:[#allocation63_spill] sm:$0xff] }
 0x47a   : > { %4206 = vmatpush2.msra.mxu0 %v3965_v51  ;;  %v3962_v25 = vsel %vm3937_vm2, %v10780_v5, %v10779_v1  ;;  %v10782_v51 = vld [vmem:[#allocation111_spill] sm:$0xff]  ;;  %v10789_v1 = vld [vmem:[#allocation101_spill] sm:$0xff] }
 0x47b   : > { %4207 = vmatprep.subr.mxu0 %v4009_v46  ;;  %v3861_v6 = vpop.permute.xlu0 %3860  ;;  %3754 = vrot.lane.b32.xlu1 %v10726_v35, %s10547_s25  ;;  %v3961_v46 = vsel %vm3937_vm2, %v10783_v55, %v10782_v51  ;;  %v10785_v33 = vld [vmem:[#allocation75_spill] sm:$0xff]  ;;  %s6555_s25 = sshll.u32 %s7214_s21, 7  ;;  %s7070_s21 = sshll.u32 %s7132_s30, 4  ;;  %s7071_s21 = int_to_ptr.vmem [resolvable:$false] %s7070_s21 }
 0x47c   : > { %4208 = vmatpush2.msra.mxu0 %v3964_v7  ;;  %v9221_v38 = vsel %vm3937_vm2, %v3431_v44, %v3861_v6  ;;  %v10781_v44 = vld [vmem:[#allocation78_spill] sm:$0xff]  ;;  %v4005_v7 = vsel %vm3937_vm2, %v10785_v33, %v10784_v37  ;;  %v10790_v5 = vld [vmem:[#allocation55_spill] sm:$0xff]  ;;  %s10402_s15 = scalar_lea.hbm %s10448_s11, %s6555_s25  ;;  %s7072_s24 = scalar_lea.vmem %s7071_s21, 256 }
 0x47d   : > { %4209 = vmatprep.subr.mxu0 %v4008_v20  ;;  %v3691_v15 = vpop.permute.xlu1 %3690  ;;  %v4006_v53 = vsel %vm3937_vm2, %v10781_v44, %v8869_v10  ;;  %v10787_v20 = vld [vmem:[#allocation56_spill] sm:$0xff]  ;;  %v10791_v44 = vld [vmem:[#allocation70_spill] sm:$0xff]  ;;  %v10792_v51 = vld [vmem:[#allocation95_spill] sm:$0xff]  ;;  %p7073_p0 = scmp.lt.s32.totalorder %s6151_s13, %s7071_s21  ;;  %p7074_p1 = scmp.lt.s32.totalorder %s7072_s24, %s7066_s1 }
 0x47e   : > { %4210 = vmatpush2.msra.mxu0 %v3963_v59  ;;  %v3960_v12 = vsel %vm3937_vm2, %v10787_v20, %v10786_v58  ;;  %v10788_v10 = vld [vmem:[#allocation72_spill] sm:$0xff]  ;;  %v10793_v55 = vld [vmem:[#allocation51_spill] sm:$0xff]  ;;  %v10795_v37 = vld [vmem:[#allocation34_spill] sm:$0xff] }
 0x47f   : > { %4211 = vmatprep.subr.mxu0 %v4007_v9  ;;  %v3291_v35 = vpop.permute.xlu0 %3290  ;;  %v4004_v22 = vsel %vm3937_vm2, %v10788_v10, %v8815_v18  ;;  %v10794_v18 = vld [vmem:[#allocation91_spill] sm:$0xff]  ;;  %p7075_p2 = por %p7074_p1, %p7073_p0 }
 0x480   : > { %4212 = vmatpush2.msra.mxu0 %v3962_v25  ;;  %v3959_v25 = vsel %vm3937_vm2, %v10790_v5, %v10789_v1  ;;  %v4002_v33 = vsel %vm3937_vm2, %v10795_v37, %v10794_v18  ;;  %v10801_v1 = vld [vmem:[#allocation15_spill] sm:$0xff]  ;;  %v10805_v18 = vld [vmem:[#allocation14_spill] sm:$0xff] }
 0x481   : > { %4213 = vmatprep.subr.mxu0 %v4006_v53  ;;  %v3687_v56 = vpop.permute.xlu1 %3686  ;;  %v4003_v53 = vsel %vm3937_vm2, %v10791_v44, %v8798_v32  ;;  %v10798_v32 = vld [vmem:[#allocation87_spill] sm:$0xff]  ;;  %p7076_p3 = pnand %p7075_p2, %p7069_p13 }
 0x482   : > { %4214 = vmatpush2.msra.mxu0 %v3961_v46  ;;  %v3958_v46 = vsel %vm3937_vm2, %v10793_v55, %v10792_v51  ;;  %v10802_v44 = vld [vmem:[#allocation83_spill] sm:$0xff] }
 0x483   : > { %4215 = vmatprep.subr.mxu0 %v4005_v7  ;;  %v3761_v6 = vpop.permute.xlu0 %3760  ;;  %v10796_v7 = vld [vmem:[#allocation62_spill] sm:$0xff] }
 0x484   : > { %v9245_v59 = vsel %vm3937_vm2, %v3291_v35, %v3761_v6  ;;  %4216 = vmatpush2.msra.mxu0 %v3960_v12  ;;  %v10797_v6 = vld [vmem:[#allocation16_spill] sm:$0xff]  ;;  %v10799_v12 = vld [vmem:[#allocation33_spill] sm:$0xff] }
 0x485   : > { %4217 = vmatprep.subr.mxu0 %v4004_v22  ;;  %v9250_v9 = vpop.permute.xlu1 %3784  ;;  %v3957_v58 = vsel %vm3937_vm2, %v10797_v6, %v10796_v7  ;;  %v4001_v10 = vsel %vm3937_vm2, %v10799_v12, %v10798_v32  ;;  %v10800_v22 = vld [vmem:[#allocation54_spill] sm:$0xff]  ;;  %v10807_v6 = vld [vmem:[#allocation31_spill] sm:$0xff]  ;;  %v10808_v12 = vld [vmem:[#allocation53_spill] sm:$0xff] }
 0x486   : > { %4218 = vmatpush2.msra.mxu0 %v3959_v25  ;;  %v3956_v5 = vsel %vm3937_vm2, %v10801_v1, %v10800_v22  ;;  %v10806_v7 = vld [vmem:[#allocation82_spill] sm:$0xff]  ;;  %v9292_v32 = vld [vmem:[%s10440_s3] sm:$0xff] }
 0x487   : > { %4219 = vmatprep.subr.mxu0 %v4003_v53  ;;  %v3429_v35 = vpop.permute.xlu0 %3428  ;;  %v10803_v53 = vld [vmem:[#allocation32_spill] sm:$0xff]  ;;  %v9302_v1 = vld [vmem:[%s10440_s3 + $0x20] sm:$0xff] }
 0x488   : > { %4220 = vmatpush2.msra.mxu0 %v3958_v46  ;;  %v4000_v51 = vsel %vm3937_vm2, %v10803_v53, %v10802_v44  ;;  %v10804_v46 = vld [vmem:[#allocation49_spill] sm:$0xff] }
 0x489   : > { %4221 = vmatprep.subr.mxu0 %v4002_v33  ;;  %v9267_v20 = vpop.permute.xlu1 %3786  ;;  %v3955_v37 = vsel %vm3937_vm2, %v10805_v18, %v10804_v46  ;;  %v10811_v44 = vld [vmem:[#allocation109_spill] sm:$0xff]  ;;  %v10812_v46 = vld [vmem:[#allocation124_spill] sm:$0xff] }
 0x48a   : > { %4222 = vmatpush2.msra.mxu0 %v3957_v58  ;;  %v3999_v58 = vsel %vm3937_vm2, %v10807_v6, %v10806_v7  ;;  %v3982_v53 = vsel %vm3937_vm2, %v10811_v44, %v9177_v24  ;;  %v4026_v18 = vsel %vm3937_vm2, %v10812_v46, %v9187_v63  ;;  %v9329_v6 = vld [vmem:[%s10440_s3 + $0x38] sm:$0xff] }
 0x48b   : > { %4223 = vmatprep.subr.mxu0 %v4001_v10  ;;  %v3859_v25 = vpop.permute.xlu0 %3858  ;;  %v10814_v63 = vld [vmem:[#allocation122_spill] sm:$0xff] }
 0x48c   : > { %4224 = vmatpush2.msra.mxu0 %v3956_v5  ;;  %v9279_v55 = vsel %vm3937_vm2, %v3429_v35, %v3859_v25  ;;  %v10809_v35 = vld [vmem:[#allocation13_spill] sm:$0xff]  ;;  %v10810_v5 = vld [vmem:[#allocation120_spill] sm:$0xff] }
 0x48d   : > { %4225 = vmatprep.subr.mxu0 %v4000_v51  ;;  %v9284_v33 = vpop.permute.xlu1 %3782  ;;  %v3954_v10 = vsel %vm3937_vm2, %v10809_v35, %v10808_v12  ;;  %v4027_v25 = vsel %vm3937_vm2, %v10810_v5, %v3691_v15  ;;  %v9319_v15 = vld [vmem:[%s10440_s3 + $0x18] sm:$0xff]  ;;  %v10815_v12 = vld [vmem:[#allocation99_spill] sm:$0xff]  ;;  %v10816_v5 = vld [vmem:[#allocation117_spill] sm:$0xff] }
 0x48e   : > { %4226 = vmatpush2.msra.mxu0 %v3955_v37  ;;  %v10813_v37 = vld [vmem:[#allocation103_spill] sm:$0xff]  ;;  %v3980_v35 = vsel %vm3937_vm2, %v10815_v12, %v9159_v41  ;;  %v10817_v41 = vld [vmem:[#allocation105_spill] sm:$0xff] }
 0x48f   : > { %4227 = vmatprep.subr.mxu0 %v3999_v58  ;;  %v9297_v22 = vpop.permute.xlu0 %3288  ;;  %v3981_v24 = vsel %vm3937_vm2, %v10813_v37, %v9167_v62  ;;  %v4025_v58 = vsel %vm3937_vm2, %v10814_v63, %v3687_v56  ;;  %v9348_v56 = vld [vmem:[%s10440_s3 + $0x30] sm:$0xff]  ;;  %v3979_v44 = vsel %vm3937_vm2, %v10817_v41, %v9153_v61  ;;  %v10820_v61 = vld [vmem:[#allocation118_spill] sm:$0xff] }
 0x490   : > { %4228 = vmatpush2.msra.mxu0 %v3954_v10  ;;  %v4022_v63 = vsel %vm3937_vm2, %v10820_v61, %v9195_v60  ;;  %v10823_v60 = vld [vmem:[#allocation5_spill] sm:$0xff] }
 0x491   : > { %4260 = vmatprep.subr.mxu0 %v4027_v25  ;;  %v9309_v51 = vpop.permute.xlu1 %3788  ;;  %4230 = vmatmul.mubr.f32.vlgmr.msra.gmra.mxu0 %v9292_v32  ;;  %v4024_v25 = vsel %vm3937_vm2, %v10816_v5, %v9209_v26  ;;  %v10818_v26 = vld [vmem:[#allocation114_spill] sm:$0xff]  ;;  %v3976_v5 = vsel %vm3937_vm2, %v10823_v60, %v9093_v47  ;;  %v10826_v47 = vld [vmem:[#allocation108_spill] sm:$0xff] }
 0x492   : > { %4261 = vmatpush1.msra.mxu0 %v3982_v53  ;;  %4235 = vmatprep.mubr.f32.mxu0 %v9302_v1  ;;  %v4023_v46 = vsel %vm3937_vm2, %v10818_v26, %v9183_v43  ;;  %v10821_v43 = vld [vmem:[#allocation94_spill] sm:$0xff]  ;;  %v10825_v26 = vld [vmem:[#allocation35_spill] sm:$0xff] }
 0x493   : > { %v9324_v7 = vpop.permute.xlu0 %3762  ;;  %4262 = vmatprep.subr.mxu0 %v4026_v18  ;;  %v10819_v18 = vld [vmem:[#allocation100_spill] sm:$0xff]  ;;  %v10831_v60 = vld [vmem:[#allocation98_spill] sm:$0xff] }
 0x494   : > { %4263 = vmatpush1.msra.mxu0 %v3981_v24  ;;  %v3978_v37 = vsel %vm3937_vm2, %v10819_v18, %v9130_v2  ;;  %v3977_v2 = vsel %vm3937_vm2, %v10821_v43, %v9105_v0  ;;  %v10824_v0 = vld [vmem:[#allocation112_spill] sm:$0xff]  ;;  %v4019_v18 = vsel %vm3937_vm2, %v10826_v47, %v9145_v23  ;;  %v10830_v23 = vld [vmem:[#allocation81_spill] sm:$0xff] }
 0x495   : > { %4264 = vmatprep.subr.mxu0 %v4025_v58  ;;  %v3775_v10 = vpop.permute.xlu1 %3774  ;;  %4236 = vmatmul.mubr.f32.gmra.mxu0 %v9319_v15  ;;  %v9374_v58 = vld [vmem:[%s10440_s3 + $0x48] sm:$0xff]  ;;  %v4020_v41 = vsel %vm3937_vm2, %v10824_v0, %v9157_v54 }
 0x496   : > { %v9339_v62 = vsel %vm3937_vm2, %v9175_v17, %v3775_v10  ;;  %4265 = vmatpush1.msra.mxu0 %v3980_v35  ;;  %4241 = vmatprep.mubr.f32.mxu0 %v9329_v6  ;;  %v9358_v17 = vld [vmem:[%s10440_s3 + $0x50] sm:$0xff]  ;;  %v10822_v35 = vld [vmem:[#allocation116_spill] sm:$0xff] }
 0x497   : > { %v9353_v53 = vpop.permute.xlu0 %3764  ;;  %4266 = vmatprep.subr.mxu0 %v4024_v25  ;;  %v4021_v10 = vsel %vm3937_vm2, %v10822_v35, %v9165_v13  ;;  %v3975_v13 = vsel %vm3937_vm2, %v10825_v26, %v9066_v34  ;;  %v10829_v34 = vld [vmem:[#allocation25_spill] sm:$0xff] }
 0x498   : > { %4267 = vmatpush1.msra.mxu0 %v3979_v44  ;;  %v10553_v44 = vmov 0.0   ;;  %v10834_v26 = vld [vmem:[#allocation97_spill] sm:$0xff] }
 0x499   : > { %4268 = vmatprep.subr.mxu0 %v4023_v46  ;;  %v3791_v24 = vpop.permute.xlu1 %3790  ;;  %4242 = vmatmul.mubr.f32.gmra.mxu0 %v9348_v56 }
 0x49a   : > { %4269 = vmatpush1.msra.mxu0 %v3978_v37  ;;  %4247 = vmatprep.mubr.f32.mxu0 %v9358_v17  ;;  %v10827_v37 = vld [vmem:[#allocation11_spill] sm:$0xff] }
 0x49b   : > { %v9379_v12 = vpop.permute.xlu0 %3766  ;;  %4270 = vmatprep.subr.mxu0 %v4022_v63  ;;  %v3974_v61 = vsel %vm3937_vm2, %v10827_v37, %v9034_v16  ;;  %v10828_v63 = vld [vmem:[#allocation104_spill] sm:$0xff] }
 0x49c   : > { %4271 = vmatpush1.msra.mxu0 %v3977_v2  ;;  %v4018_v43 = vsel %vm3937_vm2, %v10828_v63, %v9137_v11  ;;  %v3973_v2 = vsel %vm3937_vm2, %v10829_v34, %v8974_v50  ;;  %v10833_v11 = vld [vmem:[#allocation79_spill] sm:$0xff] }
 0x49d   : > { %4272 = vmatprep.subr.mxu0 %v4021_v10  ;;  %v9387_v25 = vpop.permute.xlu1 %3776  ;;  %4248 = vmatmul.mubr.f32.gmra.mxu0 %v9374_v58  ;;  %v4017_v10 = vsel %vm3937_vm2, %v10830_v23, %v8786_v19  ;;  %v10836_v19 = vld [vmem:[#allocation115_spill] sm:$0xff] }
 0x49e   : > { %4273 = vmatpush1.msra.mxu0 %v3976_v5  ;;  %4318 = vmatprep.mubr.f32.mxu0 %v10553_v44  ;;  %v10832_v5 = vld [vmem:[#allocation64_spill] sm:$0xff] }
 0x49f   : > { %4274 = vmatprep.subr.mxu0 %v4020_v41  ;;  %v3883_v46 = vpop.permute.xlu0 %3882  ;;  %v3972_v0 = vsel %vm3937_vm2, %v10832_v5, %v10831_v60  ;;  %v4016_v41 = vsel %vm3937_vm2, %v10833_v11, %v8776_v27  ;;  %v10838_v27 = vld [vmem:[#allocation96_spill] sm:$0xff]  ;;  %v10840_v60 = vld [vmem:[#allocation38_spill] sm:$0xff] }
 0x4a0   : > { %4275 = vmatpush1.msra.mxu0 %v3975_v13  ;;  %v10835_v13 = vld [vmem:[#allocation61_spill] sm:$0xff]  ;;  %v4072_v5 = vsel %vm3937_vm2, %v10840_v60, %v3791_v24 }
 0x4a1   : > { %4276 = vmatprep.subr.mxu0 %v4019_v18  ;;  %v9403_v54 = vpop.permute.xlu1 %3768  ;;  %v3971_v47 = vsel %vm3937_vm2, %v10835_v13, %v10834_v26  ;;  %v10837_v18 = vld [vmem:[#allocation76_spill] sm:$0xff]  ;;  %v9463_v13 = vld [vmem:[%s10440_s3 + $0x40] sm:$0xff] }
 0x4a2   : > { %4277 = vmatpush1.msra.mxu0 %v3974_v61  ;;  %v4015_v37 = vsel %vm3937_vm2, %v10837_v18, %v10836_v19  ;;  %v9431_v61 = vld [vmem:[%s10440_s3 + $0x10] sm:$0xff]  ;;  %v10843_v19 = vld [vmem:[#allocation68_spill] sm:$0xff] }
 0x4a3   : > { %4278 = vmatprep.subr.mxu0 %v4018_v43  ;;  %v3889_v35 = vpop.permute.xlu0 %3888  ;;  %v10839_v43 = vld [vmem:[#allocation57_spill] sm:$0xff]  ;;  %v10844_v18 = vld [vmem:[#allocation20_spill] sm:$0xff] }
 0x4a4   : > { %4279 = vmatpush1.msra.mxu0 %v3973_v2  ;;  %v3970_v34 = vsel %vm3937_vm2, %v10839_v43, %v10838_v27  ;;  %v4116_v11 = vsel %vm3937_vm2, %v9074_v39, %v3889_v35  ;;  %v10842_v39 = vld [vmem:[#allocation28_spill] sm:$0xff] }
 0x4a5   : > { %4280 = vmatprep.subr.mxu0 %v4017_v10  ;;  %v9414_v16 = vpop.permute.xlu1 %3778  ;;  %v9444_v10 = vld [vmem:[%s10440_s3 + $0x28] sm:$0xff] }
 0x4a6   : > { %4281 = vmatpush1.msra.mxu0 %v3972_v0 }
 0x4a7   : > { %4282 = vmatprep.subr.mxu0 %v4016_v41  ;;  %v3885_v50 = vpop.permute.xlu0 %3884  ;;  %v10841_v41 = vld [vmem:[#allocation26_spill] sm:$0xff] }
 0x4a8   : > { %4283 = vmatpush1.msra.mxu0 %v3971_v47  ;;  %v4114_v47 = vsel %vm3937_vm2, %v8991_v42, %v3885_v50  ;;  %v10845_v42 = vld [vmem:[#allocation43_spill] sm:$0xff] }
 0x4a9   : > { %4284 = vmatprep.subr.mxu0 %v4015_v37  ;;  %v3771_v63 = vpop.permute.xlu1 %3770  ;;  %v4113_v37 = vsel %vm3937_vm2, %v10844_v18, %v3883_v46  ;;  %v4068_v50 = vsel %vm3937_vm2, %v10845_v42, %v9284_v33 }
 0x4aa   : > { %4285 = vmatpush1.msra.mxu0 %v3970_v34 }
 0x4ab   : > { %6449 = vmatmul.mubr.msk.f32.vlgmr.msra.gmra.mxu0 %vm4152_vm3, %v9431_v61  ;;  %v3891_v2 = vpop.permute.xlu0 %3890 }
 0x4ac   : > { %v4117_v23 = vsel %vm3937_vm2, %v9029_v40, %v3891_v2  ;;  %4324 = vmatprep.mubr.f32.mxu0 %v10553_v44  ;;  %v4071_v40 = vsel %vm3937_vm2, %v10841_v41, %v9309_v51  ;;  %v4070_v51 = vsel %vm3937_vm2, %v10842_v39, %v9267_v20  ;;  %v9481_v20 = vld [vmem:[%s10440_s3 + $0x58] sm:$0xff] }
 0x4ad   : > { %v9448_v0 = vpop.permute.xlu1 %3780  ;;  %4438 = vmatprep.subr.mxu0 %v4117_v23 }
 0x4ae   : > { %4439 = vmatpush1.msra.mxu0 %v4072_v5  ;;  %v10846_v5 = vld [vmem:[#allocation41_spill] sm:$0xff] }
 0x4af   : > { %6450 = vmatmul.mubr.msk.f32.gmra.mxu0 %vm4152_vm3, %v9444_v10  ;;  %4440 = vmatprep.subr.mxu0 %v4116_v11  ;;  %v3887_v26 = vpop.permute.xlu0 %3886  ;;  %v4057_v11 = vsel %vm3937_vm2, %v10846_v5, %v3771_v63 }
 0x4b0   : > { %4441 = vmatpush1.msra.mxu0 %v4071_v40  ;;  %v4115_v24 = vsel %vm3937_vm2, %v9051_v29, %v3887_v26  ;;  %4330 = vmatprep.mubr.f32.mxu0 %v10553_v44  ;;  %v4069_v29 = vsel %vm3937_vm2, %v10843_v19, %v9250_v9  ;;  %v10847_v40 = vld [vmem:[#allocation45_spill] sm:$0xff] }
 0x4b1   : > { %v3863_v35 = vpop.permute.xlu1 %3862  ;;  %4442 = vmatprep.subr.mxu0 %v4115_v24  ;;  %v4056_v26 = vsel %vm3937_vm2, %v10847_v40, %v9403_v54  ;;  %v10860_v40 = vld [vmem:[#allocation48_spill] sm:$0xff] }
 0x4b2   : > { %4443 = vmatpush1.msra.mxu0 %v4070_v51  ;;  %v10848_v51 = vld [vmem:[#allocation123_spill] sm:$0xff] }
 0x4b3   : > { %6451 = vmatmul.mubr.msk.f32.gmra.mxu0 %vm4152_vm3, %v9463_v13  ;;  %4444 = vmatprep.subr.mxu0 %v4114_v47  ;;  %v9502_v24 = vpop.permute.xlu0 %3758  ;;  %v4055_v63 = vsel %vm3937_vm2, %v10848_v51, %v9379_v12  ;;  %v10849_v47 = vld [vmem:[#allocation121_spill] sm:$0xff] }
 0x4b4   : > { %4445 = vmatpush1.msra.mxu0 %v4069_v29  ;;  %4336 = vmatprep.mubr.f32.mxu0 %v10553_v44  ;;  %v4054_v54 = vsel %vm3937_vm2, %v10849_v47, %v9353_v53  ;;  %v4098_v29 = vsel %vm3937_vm2, %v9023_v36, %v3863_v35  ;;  %v10852_v53 = vld [vmem:[#allocation92_spill] sm:$0xff]  ;;  %v10853_v36 = vld [vmem:[#allocation18_spill] sm:$0xff] }
 0x4b5   : > { %v9486_v9 = vpop.permute.xlu1 %3872  ;;  %4446 = vmatprep.subr.mxu0 %v4113_v37  ;;  %v10851_v37 = vld [vmem:[#allocation9_spill] sm:$0xff]  ;;  %v4096_v35 = vsel %vm3937_vm2, %v10853_v36, %v9141_v52 }
 0x4b6   : > { %4447 = vmatpush1.msra.mxu0 %v4068_v50  ;;  %v4052_v50 = vsel %vm3937_vm2, %v10852_v53, %v8956_v48  ;;  %v10856_v48 = vld [vmem:[#allocation21_spill] sm:$0xff] }
 0x4b7   : > { %6452 = vmatmul.mubr.msk.f32.gmra.mxu0 %vm4152_vm3, %v9481_v20  ;;  %v3427_v12 = vpop.permute.xlu0 %3426  ;;  %v10873_v36 = vld [vmem:[#allocation93_spill] sm:$0xff] }
 0x4b8   : > { %4496 = vmatprep.mubr.f32.mxu0 %v10553_v44 }
 0x4b9   : > { %v3865_v46 = vpop.permute.xlu1 %3864 }
 0x4bd   : > { %v9491_v27 = vpop.permute.xlu1 %3874 }
 0x4c1   : > { %v3867_v43 = vpop.permute.xlu1 %3866 }
 0x4c5   : > { %v3877_v34 = vpop.permute.xlu1 %3876 }
 0x4c9   : > { %v3869_v2 = vpop.permute.xlu1 %3868 }
 0x4ca   : > { %v4101_v41 = vsel %vm3937_vm2, %v9082_v45, %v3869_v2  ;;  %v4099_v45 = vsel %vm3937_vm2, %v9044_v28, %v3865_v46  ;;  %v4097_v28 = vsel %vm3937_vm2, %v10851_v37, %v9149_v30  ;;  %v10854_v46 = vld [vmem:[#allocation23_spill] sm:$0xff]  ;;  %v10855_v30 = vld [vmem:[#allocation89_spill] sm:$0xff] }
 0x4cb   : > { %v4051_v2 = vsel %vm3937_vm2, %v10855_v30, %v8947_v21 }
 0x4cd   : > { %v3879_v23 = vpop.permute.xlu1 %3878 }
 0x4ce   : > { %v4111_v52 = vsel %vm3937_vm2, %v9089_v57, %v3879_v23  ;;  %v4110_v57 = vsel %vm3937_vm2, %v10860_v40, %v3877_v34  ;;  %v10861_v23 = vld [vmem:[#allocation52_spill] sm:$0xff] }
 0x4cf   : > { %v4586_v40 = vld [vmem:[%s10444_s7 + $0x88] sm:$0xff] }
 0x4d1   : > { %v3871_v60 = vpop.permute.xlu1 %3870 }
 0x4d2   : > { %v4102_v33 = vsel %vm3937_vm2, %v9096_v14, %v3871_v60  ;;  %v4100_v14 = vsel %vm3937_vm2, %v9063_v3, %v3867_v43  ;;  %v10850_v3 = vld [vmem:[#allocation119_spill] sm:$0xff]  ;;  %v4067_v43 = vsel %vm3937_vm2, %v10854_v46, %v9448_v0  ;;  %v4095_v60 = vsel %vm3937_vm2, %v10856_v48, %v9126_v31  ;;  %v3287_v0 = vpop.permute.xlu0 %3286  ;;  %v10877_v46 = vld [vmem:[#allocation90_spill] sm:$0xff] }
 0x4d3   : > { %4379 = vmatprep.subr.mxu1 %v4102_v33  ;;  %v4053_v18 = vsel %vm3937_vm2, %v10850_v3, %v9324_v7  ;;  %v10869_v3 = vld [vmem:[#allocation77_spill] sm:$0xff] }
 0x4d4   : > { %4380 = vmatpush2.msra.mxu1 %v4057_v11  ;;  %v10858_v11 = vld [vmem:[#allocation86_spill] sm:$0xff] }
 0x4d5   : > { %4381 = vmatprep.subr.mxu1 %v4101_v41  ;;  %v3323_v39 = vpop.permute.xlu1 %3322  ;;  %v4050_v21 = vsel %vm3937_vm2, %v10858_v11, %v8884_v4  ;;  %v10859_v41 = vld [vmem:[#allocation40_spill] sm:$0xff]  ;;  %v10864_v4 = vld [vmem:[#allocation50_spill] sm:$0xff] }
 0x4d6   : > { %4382 = vmatpush2.msra.mxu1 %v4056_v26  ;;  %v4094_v31 = vsel %vm3937_vm2, %v10859_v41, %v9119_v49  ;;  %v10862_v26 = vld [vmem:[#allocation71_spill] sm:$0xff]  ;;  %v10866_v49 = vld [vmem:[#allocation44_spill] sm:$0xff]  ;;  %v3425_v37 = vpop.permute.xlu0 %3424 }
 0x4d7   : > { %4383 = vmatprep.subr.mxu1 %v4100_v14  ;;  %v10863_v14 = vld [vmem:[#allocation85_spill] sm:$0xff]  ;;  %v4109_v34 = vsel %vm3937_vm2, %v10866_v49, %v9491_v27  ;;  %v10870_v27 = vld [vmem:[#allocation46_spill] sm:$0xff]  ;;  %v4610_v11 = vld [vmem:[%s10444_s7 + $0x148] sm:$0xff] }
 0x4d8   : > { %4384 = vmatpush2.msra.mxu1 %v4055_v63  ;;  %v4049_v51 = vsel %vm3937_vm2, %v10863_v14, %v10862_v26  ;;  %v10865_v63 = vld [vmem:[#allocation12_spill] sm:$0xff] }
 0x4d9   : > { %4385 = vmatprep.subr.mxu1 %v4099_v45  ;;  %v3773_v19 = vpop.permute.xlu1 %3772  ;;  %v4093_v45 = vsel %vm3937_vm2, %v10865_v63, %v10864_v4  ;;  %v4577_v4 = vld [vmem:[%s10444_s7 + $0x40] sm:$0xff]  ;;  %v4570_v63 = vld [vmem:[%s10444_s7 + $0x8] sm:$0xff] }
 0x4da   : > { %4386 = vmatpush2.msra.mxu1 %v4054_v54  ;;  %v10868_v54 = vld [vmem:[#allocation84_spill] sm:$0xff] }
 0x4db   : > { %4387 = vmatprep.subr.mxu1 %v4098_v29 }
 0x4dc   : > { %4388 = vmatpush2.msra.mxu1 %v4053_v18  ;;  %v4108_v18 = vsel %vm3937_vm2, %v10869_v3, %v9486_v9  ;;  %v4046_v9 = vsel %vm3937_vm2, %v9297_v22, %v9502_v24  ;;  %v10878_v22 = vld [vmem:[#allocation29_spill] sm:$0xff] }
 0x4dd   : > { %4389 = vmatprep.subr.mxu1 %v4097_v28  ;;  %v3881_v42 = vpop.permute.xlu1 %3880  ;;  %v4063_v28 = vsel %vm3937_vm2, %v3323_v39, %v3773_v19  ;;  %v10875_v19 = vld [vmem:[#allocation6_spill] sm:$0xff]  ;;  %v10879_v24 = vld [vmem:[#allocation37_spill] sm:$0xff] }
 0x4de   : > { %4390 = vmatpush2.msra.mxu1 %v4052_v50  ;;  %v4112_v7 = vsel %vm3937_vm2, %v9101_v8, %v3881_v42  ;;  %v10857_v8 = vld [vmem:[#allocation73_spill] sm:$0xff]  ;;  %v10872_v50 = vld [vmem:[#allocation58_spill] sm:$0xff] }
 0x4df   : > { %4391 = vmatprep.subr.mxu1 %v4096_v35  ;;  %4448 = vmatprep.subr.mxu0 %v4112_v7  ;;  %v4066_v33 = vsel %vm3937_vm2, %v10857_v8, %v9414_v16  ;;  %v4065_v16 = vsel %vm3937_vm2, %v10861_v23, %v9387_v25  ;;  %v10867_v25 = vld [vmem:[#allocation66_spill] sm:$0xff]  ;;  %v10871_v42 = vld [vmem:[#allocation17_spill] sm:$0xff] }
 0x4e0   : > { %4392 = vmatpush2.msra.mxu1 %v4051_v2  ;;  %4449 = vmatpush1.msra.mxu0 %v4067_v43  ;;  %v4048_v29 = vsel %vm3937_vm2, %v10868_v54, %v10867_v25  ;;  %v4107_v53 = vsel %vm3937_vm2, %v10871_v42, %v10870_v27  ;;  %v10876_v7 = vld [vmem:[#allocation65_spill] sm:$0xff]  ;;  %v3285_v2 = vpop.permute.xlu0 %3284  ;;  %v4132_v42 = vlaneseq }
 0x4e1   : > { %4393 = vmatprep.subr.mxu1 %v4095_v60  ;;  %v3857_v5 = vpop.permute.xlu1 %3856  ;;  %4450 = vmatprep.subr.mxu0 %v4111_v52  ;;  %v4061_v43 = vsel %vm3937_vm2, %v10877_v46, %v10876_v7  ;;  %v10880_v60 = vld [vmem:[#allocation30_spill] sm:$0xff]  ;;  %v10881_v52 = vld [vmem:[#allocation88_spill] sm:$0xff] }
 0x4e2   : > { %4394 = vmatpush2.msra.mxu1 %v4050_v21  ;;  %4451 = vmatpush1.msra.mxu0 %v4066_v33  ;;  %v4060_v8 = vsel %vm3937_vm2, %v10881_v52, %v10880_v60  ;;  %v4585_v21 = vld [vmem:[%s10444_s7 + $0x80] sm:$0xff] }
 0x4e3   : > { %4395 = vmatprep.subr.mxu1 %v4094_v31  ;;  %4452 = vmatprep.subr.mxu0 %v4110_v57  ;;  %v4593_v31 = vld [vmem:[%s10444_s7 + $0xc0] sm:$0xff]  ;;  %v4594_v57 = vld [vmem:[%s10444_s7 + $0xc8] sm:$0xff] }
 0x4e4   : > { %4396 = vmatpush2.msra.mxu1 %v4049_v51  ;;  %4453 = vmatpush1.msra.mxu0 %v4065_v16  ;;  %v6474_v26 = vcombine.high %v4585_v21, %v4593_v31  ;;  %v6476_v14 = vcombine.high %v4586_v40, %v4594_v57  ;;  %v4569_v51 = vld [vmem:[%s10444_s7] sm:$0xff] }
 0x4e5   : > { %4397 = vmatprep.subr.mxu1 %v4093_v45  ;;  %v3757_v47 = vpop.permute.xlu1 %3756  ;;  %4454 = vmatprep.subr.mxu0 %v4109_v34  ;;  %v4578_v45 = vld [vmem:[%s10444_s7 + $0x48] sm:$0xff]  ;;  %v6473_v34 = vcombine.low %v4585_v21, %v4593_v31  ;;  %v6458_v25 = vcombine.high %v4569_v51, %v4577_v4 }
 0x4e6   : > { %4398 = vmatpush2.msra.mxu1 %v4048_v29  ;;  %4455 = vmatpush1.msra.mxu0 %v9339_v62  ;;  %v4062_v62 = vsel %vm3937_vm2, %v10873_v36, %v10872_v50  ;;  %v4045_v30 = vsel %vm3937_vm2, %v3287_v0, %v3757_v47  ;;  %v6475_v47 = vcombine.low %v4586_v40, %v4594_v57  ;;  %v9668_v50 = vshrl.u32 %v4132_v42, 7 }
 0x4e7   : > { %4399 = vmatprep.subr.mxu1 %v9221_v38  ;;  %4456 = vmatprep.subr.mxu0 %v4108_v18  ;;  %v4090_v38 = vsel %vm3937_vm2, %v3427_v12, %v3857_v5  ;;  %v4105_v12 = vsel %vm3937_vm2, %v10879_v24, %v10878_v22  ;;  %v4602_v5 = vld [vmem:[%s10444_s7 + $0x108] sm:$0xff]  ;;  %v6460_v29 = vcombine.high %v4570_v63, %v4578_v45 }
 0x4e8   : > { %4400 = vmatpush2.msra.mxu1 %v9245_v59  ;;  %4457 = vmatpush1.msra.mxu0 %v4063_v28  ;;  %v10874_v59 = vld [vmem:[#allocation47_spill] sm:$0xff]  ;;  %v6492_v41 = vcombine.high %v4602_v5, %v4610_v11  ;;  %v6491_v16 = vcombine.low %v4602_v5, %v4610_v11  ;;  %v6457_v18 = vcombine.low %v4569_v51, %v4577_v4 }
 0x4e9   : > { %4401 = vmatprep.subr.mxu1 %v9279_v55  ;;  %v3855_v39 = vpop.permute.xlu1 %3854  ;;  %4458 = vmatprep.subr.mxu0 %v4107_v53  ;;  %v4106_v35 = vsel %vm3937_vm2, %v10875_v19, %v10874_v59  ;;  %10883 = vst [vmem:[#allocation27_spill] sm:$0xff] %v9668_v50 }
 0x4ea   : > { %4402 = vmatpush2.msra.mxu1 %v4046_v9  ;;  %4459 = vmatpush1.msra.mxu0 %v4062_v62  ;;  %v4089_v55 = vsel %vm3937_vm2, %v3425_v37, %v3855_v39  ;;  %v6459_v37 = vcombine.low %v4570_v63, %v4578_v45  ;;  %v10551_v62 = vsub.s32 0, %v9668_v50  ;;  %v4130_v9 = vld [vmem:[%s10442_s5] sm:$0xf]  ;;  %v10550_v63 = vsub.s32 2, %v9668_v50 }
 0x4eb   : > { %4403 = vmatprep.subr.mxu1 %v4090_v38  ;;  %4460 = vmatprep.subr.mxu0 %v4106_v35  ;;  %v10552_v38 = vsub.s32 1, %v9668_v50 }
 0x4ec   : > { %4404 = vmatpush2.msra.mxu1 %v4045_v30  ;;  %4461 = vmatpush1.msra.mxu0 %v4061_v43  ;;  %v4135_v59 = vrot.slane %v4130_v9, %v10551_v62 }
 0x4ed   : > { %v3755_v48 = vpop.permute.xlu1 %3754  ;;  %4405 = vmatprep.subr.mxu1 %v4089_v55  ;;  %4462 = vmatprep.subr.mxu0 %v4105_v12  ;;  %v4139_v35 = vrot.slane %v4130_v9, %v10552_v38 }
 0x4ee   : > { %v4044_v33 = vsel %vm3937_vm2, %v3285_v2, %v3755_v48  ;;  %4463 = vmatpush1.msra.mxu0 %v4060_v8 }
 0x4ef   : > { %4406 = vmatpush2.msra.mxu1 %v4044_v33  ;;  %6453 = vmatmul.mubr.msk.f32.vlgmr.msra.gmra.mxu0 %vm4152_vm3, %v9431_v61  ;;  %v4601_v61 = vld [vmem:[%s10444_s7 + $0x100] sm:$0xff] }
 0x4f0   : > { %4408 = vmatmul.mubr.f32.vlgmr.msra.gmra.mxu1 %v9292_v32  ;;  %4502 = vmatprep.mubr.f32.mxu0 %v10553_v44  ;;  %v10882_v32 = vmov 0  }
 0x4f1   : > { %4413 = vmatprep.mubr.f32.mxu1 %v9302_v1  ;;  %v4617_v1 = vld [vmem:[%s10444_s7 + $0x180] sm:$0xff] }
 0x4f3   : > { %6454 = vmatmul.mubr.msk.f32.gmra.mxu0 %vm4152_vm3, %v9444_v10  ;;  %v4609_v10 = vld [vmem:[%s10444_s7 + $0x140] sm:$0xff] }
 0x4f4   : > { %4414 = vmatmul.mubr.f32.gmra.mxu1 %v9319_v15  ;;  %4508 = vmatprep.mubr.f32.mxu0 %v10553_v44  ;;  %v4625_v15 = vld [vmem:[%s10444_s7 + $0x1c0] sm:$0xff]  ;;  %v6490_v0 = vcombine.high %v4601_v61, %v4609_v10  ;;  %v6489_v23 = vcombine.low %v4601_v61, %v4609_v10 }
 0x4f5   : > { %4419 = vmatprep.mubr.f32.mxu1 %v9329_v6  ;;  %v4618_v6 = vld [vmem:[%s10444_s7 + $0x188] sm:$0xff] }
 0x4f7   : > { %6455 = vmatmul.mubr.msk.f32.gmra.mxu0 %vm4152_vm3, %v9463_v13 }
 0x4f8   : > { %4420 = vmatmul.mubr.f32.gmra.mxu1 %v9348_v56  ;;  %4514 = vmatprep.mubr.f32.mxu0 %v10553_v44  ;;  %v6505_v56 = vcombine.low %v4617_v1, %v4625_v15 }
 0x4f9   : > { %4425 = vmatprep.mubr.f32.mxu1 %v9358_v17  ;;  %v6506_v17 = vcombine.high %v4617_v1, %v4625_v15 }
 0x4fb   : > { %6456 = vmatmul.mubr.msk.f32.gmra.mxu0 %vm4152_vm3, %v9481_v20  ;;  %4973 = vmatprep.subr.bf16.mxu0 %v6506_v17 }
 0x4fc   : > { %4426 = vmatmul.mubr.f32.gmra.mxu1 %v9374_v58  ;;  %4997 = vmatprep.mubr.bf16.mxu0 %v10882_v32  ;;  %v4626_v58 = vld [vmem:[%s10444_s7 + $0x1c8] sm:$0xff] }
 0x4fd   : > { %5070 = vmatprep.mubr.bf16.mxu1 %v10882_v32  ;;  %v6507_v13 = vcombine.low %v4618_v6, %v4626_v58  ;;  %v6508_v20 = vcombine.high %v4618_v6, %v4626_v58  ;;  %4974 = vmatpush1.bf16.msra.mxu0 %v6505_v56 }
 0x4fe   : > { %4975 = vmatprep.subr.bf16.mxu0 %v6490_v0 }
 0x4ff   : > { %5046 = vmatprep.subr.bf16.mxu1 %v6508_v20 }
 0x500   : > { %5047 = vmatpush1.bf16.msra.mxu1 %v6507_v13 }
 0x501   : > { %5048 = vmatprep.subr.bf16.mxu1 %v6492_v41  ;;  %4976 = vmatpush1.bf16.msra.mxu0 %v6489_v23 }
 0x502   : > { %4977 = vmatprep.subr.bf16.mxu0 %v6474_v26 }
 0x504   : > { %5049 = vmatpush1.bf16.msra.mxu1 %v6491_v16 }
 0x505   : > { %5050 = vmatprep.subr.bf16.mxu1 %v6476_v14  ;;  %4978 = vmatpush1.bf16.msra.mxu0 %v6473_v34  ;;  %v10549_v34 = vsub.s32 3, %v9668_v50 }
 0x506   : > { %4979 = vmatprep.subr.bf16.mxu0 %v6458_v25 }
 0x508   : > { %5051 = vmatpush1.bf16.msra.mxu1 %v6475_v47 }
 0x509   : > { %5052 = vmatprep.subr.bf16.mxu1 %v6460_v29  ;;  %4980 = vmatpush1.bf16.msra.mxu0 %v6457_v18  ;;  %v4147_v18 = vrot.slane %v4130_v9, %v10549_v34 }
 0x50c   : > { %5053 = vmatpush1.bf16.msra.mxu1 %v6459_v37 }
 0x551   : > { %v4231_v49 = vpop.f32.mrf.mxu0 }
 0x552   : > { %v4232_v46 = vadd.f32 %v4231_v49, %v4135_v59 }
 0x553   : > { %v4233_v54 = vpop.f32.mrf.mxu0 }
 0x554   : > { %v4234_v55 = vadd.f32 %v4233_v54, %v4139_v35  ;;  %v4143_v54 = vrot.slane %v4130_v9, %v10550_v63  ;;  %v9706_v9 = vld [vmem:[%s10444_s7 + $0x198] sm:$0xff] }
 0x555   : > { %v4237_v3 = vpop.f32.mrf.mxu0 }
 0x556   : > { %v4238_v43 = vadd.f32 %v4237_v3, %v4135_v59 }
 0x557   : > { %v4239_v28 = vpop.f32.mrf.mxu0 }
 0x558   : > { %v4240_v22 = vadd.f32 %v4239_v28, %v4139_v35 }
 0x559   : > { %v4243_v27 = vpop.f32.mrf.mxu0 }
 0x55a   : > { %v4244_v24 = vadd.f32 %v4243_v27, %v4135_v59 }
 0x55b   : > { %v4245_v53 = vpop.f32.mrf.mxu0 }
 0x55c   : > { %v4246_v2 = vadd.f32 %v4245_v53, %v4139_v35 }
 0x55d   : > { %v4249_v36 = vpop.f32.mrf.mxu0 }
 0x55e   : > { %v4250_v8 = vadd.f32 %v4249_v36, %v4135_v59 }
 0x55f   : > { %v4251_v39 = vpop.f32.mrf.mxu0 }
 0x560   : > { %v4252_v56 = vadd.f32 %v4251_v39, %v4139_v35  ;;  %v9701_v35 = vld [vmem:[%s10444_s7 + $0x1d0] sm:$0xff] }
 0x56b   : > { %v4320_v19 = vpop.f32.mrf.mxu0 }
 0x56c   : > { %v4321_v48 = vadd.f32 %v4320_v19, %v4232_v46  ;;  %v9696_v19 = vld [vmem:[%s10444_s7 + $0x190] sm:$0xff] }
 0x56d   : > { %v4322_v7 = vpop.f32.mrf.mxu0 }
 0x56e   : > { %v4323_v33 = vadd.f32 %v4322_v7, %v4234_v55  ;;  %v4521_v17 = vmax.f32 %v4321_v48, 0.0 }
 0x56f   : > { %v4326_v30 = vpop.f32.mrf.mxu0 }
 0x570   : > { %v4327_v60 = vadd.f32 %v4326_v30, %v4238_v43  ;;  %v4522_v13 = vmax.f32 %v4323_v33, 0.0  ;;  %v6510_v43 = vcombine.high %v9696_v19, %v9701_v35  ;;  %v4628_v30 = vld [vmem:[%s10444_s7 + $0x1d8] sm:$0xff] }
 0x571   : > { %v4328_v12 = vpop.f32.mrf.mxu0  ;;  %v6512_v48 = vcombine.high %v9706_v9, %v4628_v30 }
 0x572   : > { %v4329_v1 = vadd.f32 %v4328_v12, %v4240_v22  ;;  %v4525_v58 = vmax.f32 %v4327_v60, 0.0  ;;  %5119 = vmatprep.subr.bf16.mxu0 %v6510_v43 }
 0x573   : > { %v4332_v52 = vpop.f32.mrf.mxu0  ;;  %5192 = vmatprep.subr.bf16.mxu1 %v6512_v48 }
 0x574   : > { %v4333_v15 = vadd.f32 %v4332_v52, %v4244_v24  ;;  %v4526_v20 = vmax.f32 %v4329_v1, 0.0  ;;  %v4537_v21 = vmax.f32 %v4521_v17, %v4525_v58 }
 0x575   : > { %v4334_v6 = vpop.f32.mrf.mxu0 }
 0x576   : > { %v4335_v61 = vadd.f32 %v4334_v6, %v4246_v2  ;;  %v4529_v0 = vmax.f32 %v4333_v15, 0.0  ;;  %v4538_v57 = vmax.f32 %v4522_v13, %v4526_v20 }
 0x577   : > { %v4338_v10 = vpop.f32.mrf.mxu0 }
 0x578   : > { %v4339_v5 = vadd.f32 %v4338_v10, %v4250_v8  ;;  %v4530_v41 = vmax.f32 %v4335_v61, 0.0 }
 0x579   : > { %v4340_v11 = vpop.f32.mrf.mxu0 }
 0x57a   : > { %v4533_v31 = vmax.f32 %v4339_v5, 0.0  ;;  %v4341_v40 = vadd.f32 %v4340_v11, %v4252_v56 }
 0x57c   : > { %v4541_v23 = vmax.f32 %v4529_v0, %v4533_v31  ;;  %v4534_v16 = vmax.f32 %v4341_v40, 0.0 }
 0x57e   : > { %v9679_v26 = vmax.f32 %v4537_v21, %v4541_v23  ;;  %v4542_v14 = vmax.f32 %v4530_v41, %v4534_v16 }
 0x580   : > { %v9681_v51 = vmax.f32 %v4538_v57, %v4542_v14  ;;  %4550 = vrot.lane.b32.xlu0 %v9679_v26, %s10884_s22  ;;  %v9725_v14 = vld [vmem:[%s10444_s7 + $0x1a0] sm:$0xff] }
 0x582   : > { %4554 = vrot.lane.b32.xlu1 %v9681_v51, %s10884_s22 }
 0x5af   : > { %v4498_v4 = vpop.f32.mrf.mxu0 }
 0x5b0   : > { %v4409_v45 = vpop.f32.mrf.mxu1 }
 0x5b1   : > { %v4500_v49 = vpop.f32.mrf.mxu0  ;;  %v4410_v42 = vadd.f32 %v4409_v45, %v4143_v54  ;;  %v9735_v45 = vld [vmem:[%s10444_s7 + $0x1a8] sm:$0xff] }
 0x5b2   : > { %v4411_v47 = vpop.f32.mrf.mxu1 }
 0x5b3   : > { %v4504_v25 = vpop.f32.mrf.mxu0  ;;  %v4412_v7 = vadd.f32 %v4411_v47, %v4147_v18  ;;  %v4499_v24 = vadd.f32 %v4498_v4, %v4410_v42  ;;  %v9730_v4 = vld [vmem:[%s10444_s7 + $0x1e0] sm:$0xff]  ;;  %v6511_v42 = vcombine.low %v9706_v9, %v4628_v30  ;;  %v4571_v30 = vld [vmem:[%s10444_s7 + $0x10] sm:$0xff] }
 0x5b4   : > { %v4415_v29 = vpop.f32.mrf.mxu1  ;;  %v6513_v47 = vcombine.low %v9725_v14, %v9730_v4 }
 0x5b5   : > { %v4506_v3 = vpop.f32.mrf.mxu0  ;;  %v4416_v28 = vadd.f32 %v4415_v29, %v4143_v54  ;;  %v4501_v33 = vadd.f32 %v4500_v49, %v4412_v7  ;;  %v4523_v58 = vmax.f32 %v4499_v24, 0.0  ;;  %v9740_v49 = vld [vmem:[%s10444_s7 + $0x1e8] sm:$0xff]  ;;  %v4611_v29 = vld [vmem:[%s10444_s7 + $0x150] sm:$0xff]  ;;  %v4580_v24 = vld [vmem:[%s10444_s7 + $0x58] sm:$0xff] }
 0x5b6   : > { %v4417_v37 = vpop.f32.mrf.mxu1 }
 0x5b7   : > { %v4510_v27 = vpop.f32.mrf.mxu0  ;;  %v4418_v36 = vadd.f32 %v4417_v37, %v4147_v18  ;;  %v4505_v55 = vadd.f32 %v4504_v25, %v4416_v28  ;;  %v4524_v5 = vmax.f32 %v4501_v33, 0.0  ;;  %v6515_v25 = vcombine.low %v9735_v45, %v9740_v49 }
 0x5b8   : > { %v4421_v53 = vpop.f32.mrf.mxu1  ;;  %v6514_v33 = vcombine.high %v9725_v14, %v9730_v4  ;;  %v4574_v14 = vld [vmem:[%s10444_s7 + $0x28] sm:$0xff] }
 0x5b9   : > { %v4422_v39 = vadd.f32 %v4421_v53, %v4143_v54  ;;  %v4512_v59 = vpop.f32.mrf.mxu0  ;;  %v4507_v60 = vadd.f32 %v4506_v3, %v4418_v36  ;;  %v4527_v15 = vmax.f32 %v4505_v55, 0.0  ;;  %v4604_v3 = vld [vmem:[%s10444_s7 + $0x118] sm:$0xff]  ;;  %v4579_v55 = vld [vmem:[%s10444_s7 + $0x50] sm:$0xff]  ;;  %v4582_v4 = vld [vmem:[%s10444_s7 + $0x68] sm:$0xff] }
 0x5ba   : > { %v4423_v46 = vpop.f32.mrf.mxu1 }
 0x5bb   : > { %v4424_v22 = vadd.f32 %v4423_v46, %v4147_v18  ;;  %v4516_v2 = vpop.f32.mrf.mxu0  ;;  %v4511_v52 = vadd.f32 %v4510_v27, %v4422_v39  ;;  %v4528_v10 = vmax.f32 %v4507_v60, 0.0  ;;  %v4539_v11 = vmax.f32 %v4523_v58, %v4527_v15  ;;  %v4587_v39 = vld [vmem:[%s10444_s7 + $0x90] sm:$0xff]  ;;  %v4605_v58 = vld [vmem:[%s10444_s7 + $0x120] sm:$0xff] }
 0x5bc   : > { %v4427_v12 = vpop.f32.mrf.mxu1  ;;  %v6509_v27 = vcombine.low %v9696_v19, %v9701_v35  ;;  %v4596_v19 = vld [vmem:[%s10444_s7 + $0xd8] sm:$0xff]  ;;  %v6462_v60 = vcombine.high %v4571_v30, %v4579_v55 }
 0x5bd   : > { %v4428_v8 = vadd.f32 %v4427_v12, %v4143_v54  ;;  %v4513_v6 = vadd.f32 %v4512_v59, %v4424_v22  ;;  %v4518_v61 = vpop.f32.mrf.mxu0  ;;  %v4531_v13 = vmax.f32 %v4511_v52, 0.0  ;;  %v4540_v40 = vmax.f32 %v4524_v5, %v4528_v10  ;;  %v4603_v54 = vld [vmem:[%s10444_s7 + $0x110] sm:$0xff]  ;;  %v4588_v59 = vld [vmem:[%s10444_s7 + $0x98] sm:$0xff]  ;;  %v4606_v10 = vld [vmem:[%s10444_s7 + $0x128] sm:$0xff] }
 0x5be   : > { %v4429_v1 = vpop.f32.mrf.mxu1  ;;  %v6494_v53 = vcombine.high %v4603_v54, %v4611_v29  ;;  %v6493_v35 = vcombine.low %v4603_v54, %v4611_v29  ;;  %v6480_v43 = vcombine.high %v4588_v59, %v4596_v19  ;;  %v4572_v22 = vld [vmem:[%s10444_s7 + $0x18] sm:$0xff]  ;;  %v6479_v48 = vcombine.low %v4588_v59, %v4596_v19  ;;  %v4589_v5 = vld [vmem:[%s10444_s7 + $0xa0] sm:$0xff]  ;;  %v4623_v29 = vld [vmem:[%s10444_s7 + $0x1b0] sm:$0xff] }
 0x5bf   : > { %v4430_v56 = vadd.f32 %v4429_v1, %v4147_v18  ;;  %v4517_v17 = vadd.f32 %v4516_v2, %v4428_v8  ;;  %v4532_v21 = vmax.f32 %v4513_v6, 0.0  ;;  %v4612_v18 = vld [vmem:[%s10444_s7 + $0x158] sm:$0xff]  ;;  %v6464_v52 = vcombine.high %v4572_v22, %v4580_v24  ;;  %v4581_v54 = vld [vmem:[%s10444_s7 + $0x60] sm:$0xff] }
 0x5c0   : > { %v6496_v36 = vcombine.high %v4604_v3, %v4612_v18  ;;  %v6495_v9 = vcombine.low %v4604_v3, %v4612_v18  ;;  %v6463_v8 = vcombine.low %v4572_v22, %v4580_v24  ;;  %v6516_v1 = vcombine.high %v9735_v45, %v9740_v49  ;;  %v4631_v3 = vld [vmem:[%s10444_s7 + $0x1f0] sm:$0xff]  ;;  %v4624_v18 = vld [vmem:[%s10444_s7 + $0x1b8] sm:$0xff] }
 0x5c1   : > { %v4535_v20 = vmax.f32 %v4517_v17, 0.0  ;;  %v4519_v0 = vadd.f32 %v4518_v61, %v4430_v56  ;;  %v4613_v61 = vld [vmem:[%s10444_s7 + $0x160] sm:$0xff]  ;;  %v4608_v59 = vld [vmem:[%s10444_s7 + $0x138] sm:$0xff] }
 0x5c2   : > { %v4616_v19 = vld [vmem:[%s10444_s7 + $0x178] sm:$0xff] }
 0x5c3   : > { %v4543_v41 = vmax.f32 %v4531_v13, %v4535_v20  ;;  %v4536_v31 = vmax.f32 %v4519_v0, 0.0  ;;  %v4614_v13 = vld [vmem:[%s10444_s7 + $0x168] sm:$0xff]  ;;  %v6498_v20 = vcombine.high %v4605_v58, %v4613_v61  ;;  %v4600_v22 = vld [vmem:[%s10444_s7 + $0xf8] sm:$0xff] }
 0x5c4   : > { %v6500_v0 = vcombine.high %v4606_v10, %v4614_v13 }
 0x5c5   : > { %v9714_v57 = vmax.f32 %v4539_v11, %v4543_v41  ;;  %v4544_v23 = vmax.f32 %v4532_v21, %v4536_v31  ;;  %v4597_v11 = vld [vmem:[%s10444_s7 + $0xe0] sm:$0xff]  ;;  %v4590_v21 = vld [vmem:[%s10444_s7 + $0xa8] sm:$0xff]  ;;  %v6497_v31 = vcombine.low %v4605_v58, %v4613_v61 }
 0x5c6   : > { %v4598_v41 = vld [vmem:[%s10444_s7 + $0xe8] sm:$0xff]  ;;  %v6481_v45 = vcombine.low %v4589_v5, %v4597_v11 }
 0x5c7   : > { %v9716_v16 = vmax.f32 %v4540_v40, %v4544_v23  ;;  %4558 = vrot.lane.b32.xlu0 %v9714_v57, %s10884_s22  ;;  %v6499_v40 = vcombine.low %v4606_v10, %v4614_v13  ;;  %v6484_v23 = vcombine.high %v4590_v21, %v4598_v41  ;;  %v6483_v49 = vcombine.low %v4590_v21, %v4598_v41 }
 0x5c9   : > { %4562 = vrot.lane.b32.xlu1 %v9716_v16, %s10884_s22 }
 0x5f2   : > { %v4551_v37 = vpop.permute.xlu0 %4550 }
 0x5f3   : > { %v9759_v28 = vpack.c.bf16 %v4551_v37, %v9679_v26  ;;  %v4595_v26 = vld [vmem:[%s10444_s7 + $0xd0] sm:$0xff]  ;;  %v4632_v37 = vld [vmem:[%s10444_s7 + $0x1f8] sm:$0xff] }
 0x5f4   : > { %v4555_v7 = vpop.permute.xlu1 %4554  ;;  %v6478_v46 = vcombine.high %v4587_v39, %v4595_v26  ;;  %v6477_v2 = vcombine.low %v4587_v39, %v4595_v26  ;;  %v4607_v39 = vld [vmem:[%s10444_s7 + $0x130] sm:$0xff] }
 0x5f5   : > { %6521 = vmatmul.mubr.msk.bf16.vlgmr.msra.gmra.mxu0 %vm3937_vm2, %v9759_v28  ;;  %6525 = vmatmul.mubr.msk.bf16.vlgmr.msra.gmra.mxu1 %vm3937_vm2, %v9759_v28  ;;  %v9795_v12 = vpack.c.bf16 %v4555_v7, %v9681_v51  ;;  %v6461_v51 = vcombine.low %v4571_v30, %v4579_v55  ;;  %v4615_v26 = vld [vmem:[%s10444_s7 + $0x170] sm:$0xff]  ;;  %v4592_v55 = vld [vmem:[%s10444_s7 + $0xb8] sm:$0xff] }
 0x5f6   : > { %5007 = vmatprep.mubr.bf16.mxu0 %v10882_v32  ;;  %5080 = vmatprep.mubr.bf16.mxu1 %v10882_v32  ;;  %v6502_v7 = vcombine.high %v4607_v39, %v4615_v26  ;;  %v4599_v30 = vld [vmem:[%s10444_s7 + $0xf0] sm:$0xff]  ;;  %v6501_v24 = vcombine.low %v4607_v39, %v4615_v26 }
 0x5f7   : > { %5120 = vmatpush1.bf16.msra.mxu0 %v6509_v27  ;;  %5193 = vmatpush1.bf16.msra.mxu1 %v6511_v42  ;;  %v6467_v42 = vcombine.low %v4574_v14, %v4582_v4 }
 0x5f8   : > { %5121 = vmatprep.subr.bf16.mxu0 %v6494_v53  ;;  %5194 = vmatprep.subr.bf16.mxu1 %v6496_v36  ;;  %v6518_v53 = vcombine.high %v4623_v29, %v4631_v3  ;;  %v6520_v36 = vcombine.high %v4624_v18, %v4632_v37 }
 0x5fb   : > { %5122 = vmatpush1.bf16.msra.mxu0 %v6493_v35  ;;  %5195 = vmatpush1.bf16.msra.mxu1 %v6495_v9  ;;  %v6517_v35 = vcombine.low %v4623_v29, %v4631_v3  ;;  %v6519_v9 = vcombine.low %v4624_v18, %v4632_v37 }
 0x5fc   : > { %5123 = vmatprep.subr.bf16.mxu0 %v6478_v46  ;;  %5196 = vmatprep.subr.bf16.mxu1 %v6480_v43  ;;  %v6504_v46 = vcombine.high %v4608_v59, %v4616_v19  ;;  %v4591_v43 = vld [vmem:[%s10444_s7 + $0xb0] sm:$0xff] }
 0x5fd   : > { %6522 = vmatmul.mubr.msk.bf16.gmra.mxu0 %vm3937_vm2, %v9795_v12  ;;  %6526 = vmatmul.mubr.msk.bf16.gmra.mxu1 %vm3937_vm2, %v9795_v12 }
 0x5fe   : > { %5017 = vmatprep.mubr.bf16.mxu0 %v10882_v32  ;;  %5090 = vmatprep.mubr.bf16.mxu1 %v10882_v32 }
 0x5ff   : > { %5124 = vmatpush1.bf16.msra.mxu0 %v6477_v2  ;;  %5197 = vmatpush1.bf16.msra.mxu1 %v6479_v48  ;;  %v6503_v2 = vcombine.low %v4608_v59, %v4616_v19  ;;  %v6486_v48 = vcombine.high %v4591_v43, %v4599_v30 }
 0x600   : > { %5125 = vmatprep.subr.bf16.mxu0 %v6462_v60  ;;  %5198 = vmatprep.subr.bf16.mxu1 %v6464_v52  ;;  %v6488_v60 = vcombine.high %v4592_v55, %v4600_v22  ;;  %v4575_v52 = vld [vmem:[%s10444_s7 + $0x30] sm:$0xff] }
 0x603   : > { %5126 = vmatpush1.bf16.msra.mxu0 %v6461_v51  ;;  %5199 = vmatpush1.bf16.msra.mxu1 %v6463_v8  ;;  %v4583_v51 = vld [vmem:[%s10444_s7 + $0x70] sm:$0xff]  ;;  %v4576_v8 = vld [vmem:[%s10444_s7 + $0x38] sm:$0xff] }
 0x604   : > { %5265 = vmatprep.subr.bf16.mxu0 %v6514_v33  ;;  %5338 = vmatprep.subr.bf16.mxu1 %v6516_v1  ;;  %v4584_v33 = vld [vmem:[%s10444_s7 + $0x78] sm:$0xff]  ;;  %v6485_v1 = vcombine.low %v4591_v43, %v4599_v30  ;;  %v6469_v61 = vcombine.low %v4575_v52, %v4583_v51 }
 0x605   : > { %v6472_v58 = vcombine.high %v4576_v8, %v4584_v33  ;;  %v6471_v10 = vcombine.low %v4576_v8, %v4584_v33 }
 0x639   : > { %v4559_v15 = vpop.permute.xlu0 %4558 }
 0x63a   : > { %v9808_v6 = vpack.c.bf16 %v4559_v15, %v9714_v57  ;;  %v6482_v57 = vcombine.high %v4589_v5, %v4597_v11  ;;  %v6487_v15 = vcombine.low %v4592_v55, %v4600_v22 }
 0x63b   : > { %v4563_v56 = vpop.permute.xlu1 %4562 }
 0x63c   : > { %6523 = vmatmul.mubr.msk.bf16.gmra.mxu0 %vm3937_vm2, %v9808_v6  ;;  %6527 = vmatmul.mubr.msk.bf16.gmra.mxu1 %vm3937_vm2, %v9808_v6  ;;  %v9817_v17 = vpack.c.bf16 %v4563_v56, %v9716_v16  ;;  %v4573_v16 = vld [vmem:[%s10444_s7 + $0x20] sm:$0xff]  ;;  %v6470_v56 = vcombine.high %v4575_v52, %v4583_v51 }
 0x63d   : > { %5027 = vmatprep.mubr.bf16.mxu0 %v10882_v32  ;;  %5100 = vmatprep.mubr.bf16.mxu1 %v10882_v32  ;;  %v6465_v27 = vcombine.low %v4573_v16, %v4581_v54 }
 0x644   : > { %6524 = vmatmul.mubr.msk.bf16.gmra.mxu0 %vm3937_vm2, %v9817_v17  ;;  %6528 = vmatmul.mubr.msk.bf16.gmra.mxu1 %vm3937_vm2, %v9817_v17 }
 0x645   : > { %5143 = vmatprep.mubr.bf16.mxu0 %v10882_v32  ;;  %5216 = vmatprep.mubr.bf16.mxu1 %v10882_v32 }
 0x64c   : > { %6529 = vmatmul.mubr.msk.bf16.vlgmr.msra.gmra.mxu0 %vm3937_vm2, %v9759_v28  ;;  %6533 = vmatmul.mubr.msk.bf16.vlgmr.msra.gmra.mxu1 %vm3937_vm2, %v9759_v28 }
 0x64d   : > { %5153 = vmatprep.mubr.bf16.mxu0 %v10882_v32  ;;  %5226 = vmatprep.mubr.bf16.mxu1 %v10882_v32 }
 0x64e   : > { %5266 = vmatpush1.bf16.msra.mxu0 %v6513_v47  ;;  %5339 = vmatpush1.bf16.msra.mxu1 %v6515_v25  ;;  %v6466_v47 = vcombine.high %v4573_v16, %v4581_v54  ;;  %v6468_v25 = vcombine.high %v4574_v14, %v4582_v4 }
 0x64f   : > { %5267 = vmatprep.subr.bf16.mxu0 %v6498_v20  ;;  %5340 = vmatprep.subr.bf16.mxu1 %v6500_v0 }
 0x652   : > { %5268 = vmatpush1.bf16.msra.mxu0 %v6497_v31  ;;  %5341 = vmatpush1.bf16.msra.mxu1 %v6499_v40 }
 0x653   : > { %5269 = vmatprep.subr.bf16.mxu0 %v6482_v57  ;;  %5342 = vmatprep.subr.bf16.mxu1 %v6484_v23 }
 0x654   : > { %6530 = vmatmul.mubr.msk.bf16.gmra.mxu0 %vm3937_vm2, %v9795_v12  ;;  %6534 = vmatmul.mubr.msk.bf16.gmra.mxu1 %vm3937_vm2, %v9795_v12 }
 0x655   : > { %5163 = vmatprep.mubr.bf16.mxu0 %v10882_v32  ;;  %5236 = vmatprep.mubr.bf16.mxu1 %v10882_v32 }
 0x656   : > { %5270 = vmatpush1.bf16.msra.mxu0 %v6481_v45  ;;  %5343 = vmatpush1.bf16.msra.mxu1 %v6483_v49 }
 0x657   : > { %5271 = vmatprep.subr.bf16.mxu0 %v6466_v47  ;;  %5344 = vmatprep.subr.bf16.mxu1 %v6468_v25 }
 0x65a   : > { %5272 = vmatpush1.bf16.msra.mxu0 %v6465_v27  ;;  %5345 = vmatpush1.bf16.msra.mxu1 %v6467_v42 }
 0x65b   : > { %5411 = vmatprep.subr.bf16.mxu0 %v6518_v53  ;;  %5484 = vmatprep.subr.bf16.mxu1 %v6520_v36 }
 0x65c   : > { %6531 = vmatmul.mubr.msk.bf16.gmra.mxu0 %vm3937_vm2, %v9808_v6  ;;  %6535 = vmatmul.mubr.msk.bf16.gmra.mxu1 %vm3937_vm2, %v9808_v6 }
 0x65d   : > { %5173 = vmatprep.mubr.bf16.mxu0 %v10882_v32  ;;  %5246 = vmatprep.mubr.bf16.mxu1 %v10882_v32 }
 0x664   : > { %6532 = vmatmul.mubr.msk.bf16.gmra.mxu0 %vm3937_vm2, %v9817_v17  ;;  %6536 = vmatmul.mubr.msk.bf16.gmra.mxu1 %vm3937_vm2, %v9817_v17 }
 0x665   : > { %5289 = vmatprep.mubr.bf16.mxu0 %v10882_v32  ;;  %5362 = vmatprep.mubr.bf16.mxu1 %v10882_v32 }
 0x66c   : > { %6537 = vmatmul.mubr.msk.bf16.vlgmr.msra.gmra.mxu0 %vm3937_vm2, %v9759_v28  ;;  %6541 = vmatmul.mubr.msk.bf16.vlgmr.msra.gmra.mxu1 %vm3937_vm2, %v9759_v28 }
 0x66d   : > { %5299 = vmatprep.mubr.bf16.mxu0 %v10882_v32  ;;  %5372 = vmatprep.mubr.bf16.mxu1 %v10882_v32 }
 0x66e   : > { %5412 = vmatpush1.bf16.msra.mxu0 %v6517_v35  ;;  %5485 = vmatpush1.bf16.msra.mxu1 %v6519_v9 }
 0x66f   : > { %5413 = vmatprep.subr.bf16.mxu0 %v6502_v7  ;;  %5486 = vmatprep.subr.bf16.mxu1 %v6504_v46 }
 0x672   : > { %5414 = vmatpush1.bf16.msra.mxu0 %v6501_v24  ;;  %5487 = vmatpush1.bf16.msra.mxu1 %v6503_v2 }
 0x673   : > { %5415 = vmatprep.subr.bf16.mxu0 %v6486_v48  ;;  %5488 = vmatprep.subr.bf16.mxu1 %v6488_v60 }
 0x674   : > { %6538 = vmatmul.mubr.msk.bf16.gmra.mxu0 %vm3937_vm2, %v9795_v12  ;;  %6542 = vmatmul.mubr.msk.bf16.gmra.mxu1 %vm3937_vm2, %v9795_v12 }
 0x675   : > { %5309 = vmatprep.mubr.bf16.mxu0 %v10882_v32  ;;  %5382 = vmatprep.mubr.bf16.mxu1 %v10882_v32 }
 0x676   : > { %5416 = vmatpush1.bf16.msra.mxu0 %v6485_v1  ;;  %5489 = vmatpush1.bf16.msra.mxu1 %v6487_v15 }
 0x677   : > { %5417 = vmatprep.subr.bf16.mxu0 %v6470_v56  ;;  %5490 = vmatprep.subr.bf16.mxu1 %v6472_v58 }
 0x67a   : > { %5418 = vmatpush1.bf16.msra.mxu0 %v6469_v61  ;;  %5491 = vmatpush1.bf16.msra.mxu1 %v6471_v10 }
 0x67c   : > { %6539 = vmatmul.mubr.msk.bf16.gmra.mxu0 %vm3937_vm2, %v9808_v6  ;;  %6543 = vmatmul.mubr.msk.bf16.gmra.mxu1 %vm3937_vm2, %v9808_v6 }
 0x67d   : > { %5319 = vmatprep.mubr.bf16.mxu0 %v10882_v32  ;;  %5392 = vmatprep.mubr.bf16.mxu1 %v10882_v32 }
 0x684   : > { %6540 = vmatmul.mubr.msk.bf16.gmra.mxu0 %vm3937_vm2, %v9817_v17  ;;  %6544 = vmatmul.mubr.msk.bf16.gmra.mxu1 %vm3937_vm2, %v9817_v17 }
 0x685   : > { %5435 = vmatprep.mubr.bf16.mxu0 %v10882_v32  ;;  %5508 = vmatprep.mubr.bf16.mxu1 %v10882_v32 }
 0x68c   : > { %6545 = vmatmul.mubr.msk.bf16.vlgmr.msra.gmra.mxu0 %vm3937_vm2, %v9759_v28  ;;  %6549 = vmatmul.mubr.msk.bf16.vlgmr.msra.gmra.mxu1 %vm3937_vm2, %v9759_v28 }
 0x68d   : > { %5445 = vmatprep.mubr.bf16.mxu0 %v10882_v32  ;;  %5518 = vmatprep.mubr.bf16.mxu1 %v10882_v32 }
 0x694   : > { %6546 = vmatmul.mubr.msk.bf16.gmra.mxu0 %vm3937_vm2, %v9795_v12  ;;  %6550 = vmatmul.mubr.msk.bf16.gmra.mxu1 %vm3937_vm2, %v9795_v12 }
 0x695   : > { %5455 = vmatprep.mubr.bf16.mxu0 %v10882_v32  ;;  %5528 = vmatprep.mubr.bf16.mxu1 %v10882_v32 }
 0x69c   : > { %6547 = vmatmul.mubr.msk.bf16.gmra.mxu0 %vm3937_vm2, %v9808_v6  ;;  %6551 = vmatmul.mubr.msk.bf16.gmra.mxu1 %vm3937_vm2, %v9808_v6 }
 0x69d   : > { %5465 = vmatprep.mubr.bf16.mxu0 %v10882_v32  ;;  %5538 = vmatprep.mubr.bf16.mxu1 %v10882_v32 }
 0x6a4   : > { %6548 = vmatmul.mubr.msk.bf16.gmra.mxu0 %vm3937_vm2, %v9817_v17  ;;  %6552 = vmatmul.mubr.msk.bf16.gmra.mxu1 %vm3937_vm2, %v9817_v17 }
 0x6a5   : > { %5659 = vmatprep.mubr.f32.mxu0 %v10553_v44  ;;  %5748 = vmatprep.mubr.f32.mxu1 %v10553_v44 }
 0x6b5   : > { %v9987_v28 = vpop.f32.mrf.mxu0  ;;  %v9989_v12 = vpop.f32.mrf.mxu1 }
 0x6b7   : > { %v9991_v13 = vpop.f32.mrf.mxu0  ;;  %v9993_v6 = vpop.f32.mrf.mxu1 }
 0x6b9   : > { %v9995_v20 = vpop.f32.mrf.mxu0  ;;  %v9997_v32 = vpop.f32.mrf.mxu1 }
 0x6bb   : > { %v9999_v0 = vpop.f32.mrf.mxu0  ;;  %v10001_v5 = vpop.f32.mrf.mxu1 }
 0x6bd   : > { %v10003_v17 = vpop.f32.mrf.mxu0  ;;  %v10005_v11 = vpop.f32.mrf.mxu1 }
 0x6bf   : > { %v10007_v21 = vpop.f32.mrf.mxu0  ;;  %v10009_v41 = vpop.f32.mrf.mxu1 }
 0x6c1   : > { %v10011_v31 = vpop.f32.mrf.mxu0  ;;  %v10013_v40 = vpop.f32.mrf.mxu1 }
 0x6c3   : > { %v10015_v57 = vpop.f32.mrf.mxu0  ;;  %v10017_v23 = vpop.f32.mrf.mxu1 }
 0x6fc   : > { %v10019_v16 = vpop.f32.mrf.mxu0  ;;  %v10021_v54 = vpop.f32.mrf.mxu1 }
 0x6fd   : > { %10885 = vst [vmem:[#allocation42_spill] sm:$0xff] %v10019_v16  ;;  %10886 = vst [vmem:[#allocation69_spill] sm:$0xff] %v10021_v54 }
 0x6fe   : > { %v10023_v14 = vpop.f32.mrf.mxu0  ;;  %v10025_v4 = vpop.f32.mrf.mxu1 }
 0x6ff   : > { %10887 = vst [vmem:[#allocation24_spill] sm:$0xff] %v10023_v14  ;;  %10888 = vst [vmem:[#allocation39_spill] sm:$0xff] %v10025_v4 }
 0x700   : > { %v10027_v45 = vpop.f32.mrf.mxu0  ;;  %v10029_v49 = vpop.f32.mrf.mxu1 }
 0x701   : > { %10889 = vst [vmem:[#allocation67_spill] sm:$0xff] %v10027_v45  ;;  %10890 = vst [vmem:[#allocation22_spill] sm:$0xff] %v10029_v49 }
 0x702   : > { %v10031_v47 = vpop.f32.mrf.mxu0  ;;  %v10033_v25 = vpop.f32.mrf.mxu1 }
 0x703   : > { %10891 = vst [vmem:[#allocation36_spill] sm:$0xff] %v10031_v47  ;;  %10892 = vst [vmem:[#allocation60_spill] sm:$0xff] %v10033_v25 }
 0x704   : > { %v10035_v29 = vpop.f32.mrf.mxu0  ;;  %v10037_v3 = vpop.f32.mrf.mxu1 }
 0x705   : > { %10893 = vst [vmem:[#allocation19_spill] sm:$0xff] %v10035_v29  ;;  %10894 = vst [vmem:[#allocation110_spill] sm:$0xff] %v10037_v3 }
 0x706   : > { %v10039_v18 = vpop.f32.mrf.mxu0  ;;  %v10041_v37 = vpop.f32.mrf.mxu1 }
 0x707   : > { %10895 = vst [vmem:[#allocation10_spill] sm:$0xff] %v10039_v18  ;;  %10896 = vst [vmem:[#allocation106_spill] sm:$0xff] %v10041_v37 }
 0x708   : > { %v10043_v27 = vpop.f32.mrf.mxu0  ;;  %v10045_v42 = vpop.f32.mrf.mxu1 }
 0x709   : > { %10897 = vst [vmem:[#allocation7_spill] sm:$0xff] %v10043_v27  ;;  %10898 = vst [vmem:[#allocation102_spill] sm:$0xff] %v10045_v42 }
 0x70a   : > { %v10047_v53 = vpop.f32.mrf.mxu0  ;;  %v10049_v36 = vpop.f32.mrf.mxu1 }
 0x70b   : > { %10899 = vst [vmem:[#allocation8_spill] sm:$0xff] %v10047_v53  ;;  %10900 = vst [vmem:[#allocation80_spill] sm:$0xff] %v10049_v36 }
 0x70c   : > { %v10051_v39 = vpop.f32.mrf.mxu0  ;;  %v10053_v26 = vpop.f32.mrf.mxu1 }
 0x70e   : > { %v10055_v59 = vpop.f32.mrf.mxu0  ;;  %v10057_v19 = vpop.f32.mrf.mxu1 }
 0x710   : > { %v10059_v35 = vpop.f32.mrf.mxu0  ;;  %v10061_v9 = vpop.f32.mrf.mxu1 }
 0x712   : > { %v10063_v7 = vpop.f32.mrf.mxu0  ;;  %v10065_v46 = vpop.f32.mrf.mxu1 }
 0x714   : > { %v10067_v43 = vpop.f32.mrf.mxu0  ;;  %v10069_v30 = vpop.f32.mrf.mxu1 }
 0x716   : > { %v10071_v55 = vpop.f32.mrf.mxu0  ;;  %v10073_v22 = vpop.f32.mrf.mxu1 }
 0x718   : > { %v10075_v24 = vpop.f32.mrf.mxu0  ;;  %v10077_v2 = vpop.f32.mrf.mxu1 }
 0x71a   : > { %v10079_v48 = vpop.f32.mrf.mxu0  ;;  %v10081_v60 = vpop.f32.mrf.mxu1 }
 0x71c   : > { %v10083_v52 = vpop.f32.mrf.mxu0  ;;  %v10085_v51 = vpop.f32.mrf.mxu1 }
 0x71d   : > { %10901 = vst [vmem:[#allocation113_spill] sm:$0xff] %v10083_v52  ;;  %10902 = vst [vmem:[#allocation63_spill] sm:$0xff] %v10085_v51 }
 0x71e   : > { %v10087_v8 = vpop.f32.mrf.mxu0  ;;  %v10089_v33 = vpop.f32.mrf.mxu1 }
 0x71f   : > { %10903 = vst [vmem:[#allocation78_spill] sm:$0xff] %v10087_v8  ;;  %10904 = vst [vmem:[#allocation111_spill] sm:$0xff] %v10089_v33 }
 0x720   : > { %v10091_v1 = vpop.f32.mrf.mxu0  ;;  %v10093_v15 = vpop.f32.mrf.mxu1 }
 0x721   : > { %10905 = vst [vmem:[#allocation59_spill] sm:$0xff] %v10091_v1  ;;  %10906 = vst [vmem:[#allocation74_spill] sm:$0xff] %v10093_v15 }
 0x722   : > { %v10095_v56 = vpop.f32.mrf.mxu0  ;;  %v10097_v58 = vpop.f32.mrf.mxu1 }
 0x723   : > { %10907 = vst [vmem:[#allocation75_spill] sm:$0xff] %v10095_v56  ;;  %10908 = vst [vmem:[#allocation107_spill] sm:$0xff] %v10097_v58 }
 0x724   : > { %v10099_v61 = vpop.f32.mrf.mxu0  ;;  %v10101_v10 = vpop.f32.mrf.mxu1 }
 0x725   : > { %10909 = vst [vmem:[#allocation56_spill] sm:$0xff] %v10099_v61  ;;  %10910 = vst [vmem:[#allocation72_spill] sm:$0xff] %v10101_v10 }
 0x726   : > { %v10103_v34 = vpop.f32.mrf.mxu0  ;;  %v10105_v63 = vpop.f32.mrf.mxu1 }
 0x727   : > { %10911 = vst [vmem:[#allocation101_spill] sm:$0xff] %v10103_v34  ;;  %10912 = vst [vmem:[#allocation55_spill] sm:$0xff] %v10105_v63 }
 0x728   : > { %v10107_v62 = vpop.f32.mrf.mxu0  ;;  %v10109_v38 = vpop.f32.mrf.mxu1 }
 0x729   : > { %10913 = vst [vmem:[#allocation70_spill] sm:$0xff] %v10107_v62  ;;  %10914 = vst [vmem:[#allocation95_spill] sm:$0xff] %v10109_v38 }
 0x72a   : > { %v10111_v44 = vpop.f32.mrf.mxu0  ;;  %v10113_v50 = vpop.f32.mrf.mxu1 }
 0x72b   : > { %10915 = vst [vmem:[#allocation51_spill] sm:$0xff] %v10111_v44  ;;  %10916 = vst [vmem:[#allocation91_spill] sm:$0xff] %v10113_v50 }
 0x72c   : > { %v10115_v29 = vpop.f32.mrf.mxu0  ;;  %v5364_v27 = vpop.f32.mrf.mxu1 }
 0x72e   : > { %v10117_v18 = vpop.f32.mrf.mxu0  ;;  %v5366_v53 = vpop.f32.mrf.mxu1 }
 0x730   : > { %v10119_v3 = vpop.f32.mrf.mxu0  ;;  %v5368_v42 = vpop.f32.mrf.mxu1 }
 0x732   : > { %v5297_v37 = vpop.f32.mrf.mxu0  ;;  %v5370_v36 = vpop.f32.mrf.mxu1 }
 0x734   : > { %v10121_v61 = vpop.f32.mrf.mxu0  ;;  %v10123_v16 = vpop.f32.mrf.mxu1 }
 0x736   : > { %v10125_v62 = vpop.f32.mrf.mxu0  ;;  %v10127_v45 = vpop.f32.mrf.mxu1 }
 0x738   : > { %v10129_v34 = vpop.f32.mrf.mxu0  ;;  %v10131_v14 = vpop.f32.mrf.mxu1 }
 0x73a   : > { %v10133_v44 = vpop.f32.mrf.mxu0  ;;  %v5380_v47 = vpop.f32.mrf.mxu1 }
 0x73c   : > { %v10135_v10 = vpop.f32.mrf.mxu0  ;;  %v10137_v54 = vpop.f32.mrf.mxu1 }
 0x73d   : > { %10917 = vst [vmem:[#allocation34_spill] sm:$0xff] %v10135_v10  ;;  %10918 = vst [vmem:[#allocation62_spill] sm:$0xff] %v10137_v54 }
 0x73e   : > { %v10139_v38 = vpop.f32.mrf.mxu0  ;;  %v10141_v49 = vpop.f32.mrf.mxu1 }
 0x73f   : > { %10919 = vst [vmem:[#allocation16_spill] sm:$0xff] %v10139_v38  ;;  %10920 = vst [vmem:[#allocation87_spill] sm:$0xff] %v10141_v49 }
 0x740   : > { %v10143_v63 = vpop.f32.mrf.mxu0  ;;  %v10145_v4 = vpop.f32.mrf.mxu1 }
 0x741   : > { %10921 = vst [vmem:[#allocation33_spill] sm:$0xff] %v10143_v63  ;;  %10922 = vst [vmem:[#allocation54_spill] sm:$0xff] %v10145_v4 }
 0x742   : > { %v10147_v50 = vpop.f32.mrf.mxu0  ;;  %v10149_v25 = vpop.f32.mrf.mxu1 }
 0x743   : > { %10923 = vst [vmem:[#allocation15_spill] sm:$0xff] %v10147_v50  ;;  %10924 = vst [vmem:[#allocation83_spill] sm:$0xff] %v10149_v25 }
 0x744   : > { %v10151_v52 = vpop.f32.mrf.mxu0  ;;  %v10153_v1 = vpop.f32.mrf.mxu1 }
 0x745   : > { %10925 = vst [vmem:[#allocation32_spill] sm:$0xff] %v10151_v52  ;;  %10926 = vst [vmem:[#allocation49_spill] sm:$0xff] %v10153_v1 }
 0x746   : > { %v10155_v8 = vpop.f32.mrf.mxu0  ;;  %v10157_v56 = vpop.f32.mrf.mxu1 }
 0x747   : > { %10927 = vst [vmem:[#allocation14_spill] sm:$0xff] %v10155_v8  ;;  %10928 = vst [vmem:[#allocation82_spill] sm:$0xff] %v10157_v56 }
 0x748   : > { %v10159_v51 = vpop.f32.mrf.mxu0  ;;  %v10161_v15 = vpop.f32.mrf.mxu1 }
 0x749   : > { %10929 = vst [vmem:[#allocation31_spill] sm:$0xff] %v10159_v51  ;;  %10930 = vst [vmem:[#allocation53_spill] sm:$0xff] %v10161_v15 }
 0x74a   : > { %v10163_v33 = vpop.f32.mrf.mxu0  ;;  %v10165_v58 = vpop.f32.mrf.mxu1 }
 0x74b   : > { %10931 = vst [vmem:[#allocation13_spill] sm:$0xff] %v10163_v33  ;;  %10932 = vst [vmem:[#allocation120_spill] sm:$0xff] %v10165_v58 }
 0x74c   : > { %v5437_v10 = vpop.f32.mrf.mxu0  ;;  %v5510_v63 = vpop.f32.mrf.mxu1 }
 0x74e   : > { %v5439_v38 = vpop.f32.mrf.mxu0  ;;  %v5512_v50 = vpop.f32.mrf.mxu1 }
 0x750   : > { %v5441_v54 = vpop.f32.mrf.mxu0  ;;  %v5514_v52 = vpop.f32.mrf.mxu1 }
 0x752   : > { %v5443_v4 = vpop.f32.mrf.mxu0  ;;  %v5516_v1 = vpop.f32.mrf.mxu1 }
 0x753   : > { %5595 = vmatprep.subr.mxu0 %v5516_v1 }
 0x754   : > { %v5447_v8 = vpop.f32.mrf.mxu0  ;;  %v5520_v49 = vpop.f32.mrf.mxu1  ;;  %5596 = vmatpush1.msra.mxu0 %v5512_v50 }
 0x755   : > { %5597 = vmatprep.subr.mxu0 %v5514_v52  ;;  %v5550_v52 = vld [vmem:[%s10443_s6 + $0x8] sm:$0xff] }
 0x756   : > { %v5449_v51 = vpop.f32.mrf.mxu0  ;;  %v5522_v56 = vpop.f32.mrf.mxu1  ;;  %5598 = vmatpush1.msra.mxu0 %v5510_v63 }
 0x757   : > { %5599 = vmatprep.subr.mxu0 %v5443_v4 }
 0x758   : > { %v5524_v33 = vpop.f32.mrf.mxu1  ;;  %5600 = vmatpush1.msra.mxu0 %v5439_v38  ;;  %v5451_v15 = vpop.f32.mrf.mxu0 }
 0x759   : > { %5601 = vmatprep.subr.mxu0 %v5441_v54 }
 0x75a   : > { %v5526_v58 = vpop.f32.mrf.mxu1  ;;  %5602 = vmatpush1.msra.mxu0 %v5437_v10  ;;  %v5453_v1 = vpop.f32.mrf.mxu0  ;;  %v10977_v10 = vld [vmem:[#allocation110_spill] sm:$0xff] }
 0x75b   : > { %5603 = vmatprep.subr.mxu0 %v5370_v36  ;;  %5684 = vmatprep.subr.mxu1 %v5526_v58  ;;  %v10954_v36 = vld [vmem:[#allocation31_spill] sm:$0xff]  ;;  %v10976_v58 = vld [vmem:[#allocation102_spill] sm:$0xff] }
 0x75c   : > { %5604 = vmatpush1.msra.mxu0 %v5366_v53  ;;  %5685 = vmatpush1.msra.mxu1 %v5522_v56  ;;  %v10167_v25 = vpop.f32.mrf.mxu1  ;;  %v5457_v38 = vpop.f32.mrf.mxu0  ;;  %v10953_v53 = vld [vmem:[#allocation59_spill] sm:$0xff]  ;;  %v10975_v56 = vld [vmem:[#allocation106_spill] sm:$0xff] }
 0x75d   : > { %5605 = vmatprep.subr.mxu0 %v5368_v42  ;;  %5686 = vmatprep.subr.mxu1 %v5524_v33  ;;  %v10952_v42 = vld [vmem:[#allocation14_spill] sm:$0xff]  ;;  %v10973_v33 = vld [vmem:[#allocation80_spill] sm:$0xff] }
 0x75e   : > { %5606 = vmatpush1.msra.mxu0 %v5364_v27  ;;  %5687 = vmatpush1.msra.mxu1 %v5520_v49  ;;  %v5532_v50 = vpop.f32.mrf.mxu1  ;;  %v5459_v54 = vpop.f32.mrf.mxu0  ;;  %v10944_v49 = vld [vmem:[#allocation82_spill] sm:$0xff] }
 0x75f   : > { %5607 = vmatprep.subr.mxu0 %v5297_v37  ;;  %5688 = vmatprep.subr.mxu1 %v5453_v1  ;;  %v10950_v37 = vld [vmem:[#allocation13_spill] sm:$0xff]  ;;  %v10951_v27 = vld [vmem:[#allocation78_spill] sm:$0xff]  ;;  %v10978_v1 = vld [vmem:[#allocation8_spill] sm:$0xff] }
 0x760   : > { %5608 = vmatpush1.msra.mxu0 %v10117_v18  ;;  %5689 = vmatpush1.msra.mxu1 %v5449_v51  ;;  %v5534_v63 = vpop.f32.mrf.mxu1  ;;  %v10949_v18 = vld [vmem:[#allocation75_spill] sm:$0xff]  ;;  %v10971_v51 = vld [vmem:[#allocation42_spill] sm:$0xff] }
 0x761   : > { %5609 = vmatprep.subr.mxu0 %v10119_v3  ;;  %5690 = vmatprep.subr.mxu1 %v5451_v15  ;;  %v10948_v3 = vld [vmem:[#allocation49_spill] sm:$0xff]  ;;  %v10974_v15 = vmov 0.0  }
 0x762   : > { %5610 = vmatpush1.msra.mxu0 %v10115_v29  ;;  %5691 = vmatpush1.msra.mxu1 %v5447_v8  ;;  %v5536_v4 = vpop.f32.mrf.mxu1  ;;  %v10947_v29 = vld [vmem:[#allocation63_spill] sm:$0xff]  ;;  %v10972_v8 = vld [vmem:[#allocation56_spill] sm:$0xff] }
 0x763   : > { %5611 = vmatprep.subr.mxu0 %v10065_v46  ;;  %5692 = vmatprep.subr.mxu1 %v5380_v47  ;;  %v10945_v47 = vld [vmem:[#allocation74_spill] sm:$0xff]  ;;  %v10962_v46 = vld [vmem:[#allocation95_spill] sm:$0xff] }
 0x764   : > { %5612 = vmatpush1.msra.mxu0 %v10057_v19  ;;  %5693 = vmatpush1.msra.mxu1 %v10127_v45  ;;  %v10943_v45 = vld [vmem:[#allocation111_spill] sm:$0xff] }
 0x765   : > { %5613 = vmatprep.subr.mxu0 %v10061_v9  ;;  %5694 = vmatprep.subr.mxu1 %v10131_v14  ;;  %v5461_v14 = vpop.f32.mrf.mxu0  ;;  %v10958_v19 = vld [vmem:[#allocation91_spill] sm:$0xff] }
 0x766   : > { %5614 = vmatpush1.msra.mxu0 %v10053_v26  ;;  %5695 = vmatpush1.msra.mxu1 %v10123_v16  ;;  %v10942_v16 = vld [vmem:[#allocation120_spill] sm:$0xff]  ;;  %v10960_v9 = vld [vmem:[#allocation55_spill] sm:$0xff] }
 0x767   : > { %5615 = vmatprep.subr.mxu0 %v10063_v7  ;;  %5696 = vmatprep.subr.mxu1 %v10133_v44  ;;  %v5540_v44 = vpop.f32.mrf.mxu1  ;;  %v10956_v26 = vld [vmem:[#allocation32_spill] sm:$0xff]  ;;  %v10961_v7 = vld [vmem:[#allocation22_spill] sm:$0xff] }
 0x768   : > { %5616 = vmatpush1.msra.mxu0 %v10055_v59  ;;  %5697 = vmatpush1.msra.mxu1 %v10125_v62  ;;  %v5463_v62 = vpop.f32.mrf.mxu0  ;;  %v10957_v59 = vld [vmem:[#allocation60_spill] sm:$0xff] }
 0x769   : > { %5617 = vmatprep.subr.mxu0 %v10059_v35  ;;  %5698 = vmatprep.subr.mxu1 %v10129_v34  ;;  %v10204_v34 = vld [vmem:[%s10443_s6] sm:$0xff] }
 0x76a   : > { %5618 = vmatpush1.msra.mxu0 %v10051_v39  ;;  %5699 = vmatpush1.msra.mxu1 %v10121_v61  ;;  %v10955_v39 = vld [vmem:[#allocation113_spill] sm:$0xff]  ;;  %v10959_v35 = vld [vmem:[#allocation39_spill] sm:$0xff] }
 0x76b   : > { %5619 = vmatprep.subr.mxu0 %v10001_v5  ;;  %5700 = vmatprep.subr.mxu1 %v10081_v60  ;;  %v10934_v5 = vld [vmem:[#allocation87_spill] sm:$0xff]  ;;  %v10970_v60 = vld [vmem:[#allocation70_spill] sm:$0xff]  ;;  %v5551_v61 = vld [vmem:[%s10443_s6 + $0x10] sm:$0xff] }
 0x76c   : > { %5620 = vmatpush1.msra.mxu0 %v9993_v6  ;;  %5701 = vmatpush1.msra.mxu1 %v10073_v22  ;;  %v5467_v6 = vpop.f32.mrf.mxu0  ;;  %v10966_v22 = vld [vmem:[#allocation51_spill] sm:$0xff] }
 0x76d   : > { %5621 = vmatprep.subr.mxu0 %v9997_v32  ;;  %5702 = vmatprep.subr.mxu1 %v10077_v2  ;;  %v10968_v2 = vld [vmem:[#allocation101_spill] sm:$0xff] }
 0x76e   : > { %5622 = vmatpush1.msra.mxu0 %v9989_v12  ;;  %5703 = vmatpush1.msra.mxu1 %v10069_v30  ;;  %v5542_v12 = vpop.f32.mrf.mxu1  ;;  %v10964_v30 = vld [vmem:[#allocation72_spill] sm:$0xff] }
 0x76f   : > { %5623 = vmatprep.subr.mxu0 %v9999_v0  ;;  %5704 = vmatprep.subr.mxu1 %v10079_v48  ;;  %v10933_v0 = vld [vmem:[#allocation83_spill] sm:$0xff] }
 0x770   : > { %5624 = vmatpush1.msra.mxu0 %v9991_v13  ;;  %5705 = vmatpush1.msra.mxu1 %v10071_v55  ;;  %v5544_v13 = vpop.f32.mrf.mxu1  ;;  %v10965_v55 = vld [vmem:[#allocation36_spill] sm:$0xff]  ;;  %v10969_v48 = vld [vmem:[#allocation67_spill] sm:$0xff] }
 0x771   : > { %5625 = vmatprep.subr.mxu0 %v9995_v20  ;;  %5706 = vmatprep.subr.mxu1 %v10075_v24  ;;  %v5469_v20 = vpop.f32.mrf.mxu0  ;;  %v10967_v24 = vld [vmem:[#allocation24_spill] sm:$0xff] }
 0x772   : > { %5626 = vmatpush1.msra.mxu0 %v9987_v28  ;;  %5707 = vmatpush1.msra.mxu1 %v10067_v43  ;;  %v5546_v28 = vpop.f32.mrf.mxu1  ;;  %v10963_v43 = vld [vmem:[#allocation69_spill] sm:$0xff] }
 0x773   : > { %5708 = vmatprep.subr.mxu1 %v10017_v23  ;;  %5773 = vmatprep.subr.mxu0 %v5536_v4  ;;  %v5471_v32 = vpop.f32.mrf.mxu0  ;;  %v10941_v23 = vld [vmem:[#allocation107_spill] sm:$0xff]  ;;  %v6057_v4 = vld [vmem:[%s10446_s9 + $0x78] sm:$0xff] }
 0x774   : > { %5660 = vmatmul.mubr.f32.vlgmr.msra.gmra.mxu0 %v10204_v34  ;;  %5709 = vmatpush1.msra.mxu1 %v10009_v41  ;;  %v10936_v41 = vld [vmem:[#allocation62_spill] sm:$0xff] }
 0x775   : > { %5774 = vmatpush1.msra.mxu0 %v5532_v50  ;;  %5710 = vmatprep.subr.mxu1 %v10013_v40  ;;  %v10939_v40 = vld [vmem:[#allocation33_spill] sm:$0xff]  ;;  %v10979_v50 = vld [vmem:[#allocation10_spill] sm:$0xff] }
 0x776   : > { %5775 = vmatprep.subr.mxu0 %v5534_v63  ;;  %5711 = vmatpush1.msra.mxu1 %v10005_v11  ;;  %v10935_v11 = vld [vmem:[#allocation54_spill] sm:$0xff] }
 0x777   : > { %5776 = vmatpush1.msra.mxu0 %v10167_v25  ;;  %5712 = vmatprep.subr.mxu1 %v10015_v57  ;;  %v10940_v57 = vld [vmem:[#allocation34_spill] sm:$0xff]  ;;  %v10946_v25 = vld [vmem:[#allocation53_spill] sm:$0xff] }
 0x778   : > { %5777 = vmatprep.subr.mxu0 %v5463_v62  ;;  %5713 = vmatpush1.msra.mxu1 %v10007_v21  ;;  %v5473_v21 = vpop.f32.mrf.mxu0  ;;  %v5552_v63 = vld [vmem:[%s10443_s6 + $0x18] sm:$0xff]  ;;  %v6054_v62 = vld [vmem:[%s10446_s9 + $0x60] sm:$0xff] }
 0x779   : > { %5778 = vmatpush1.msra.mxu0 %v5459_v54  ;;  %5714 = vmatprep.subr.mxu1 %v10011_v31  ;;  %v10937_v31 = vld [vmem:[#allocation15_spill] sm:$0xff] }
 0x77a   : > { %5779 = vmatprep.subr.mxu0 %v5461_v14  ;;  %5715 = vmatpush1.msra.mxu1 %v10003_v17  ;;  %v10938_v17 = vld [vmem:[#allocation16_spill] sm:$0xff]  ;;  %v10981_v54 = vld [vmem:[#allocation19_spill] sm:$0xff]  ;;  %v6056_v14 = vld [vmem:[%s10446_s9 + $0x70] sm:$0xff] }
 0x77b   : > { %5780 = vmatpush1.msra.mxu0 %v5457_v38  ;;  %5862 = vmatprep.subr.mxu1 %v5546_v28  ;;  %v10980_v38 = vld [vmem:[#allocation7_spill] sm:$0xff]  ;;  %v6048_v28 = vld [vmem:[%s10446_s9 + $0x30] sm:$0xff] }
 0x77c   : > { %5781 = vmatprep.subr.mxu0 %v10933_v0  ;;  %5749 = vmatmul.mubr.f32.vlgmr.msra.gmra.mxu1 %v10204_v34  ;;  %v6046_v0 = vld [vmem:[%s10446_s9 + $0x20] sm:$0xff] }
 0x77d   : > { %5782 = vmatpush1.msra.mxu0 %v10934_v5  ;;  %5863 = vmatpush1.msra.mxu1 %v5542_v12  ;;  %v6052_v12 = vld [vmem:[%s10446_s9 + $0x50] sm:$0xff]  ;;  %v6045_v5 = vld [vmem:[%s10446_s9 + $0x18] sm:$0xff] }
 0x77e   : > { %5783 = vmatprep.subr.mxu0 %v10935_v11  ;;  %5864 = vmatprep.subr.mxu1 %v5544_v13  ;;  %v6050_v13 = vld [vmem:[%s10446_s9 + $0x40] sm:$0xff]  ;;  %v6044_v11 = vld [vmem:[%s10446_s9 + $0x10] sm:$0xff] }
 0x77f   : > { %5784 = vmatpush1.msra.mxu0 %v10936_v41  ;;  %5865 = vmatpush1.msra.mxu1 %v5540_v44  ;;  %v6055_v44 = vld [vmem:[%s10446_s9 + $0x68] sm:$0xff]  ;;  %v6042_v41 = vld [vmem:[%s10446_s9] sm:$0xff] }
 0x780   : > { %5785 = vmatprep.subr.mxu0 %v10937_v31  ;;  %5866 = vmatprep.subr.mxu1 %v5473_v21  ;;  %v6043_v21 = vld [vmem:[%s10446_s9 + $0x8] sm:$0xff] }
 0x781   : > { %5786 = vmatpush1.msra.mxu0 %v10938_v17  ;;  %5867 = vmatpush1.msra.mxu1 %v5469_v20  ;;  %v6049_v20 = vld [vmem:[%s10446_s9 + $0x38] sm:$0xff] }
 0x782   : > { %5787 = vmatprep.subr.mxu0 %v10939_v40  ;;  %5868 = vmatprep.subr.mxu1 %v5471_v32  ;;  %v6047_v32 = vld [vmem:[%s10446_s9 + $0x28] sm:$0xff] }
 0x783   : > { %5788 = vmatpush1.msra.mxu0 %v10940_v57  ;;  %5869 = vmatpush1.msra.mxu1 %v5467_v6  ;;  %v6051_v6 = vld [vmem:[%s10446_s9 + $0x48] sm:$0xff] }
 0x784   : > { %5789 = vmatprep.subr.mxu0 %v10941_v23  ;;  %5870 = vmatprep.subr.mxu1 %v10942_v16  ;;  %v5553_v23 = vld [vmem:[%s10445_s8] sm:$0xff] }
 0x785   : > { %5790 = vmatpush1.msra.mxu0 %v10943_v45  ;;  %5871 = vmatpush1.msra.mxu1 %v10944_v49  ;;  %v10982_v49 = vld [vmem:[#allocation27_spill] sm:$0xff] }
 0x786   : > { %5791 = vmatprep.subr.mxu0 %v10945_v47  ;;  %5872 = vmatprep.subr.mxu1 %v10946_v25  ;;  %v10983_v47 = vsub.s32 1, %v10982_v49 }
 0x787   : > { %5792 = vmatpush1.msra.mxu0 %v10947_v29  ;;  %5873 = vmatpush1.msra.mxu1 %v10948_v3 }
 0x788   : > { %5793 = vmatprep.subr.mxu0 %v10949_v18  ;;  %5874 = vmatprep.subr.mxu1 %v10950_v37  ;;  %v5562_v25 = vrot.slane %v5553_v23, %v10983_v47  ;;  %v10984_v37 = vsub.s32 0, %v10982_v49 }
 0x789   : > { %5794 = vmatpush1.msra.mxu0 %v10951_v27  ;;  %5875 = vmatpush1.msra.mxu1 %v10952_v42 }
 0x78a   : > { %5795 = vmatprep.subr.mxu0 %v10953_v53  ;;  %5876 = vmatprep.subr.mxu1 %v10954_v36  ;;  %v5558_v27 = vrot.slane %v5553_v23, %v10984_v37  ;;  %v5573_v53 = vsub.s32 4, %v10982_v49 }
 0x78b   : > { %5796 = vmatpush1.msra.mxu0 %v10955_v39  ;;  %5877 = vmatpush1.msra.mxu1 %v10956_v26  ;;  %v10985_v26 = vsub.s32 2, %v10982_v49 }
 0x78c   : > { %5797 = vmatprep.subr.mxu0 %v10957_v59  ;;  %5878 = vmatprep.subr.mxu1 %v10958_v19 }
 0x78d   : > { %5798 = vmatpush1.msra.mxu0 %v10959_v35  ;;  %5879 = vmatpush1.msra.mxu1 %v10960_v9  ;;  %v5566_v59 = vrot.slane %v5553_v23, %v10985_v26  ;;  %v10986_v9 = vsub.s32 3, %v10982_v49 }
 0x78e   : > { %5799 = vmatprep.subr.mxu0 %v10961_v7  ;;  %5880 = vmatprep.subr.mxu1 %v10962_v46 }
 0x78f   : > { %5800 = vmatpush1.msra.mxu0 %v10963_v43  ;;  %5881 = vmatpush1.msra.mxu1 %v10964_v30  ;;  %v5570_v7 = vrot.slane %v5553_v23, %v10986_v9  ;;  %v5577_v30 = vsub.s32 5, %v10982_v49 }
 0x790   : > { %5801 = vmatprep.subr.mxu0 %v10965_v55  ;;  %5882 = vmatprep.subr.mxu1 %v10966_v22  ;;  %v5581_v55 = vsub.s32 6, %v10982_v49 }
 0x791   : > { %5802 = vmatpush1.msra.mxu0 %v10967_v24  ;;  %5883 = vmatpush1.msra.mxu1 %v10968_v2 }
 0x792   : > { %5803 = vmatprep.subr.mxu0 %v10969_v48  ;;  %5884 = vmatprep.subr.mxu1 %v10970_v60  ;;  %v10371_v48 = vrot.slane %v5553_v23, %v5573_v53  ;;  %v5585_v60 = vsub.s32 7, %v10982_v49 }
 0x793   : > { %5804 = vmatpush1.msra.mxu0 %v10971_v51  ;;  %5885 = vmatpush1.msra.mxu1 %v10972_v8 }
 0x794   : > { %5886 = vmatprep.subr.mxu1 %v10973_v33  ;;  %5665 = vmatprep.mubr.f32.mxu0 %v10974_v15 }
 0x795   : > { %5887 = vmatpush1.msra.mxu1 %v10975_v56  ;;  %5666 = vmatmul.mubr.f32.gmra.mxu0 %v5550_v52 }
 0x796   : > { %5888 = vmatprep.subr.mxu1 %v10976_v58  ;;  %5754 = vmatprep.mubr.f32.mxu1 %v10974_v15 }
 0x797   : > { %5889 = vmatpush1.msra.mxu1 %v10977_v10  ;;  %5671 = vmatprep.mubr.f32.mxu0 %v10974_v15 }
 0x798   : > { %5890 = vmatprep.subr.mxu1 %v10978_v1  ;;  %5755 = vmatmul.mubr.f32.gmra.mxu1 %v5550_v52 }
 0x799   : > { %5891 = vmatpush1.msra.mxu1 %v10979_v50  ;;  %5672 = vmatmul.mubr.f32.gmra.mxu0 %v5551_v61 }
 0x79a   : > { %5892 = vmatprep.subr.mxu1 %v10980_v38  ;;  %5760 = vmatprep.mubr.f32.mxu1 %v10974_v15 }
 0x79b   : > { %5893 = vmatpush1.msra.mxu1 %v10981_v54  ;;  %5677 = vmatprep.mubr.f32.mxu0 %v10974_v15 }
 0x79c   : > { %5761 = vmatmul.mubr.f32.gmra.mxu1 %v5551_v61  ;;  %6890 = vmatprep.subr.mxu0 %v10974_v15 }
 0x79d   : > { %5678 = vmatmul.mubr.f32.gmra.mxu0 %v5552_v63  ;;  %5766 = vmatprep.mubr.f32.mxu1 %v10974_v15 }
 0x79e   : > { %5837 = vmatprep.mubr.f32.mxu0 %v10974_v15 }
 0x7a0   : > { %5767 = vmatmul.mubr.f32.gmra.mxu1 %v5552_v63 }
 0x7a1   : > { %5838 = vmatmul.mubr.f32.vlgmr.msra.gmra.mxu0 %v10204_v34  ;;  %5926 = vmatprep.mubr.f32.mxu1 %v10974_v15 }
 0x7a2   : > { %5843 = vmatprep.mubr.f32.mxu0 %v10974_v15  ;;  %6891 = vmatpush3.msra.mxu0 %v6057_v4 }
 0x7a3   : > { %6892 = vmatprep.subr.mxu0 %v10974_v15 }
 0x7a4   : > { %5927 = vmatmul.mubr.f32.vlgmr.msra.gmra.mxu1 %v10204_v34  ;;  %6893 = vmatpush3.msra.mxu0 %v6056_v14  ;;  %v6053_v34 = vld [vmem:[%s10446_s9 + $0x58] sm:$0xff] }
 0x7a5   : > { %5844 = vmatmul.mubr.f32.gmra.mxu0 %v5550_v52  ;;  %5932 = vmatprep.mubr.f32.mxu1 %v10974_v15 }
 0x7a6   : > { %5849 = vmatprep.mubr.f32.mxu0 %v10974_v15  ;;  %6894 = vmatprep.subr.mxu0 %v10974_v15 }
 0x7a7   : > { %6895 = vmatpush3.msra.mxu0 %v6055_v44 }
 0x7a8   : > { %5933 = vmatmul.mubr.f32.gmra.mxu1 %v5550_v52  ;;  %6896 = vmatprep.subr.mxu0 %v10974_v15 }
 0x7a9   : > { %5850 = vmatmul.mubr.f32.gmra.mxu0 %v5551_v61  ;;  %5938 = vmatprep.mubr.f32.mxu1 %v10974_v15 }
 0x7aa   : > { %5855 = vmatprep.mubr.f32.mxu0 %v10974_v15  ;;  %6897 = vmatpush3.msra.mxu0 %v6054_v62 }
 0x7ab   : > { %6898 = vmatprep.subr.mxu0 %v10974_v15 }
 0x7ac   : > { %5939 = vmatmul.mubr.f32.gmra.mxu1 %v5551_v61  ;;  %6899 = vmatpush3.msra.mxu0 %v6053_v34 }
 0x7ad   : > { %5856 = vmatmul.mubr.f32.gmra.mxu0 %v5552_v63  ;;  %5944 = vmatprep.mubr.f32.mxu1 %v10974_v15 }
 0x7ae   : > { %6900 = vmatprep.subr.mxu0 %v10974_v15  ;;  %6922 = vmatprep.mubr.msk.f32.mxu0 %vm7131_vm4, %v10974_v15 }
 0x7af   : > { %6901 = vmatpush3.msra.mxu0 %v6052_v12 }
 0x7b0   : > { %5945 = vmatmul.mubr.f32.gmra.mxu1 %v5552_v63  ;;  %6902 = vmatprep.subr.mxu0 %v10974_v15 }
 0x7b1   : > { %6903 = vmatpush3.msra.mxu0 %v6051_v6 }
 0x7b2   : > { %6904 = vmatprep.subr.mxu0 %v10974_v15 }
 0x7b3   : > { %6905 = vmatpush3.msra.mxu0 %v6050_v13 }
 0x7b4   : > { %6906 = vmatprep.subr.mxu0 %v10974_v15 }
 0x7b5   : > { %6907 = vmatpush3.msra.mxu0 %v6049_v20 }
 0x7b6   : > { %6908 = vmatprep.subr.mxu0 %v10974_v15 }
 0x7b7   : > { %6909 = vmatpush3.msra.mxu0 %v6048_v28  ;;  %v5578_v28 = vrot.slane %v5553_v23, %v5577_v30 }
 0x7b8   : > { %6910 = vmatprep.subr.mxu0 %v10974_v15 }
 0x7b9   : > { %6911 = vmatpush3.msra.mxu0 %v6047_v32 }
 0x7ba   : > { %6912 = vmatprep.subr.mxu0 %v10974_v15 }
 0x7bb   : > { %6913 = vmatpush3.msra.mxu0 %v6046_v0 }
 0x7bc   : > { %6914 = vmatprep.subr.mxu0 %v10974_v15 }
 0x7bd   : > { %6915 = vmatpush3.msra.mxu0 %v6045_v5 }
 0x7be   : > { %6916 = vmatprep.subr.mxu0 %v10974_v15 }
 0x7bf   : > { %6917 = vmatpush3.msra.mxu0 %v6044_v11  ;;  %v10374_v11 = vrot.slane %v5553_v23, %v5581_v55 }
 0x7c0   : > { %6918 = vmatprep.subr.mxu0 %v10974_v15 }
 0x7c1   : > { %6919 = vmatpush3.msra.mxu0 %v6043_v21 }
 0x7c2   : > { %6920 = vmatprep.subr.mxu0 %v10974_v15 }
 0x7c3   : > { %6921 = vmatpush3.msra.mxu0 %v6042_v41  ;;  %v10376_v41 = vrot.slane %v5553_v23, %v5585_v60 }
 0x834   : > { %v5661_v31 = vpop.f32.mrf.mxu0 }
 0x835   : > { %v5662_v22 = vadd.f32 %v5661_v31, %v5558_v27 }
 0x836   : > { %v5663_v40 = vpop.f32.mrf.mxu0 }
 0x837   : > { %v5664_v36 = vadd.f32 %v5663_v40, %v5562_v25  ;;  %v5951_v31 = vmax.f32 %v5662_v22, 0.0 }
 0x839   : > { %v5952_v52 = vmax.f32 %v5664_v36, 0.0 }
 0x83c   : > { %v5750_v17 = vpop.f32.mrf.mxu1 }
 0x83d   : > { %v5751_v56 = vadd.f32 %v5750_v17, %v5566_v59 }
 0x83e   : > { %v5752_v57 = vpop.f32.mrf.mxu1 }
 0x83f   : > { %v5753_v6 = vadd.f32 %v5752_v57, %v5570_v7  ;;  %v5953_v49 = vmax.f32 %v5751_v56, 0.0 }
 0x855   : > { %v5667_v16 = vpop.f32.mrf.mxu0 }
 0x856   : > { %v5668_v50 = vadd.f32 %v5667_v16, %v5558_v27 }
 0x857   : > { %v5669_v45 = vpop.f32.mrf.mxu0 }
 0x858   : > { %v5756_v29 = vpop.f32.mrf.mxu1  ;;  %v5670_v46 = vadd.f32 %v5669_v45, %v5562_v25  ;;  %v5959_v17 = vmax.f32 %v5668_v50, 0.0 }
 0x859   : > { %v5673_v3 = vpop.f32.mrf.mxu0  ;;  %v5757_v58 = vadd.f32 %v5756_v29, %v5566_v59 }
 0x85a   : > { %v5758_v18 = vpop.f32.mrf.mxu1  ;;  %v5674_v51 = vadd.f32 %v5673_v3, %v5558_v27  ;;  %v5960_v38 = vmax.f32 %v5670_v46, 0.0  ;;  %v5954_v3 = vmax.f32 %v5753_v6, 0.0  ;;  %v5983_v26 = vmax.f32 %v5951_v31, %v5959_v17 }
 0x85b   : > { %v5675_v42 = vpop.f32.mrf.mxu0  ;;  %v5759_v14 = vadd.f32 %v5758_v18, %v5570_v7  ;;  %v5961_v0 = vmax.f32 %v5757_v58, 0.0 }
 0x85c   : > { %v5762_v39 = vpop.f32.mrf.mxu1  ;;  %v5676_v19 = vadd.f32 %v5675_v42, %v5562_v25  ;;  %v5967_v13 = vmax.f32 %v5674_v51, 0.0  ;;  %v5984_v47 = vmax.f32 %v5952_v52, %v5960_v38 }
 0x85d   : > { %v5679_v35 = vpop.f32.mrf.mxu0  ;;  %v5763_v24 = vadd.f32 %v5762_v39, %v5566_v59  ;;  %v5985_v42 = vmax.f32 %v5953_v49, %v5961_v0 }
 0x85e   : > { %v5764_v43 = vpop.f32.mrf.mxu1  ;;  %v5680_v8 = vadd.f32 %v5679_v35, %v5558_v27  ;;  %v5968_v61 = vmax.f32 %v5676_v19, 0.0 }
 0x85f   : > { %v5681_v2 = vpop.f32.mrf.mxu0  ;;  %v5765_v63 = vadd.f32 %v5764_v43, %v5570_v7  ;;  %v5969_v44 = vmax.f32 %v5763_v24, 0.0 }
 0x860   : > { %v5682_v33 = vadd.f32 %v5681_v2, %v5562_v25  ;;  %v5768_v15 = vpop.f32.mrf.mxu1  ;;  %v5975_v20 = vmax.f32 %v5680_v8, 0.0  ;;  %v5962_v25 = vmax.f32 %v5759_v14, 0.0 }
 0x861   : > { %v5769_v10 = vadd.f32 %v5768_v15, %v5566_v59  ;;  %v5839_v1 = vpop.f32.mrf.mxu0  ;;  %v5970_v40 = vmax.f32 %v5765_v63, 0.0 }
 0x862   : > { %v5976_v54 = vmax.f32 %v5682_v33, 0.0  ;;  %v5770_v4 = vpop.f32.mrf.mxu1  ;;  %v5991_v18 = vmax.f32 %v5967_v13, %v5975_v20  ;;  %v5840_v37 = vadd.f32 %v5839_v1, %v10371_v48 }
 0x863   : > { %v5977_v62 = vmax.f32 %v5769_v10, 0.0  ;;  %v5771_v34 = vadd.f32 %v5770_v4, %v5570_v7  ;;  %v5841_v12 = vpop.f32.mrf.mxu0  ;;  %v5986_v7 = vmax.f32 %v5954_v3, %v5962_v25 }
 0x864   : > { %v5928_v32 = vpop.f32.mrf.mxu1  ;;  %v5992_v5 = vmax.f32 %v5968_v61, %v5976_v54  ;;  %v5842_v23 = vadd.f32 %v5841_v12, %v5578_v28  ;;  %v5999_v55 = vmax.f32 %v5983_v26, %v5991_v18  ;;  %v5955_v22 = vmax.f32 %v5840_v37, 0.0 }
 0x865   : > { %v5845_v21 = vpop.f32.mrf.mxu0  ;;  %v5978_v16 = vmax.f32 %v5771_v34, 0.0  ;;  %v5993_v57 = vmax.f32 %v5969_v44, %v5977_v62  ;;  %v5929_v36 = vadd.f32 %v5928_v32, %v10374_v11 }
 0x866   : > { %v5930_v45 = vpop.f32.mrf.mxu1  ;;  %v6000_v53 = vmax.f32 %v5984_v47, %v5992_v5  ;;  %v5846_v19 = vadd.f32 %v5845_v21, %v10371_v48  ;;  %v5956_v51 = vmax.f32 %v5842_v23, 0.0 }
 0x867   : > { %v5847_v29 = vpop.f32.mrf.mxu0  ;;  %v5994_v59 = vmax.f32 %v5970_v40, %v5978_v16  ;;  %v6001_v46 = vmax.f32 %v5985_v42, %v5993_v57  ;;  %v5931_v43 = vadd.f32 %v5930_v45, %v10376_v41  ;;  %v5957_v8 = vmax.f32 %v5929_v36, 0.0 }
 0x868   : > { %v5934_v27 = vpop.f32.mrf.mxu1  ;;  %v5848_v24 = vadd.f32 %v5847_v29, %v5578_v28  ;;  %v6008_v52 = vrot.slane %v6000_v53, 7  ;;  %v5963_v58 = vmax.f32 %v5846_v19, 0.0 }
 0x869   : > { %v5851_v39 = vpop.f32.mrf.mxu0  ;;  %v5935_v33 = vadd.f32 %v5934_v27, %v10374_v11  ;;  %v6002_v56 = vmax.f32 %v5986_v7, %v5994_v59  ;;  %v6011_v50 = vrot.slane %v6001_v46, 6  ;;  %v5958_v38 = vmax.f32 %v5931_v43, 0.0  ;;  %v6553_v7 = vld [vmem:[%s10447_s10] ss:$0 sm:$0xff] }
 0x86a   : > { %v5852_v35 = vadd.f32 %v5851_v39, %v10371_v48  ;;  %v5936_v9 = vpop.f32.mrf.mxu1  ;;  %v5964_v14 = vmax.f32 %v5848_v24, 0.0  ;;  %v6029_v6 = vsel %vm6028_vm5, %v5999_v55, %v6008_v52  ;;  %v5987_v0 = vmax.f32 %v5955_v22, %v5963_v58 }
 0x86b   : > { %v5853_v30 = vpop.f32.mrf.mxu0  ;;  %v5937_v63 = vadd.f32 %v5936_v9, %v10376_v41  ;;  %v5965_v13 = vmax.f32 %v5935_v33, 0.0  ;;  %v6014_v32 = vrot.slane %v6002_v56, 5 }
 0x86c   : > { %v5854_v2 = vadd.f32 %v5853_v30, %v5578_v28  ;;  %v5940_v60 = vpop.f32.mrf.mxu1  ;;  %v5971_v61 = vmax.f32 %v5852_v35, 0.0  ;;  %v5988_v49 = vmax.f32 %v5956_v51, %v5964_v14 }
 0x86d   : > { %v5857_v15 = vpop.f32.mrf.mxu0  ;;  %v5941_v54 = vadd.f32 %v5940_v60, %v10374_v11  ;;  %v5966_v17 = vmax.f32 %v5937_v63, 0.0  ;;  %v5989_v57 = vmax.f32 %v5957_v8, %v5965_v13 }
 0x86e   : > { %v5858_v10 = vadd.f32 %v5857_v15, %v10371_v48  ;;  %v5942_v1 = vpop.f32.mrf.mxu1  ;;  %v5972_v44 = vmax.f32 %v5854_v2, 0.0 }
 0x86f   : > { %v5859_v4 = vpop.f32.mrf.mxu0  ;;  %v5943_v20 = vadd.f32 %v5942_v1, %v10376_v41  ;;  %v5973_v40 = vmax.f32 %v5941_v54, 0.0  ;;  %v5990_v42 = vmax.f32 %v5958_v38, %v5966_v17 }
 0x870   : > { %v5979_v62 = vmax.f32 %v5858_v10, 0.0  ;;  %v5860_v34 = vadd.f32 %v5859_v4, %v5578_v28  ;;  %v5946_v12 = vpop.f32.mrf.mxu1  ;;  %v6031_v28 = vsel %vm6030_vm6, %v6029_v6, %v6011_v50 }
 0x871   : > { %v5947_v48 = vadd.f32 %v5946_v12, %v10374_v11  ;;  %v5974_v29 = vmax.f32 %v5943_v20, 0.0  ;;  %v6033_v27 = vsel %vm6032_vm7, %v6031_v28, %v6014_v32 }
 0x872   : > { %v5995_v5 = vmax.f32 %v5971_v61, %v5979_v62  ;;  %v5980_v21 = vmax.f32 %v5860_v34, 0.0  ;;  %v5948_v31 = vpop.f32.mrf.mxu1 }
 0x873   : > { %v5981_v16 = vmax.f32 %v5947_v48, 0.0  ;;  %v5949_v45 = vadd.f32 %v5948_v31, %v10376_v41 }
 0x874   : > { %v6003_v47 = vmax.f32 %v5987_v0, %v5995_v5  ;;  %v5996_v25 = vmax.f32 %v5972_v44, %v5980_v21 }
 0x875   : > { %v5997_v3 = vmax.f32 %v5973_v40, %v5981_v16  ;;  %v5982_v18 = vmax.f32 %v5949_v45, 0.0 }
 0x876   : > { %v6017_v11 = vrot.slane %v6003_v47, 4  ;;  %v6004_v37 = vmax.f32 %v5988_v49, %v5996_v25 }
 0x877   : > { %v6005_v53 = vmax.f32 %v5989_v57, %v5997_v3  ;;  %v5998_v23 = vmax.f32 %v5974_v29, %v5982_v18 }
 0x878   : > { %v6035_v41 = vsel %vm6034_vm8, %v6033_v27, %v6017_v11  ;;  %v6020_v36 = vrot.slane %v6004_v37, 3 }
 0x879   : > { %v6023_v39 = vrot.slane %v6005_v53, 2  ;;  %v6006_v26 = vmax.f32 %v5990_v42, %v5998_v23 }
 0x87a   : > { %v6037_v59 = vsel %vm6036_vm9, %v6035_v41, %v6020_v36 }
 0x87b   : > { %v6039_v19 = vsel %vm6038_vm10, %v6037_v59, %v6023_v39  ;;  %v6026_v35 = vrot.slane %v6006_v26, 1 }
 0x87d   : > { %v6041_v9 = vsel %vm6040_vm11, %v6039_v19, %v6026_v35 }
 0x87e   : > { %6923 = vmatmul.mubr.f32.vlgmr.msra.gmra.mxu0 %v6041_v9 }
 0x93e   : > { %v6131_v46 = vpop.f32.mrf.mxu0 }
 0x93f   : > { %v6132_v43 = vadd.f32 %v6553_v7, %v6131_v46 }
 0x940   : > { %v6924_v30 = vpop.f32.mrf.mxu0 }
 0x941   : > { %6135 = vst [vmem:[%s380_s12] sm:$0xff] %v6132_v43 }
 0x942   : > { %7079 = shalt.err (!%p7076_p3)
}
 0x943   : > { %s7080_s29 = scalar_lea.hbm %s10402_s15, 128  ;;  %s7084_s12 = scalar_lea.hbm %s10448_s11, 256 }
 0x944   : > { %p7081_p4 = scmp.ne.s32.totalorder %s10402_s15, %s7080_s29  ;;  %p7085_p9 = scmp.lt.s32.totalorder %s10402_s15, %s10448_s11 }
 0x945   : > { %p7086_p10 = scmp.lt.s32.totalorder %s7084_s12, %s7080_s29 }
 0x946   : > { %p7082_p7 = pnand %p7081_p4, %p7231_p5 }
 0x947   : > { %p7087_p11 = por %p7086_p10, %p7085_p9 }
 0x948   : > { %p7083_p8 = pneg %p7082_p7 }
 0x94a   : > { %p7088_p12 = pnand %p7087_p11, %p7083_p8 }
 0x94c   : > { %7091 = shalt.err (!%p7088_p12)
}
 0x94d   : > { %6925 = dma.vmem_to_hbm [thread:$0]  (%p7231_p5), %s6151_s13, 128, %s10402_s15, %s6137_s0  }
 0x94e PF: > { %p6931_p13 = scmp.ge.s32.totalorder %s7126_s20, 2  ;;  %s6162_s1 = sand.u32 1, %s7114_s17  }
 0x94f   : > { %s6163_s30 = scalar_lea.sflag [#allocation3], %s6162_s1 }
 0x950   : > { %p6928_p0 = pnand %p6931_p13, %p7235_p6 }
 0x952   : > { %p6929_p1 = pneg %p6928_p0 }
 0x954   : > { %7109 = dma.done.wait (%p6929_p1), %s6163_s30, 128  }
 0x955   : > { %7111 = vsyncadd (%p6929_p1), %s6163_s30, 4294967168  ;;  %p21_p2 = scmp.ge.s32.totalorder %s7218_s23, 4   ;;  %s10987_s17 = smov %s7118_s18 }
 0x956   : > { %s10988_s18 = smov %s7122_s19  ;;  %s10989_s19 = smov %s7229_s26 }
 0x957   : > { %s10990_s20 = smov %s7218_s23  ;;  %23 = sbr.rel (!%p21_p2) target bundleno = 6 (0x6), region = 99 }
 0x95c   :  { %6168 = vsyncpa [#allocation3], 1 }
 0x95d   :  { %6170 = vsyncpa [#allocation3 + $0x1], 1 }

</bundles_post_ra>
